<compile_context>
chip_gen: v5e
topology: v5e:2x2
jax: 0.10.0
libtpu: 0.0.40
codegen_flags: <defaults>
</compile_context>

<pallas_src>
import functools

import numpy as np
import jax
import jax.numpy as jnp
from jax import lax
from jax.experimental import pallas as pl
from jax.experimental.pallas import tpu as pltpu

# ---- fixed dims implied by the module ------------------------------------
FEAT_DIM = 9216          # backbone flatten dim (256 * 6 * 6)
PROJ_DIM = 4560          # embedding / proj dim
PROJ_PAD = 4608          # 4560 padded to 36*128 (lane-aligned, splittable)
NUM_CLS = 230            # space groups
NUM_HKL = 3              # embedding vocab size

NJ = 2                   # PROJ_PAD chunks (leading parallel grid axis)
CHUNK = PROJ_PAD // NJ   # 2304  (divisible by 128)
TK = 1152                # contraction tile over 9216 (9216 / 1152 = 8 steps)
NK = FEAT_DIM // TK


# ---------------------------------------------------------------------------
# Pallas kernel: fused  proj_linear (bf16 weight stream, f32 acc)
#                        -> * sigmoid(h+k+l) position gate
# Output is fx = proj(x) * pos;  the tiny cls GEMM runs in XLA afterwards.
# Grid: (j over PROJ chunks [parallel], kk over K tiles [arbitrary/reduction])
# ---------------------------------------------------------------------------
def _proj_gate_kernel(feat_ref, wproj_ref, bproj_ref, pos_ref,
                      fx_ref, acc_ref):
    kk = pl.program_id(1)

    @pl.when(kk == 0)
    def _():
        acc_ref[...] = jnp.zeros_like(acc_ref)

    # partial matmul over the 9216 contraction dim: (B, TK) @ (TK, CHUNK)
    acc_ref[...] += jnp.dot(feat_ref[...], wproj_ref[...],
                            preferred_element_type=jnp.float32)

    @pl.when(kk == pl.num_programs(1) - 1)
    def _():
        proj = acc_ref[...] + bproj_ref[...]          # (B, CHUNK) f32
        fx_ref[...] = (proj * pos_ref[...]).astype(fx_ref.dtype)


def proj_gate(feat_bf16, w_proj_bf16, b_proj_pad, pos_pad):
    """feat_bf16: [B, 9216] bf16; w_proj_bf16: [9216, 4608] bf16;
    b_proj_pad: [1, 4608] f32; pos_pad: [B, 4608] f32 -> fx [B, 4608] f32."""
    B = feat_bf16.shape[0]
    return pl.pallas_call(
        _proj_gate_kernel,
        out_shape=jax.ShapeDtypeStruct((B, PROJ_PAD), jnp.float32),
        grid_spec=pltpu.PrefetchScalarGridSpec(
            num_scalar_prefetch=0,
            grid=(NJ, NK),
            in_specs=[
                pl.BlockSpec((B, TK), lambda j, kk: (0, kk)),        # feat
                pl.BlockSpec((TK, CHUNK), lambda j, kk: (kk, j)),    # w_proj
                pl.BlockSpec((1, CHUNK), lambda j, kk: (0, j)),      # b_proj
                pl.BlockSpec((B, CHUNK), lambda j, kk: (0, j)),      # pos gate
            ],
            out_specs=pl.BlockSpec((B, CHUNK), lambda j, kk: (0, j)),
            scratch_shapes=[pltpu.VMEM((B, CHUNK), jnp.float32)],
        ),
        compiler_params=pltpu.CompilerParams(
            dimension_semantics=("parallel", "arbitrary"),
            vmem_limit_bytes=48 << 20,   # actual footprint ~11 MiB; <64 MiB (v7x)
        ),
    )(feat_bf16, w_proj_bf16, b_proj_pad, pos_pad)


# ---------------------------------------------------------------------------
# Minimal backbone stand-in (plain JAX glue), NHWC conv + matrix adaptive pool
# ---------------------------------------------------------------------------
def _adaptive_pool_matrix(in_size, out_size):
    """P[h, i] so that (x @ P) averages over torch AdaptiveAvgPool2d bins."""
    P = np.zeros((in_size, out_size), dtype=np.float32)
    for i in range(out_size):
        s = (i * in_size) // out_size
        e = -(-((i + 1) * in_size) // out_size)
        P[s:e, i] = 1.0 / (e - s)
    return jnp.asarray(P)


def backbone_features(x, conv_w, conv_b):
    # x: [B, C, H, W] NCHW (matches PyTorch input); compute in NHWC on TPU.
    xh = jnp.transpose(x, (0, 2, 3, 1))
    y = lax.conv_general_dilated(
        xh, conv_w, window_strides=(1, 1), padding="SAME",
        dimension_numbers=("NHWC", "HWIO", "NHWC"))
    y = jnp.maximum(y + conv_b[None, None, None, :], 0.0)     # [B, H, W, 256]
    Ph = _adaptive_pool_matrix(y.shape[1], 6)
    Pw = _adaptive_pool_matrix(y.shape[2], 6)
    y = jnp.einsum('bhwc,hi,wj->bijc', y, Ph, Pw)             # [B, 6, 6, 256]
    y = jnp.transpose(y, (0, 3, 1, 2))                        # [B, 256, 6, 6]
    return y.reshape(y.shape[0], -1)                          # [B, 9216]


# ---------------------------------------------------------------------------
# Full forward: mirrors HKL_model.forward
# ---------------------------------------------------------------------------
@jax.jit
def hkl_model_forward(params, x, h, k, l):
    feat = backbone_features(x, params["conv_w"], params["conv_b"])
    feat = feat.astype(jnp.bfloat16)                 # stream activations bf16

    h_emb = jnp.take(params["emb_h"], h, axis=0)     # [B, 4560]
    k_emb = jnp.take(params["emb_k"], k, axis=0)
    l_emb = jnp.take(params["emb_l"], l, axis=0)

    pos = jax.nn.sigmoid(h_emb + k_emb + l_emb)      # [B, 4560]
    pos_pad = jnp.pad(pos, ((0, 0), (0, PROJ_PAD - PROJ_DIM)))

    fx_pad = proj_gate(feat, params["w_proj"], params["b_proj"], pos_pad)
    fx = fx_pad[:, :PROJ_DIM]                        # [B, 4560]

    # Tiny cls GEMM (4560 x 230) kept in XLA — keeps w_cls out of the
    # pipelined VMEM budget of the weight-streaming kernel.
    logits = fx @ params["w_cls"] + params["b_cls"]  # [B, 230]
    return logits, h_emb, k_emb, l_emb


def init_params(key):
    ks = jax.random.split(key, 8)
    s = 0.02
    # proj_linear stored [in, out] = [9216, 4560] (x @ W + b == torch x @ W.T + b),
    # padded to [9216, 4608] and cast to bf16 for HBM-bandwidth streaming.
    w_proj = s * jax.random.normal(ks[4], (FEAT_DIM, PROJ_DIM), jnp.float32)
    w_proj = jnp.pad(w_proj, ((0, 0), (0, PROJ_PAD - PROJ_DIM))).astype(jnp.bfloat16)
    b_proj = s * jax.random.normal(ks[5], (1, PROJ_DIM), jnp.float32)
    b_proj = jnp.pad(b_proj, ((0, 0), (0, PROJ_PAD - PROJ_DIM)))
    return {
        # backbone stand-in: Conv2d(in=4, out=256, 3x3), weights in HWIO
        "conv_w": s * jax.random.normal(ks[0], (3, 3, 4, 256), jnp.float32),
        "conv_b": jnp.zeros((256,), jnp.float32),
        # embeddings (3, 4560)
        "emb_h": s * jax.random.normal(ks[1], (NUM_HKL, PROJ_DIM), jnp.float32),
        "emb_k": s * jax.random.normal(ks[2], (NUM_HKL, PROJ_DIM), jnp.float32),
        "emb_l": s * jax.random.normal(ks[3], (NUM_HKL, PROJ_DIM), jnp.float32),
        "w_proj": w_proj,                 # [9216, 4608] bf16 (zero-padded cols)
        "b_proj": b_proj,                 # [1, 4608] f32
        # cls: stored [in, out] = [4560, 230]
        "w_cls": s * jax.random.normal(ks[6], (PROJ_DIM, NUM_CLS), jnp.float32),
        "b_cls": s * jax.random.normal(ks[7], (1, NUM_CLS), jnp.float32),
    }


# Pure-JAX reference of the head (same bf16 weights) for a sanity check.
def _head_reference(params, feat_bf16, pos):
    w = params["w_proj"].astype(jnp.float32)[:, :PROJ_DIM]
    b = params["b_proj"][:, :PROJ_DIM]
    proj = feat_bf16.astype(jnp.float32) @ w + b
    fx = proj * pos
    return fx @ params["w_cls"] + params["b_cls"]


if __name__ == "__main__":
    key = jax.random.PRNGKey(0)
    kx, kh, kk_, kl, kp = jax.random.split(key, 5)

    B, C, H, W = 2, 4, 16, 16
    x = jax.random.normal(kx, (B, C, H, W), jnp.float32)
    h = jax.random.randint(kh, (B,), 0, NUM_HKL, jnp.int32)
    k = jax.random.randint(kk_, (B,), 0, NUM_HKL, jnp.int32)
    l = jax.random.randint(kl, (B,), 0, NUM_HKL, jnp.int32)

    params = init_params(kp)

    logits, h_emb, k_emb, l_emb = hkl_model_forward(params, x, h, k, l)
    jax.block_until_ready((logits, h_emb, k_emb, l_emb))

    assert logits.shape == (B, NUM_CLS)
    assert h_emb.shape == (B, PROJ_DIM)
    assert k_emb.shape == (B, PROJ_DIM)
    assert l_emb.shape == (B, PROJ_DIM)

    # numerical sanity check vs. pure-JAX reference on the same bf16 weights
    feat = backbone_features(x, params["conv_w"], params["conv_b"]).astype(jnp.bfloat16)
    pos = jax.nn.sigmoid(h_emb + k_emb + l_emb)
    logits_ref = _head_reference(params, feat, pos)
    assert jnp.allclose(logits, logits_ref, rtol=1e-2, atol=1e-2), (
        float(jnp.max(jnp.abs(logits - logits_ref))))

    print("KERNEL_OK")
</pallas_src>

<mosaic_0001>
module attributes {stable_mosaic.version = 11 : i64} {
  func.func @_proj_gate_kernel(%arg0: i32, %arg1: i32, %arg2: memref<2x1152xbf16, #tpu.memory_space<vmem>>, %arg3: memref<1152x2304xbf16, #tpu.memory_space<vmem>>, %arg4: memref<1x2304xf32, #tpu.memory_space<vmem>>, %arg5: memref<2x2304xf32, #tpu.memory_space<vmem>>, %arg6: memref<2x2304xf32, #tpu.memory_space<vmem>>, %arg7: memref<2x2304xf32, #tpu.memory_space<vmem>>) attributes {dimension_semantics = [#tpu.dimension_semantics<parallel>, #tpu.dimension_semantics<arbitrary>], iteration_bounds = array<i64: 2, 8>, scalar_prefetch = 0 : i64, scratch_operands = 1 : i64, tpu.core_type = #tpu.core_type<tc>, window_params = [{transform_indices = @transform_0, window_bounds = array<i64: 2, 1152>}, {transform_indices = @transform_1, window_bounds = array<i64: 1152, 2304>}, {transform_indices = @transform_2, window_bounds = array<i64: 1, 2304>}, {transform_indices = @transform_3, window_bounds = array<i64: 2, 2304>}, {transform_indices = @transform_4, window_bounds = array<i64: 2, 2304>}]} {
    %c0_i32 = arith.constant 0 : i32
    %0 = arith.cmpi eq, %arg1, %c0_i32 : i32
    %1 = arith.extui %0 : i1 to i32
    %c0_i32_0 = arith.constant 0 : i32
    %2 = arith.cmpi ne, %1, %c0_i32_0 : i32
    scf.if %2 {
      %cst_9 = arith.constant 0.000000e+00 : f32
      %12 = vector.broadcast %cst_9 : f32 to vector<2x2304xf32>
      %c0_10 = arith.constant 0 : index
      %c0_11 = arith.constant 0 : index
      %13 = vector.load %arg7[%c0_10, %c0_11] : memref<2x2304xf32, #tpu.memory_space<vmem>>, vector<2x2304xf32>
      tpu.vector_store %arg7[%c0_10, %c0_11], %12 {strides = array<i32>} : memref<2x2304xf32, #tpu.memory_space<vmem>>, vector<2x2304xf32>,
    } else {
    }
    %c0 = arith.constant 0 : index
    %c0_1 = arith.constant 0 : index
    %3 = vector.load %arg7[%c0, %c0_1] : memref<2x2304xf32, #tpu.memory_space<vmem>>, vector<2x2304xf32>
    %c0_2 = arith.constant 0 : index
    %c0_3 = arith.constant 0 : index
    %4 = vector.load %arg2[%c0_2, %c0_3] : memref<2x1152xbf16, #tpu.memory_space<vmem>>, vector<2x1152xbf16>
    %c0_4 = arith.constant 0 : index
    %c0_5 = arith.constant 0 : index
    %5 = vector.load %arg3[%c0_4, %c0_5] : memref<1152x2304xbf16, #tpu.memory_space<vmem>>, vector<1152x2304xbf16>
    %cst = arith.constant dense<0.000000e+00> : vector<2x2304xf32>
    %6 = tpu.matmul %4, %5, %cst {dimension_numbers = #tpu.dot_dimension_numbers<[1], [0], [0], [1], [0, 0, 1, 1], [], []>} : vector<2x1152xbf16>, vector<1152x2304xbf16>, vector<2x2304xf32> -> vector<2x2304xf32>
    %7 = arith.addf %3, %6 : vector<2x2304xf32>
    %c0_6 = arith.constant 0 : index
    %c0_7 = arith.constant 0 : index
    %8 = vector.load %arg7[%c0_6, %c0_7] : memref<2x2304xf32, #tpu.memory_space<vmem>>, vector<2x2304xf32>
    tpu.vector_store %arg7[%c0_6, %c0_7], %7 {strides = array<i32>} : memref<2x2304xf32, #tpu.memory_space<vmem>>, vector<2x2304xf32>,
    %c7_i32 = arith.constant 7 : i32
    %9 = arith.cmpi eq, %arg1, %c7_i32 : i32
    %10 = arith.extui %9 : i1 to i32
    %c0_i32_8 = arith.constant 0 : i32
    %11 = arith.cmpi ne, %10, %c0_i32_8 : i32
    scf.if %11 {
      %c0_9 = arith.constant 0 : index
      %c0_10 = arith.constant 0 : index
      %12 = vector.load %arg7[%c0_9, %c0_10] : memref<2x2304xf32, #tpu.memory_space<vmem>>, vector<2x2304xf32>
      %c0_11 = arith.constant 0 : index
      %c0_12 = arith.constant 0 : index
      %13 = vector.load %arg4[%c0_11, %c0_12] : memref<1x2304xf32, #tpu.memory_space<vmem>>, vector<1x2304xf32>
      %14 = vector.broadcast %13 : vector<1x2304xf32> to vector<2x2304xf32>
      %15 = arith.addf %12, %14 : vector<2x2304xf32>
      %c0_13 = arith.constant 0 : index
      %c0_14 = arith.constant 0 : index
      %16 = vector.load %arg5[%c0_13, %c0_14] : memref<2x2304xf32, #tpu.memory_space<vmem>>, vector<2x2304xf32>
      %17 = arith.mulf %15, %16 : vector<2x2304xf32>
      %c0_15 = arith.constant 0 : index
      %c0_16 = arith.constant 0 : index
      %18 = vector.load %arg6[%c0_15, %c0_16] : memref<2x2304xf32, #tpu.memory_space<vmem>>, vector<2x2304xf32>
      tpu.vector_store %arg6[%c0_15, %c0_16], %17 {strides = array<i32>} : memref<2x2304xf32, #tpu.memory_space<vmem>>, vector<2x2304xf32>,
    } else {
    }
    return
  }
  func.func @transform_0(%arg0: i32, %arg1: i32) -> (i32, i32) {
    %c0_i32 = arith.constant 0 : i32
    %c0_i32_0 = arith.constant 0 : i32
    return %c0_i32, %arg1 : i32, i32
  }
  func.func @transform_1(%arg0: i32, %arg1: i32) -> (i32, i32) {
    %c0_i32 = arith.constant 0 : i32
    return %arg1, %arg0 : i32, i32
  }
  func.func @transform_2(%arg0: i32, %arg1: i32) -> (i32, i32) {
    %c0_i32 = arith.constant 0 : i32
    %c0_i32_0 = arith.constant 0 : i32
    return %c0_i32, %arg0 : i32, i32
  }
  func.func @transform_3(%arg0: i32, %arg1: i32) -> (i32, i32) {
    %c0_i32 = arith.constant 0 : i32
    %c0_i32_0 = arith.constant 0 : i32
    return %c0_i32, %arg0 : i32, i32
  }
  func.func @transform_4(%arg0: i32, %arg1: i32) -> (i32, i32) {
    %c0_i32 = arith.constant 0 : i32
    %c0_i32_0 = arith.constant 0 : i32
    return %c0_i32, %arg0 : i32, i32
  }
}

</mosaic_0001>

<bundles_post_ra>
// kernel: hkl_model_forward.1
= control target key start
LH: loop header
LB: loop body
LE: loop exit
PB: predicated region body
PF: predicated region fallthrough
CT: control target
= control target key end

     0   :  { %9 = vsyncpa [#allocation4], 0  ;;  %s20322_s0 = inlined_call_operand.vmem [shape: bf16[2,9216], index: 0, kind: input, shape index: {}]   ;;  %s20323_s1 = inlined_call_operand.hbm [shape: bf16[9216,4608], index: 1, kind: input, shape index: {}]   ;;  %s20324_s2 = inlined_call_operand.vmem [shape: f32[1,4608], index: 2, kind: input, shape index: {}]   ;;  %s20325_s3 = inlined_call_operand.vmem [shape: f32[2,4608], index: 3, kind: input, shape index: {}]   ;;  %s20326_s4 = inlined_call_operand.vmem [shape: f32[2,4608], index: 4, kind: output, shape index: {}]  }
   0x1   :  { %11 = vsyncpa [#allocation4 + $0x1], 0  ;;  %s17184_s15 = smov 0   ;;  %s17186_s16 = smov 0  }
   0x2   :  { %s17188_s17 = smov 0   ;;  %s17190_s18 = smov 0  }
   0x3   :  { %s17192_s19 = smov 0   ;;  %s17194_s20 = smov 0  }
   0x4   :  { %s17196_s21 = smov 0   ;;  %s17198_s22 = smov 0  }
   0x5 LB: > { %s10478_s23 = sadd.s32 4294967295, %s17153_s22   ;;  %s26_s24 = sadd.s32 1, %s17145_s20  ;;  %s17153_s22 = sphi %s17198_s22, %s17_s22   ;;  %s17149_s21 = sphi %s17196_s21, %s20341_s21   ;;  %s17145_s20 = sphi %s17194_s20, %s20340_s20   ;;  %s17141_s19 = sphi %s17192_s19, %s20339_s19   ;;  %s17137_s18 = sphi %s17190_s18, %s20338_s18   ;;  %s17133_s17 = sphi %s17188_s17, %s20337_s17   ;;  %s17129_s16 = sphi %s17186_s16, %s20336_s16   ;;  %s17125_s15 = sphi %s17184_s15, %s20335_s15  }
   0x6   : > { %p27_p0 = scmp.ge.s32.totalorder %s26_s24, 8  ;;  %s29_s25 = sadd.s32 1, %s17149_s21 }
   0x7   : > { %s64_s26 = sadd.s32 1, %s17133_s17  ;;  %p71_p1 = scmp.ne.s32.totalorder %s17133_s17, %s17129_s16 }
   0x8   : > { %s20343_s24 = smov (%p27_p0, %s26_s24), 0  ;;  %s20345_s25 = smov (!%p27_p0, %s29_s25), %s17149_s21 }
   0x9   : > { %20329 = sst [smem:[#allocation6_spill]] %s20343_s24  ;;  %s59_s27 = ssub.s32 %s17145_s20, %s20343_s24 }
   0xa   : > { %p72_p2 = scmp.eq.s32.totalorder %s17153_s22, 0  ;;  %p31_p3 = scmp.ge.s32.totalorder %s20345_s25, 2 }
   0xb   : > { %p77_p4 = scmp.ne.s32.totalorder %s17129_s16, %s17125_s15  ;;  %p78_p6 = scmp.eq.s32.totalorder %s10478_s23, 0 }
   0xc   : > { %p73_p5 = por %p72_p2, %p71_p1  ;;  %s20347_s25 = smov (%p31_p3, %s20345_s25), 0 }
   0xd   : > { %20330 = sst [smem:[#allocation7_spill]] %s20347_s25  ;;  %p17237_p7 = por %p78_p6, %p77_p4 }
   0xe   : > { %s60_s29 = ssub.s32 %s17149_s21, %s20347_s25  ;;  %p16979_p8 = scmp.lt.s32.totalorder %s17153_s22, 16 }
   0xf   : > { %s61_s30 = sor.u32 %s60_s29, %s59_s27  ;;  %s187_s5 = sand.u32 1, %s17133_s17  }
  0x10   : > { %p62_p9 = scmp.eq.s32.totalorder %s61_s30, 0  ;;  %s16970_s6 = smul.u32 10368, %s187_s5 }
  0x11   : > { %p17245_p10 = pnand %p16979_p8, %p73_p5  ;;  %s193_s9 = smul.u32 18, %s17149_s21 }
  0x12   : > { %s17250_s8 = scalar_select %p62_p9, %s17133_s17, %s64_s26  }
  0x13   : > { %s191_s10 = scalar_lea.vmem [#allocation3], %s16970_s6  ;;  %s16980_s12 = smul.u32 5184, %s17145_s20 }
  0x14   : > { %s202_s11 = sshll.u32 %s191_s10, 4  ;;  %p10483_p11 = scmp.ge.s32.totalorder %s17153_s22, 1  ;;  %s203_s11 = int_to_ptr.vmem [resolvable:$true] %s202_s11 }
  0x15   : > { %s197_s13 = sadd.s32 %s16980_s12, %s193_s9  ;;  %p227_p12 = scmp.lt.s32.totalorder %s17153_s22, 17 }
  0x16   : > { %s10482_s14 = sshll.u32 %s197_s13, 2  ;;  %s188_s30 = scalar_lea.sflag [#allocation4], %s187_s5 }
  0x17   : > { %s199_s27 = scalar_lea.hbm %s20323_s1, %s10482_s14  ;;  %s17155_s25 = smov 2304  }
  0x18   : > { %s200_s29 = sshll.u32 %s199_s27, 4  ;;  %s17156_s26 = smov 1152   ;;  %s201_s29 = int_to_ptr.hbm [resolvable:$true] %s200_s29 }
  0x19   : > { %s17157_s24 = smov 72   ;;  %p228_p13 = pnand %p10483_p11, %p227_p12 }
  0x1a   : > { %16978 = dma.hbm_to_vmem [thread:$0]  (!%p17245_p10), %s201_s29, 165888, %s203_s11, %s188_s30, %s17155_s25, %s17156_s26, %s17157_s24  }
  0x1b   : > { %231 = sbr.rel (%p228_p13) target bundleno = 1518 (0x5ee), region = 36  ;;  %s233_s6 = sand.u32 (!%p228_p13), 1, %s17129_s16  }
  0x1c   : > { %s16972_s9 = smul.u32 (!%p228_p13), 10368, %s233_s6  ;;  %s234_s10 = scalar_lea.sflag (!%p228_p13), [#allocation4], %s233_s6 }
  0x1e   : > { %s17262_s12 = scalar_lea.vmem (!%p228_p13), [#allocation3], %s16972_s9 }
  0x20   : > { %17120 = dma.done.wait (%p17237_p7), %s234_s10, 165888  }
  0x21   : > { %17122 = vsyncadd (%p17237_p7), %s234_s10, 4294801408  ;;  %s276_s5 = smul.u32 9, %s17137_s18  ;;  %p10486_p2 = scmp.ne.s32.totalorder %s17137_s18, 0 }
  0x22   : > { %s283_s13 = smul.u32 18, %s17141_s19 }
  0x23   : > { %p277_p0 = scmp.lt.s32.totalorder %s276_s5, 71 }
  0x24   : > { %p284_p1 = scmp.lt.s32.totalorder %s283_s13, 35  ;;  %303 = sbr.rel (%p10486_p2) target bundleno = 47 (0x2f), region = 44 }
  0x25   : > { %s20349_s5 = smov (!%p277_p0, %s276_s5), 71 }
  0x26   : > { %s20351_s13 = smov (!%p284_p1, %s283_s13), 35  ;;  %s17273_s7 = scalar_lea.vmem %s20322_s0, %s20349_s5 }
  0x27   : > { %s17278_s15 = scalar_lea.vmem %s20324_s2, %s20351_s13  ;;  %s10484_s28 = sshll.u32 %s20351_s13, 1 }
  0x28   : > { %s17283_s29 = scalar_lea.vmem %s20325_s3, %s10484_s28  ;;  %s17288_s26 = scalar_lea.vmem %s20326_s4, %s10484_s28 }
  0x29   : > { %v17158_v0 = vmov 0.0  }
  0x2a   : > { %304 = vst [vmem:[#allocation2] sm:$0xff] %v17158_v0 }
  0x2b   : > { %305 = vst [vmem:[#allocation2 + $0x8] sm:$0xff] %v17158_v0 }
  0x2c   : > { %306 = vst [vmem:[#allocation2 + $0x10] sm:$0xff] %v17158_v0 }
  0x2d   : > { %307 = vst [vmem:[#allocation2 + $0x18] sm:$0xff] %v17158_v0 }
  0x2e   : > { %308 = vst [vmem:[#allocation2 + $0x20] sm:$0xf] %v17158_v0 }
  0x2f PF: > { %v10993_v1 = vld [vmem:[%s17262_s12 + $0x3f0] sm:$0xf]  ;;  %v15809_v2 = vld [vmem:[%s17262_s12 + $0x434] sm:$0xf0]  ;;  %v10921_v12 = vld [vmem:[%s17262_s12 + $0x360] sm:$0xf] }
  0x30   : > { %v11569_v3 = vld [vmem:[%s17262_s12 + $0x870] sm:$0xf]  ;;  %v10994_v4 = vor.u32 %v15809_v2, %v10993_v1  ;;  %v15953_v5 = vld [vmem:[%s17262_s12 + $0x8b4] sm:$0xf0]  ;;  %v15791_v14 = vld [vmem:[%s17262_s12 + $0x3a4] sm:$0xf0] }
  0x31   : > { %v12145_v6 = vld [vmem:[%s17262_s12 + $0xcf0] sm:$0xf]  ;;  %v16097_v7 = vld [vmem:[%s17262_s12 + $0xd34] sm:$0xf0]  ;;  %v11570_v8 = vor.u32 %v15953_v5, %v11569_v3  ;;  %v11497_v15 = vld [vmem:[%s17262_s12 + $0x7e0] sm:$0xf]  ;;  %v10922_v17 = vor.u32 %v15791_v14, %v10921_v12 }
  0x32   : > { %v12146_v9 = vor.u32 %v16097_v7, %v12145_v6  ;;  %v12721_v10 = vld [vmem:[%s17262_s12 + $0x1170] sm:$0xf]  ;;  %v16241_v11 = vld [vmem:[%s17262_s12 + $0x11b4] sm:$0xf0]  ;;  %8114 = vmatpush.bf16.msra.mxu0 %v10994_v4  ;;  %v15935_v16 = vld [vmem:[%s17262_s12 + $0x824] sm:$0xf0] }
  0x33   : > { %v12722_v13 = vor.u32 %v16241_v11, %v12721_v10  ;;  %8127 = vmatpush.bf16.msra.mxu1 %v11570_v8  ;;  %v11498_v18 = vor.u32 %v15935_v16, %v11497_v15  ;;  %v12073_v19 = vld [vmem:[%s17262_s12 + $0xc60] sm:$0xf]  ;;  %v16079_v20 = vld [vmem:[%s17262_s12 + $0xca4] sm:$0xf0]  ;;  %v10849_v24 = vld [vmem:[%s17262_s12 + $0x2d0] sm:$0xf] }
  0x34   : > { %8140 = vmatpush.bf16.msra.mxu2 %v12146_v9  ;;  %v12649_v21 = vld [vmem:[%s17262_s12 + $0x10e0] sm:$0xf]  ;;  %v12074_v22 = vor.u32 %v16079_v20, %v12073_v19  ;;  %v16223_v23 = vld [vmem:[%s17262_s12 + $0x1124] sm:$0xf0]  ;;  %v15773_v25 = vld [vmem:[%s17262_s12 + $0x314] sm:$0xf0] }
  0x35   : > { %8153 = vmatpush.bf16.msra.mxu3 %v12722_v13  ;;  %v12650_v26 = vor.u32 %v16223_v23, %v12649_v21  ;;  %v11425_v27 = vld [vmem:[%s17262_s12 + $0x750] sm:$0xf]  ;;  %v15917_v28 = vld [vmem:[%s17262_s12 + $0x794] sm:$0xf0]  ;;  %v10850_v30 = vor.u32 %v15773_v25, %v10849_v24  ;;  %v10777_v36 = vld [vmem:[%s17262_s12 + $0x240] sm:$0xf] }
  0x36   : > { %v12001_v29 = vld [vmem:[%s17262_s12 + $0xbd0] sm:$0xf]  ;;  %8115 = vmatpush.bf16.msra.mxu0 %v10922_v17  ;;  %v16061_v31 = vld [vmem:[%s17262_s12 + $0xc14] sm:$0xf0]  ;;  %v11426_v34 = vor.u32 %v15917_v28, %v11425_v27  ;;  %v15755_v37 = vld [vmem:[%s17262_s12 + $0x284] sm:$0xf0] }
  0x37   : > { %v12577_v32 = vld [vmem:[%s17262_s12 + $0x1050] sm:$0xf]  ;;  %v16205_v33 = vld [vmem:[%s17262_s12 + $0x1094] sm:$0xf0]  ;;  %8128 = vmatpush.bf16.msra.mxu1 %v11498_v18  ;;  %v12002_v35 = vor.u32 %v16061_v31, %v12001_v29  ;;  %v11353_v38 = vld [vmem:[%s17262_s12 + $0x6c0] sm:$0xf]  ;;  %v10778_v45 = vor.u32 %v15755_v37, %v10777_v36 }
  0x38   : > { %8141 = vmatpush.bf16.msra.mxu2 %v12074_v22  ;;  %v12578_v39 = vor.u32 %v16205_v33, %v12577_v32  ;;  %v15899_v40 = vld [vmem:[%s17262_s12 + $0x704] sm:$0xf0]  ;;  %v11929_v41 = vld [vmem:[%s17262_s12 + $0xb40] sm:$0xf]  ;;  %v10705_v48 = vld [vmem:[%s17262_s12 + $0x1b0] sm:$0xf] }
  0x39   : > { %8154 = vmatpush.bf16.msra.mxu3 %v12650_v26  ;;  %v16043_v42 = vld [vmem:[%s17262_s12 + $0xb84] sm:$0xf0]  ;;  %v12505_v43 = vld [vmem:[%s17262_s12 + $0xfc0] sm:$0xf]  ;;  %v11354_v46 = vor.u32 %v15899_v40, %v11353_v38  ;;  %v15737_v49 = vld [vmem:[%s17262_s12 + $0x1f4] sm:$0xf0] }
  0x3a   : > { %v16187_v44 = vld [vmem:[%s17262_s12 + $0x1004] sm:$0xf0]  ;;  %8116 = vmatpush.bf16.msra.mxu0 %v10850_v30  ;;  %v11930_v47 = vor.u32 %v16043_v42, %v11929_v41  ;;  %v11281_v50 = vld [vmem:[%s17262_s12 + $0x630] sm:$0xf]  ;;  %v15881_v52 = vld [vmem:[%s17262_s12 + $0x674] sm:$0xf0]  ;;  %v10706_v57 = vor.u32 %v15737_v49, %v10705_v48 }
  0x3b   : > { %8129 = vmatpush.bf16.msra.mxu1 %v11426_v34  ;;  %v12506_v51 = vor.u32 %v16187_v44, %v12505_v43  ;;  %v11857_v53 = vld [vmem:[%s17262_s12 + $0xab0] sm:$0xf]  ;;  %v16025_v54 = vld [vmem:[%s17262_s12 + $0xaf4] sm:$0xf0]  ;;  %v11282_v58 = vor.u32 %v15881_v52, %v11281_v50  ;;  %v10633_v60 = vld [vmem:[%s17262_s12 + $0x120] sm:$0xf] }
  0x3c   : > { %8142 = vmatpush.bf16.msra.mxu2 %v12002_v35  ;;  %v12433_v55 = vld [vmem:[%s17262_s12 + $0xf30] sm:$0xf]  ;;  %v16169_v56 = vld [vmem:[%s17262_s12 + $0xf74] sm:$0xf0]  ;;  %v11858_v59 = vor.u32 %v16025_v54, %v11857_v53  ;;  %v15719_v61 = vld [vmem:[%s17262_s12 + $0x164] sm:$0xf0] }
  0x3d   : > { %8155 = vmatpush.bf16.msra.mxu3 %v12578_v39  ;;  %v11209_v62 = vld [vmem:[%s17262_s12 + $0x5a0] sm:$0xf]  ;;  %v12434_v63 = vor.u32 %v16169_v56, %v12433_v55  ;;  %v15863_v0 = vld [vmem:[%s17262_s12 + $0x5e4] sm:$0xf0]  ;;  %v10634_v5 = vor.u32 %v15719_v61, %v10633_v60  ;;  %v10561_v8 = vld [vmem:[%s17262_s12 + $0x90] sm:$0xf] }
  0x3e   : > { %8117 = vmatpush.bf16.msra.mxu0 %v10778_v45  ;;  %v11785_v1 = vld [vmem:[%s17262_s12 + $0xa20] sm:$0xf]  ;;  %v16007_v2 = vld [vmem:[%s17262_s12 + $0xa64] sm:$0xf0]  ;;  %v11210_v6 = vor.u32 %v15863_v0, %v11209_v62  ;;  %v15701_v9 = vld [vmem:[%s17262_s12 + $0xd4] sm:$0xf0] }
  0x3f   : > { %8130 = vmatpush.bf16.msra.mxu1 %v11354_v46  ;;  %v12361_v3 = vld [vmem:[%s17262_s12 + $0xea0] sm:$0xf]  ;;  %v16151_v4 = vld [vmem:[%s17262_s12 + $0xee4] sm:$0xf0]  ;;  %v11786_v7 = vor.u32 %v16007_v2, %v11785_v1  ;;  %v11137_v10 = vld [vmem:[%s17262_s12 + $0x510] sm:$0xf]  ;;  %v10562_v17 = vor.u32 %v15701_v9, %v10561_v8 }
  0x40   : > { %8143 = vmatpush.bf16.msra.mxu2 %v11930_v47  ;;  %v12362_v11 = vor.u32 %v16151_v4, %v12361_v3  ;;  %v15845_v12 = vld [vmem:[%s17262_s12 + $0x554] sm:$0xf0]  ;;  %v11713_v13 = vld [vmem:[%s17262_s12 + $0x990] sm:$0xf]  ;;  %v10489_v18 = vld [vmem:[%s17262_s12] sm:$0xf] }
  0x41   : > { %8156 = vmatpush.bf16.msra.mxu3 %v12506_v51  ;;  %v15989_v14 = vld [vmem:[%s17262_s12 + $0x9d4] sm:$0xf0]  ;;  %v12289_v15 = vld [vmem:[%s17262_s12 + $0xe10] sm:$0xf]  ;;  %v15683_v19 = vld [vmem:[%s17262_s12 + $0x44] sm:$0xf0]  ;;  %v11138_v20 = vor.u32 %v15845_v12, %v11137_v10 }
  0x42   : > { %8118 = vmatpush.bf16.msra.mxu0 %v10706_v57  ;;  %v16133_v16 = vld [vmem:[%s17262_s12 + $0xe54] sm:$0xf0]  ;;  %v11714_v21 = vor.u32 %v15989_v14, %v11713_v13  ;;  %v11065_v22 = vld [vmem:[%s17262_s12 + $0x480] sm:$0xf]  ;;  %v15827_v23 = vld [vmem:[%s17262_s12 + $0x4c4] sm:$0xf0]  ;;  %v10490_v32 = vor.u32 %v15683_v19, %v10489_v18 }
  0x43   : > { %8131 = vmatpush.bf16.msra.mxu1 %v11282_v58  ;;  %v11641_v24 = vld [vmem:[%s17262_s12 + $0x900] sm:$0xf]  ;;  %v12290_v25 = vor.u32 %v16133_v16, %v12289_v15  ;;  %v15971_v26 = vld [vmem:[%s17262_s12 + $0x944] sm:$0xf0]  ;;  %v13297_v27 = vld [vmem:[%s17262_s12 + $0x15f0] sm:$0xf]  ;;  %v11066_v36 = vor.u32 %v15827_v23, %v11065_v22 }
  0x44   : > { %8144 = vmatpush.bf16.msra.mxu2 %v11858_v59  ;;  %v16385_v28 = vld [vmem:[%s17262_s12 + $0x1634] sm:$0xf0]  ;;  %v13873_v29 = vld [vmem:[%s17262_s12 + $0x1a70] sm:$0xf]  ;;  %v12217_v34 = vld [vmem:[%s17262_s12 + $0xd80] sm:$0xf]  ;;  %v11642_v37 = vor.u32 %v15971_v26, %v11641_v24 }
  0x45   : > { %8157 = vmatpush.bf16.msra.mxu3 %v12434_v63  ;;  %v16529_v30 = vld [vmem:[%s17262_s12 + $0x1ab4] sm:$0xf0]  ;;  %v14449_v31 = vld [vmem:[%s17262_s12 + $0x1ef0] sm:$0xf]  ;;  %v16115_v35 = vld [vmem:[%s17262_s12 + $0xdc4] sm:$0xf0]  ;;  %v13298_v40 = vor.u32 %v16385_v28, %v13297_v27 }
  0x46   : > { %8119 = vmatpush.bf16.msra.mxu0 %v10634_v5  ;;  %v16673_v33 = vld [vmem:[%s17262_s12 + $0x1f34] sm:$0xf0]  ;;  %v15025_v38 = vld [vmem:[%s17262_s12 + $0x2370] sm:$0xf]  ;;  %v13874_v41 = vor.u32 %v16529_v30, %v13873_v29  ;;  %v13225_v42 = vld [vmem:[%s17262_s12 + $0x1560] sm:$0xf]  ;;  %v12218_v44 = vor.u32 %v16115_v35, %v12217_v34 }
  0x47   : > { %8132 = vmatpush.bf16.msra.mxu1 %v11210_v6  ;;  %v16817_v39 = vld [vmem:[%s17262_s12 + $0x23b4] sm:$0xf0]  ;;  %v14450_v43 = vor.u32 %v16673_v33, %v14449_v31  ;;  %v16367_v45 = vld [vmem:[%s17262_s12 + $0x15a4] sm:$0xf0]  ;;  %v13801_v46 = vld [vmem:[%s17262_s12 + $0x19e0] sm:$0xf] }
  0x48   : > { %8145 = vmatpush.bf16.msra.mxu2 %v11786_v7  ;;  %v16511_v47 = vld [vmem:[%s17262_s12 + $0x1a24] sm:$0xf0]  ;;  %v15026_v48 = vor.u32 %v16817_v39, %v15025_v38  ;;  %v14377_v49 = vld [vmem:[%s17262_s12 + $0x1e60] sm:$0xf]  ;;  %v13226_v53 = vor.u32 %v16367_v45, %v13225_v42  ;;  %v13153_v55 = vld [vmem:[%s17262_s12 + $0x14d0] sm:$0xf] }
  0x49   : > { %8158 = vmatpush.bf16.msra.mxu3 %v12362_v11  ;;  %v16655_v50 = vld [vmem:[%s17262_s12 + $0x1ea4] sm:$0xf0]  ;;  %v14953_v51 = vld [vmem:[%s17262_s12 + $0x22e0] sm:$0xf]  ;;  %v13802_v54 = vor.u32 %v16511_v47, %v13801_v46  ;;  %v16349_v56 = vld [vmem:[%s17262_s12 + $0x1514] sm:$0xf0] }
  0x4a   : > { %8120 = vmatpush.bf16.msra.mxu0 %v10562_v17  ;;  %v16799_v52 = vld [vmem:[%s17262_s12 + $0x2324] sm:$0xf0]  ;;  %v14378_v57 = vor.u32 %v16655_v50, %v14377_v49  ;;  %v13729_v58 = vld [vmem:[%s17262_s12 + $0x1950] sm:$0xf]  ;;  %v16493_v59 = vld [vmem:[%s17262_s12 + $0x1994] sm:$0xf0]  ;;  %v13154_v2 = vor.u32 %v16349_v56, %v13153_v55 }
  0x4b   : > { %8133 = vmatpush.bf16.msra.mxu1 %v11138_v20  ;;  %v314_v60 = vld [vmem:[%s17273_s7] sm:$0xff]  ;;  %v14954_v61 = vor.u32 %v16799_v52, %v14953_v51  ;;  %v16637_v63 = vld [vmem:[%s17262_s12 + $0x1e14] sm:$0xf0]  ;;  %v13730_v3 = vor.u32 %v16493_v59, %v13729_v58  ;;  %v13081_v4 = vld [vmem:[%s17262_s12 + $0x1440] sm:$0xf]  ;;  %vm10251_vm0 = vcmask 1041408  }
  0x4c   : > { %8146 = vmatpush.bf16.msra.mxu2 %v11714_v21  ;;  %v14305_v62 = vld [vmem:[%s17262_s12 + $0x1dd0] sm:$0xf]  ;;  %1613 = vst [vmem:[#allocation1] ss:$9 sm:$0xff] %v314_v60  ;;  %v16781_v1 = vld [vmem:[%s17262_s12 + $0x2294] sm:$0xf0] }
  0x4d   : > { %8159 = vmatpush.bf16.msra.mxu3 %v12290_v25  ;;  %v14881_v0 = vld [vmem:[%s17262_s12 + $0x2250] sm:$0xf]  ;;  %v14306_v5 = vor.u32 %v16637_v63, %v14305_v62  ;;  %v16331_v6 = vld [vmem:[%s17262_s12 + $0x1484] sm:$0xf0]  ;;  %v13657_v7 = vld [vmem:[%s17262_s12 + $0x18c0] sm:$0xf] }
  0x4e   : > { %8121 = vmatpush.bf16.msra.mxu0 %v10490_v32  ;;  %v16475_v8 = vld [vmem:[%s17262_s12 + $0x1904] sm:$0xf0]  ;;  %v14882_v9 = vor.u32 %v16781_v1, %v14881_v0  ;;  %v14233_v10 = vld [vmem:[%s17262_s12 + $0x1d40] sm:$0xf]  ;;  %v13009_v14 = vld [vmem:[%s17262_s12 + $0x13b0] sm:$0xf]  ;;  %v13082_v15 = vor.u32 %v16331_v6, %v13081_v4 }
  0x4f   : > { %8134 = vmatpush.bf16.msra.mxu1 %v11066_v36  ;;  %v16619_v11 = vld [vmem:[%s17262_s12 + $0x1d84] sm:$0xf0]  ;;  %v14809_v12 = vld [vmem:[%s17262_s12 + $0x21c0] sm:$0xf]  ;;  %v13658_v16 = vor.u32 %v16475_v8, %v13657_v7  ;;  %v16313_v17 = vld [vmem:[%s17262_s12 + $0x13f4] sm:$0xf0] }
  0x50   : > { %8147 = vmatpush.bf16.msra.mxu2 %v11642_v37  ;;  %v16763_v13 = vld [vmem:[%s17262_s12 + $0x2204] sm:$0xf0]  ;;  %v13585_v18 = vld [vmem:[%s17262_s12 + $0x1830] sm:$0xf]  ;;  %v16457_v19 = vld [vmem:[%s17262_s12 + $0x1874] sm:$0xf0]  ;;  %v14234_v20 = vor.u32 %v16619_v11, %v14233_v10  ;;  %v13010_v30 = vor.u32 %v16313_v17, %v13009_v14 }
  0x51   : > { %8160 = vmatpush.bf16.msra.mxu3 %v12218_v44  ;;  %v14810_v24 = vor.u32 %v16763_v13, %v14809_v12  ;;  %v14161_v25 = vld [vmem:[%s17262_s12 + $0x1cb0] sm:$0xf]  ;;  %v16601_v26 = vld [vmem:[%s17262_s12 + $0x1cf4] sm:$0xf0]  ;;  %v13586_v31 = vor.u32 %v16457_v19, %v13585_v18  ;;  %v12937_v32 = vld [vmem:[%s17262_s12 + $0x1320] sm:$0xf] }
  0x52   : > { %8166 = vmatpush.bf16.msrb.mxu0 %v13298_v40  ;;  %v14737_v28 = vld [vmem:[%s17262_s12 + $0x2130] sm:$0xf]  ;;  %v16745_v29 = vld [vmem:[%s17262_s12 + $0x2174] sm:$0xf0]  ;;  %v14162_v33 = vor.u32 %v16601_v26, %v14161_v25  ;;  %v16295_v34 = vld [vmem:[%s17262_s12 + $0x1364] sm:$0xf0] }
  0x53   : > { %8179 = vmatpush.bf16.msrb.mxu1 %v13874_v41  ;;  %v17392_v21 = vld [vmem:[#allocation1 + $0x12] sm:$0xff]  ;;  %v17394_v22 = vld [vmem:[#allocation1] sm:$0xff]  ;;  %v17401_v27 = vld [vmem:[#allocation1 + $0x9] sm:$0xff]  ;;  %v14738_v37 = vor.u32 %v16745_v29, %v14737_v28  ;;  %v12938_v42 = vor.u32 %v16295_v34, %v12937_v32  ;;  %vm10253_vm1 = vcmask 1045508   ;;  %vm10255_vm2 = vcmask 1043456   ;;  %p15671_p3 = scmp.ne.s32.totalorder %s17137_s18, 7 }
  0x54   : > { %8192 = vmatpush.bf16.msrb.mxu2 %v14450_v43  ;;  %v17396_v23 = vld [vmem:[#allocation1 + $0x1b] sm:$0xff]  ;;  %8122 = vmatmul.bf16.vlgmr.msra.gmra.mxu0 %v17394_v22  ;;  %v13513_v35 = vld [vmem:[%s17262_s12 + $0x17a0] sm:$0xf]  ;;  %v16439_v36 = vld [vmem:[%s17262_s12 + $0x17e4] sm:$0xf0] }
  0x55   : > { %8205 = vmatpush.bf16.msrb.mxu3 %v15026_v48  ;;  %8148 = vmatmul.bf16.vlgmr.msra.gmra.mxu2 %v17392_v21  ;;  %v14089_v38 = vld [vmem:[%s17262_s12 + $0x1c20] sm:$0xf]  ;;  %v16583_v39 = vld [vmem:[%s17262_s12 + $0x1c64] sm:$0xf0]  ;;  %v13514_v43 = vor.u32 %v16439_v36, %v13513_v35  ;;  %v12865_v44 = vld [vmem:[%s17262_s12 + $0x1290] sm:$0xf] }
  0x56   : > { %8167 = vmatpush.bf16.msrb.mxu0 %v13226_v53  ;;  %8161 = vmatmul.bf16.vlgmr.msra.gmra.mxu3 %v17396_v23  ;;  %v14665_v40 = vld [vmem:[%s17262_s12 + $0x20a0] sm:$0xf]  ;;  %v16727_v41 = vld [vmem:[%s17262_s12 + $0x20e4] sm:$0xf0]  ;;  %v14090_v45 = vor.u32 %v16583_v39, %v14089_v38  ;;  %v16277_v46 = vld [vmem:[%s17262_s12 + $0x12d4] sm:$0xf0] }
  0x57   : > { %8180 = vmatpush.bf16.msrb.mxu1 %v13802_v54  ;;  %v13441_v47 = vld [vmem:[%s17262_s12 + $0x1710] sm:$0xf]  ;;  %v16421_v48 = vld [vmem:[%s17262_s12 + $0x1754] sm:$0xf0]  ;;  %v14666_v49 = vor.u32 %v16727_v41, %v14665_v40  ;;  %v12866_v54 = vor.u32 %v16277_v46, %v12865_v44  ;;  %v12793_v56 = vld [vmem:[%s17262_s12 + $0x1200] sm:$0xf] }
  0x58   : > { %8193 = vmatpush.bf16.msrb.mxu2 %v14378_v57  ;;  %8135 = vmatmul.bf16.vlgmr.msra.gmra.mxu1 %v17401_v27  ;;  %v14017_v50 = vld [vmem:[%s17262_s12 + $0x1b90] sm:$0xf]  ;;  %v16565_v51 = vld [vmem:[%s17262_s12 + $0x1bd4] sm:$0xf0]  ;;  %v13442_v55 = vor.u32 %v16421_v48, %v13441_v47  ;;  %v16259_v57 = vld [vmem:[%s17262_s12 + $0x1244] sm:$0xf0] }
  0x59   : > { %8206 = vmatpush.bf16.msrb.mxu3 %v14954_v61  ;;  %v14593_v52 = vld [vmem:[%s17262_s12 + $0x2010] sm:$0xf]  ;;  %v16709_v53 = vld [vmem:[%s17262_s12 + $0x2054] sm:$0xf0]  ;;  %v13369_v58 = vld [vmem:[%s17262_s12 + $0x1680] sm:$0xf]  ;;  %v14018_v59 = vor.u32 %v16565_v51, %v14017_v50  ;;  %v12794_v6 = vor.u32 %v16259_v57, %v12793_v56 }
  0x5a   : > { %8168 = vmatpush.bf16.msrb.mxu0 %v13154_v2  ;;  %v16403_v60 = vld [vmem:[%s17262_s12 + $0x16c4] sm:$0xf0]  ;;  %v13945_v61 = vld [vmem:[%s17262_s12 + $0x1b00] sm:$0xf]  ;;  %v14594_v63 = vor.u32 %v16709_v53, %v14593_v52  ;;  %v15601_v0 = vld [vmem:[%s17262_s12 + $0x27f0] sm:$0xf] }
  0x5b   : > { %8181 = vmatpush.bf16.msrb.mxu1 %v13730_v3  ;;  %v16547_v62 = vld [vmem:[%s17262_s12 + $0x1b44] sm:$0xf0]  ;;  %v16961_v1 = vld [vmem:[%s17262_s12 + $0x2834] sm:$0xf0]  ;;  %v15800_v2 = vld [vmem:[%s17262_s12 + $0x3f4] sm:$0xf]  ;;  %v13370_v7 = vor.u32 %v16403_v60, %v13369_v58 }
  0x5c   : > { %8194 = vmatpush.bf16.msrb.mxu2 %v14306_v5  ;;  %v10995_v3 = vld [vmem:[%s17262_s12 + $0x438] sm:$0xf0]  ;;  %v15944_v4 = vld [vmem:[%s17262_s12 + $0x874] sm:$0xf]  ;;  %v14521_v8 = vld [vmem:[%s17262_s12 + $0x1f80] sm:$0xf]  ;;  %v13946_v10 = vor.u32 %v16547_v62, %v13945_v61  ;;  %v15602_v11 = vor.u32 %v16961_v1, %v15601_v0 }
  0x5d   : > { %8207 = vmatpush.bf16.msrb.mxu3 %v14882_v9  ;;  %v11571_v5 = vld [vmem:[%s17262_s12 + $0x8b8] sm:$0xf0]  ;;  %v16691_v9 = vld [vmem:[%s17262_s12 + $0x1fc4] sm:$0xf0]  ;;  %v16088_v12 = vld [vmem:[%s17262_s12 + $0xcf4] sm:$0xf]  ;;  %v10998_v14 = vor.u32 %v15800_v2, %v10995_v3 }
  0x5e   : > { %8169 = vmatpush.bf16.msrb.mxu0 %v13082_v15  ;;  %v12147_v13 = vld [vmem:[%s17262_s12 + $0xd38] sm:$0xf0]  ;;  %v11574_v15 = vor.u32 %v15944_v4, %v11571_v5  ;;  %v16943_v17 = vld [vmem:[%s17262_s12 + $0x27a4] sm:$0xf0]  ;;  %v15782_v18 = vld [vmem:[%s17262_s12 + $0x364] sm:$0xf]  ;;  %v14522_v19 = vor.u32 %v16691_v9, %v14521_v8 }
  0x5f   : > { %8182 = vmatpush.bf16.msrb.mxu1 %v13658_v16  ;;  %v15529_v16 = vld [vmem:[%s17262_s12 + $0x2760] sm:$0xf]  ;;  %v11499_v25 = vld [vmem:[%s17262_s12 + $0x828] sm:$0xf0]  ;;  %v12150_v26 = vor.u32 %v16088_v12, %v12147_v13  ;;  %v17448_v29 = vld [vmem:[#allocation1 + $0x24] sm:$0xff] }
  0x60   : > { %8195 = vmatpush.bf16.msrb.mxu2 %v14234_v20  ;;  %v10923_v20 = vld [vmem:[%s17262_s12 + $0x3a8] sm:$0xf0]  ;;  %v15457_v36 = vld [vmem:[%s17262_s12 + $0x26d0] sm:$0xf]  ;;  %v15764_v38 = vld [vmem:[%s17262_s12 + $0x2d4] sm:$0xf] }
  0x61   : > { %8208 = vmatpush.bf16.msrb.mxu3 %v14810_v24  ;;  %v15926_v24 = vld [vmem:[%s17262_s12 + $0x7e4] sm:$0xf]  ;;  %v17446_v28 = vld [vmem:[#allocation1 + $0x36] sm:$0xff]  ;;  %v10926_v34 = vor.u32 %v15782_v18, %v10923_v20  ;;  %v10851_v39 = vld [vmem:[%s17262_s12 + $0x318] sm:$0xf0] }
  0x62   : > { %8170 = vmatpush.bf16.msrb.mxu0 %v13010_v30  ;;  %v15530_v30 = vor.u32 %v16943_v17, %v15529_v16  ;;  %v12075_v32 = vld [vmem:[%s17262_s12 + $0xca8] sm:$0xf0]  ;;  %v11502_v35 = vor.u32 %v15926_v24, %v11499_v25  ;;  %v15908_v40 = vld [vmem:[%s17262_s12 + $0x754] sm:$0xf]  ;;  %v11427_v41 = vld [vmem:[%s17262_s12 + $0x798] sm:$0xf0]  ;;  %v10854_v47 = vor.u32 %v15764_v38, %v10851_v39 }
  0x63   : > { %8183 = vmatpush.bf16.msrb.mxu1 %v13586_v31  ;;  %v16070_v31 = vld [vmem:[%s17262_s12 + $0xc64] sm:$0xf]  ;;  %v12003_v46 = vld [vmem:[%s17262_s12 + $0xc18] sm:$0xf0]  ;;  %v11430_v48 = vor.u32 %v15908_v40, %v11427_v41  ;;  %v16907_v50 = vld [vmem:[%s17262_s12 + $0x2684] sm:$0xf0] }
  0x64   : > { %8196 = vmatpush.bf16.msrb.mxu2 %v14162_v33  ;;  %v17452_v33 = vld [vmem:[#allocation1 + $0x2d] sm:$0xff]  ;;  %v10779_v52 = vld [vmem:[%s17262_s12 + $0x288] sm:$0xf0]  ;;  %v315_v56 = vld [vmem:[%s17273_s7 + $0x8] sm:$0x1] }
  0x65   : > { %8209 = vmatpush.bf16.msrb.mxu3 %v14738_v37  ;;  %v16925_v37 = vld [vmem:[%s17262_s12 + $0x2714] sm:$0xf0]  ;;  %v15746_v51 = vld [vmem:[%s17262_s12 + $0x244] sm:$0xf]  ;;  %v15313_v62 = vld [vmem:[%s17262_s12 + $0x25b0] sm:$0xf] }
  0x66   : > { %8171 = vmatpush.bf16.msrb.mxu0 %v12938_v42  ;;  %v17462_v42 = vld [vmem:[#allocation1 + $0x3f] sm:$0xff]  ;;  %v15458_v44 = vor.u32 %v16925_v37, %v15457_v36  ;;  %v15890_v53 = vld [vmem:[%s17262_s12 + $0x6c4] sm:$0xf]  ;;  %v10782_v60 = vor.u32 %v15746_v51, %v10779_v52  ;;  %v10707_v1 = vld [vmem:[%s17262_s12 + $0x1f8] sm:$0xf0] }
  0x67   : > { %8184 = vmatpush.bf16.msrb.mxu1 %v13514_v43  ;;  %v12078_v43 = vor.u32 %v16070_v31, %v12075_v32  ;;  %v16034_v58 = vld [vmem:[%s17262_s12 + $0xb44] sm:$0xf]  ;;  %1623 = vst [vmem:[#allocation1] ss:$9 sm:$0xff] %v315_v56  ;;  %v15728_v0 = vld [vmem:[%s17262_s12 + $0x1b4] sm:$0xf] }
  0x68   : > { %8197 = vmatpush.bf16.msrb.mxu2 %v14090_v45  ;;  %v16052_v45 = vld [vmem:[%s17262_s12 + $0xbd4] sm:$0xf]  ;;  %v11283_v3 = vld [vmem:[%s17262_s12 + $0x678] sm:$0xf0]  ;;  %v10710_v8 = vor.u32 %v15728_v0, %v10707_v1  ;;  %v15710_v12 = vld [vmem:[%s17262_s12 + $0x124] sm:$0xf] }
  0x69   : > { %8210 = vmatpush.bf16.msrb.mxu3 %v14666_v49  ;;  %v15385_v49 = vld [vmem:[%s17262_s12 + $0x2640] sm:$0xf]  ;;  %v15872_v2 = vld [vmem:[%s17262_s12 + $0x634] sm:$0xf]  ;;  %v10635_v13 = vld [vmem:[%s17262_s12 + $0x168] sm:$0xf0] }
  0x6a   : > { %8172 = vmatpush.bf16.msrb.mxu0 %v12866_v54  ;;  %v11355_v54 = vld [vmem:[%s17262_s12 + $0x708] sm:$0xf0]  ;;  %v15386_v57 = vor.u32 %v16907_v50, %v15385_v49  ;;  %v11286_v9 = vor.u32 %v15872_v2, %v11283_v3  ;;  %v15998_v18 = vld [vmem:[%s17262_s12 + $0xa24] sm:$0xf]  ;;  %v10638_v20 = vor.u32 %v15710_v12, %v10635_v13  ;;  %v15169_v25 = vld [vmem:[%s17262_s12 + $0x2490] sm:$0xf] }
  0x6b   : > { %8185 = vmatpush.bf16.msrb.mxu1 %v13442_v55  ;;  %v12006_v55 = vor.u32 %v16052_v45, %v12003_v46  ;;  %v11358_v61 = vor.u32 %v15890_v53, %v11355_v54  ;;  %v10563_v31 = vld [vmem:[%s17262_s12 + $0xd8] sm:$0xf0]  ;;  %v15836_v32 = vld [vmem:[%s17262_s12 + $0x514] sm:$0xf]  ;;  %v15097_v39 = vld [vmem:[%s17262_s12 + $0x2400] sm:$0xf] }
  0x6c   : > { %8198 = vmatpush.bf16.msrb.mxu2 %v14018_v59  ;;  %v11931_v59 = vld [vmem:[%s17262_s12 + $0xb88] sm:$0xf0]  ;;  %v15980_v36 = vld [vmem:[%s17262_s12 + $0x994] sm:$0xf]  ;;  %v11715_v38 = vld [vmem:[%s17262_s12 + $0x9d8] sm:$0xf0] }
  0x6d   : > { %8211 = vmatpush.bf16.msrb.mxu3 %v14594_v63  ;;  %v16889_v63 = vld [vmem:[%s17262_s12 + $0x25f4] sm:$0xf0]  ;;  %v11934_v4 = vor.u32 %v16034_v58, %v11931_v59  ;;  %v16835_v40 = vld [vmem:[%s17262_s12 + $0x2444] sm:$0xf0]  ;;  %v10491_v45 = vld [vmem:[%s17262_s12 + $0x48] sm:$0xf0]  ;;  %v11718_v50 = vor.u32 %v15980_v36, %v11715_v38 }
  0x6e   : > { %8173 = vmatpush.bf16.msrb.mxu0 %v12794_v6  ;;  %v15314_v5 = vor.u32 %v16889_v63, %v15313_v62  ;;  %v16016_v6 = vld [vmem:[%s17262_s12 + $0xab4] sm:$0xf]  ;;  %v15818_v46 = vld [vmem:[%s17262_s12 + $0x484] sm:$0xf]  ;;  %v12723_v49 = vld [vmem:[%s17262_s12 + $0x11b8] sm:$0xf0]  ;;  %v15098_v54 = vor.u32 %v16835_v40, %v15097_v39 }
  0x6f   : > { %8186 = vmatpush.bf16.msrb.mxu1 %v13370_v7  ;;  %v11859_v7 = vld [vmem:[%s17262_s12 + $0xaf8] sm:$0xf0]  ;;  %v16376_v51 = vld [vmem:[%s17262_s12 + $0x15f4] sm:$0xf]  ;;  %v15962_v56 = vld [vmem:[%s17262_s12 + $0x904] sm:$0xf] }
  0x70   : > { %8199 = vmatpush.bf16.msrb.mxu2 %v13946_v10  ;;  %v15241_v10 = vld [vmem:[%s17262_s12 + $0x2520] sm:$0xf]  ;;  %v11862_v16 = vor.u32 %v16016_v6, %v11859_v7  ;;  %v13299_v52 = vld [vmem:[%s17262_s12 + $0x1638] sm:$0xf0]  ;;  %v16520_v53 = vld [vmem:[%s17262_s12 + $0x1a74] sm:$0xf] }
  0x71   : > { %8212 = vmatpush.bf16.msrb.mxu3 %v14522_v19  ;;  %8174 = vmatmul.bf16.vlgmr.msrb.gmra.mxu0 %v17448_v29  ;;  %v11787_v19 = vld [vmem:[%s17262_s12 + $0xa68] sm:$0xf0]  ;;  %v13302_v63 = vor.u32 %v16376_v51, %v13299_v52  ;;  %v16214_v0 = vld [vmem:[%s17262_s12 + $0x10e4] sm:$0xf]  ;;  %v16448_v52 = vld [vmem:[%s17262_s12 + $0x1834] sm:$0xf] }
  0x72   : > { %8218 = vmatpush.bf16.msra.mxu0 %v15602_v11  ;;  %8187 = vmatmul.bf16.vlgmr.msrb.gmra.mxu1 %v17452_v33  ;;  %v16871_v11 = vld [vmem:[%s17262_s12 + $0x2564] sm:$0xf0]  ;;  %v12651_v3 = vld [vmem:[%s17262_s12 + $0x1128] sm:$0xf0]  ;;  %v16502_v7 = vld [vmem:[%s17262_s12 + $0x19e4] sm:$0xf] }
  0x73   : > { %8231 = vmatpush.bf16.msra.mxu1 %v10998_v14  ;;  %8200 = vmatmul.bf16.vlgmr.msrb.gmra.mxu2 %v17446_v28  ;;  %v15854_v14 = vld [vmem:[%s17262_s12 + $0x5a4] sm:$0xf]  ;;  %v15242_v17 = vor.u32 %v16871_v11, %v15241_v10  ;;  %v14379_v11 = vld [vmem:[%s17262_s12 + $0x1ea8] sm:$0xf0]  ;;  %v12654_v12 = vor.u32 %v16214_v0, %v12651_v3 }
  0x74   : > { %8244 = vmatpush.bf16.msra.mxu2 %v11574_v15  ;;  %8213 = vmatmul.bf16.vlgmr.msrb.gmra.mxu3 %v17462_v42  ;;  %v11211_v15 = vld [vmem:[%s17262_s12 + $0x5e8] sm:$0xf0]  ;;  %v16646_v10 = vld [vmem:[%s17262_s12 + $0x1e64] sm:$0xf] }
  0x75   : > { %8257 = vmatpush.bf16.msra.mxu3 %v12150_v26  ;;  %v11214_v24 = vor.u32 %v15854_v14, %v11211_v15  ;;  %v16853_v26 = vld [vmem:[%s17262_s12 + $0x24d4] sm:$0xf0]  ;;  %v16196_v14 = vld [vmem:[%s17262_s12 + $0x1054] sm:$0xf]  ;;  %v16322_v36 = vld [vmem:[%s17262_s12 + $0x1444] sm:$0xf] }
  0x76   : > { %8219 = vmatpush.bf16.msra.mxu0 %v15530_v30  ;;  %v15692_v30 = vld [vmem:[%s17262_s12 + $0x94] sm:$0xf]  ;;  %v15170_v37 = vor.u32 %v16853_v26, %v15169_v25  ;;  %v14307_v26 = vld [vmem:[%s17262_s12 + $0x1e18] sm:$0xf0]  ;;  %v16466_v39 = vld [vmem:[%s17262_s12 + $0x18c4] sm:$0xf] }
  0x77   : > { %8232 = vmatpush.bf16.msra.mxu1 %v10926_v34  ;;  %v11139_v34 = vld [vmem:[%s17262_s12 + $0x558] sm:$0xf0]  ;;  %v10566_v41 = vor.u32 %v15692_v30, %v10563_v31  ;;  %v16628_v25 = vld [vmem:[%s17262_s12 + $0x1dd4] sm:$0xf]  ;;  %v13659_v40 = vld [vmem:[%s17262_s12 + $0x1908] sm:$0xf0] }
  0x78   : > { %8245 = vmatpush.bf16.msra.mxu2 %v11502_v35  ;;  %v11790_v35 = vor.u32 %v15998_v18, %v11787_v19  ;;  %v13155_v18 = vld [vmem:[%s17262_s12 + $0x1518] sm:$0xf0]  ;;  %v14382_v19 = vor.u32 %v16646_v10, %v14379_v11  ;;  %v14310_v38 = vor.u32 %v16628_v25, %v14307_v26  ;;  %v16430_v0 = vld [vmem:[%s17262_s12 + $0x17a4] sm:$0xf]  ;;  %v14091_v3 = vld [vmem:[%s17262_s12 + $0x1c68] sm:$0xf0] }
  0x79   : > { %8258 = vmatpush.bf16.msra.mxu3 %v12078_v43  ;;  %v11142_v43 = vor.u32 %v15836_v32, %v11139_v34  ;;  %v16178_v32 = vld [vmem:[%s17262_s12 + $0xfc4] sm:$0xf]  ;;  %v16268_v10 = vld [vmem:[%s17262_s12 + $0x1294] sm:$0xf]  ;;  %v12867_v11 = vld [vmem:[%s17262_s12 + $0x12d8] sm:$0xf0] }
  0x7a   : > { %8220 = vmatpush.bf16.msra.mxu0 %v15458_v44  ;;  %v15674_v44 = vld [vmem:[%s17262_s12 + $0x4] sm:$0xf]  ;;  %v12795_v26 = vld [vmem:[%s17262_s12 + $0x1248] sm:$0xf0] }
  0x7b   : > { %8233 = vmatpush.bf16.msra.mxu1 %v10854_v47  ;;  %v11067_v47 = vld [vmem:[%s17262_s12 + $0x4c8] sm:$0xf0]  ;;  %v10494_v58 = vor.u32 %v15674_v44, %v10491_v45 }
  0x7c   : > { %8246 = vmatpush.bf16.msra.mxu2 %v11430_v48  ;;  %v16232_v48 = vld [vmem:[%s17262_s12 + $0x1174] sm:$0xf]  ;;  %v11070_v59 = vor.u32 %v15818_v46, %v11067_v47  ;;  %v13662_v47 = vor.u32 %v16466_v39, %v13659_v40  ;;  %v15810_v39 = vld [vmem:[%s17262_s12 + $0x43c] sm:$0xf0] }
  0x7d   : > { %8259 = vmatpush.bf16.msra.mxu3 %v12006_v55  ;;  %v13875_v55 = vld [vmem:[%s17262_s12 + $0x1ab8] sm:$0xf0]  ;;  %v12726_v62 = vor.u32 %v16232_v48, %v12723_v49  ;;  %v16160_v46 = vld [vmem:[%s17262_s12 + $0xf34] sm:$0xf] }
  0x7e   : > { %8221 = vmatpush.bf16.msra.mxu0 %v15386_v57  ;;  %v11643_v57 = vld [vmem:[%s17262_s12 + $0x948] sm:$0xf0]  ;;  %v13878_v1 = vor.u32 %v16520_v53, %v13875_v55  ;;  %v12435_v48 = vld [vmem:[%s17262_s12 + $0xf78] sm:$0xf0]  ;;  %v16304_v49 = vld [vmem:[%s17262_s12 + $0x13b4] sm:$0xf] }
  0x7f   : > { %8234 = vmatpush.bf16.msra.mxu1 %v10782_v60  ;;  %v16664_v60 = vld [vmem:[%s17262_s12 + $0x1ef4] sm:$0xf]  ;;  %v11646_v2 = vor.u32 %v15962_v56, %v11643_v57  ;;  %v13587_v53 = vld [vmem:[%s17262_s12 + $0x1878] sm:$0xf0]  ;;  %v12438_v56 = vor.u32 %v16160_v46, %v12435_v48  ;;  %v15954_v48 = vld [vmem:[%s17262_s12 + $0x8bc] sm:$0xf0] }
  0x80   : > { %8247 = vmatpush.bf16.msra.mxu2 %v11358_v61  ;;  %v14451_v61 = vld [vmem:[%s17262_s12 + $0x1f38] sm:$0xf0] }
  0x81   : > { %8260 = vmatpush.bf16.msra.mxu3 %v11934_v4  ;;  %v16358_v4 = vld [vmem:[%s17262_s12 + $0x1564] sm:$0xf]  ;;  %v14454_v6 = vor.u32 %v16664_v60, %v14451_v61  ;;  %v14163_v55 = vld [vmem:[%s17262_s12 + $0x1cf8] sm:$0xf0]  ;;  %v12363_v60 = vld [vmem:[%s17262_s12 + $0xee8] sm:$0xf0] }
  0x82   : > { %8222 = vmatpush.bf16.msra.mxu0 %v15314_v5  ;;  %v13227_v5 = vld [vmem:[%s17262_s12 + $0x15a8] sm:$0xf0]  ;;  %v16286_v61 = vld [vmem:[%s17262_s12 + $0x1324] sm:$0xf] }
  0x83   : > { %8235 = vmatpush.bf16.msra.mxu1 %v10710_v8  ;;  %v13803_v8 = vld [vmem:[%s17262_s12 + $0x1a28] sm:$0xf0]  ;;  %v13230_v13 = vor.u32 %v16358_v4, %v13227_v5 }
  0x84   : > { %8248 = vmatpush.bf16.msra.mxu2 %v11286_v9  ;;  %v17523_v9 = vld [vmem:[#allocation1] sm:$0xff]  ;;  %v13806_v15 = vor.u32 %v16502_v7, %v13803_v8  ;;  %v12291_v8 = vld [vmem:[%s17262_s12 + $0xe58] sm:$0xf0] }
  0x85   : > { %8261 = vmatpush.bf16.msra.mxu3 %v11862_v16  ;;  %v12579_v16 = vld [vmem:[%s17262_s12 + $0x1098] sm:$0xf0] }
  0x86   : > { %8223 = vmatpush.bf16.msra.mxu0 %v15242_v17  ;;  %v16340_v17 = vld [vmem:[%s17262_s12 + $0x14d4] sm:$0xf]  ;;  %v12582_v30 = vor.u32 %v16196_v14, %v12579_v16  ;;  %v13443_v14 = vld [vmem:[%s17262_s12 + $0x1758] sm:$0xf0] }
  0x87   : > { %8236 = vmatpush.bf16.msra.mxu1 %v10638_v20  ;;  %v16484_v20 = vld [vmem:[%s17262_s12 + $0x1954] sm:$0xf]  ;;  %v13158_v31 = vor.u32 %v16340_v17, %v13155_v18  ;;  %v14019_v16 = vld [vmem:[%s17262_s12 + $0x1bd8] sm:$0xf0]  ;;  %v12870_v18 = vor.u32 %v16268_v10, %v12867_v11  ;;  %v15918_v10 = vld [vmem:[%s17262_s12 + $0x79c] sm:$0xf0] }
  0x88   : > { %8249 = vmatpush.bf16.msra.mxu2 %v11214_v24  ;;  %v13731_v24 = vld [vmem:[%s17262_s12 + $0x1998] sm:$0xf0] }
  0x89   : > { %8262 = vmatpush.bf16.msra.mxu3 %v11790_v35  ;;  %v13734_v34 = vor.u32 %v16484_v20, %v13731_v24  ;;  %v12507_v35 = vld [vmem:[%s17262_s12 + $0x1008] sm:$0xf0]  ;;  %v16250_v24 = vld [vmem:[%s17262_s12 + $0x1204] sm:$0xf] }
  0x8a   : > { %8224 = vmatpush.bf16.msra.mxu0 %v15170_v37  ;;  %v13083_v37 = vld [vmem:[%s17262_s12 + $0x1488] sm:$0xf0]  ;;  %v12510_v44 = vor.u32 %v16178_v32, %v12507_v35  ;;  %v15027_v35 = vld [vmem:[%s17262_s12 + $0x23b8] sm:$0xf0] }
  0x8b   : > { %8237 = vmatpush.bf16.msra.mxu1 %v10566_v41  ;;  %v16610_v41 = vld [vmem:[%s17262_s12 + $0x1d44] sm:$0xf]  ;;  %v13086_v45 = vor.u32 %v16322_v36, %v13083_v37  ;;  %v12219_v20 = vld [vmem:[%s17262_s12 + $0xdc8] sm:$0xf0]  ;;  %v16952_v36 = vld [vmem:[%s17262_s12 + $0x27f4] sm:$0xf] }
  0x8c   : > { %8250 = vmatpush.bf16.msra.mxu2 %v11142_v43  ;;  %v14235_v43 = vld [vmem:[%s17262_s12 + $0x1d88] sm:$0xf0]  ;;  %v15603_v37 = vld [vmem:[%s17262_s12 + $0x2838] sm:$0xf0] }
  0x8d   : > { %8263 = vmatpush.bf16.msra.mxu3 %v11718_v50  ;;  %v13011_v50 = vld [vmem:[%s17262_s12 + $0x13f8] sm:$0xf0]  ;;  %v14238_v51 = vor.u32 %v16610_v41, %v14235_v43  ;;  %v12798_v41 = vor.u32 %v16250_v24, %v12795_v26  ;;  %v16538_v43 = vld [vmem:[%s17262_s12 + $0x1b04] sm:$0xf]  ;;  %v11361_v24 = vld [vmem:[%s17262_s12 + $0x6c8] sm:$0xf] }
  0x8e   : > { %8225 = vmatpush.bf16.msra.mxu0 %v15098_v54  ;;  %v16592_v54 = vld [vmem:[%s17262_s12 + $0x1cb4] sm:$0xf]  ;;  %v13014_v57 = vor.u32 %v16304_v49, %v13011_v50  ;;  %v15606_v49 = vor.u32 %v16952_v36, %v15603_v37  ;;  %v10713_v36 = vld [vmem:[%s17262_s12 + $0x1b8] sm:$0xf]  ;;  %v15738_v37 = vld [vmem:[%s17262_s12 + $0x1fc] sm:$0xf0] }
  0x8f   : > { %8238 = vmatpush.bf16.msra.mxu1 %v10494_v58  ;;  %v16142_v58 = vld [vmem:[%s17262_s12 + $0xea4] sm:$0xf] }
  0x90   : > { %8251 = vmatpush.bf16.msra.mxu2 %v11070_v59  ;;  %v13590_v59 = vor.u32 %v16448_v52, %v13587_v53  ;;  %v12366_v4 = vor.u32 %v16142_v58, %v12363_v60  ;;  %v14955_v52 = vld [vmem:[%s17262_s12 + $0x2328] sm:$0xf0]  ;;  %v16934_v53 = vld [vmem:[%s17262_s12 + $0x2764] sm:$0xf]  ;;  %v11505_v60 = vld [vmem:[%s17262_s12 + $0x7e8] sm:$0xf] }
  0x91   : > { %8264 = vmatpush.bf16.msra.mxu3 %v11646_v2  ;;  %8226 = vmatmul.bf16.vlgmr.msra.gmra.mxu0 %v17523_v9  ;;  %v16574_v2 = vld [vmem:[%s17262_s12 + $0x1c24] sm:$0xf] }
  0x92   : > { %8270 = vmatpush.bf16.msrb.mxu0 %v12726_v62  ;;  %8239 = vmatmul.bf16.vlgmr.msra.gmra.mxu1 %v17394_v22  ;;  %v12939_v62 = vld [vmem:[%s17262_s12 + $0x1368] sm:$0xf0] }
  0x93   : > { %8283 = vmatpush.bf16.msrb.mxu1 %v13302_v63  ;;  %8252 = vmatmul.bf16.vlgmr.msra.gmra.mxu2 %v17401_v27  ;;  %v14166_v63 = vor.u32 %v16592_v54, %v14163_v55  ;;  %v12942_v5 = vor.u32 %v16286_v61, %v12939_v62  ;;  %v15531_v55 = vld [vmem:[%s17262_s12 + $0x27a8] sm:$0xf0]  ;;  %v15936_v61 = vld [vmem:[%s17262_s12 + $0x82c] sm:$0xf0] }
  0x94   : > { %8296 = vmatpush.bf16.msrb.mxu2 %v13878_v1  ;;  %8265 = vmatmul.bf16.vlgmr.msra.gmra.mxu3 %v17392_v21  ;;  %v13515_v1 = vld [vmem:[%s17262_s12 + $0x17e8] sm:$0xf0]  ;;  %v15534_v62 = vor.u32 %v16934_v53, %v15531_v55  ;;  %v11217_v53 = vld [vmem:[%s17262_s12 + $0x5a8] sm:$0xf] }
  0x95   : > { %8309 = vmatpush.bf16.msrb.mxu3 %v14454_v6  ;;  %v16124_v6 = vld [vmem:[%s17262_s12 + $0xe14] sm:$0xf]  ;;  %v13518_v7 = vor.u32 %v16430_v0, %v13515_v1  ;;  %v14883_v1 = vld [vmem:[%s17262_s12 + $0x2298] sm:$0xf0] }
  0x96   : > { %8271 = vmatpush.bf16.msrb.mxu0 %v12654_v12  ;;  %v14094_v12 = vor.u32 %v16574_v2, %v14091_v3  ;;  %v12294_v17 = vor.u32 %v16124_v6, %v12291_v8  ;;  %v16772_v0 = vld [vmem:[%s17262_s12 + $0x2254] sm:$0xf]  ;;  %v15459_v3 = vld [vmem:[%s17262_s12 + $0x2718] sm:$0xf0]  ;;  %v11506_v6 = vor.u32 %v15936_v61, %v11505_v60  ;;  %v11433_v8 = vld [vmem:[%s17262_s12 + $0x758] sm:$0xf] }
  0x97   : > { %8284 = vmatpush.bf16.msrb.mxu1 %v13230_v13  ;;  %v16412_v13 = vld [vmem:[%s17262_s12 + $0x1714] sm:$0xf]  ;;  %v15171_v60 = vld [vmem:[%s17262_s12 + $0x24d8] sm:$0xf0]  ;;  %v10569_v61 = vld [vmem:[%s17262_s12 + $0x98] sm:$0xf] }
  0x98   : > { %8297 = vmatpush.bf16.msrb.mxu2 %v13806_v15  ;;  %v16556_v15 = vld [vmem:[%s17262_s12 + $0x1b94] sm:$0xf]  ;;  %v13446_v25 = vor.u32 %v16412_v13, %v13443_v14  ;;  %v16754_v13 = vld [vmem:[%s17262_s12 + $0x21c4] sm:$0xf]  ;;  %v14811_v14 = vld [vmem:[%s17262_s12 + $0x2208] sm:$0xf0] }
  0x99   : > { %8310 = vmatpush.bf16.msrb.mxu3 %v14382_v19  ;;  %v16106_v19 = vld [vmem:[%s17262_s12 + $0xd84] sm:$0xf]  ;;  %v14022_v32 = vor.u32 %v16556_v15, %v14019_v16  ;;  %v16916_v2 = vld [vmem:[%s17262_s12 + $0x26d4] sm:$0xf]  ;;  %v15387_v16 = vld [vmem:[%s17262_s12 + $0x2688] sm:$0xf0] }
  0x9a   : > { %8272 = vmatpush.bf16.msrb.mxu0 %v12582_v30  ;;  %v16394_v30 = vld [vmem:[%s17262_s12 + $0x1684] sm:$0xf]  ;;  %v12222_v40 = vor.u32 %v16106_v19, %v12219_v20  ;;  %v15462_v11 = vor.u32 %v16916_v2, %v15459_v3  ;;  %v11434_v19 = vor.u32 %v15918_v10, %v11433_v8  ;;  %v14814_v20 = vor.u32 %v16754_v13, %v14811_v14  ;;  %v15846_v2 = vld [vmem:[%s17262_s12 + $0x55c] sm:$0xf0]  ;;  %v15099_v8 = vld [vmem:[%s17262_s12 + $0x2448] sm:$0xf0] }
  0x9b   : > { %8285 = vmatpush.bf16.msrb.mxu1 %v13158_v31  ;;  %v13371_v31 = vld [vmem:[%s17262_s12 + $0x16c8] sm:$0xf0]  ;;  %v16898_v15 = vld [vmem:[%s17262_s12 + $0x2644] sm:$0xf]  ;;  %v10497_v10 = vld [vmem:[%s17262_s12 + $0x8] sm:$0xf] }
  0x9c   : > { %8298 = vmatpush.bf16.msrb.mxu2 %v13734_v34  ;;  %v16808_v34 = vld [vmem:[%s17262_s12 + $0x2374] sm:$0xf]  ;;  %v15390_v26 = vor.u32 %v16898_v15, %v15387_v16  ;;  %v16682_v3 = vld [vmem:[%s17262_s12 + $0x1f84] sm:$0xf]  ;;  %v16098_v13 = vld [vmem:[%s17262_s12 + $0xd3c] sm:$0xf0] }
  0x9d   : > { %8311 = vmatpush.bf16.msrb.mxu3 %v14310_v38  ;;  %v11001_v38 = vld [vmem:[%s17262_s12 + $0x3f8] sm:$0xf]  ;;  %v15030_v46 = vor.u32 %v16808_v34, %v15027_v35  ;;  %v16880_v34 = vld [vmem:[%s17262_s12 + $0x25b4] sm:$0xf]  ;;  %v15315_v35 = vld [vmem:[%s17262_s12 + $0x25f8] sm:$0xf0] }
  0x9e   : > { %8273 = vmatpush.bf16.msrb.mxu0 %v12510_v44  ;;  %v13947_v44 = vld [vmem:[%s17262_s12 + $0x1b48] sm:$0xf0]  ;;  %v11002_v50 = vor.u32 %v15810_v39, %v11001_v38  ;;  %v12729_v15 = vld [vmem:[%s17262_s12 + $0x1178] sm:$0xf]  ;;  %v16242_v16 = vld [vmem:[%s17262_s12 + $0x11bc] sm:$0xf0] }
  0x9f   : > { %8286 = vmatpush.bf16.msrb.mxu1 %v13086_v45  ;;  %v13374_v45 = vor.u32 %v16394_v30, %v13371_v31  ;;  %v13950_v54 = vor.u32 %v16538_v43, %v13947_v44  ;;  %v16736_v31 = vld [vmem:[%s17262_s12 + $0x2134] sm:$0xf]  ;;  %v15318_v43 = vor.u32 %v16880_v34, %v15315_v35  ;;  %v10714_v44 = vor.u32 %v15738_v37, %v10713_v36  ;;  %v12081_v35 = vld [vmem:[%s17262_s12 + $0xc68] sm:$0xf] }
  0xa0   : > { %8299 = vmatpush.bf16.msrb.mxu2 %v13662_v47  ;;  %v11577_v47 = vld [vmem:[%s17262_s12 + $0x878] sm:$0xf]  ;;  %v12730_v34 = vor.u32 %v16242_v16, %v12729_v15  ;;  %v16314_v16 = vld [vmem:[%s17262_s12 + $0x13fc] sm:$0xf0] }
  0xa1   : > { %8312 = vmatpush.bf16.msrb.mxu3 %v14238_v51  ;;  %v16790_v51 = vld [vmem:[%s17262_s12 + $0x22e4] sm:$0xf]  ;;  %v11578_v58 = vor.u32 %v15954_v48, %v11577_v47  ;;  %v15243_v48 = vld [vmem:[%s17262_s12 + $0x2568] sm:$0xf0]  ;;  %v13017_v15 = vld [vmem:[%s17262_s12 + $0x13b8] sm:$0xf] }
  0xa2   : > { %8274 = vmatpush.bf16.msrb.mxu0 %v12438_v56  ;;  %v10929_v56 = vld [vmem:[%s17262_s12 + $0x368] sm:$0xf]  ;;  %v16862_v47 = vld [vmem:[%s17262_s12 + $0x2524] sm:$0xf] }
  0xa3   : > { %8287 = vmatpush.bf16.msrb.mxu1 %v13014_v57  ;;  %v15792_v57 = vld [vmem:[%s17262_s12 + $0x3ac] sm:$0xf0]  ;;  %v15246_v55 = vor.u32 %v16862_v47, %v15243_v48 }
  0xa4   : > { %8300 = vmatpush.bf16.msrb.mxu2 %v13590_v59  ;;  %v14958_v59 = vor.u32 %v16790_v51, %v14955_v52 }
  0xa5   : > { %8313 = vmatpush.bf16.msrb.mxu3 %v14166_v63  ;;  %v10930_v63 = vor.u32 %v15792_v57, %v10929_v56  ;;  %v16700_v57 = vld [vmem:[%s17262_s12 + $0x2014] sm:$0xf] }
  0xa6   : > { %8275 = vmatpush.bf16.msrb.mxu0 %v12366_v4  ;;  %v10857_v4 = vld [vmem:[%s17262_s12 + $0x2d8] sm:$0xf] }
  0xa7   : > { %8288 = vmatpush.bf16.msrb.mxu1 %v12942_v5  ;;  %v15774_v5 = vld [vmem:[%s17262_s12 + $0x31c] sm:$0xf0] }
  0xa8   : > { %8301 = vmatpush.bf16.msrb.mxu2 %v13518_v7  ;;  %v14886_v7 = vor.u32 %v16772_v0, %v14883_v1  ;;  %v11145_v0 = vld [vmem:[%s17262_s12 + $0x518] sm:$0xf] }
  0xa9   : > { %8314 = vmatpush.bf16.msrb.mxu3 %v14094_v12  ;;  %v10858_v12 = vor.u32 %v15774_v5, %v10857_v4  ;;  %v14523_v4 = vld [vmem:[%s17262_s12 + $0x1fc8] sm:$0xf0]  ;;  %v11146_v14 = vor.u32 %v15846_v2, %v11145_v0  ;;  %v12513_v0 = vld [vmem:[%s17262_s12 + $0xfc8] sm:$0xf] }
  0xaa   : > { %8276 = vmatpush.bf16.msrb.mxu0 %v12294_v17  ;;  %v10785_v17 = vld [vmem:[%s17262_s12 + $0x248] sm:$0xf] }
  0xab   : > { %8289 = vmatpush.bf16.msrb.mxu1 %v12870_v18  ;;  %v15756_v18 = vld [vmem:[%s17262_s12 + $0x28c] sm:$0xf0]  ;;  %v13089_v2 = vld [vmem:[%s17262_s12 + $0x1448] sm:$0xf] }
  0xac   : > { %8302 = vmatpush.bf16.msrb.mxu2 %v13446_v25  ;;  %v15900_v25 = vld [vmem:[%s17262_s12 + $0x70c] sm:$0xf0]  ;;  %v10786_v30 = vor.u32 %v15756_v18, %v10785_v17  ;;  %v13305_v17 = vld [vmem:[%s17262_s12 + $0x15f8] sm:$0xf]  ;;  %v14526_v18 = vor.u32 %v16682_v3, %v14523_v4  ;;  %v13665_v4 = vld [vmem:[%s17262_s12 + $0x18c8] sm:$0xf] }
  0xad   : > { %8315 = vmatpush.bf16.msrb.mxu3 %v14022_v32  ;;  %v14739_v32 = vld [vmem:[%s17262_s12 + $0x2178] sm:$0xf0]  ;;  %v11362_v38 = vor.u32 %v15900_v25, %v11361_v24  ;;  %v15828_v24 = vld [vmem:[%s17262_s12 + $0x4cc] sm:$0xf0] }
  0xae   : > { %8277 = vmatpush.bf16.msrb.mxu0 %v12222_v40  ;;  %v14742_v39 = vor.u32 %v16736_v31, %v14739_v32  ;;  %v11289_v40 = vld [vmem:[%s17262_s12 + $0x638] sm:$0xf]  ;;  %v16530_v31 = vld [vmem:[%s17262_s12 + $0x1abc] sm:$0xf0]  ;;  %v16332_v3 = vld [vmem:[%s17262_s12 + $0x148c] sm:$0xf0] }
  0xaf   : > { %8290 = vmatpush.bf16.msrb.mxu1 %v12798_v41  ;;  %v15882_v41 = vld [vmem:[%s17262_s12 + $0x67c] sm:$0xf0] }
  0xb0   : > { %8303 = vmatpush.bf16.msrb.mxu2 %v13374_v45  ;;  %v16718_v45 = vld [vmem:[%s17262_s12 + $0x20a4] sm:$0xf]  ;;  %v11290_v51 = vor.u32 %v15882_v41, %v11289_v40  ;;  %v16224_v40 = vld [vmem:[%s17262_s12 + $0x112c] sm:$0xf0] }
  0xb1   : > { %8316 = vmatpush.bf16.msrb.mxu3 %v13950_v54  ;;  %8278 = vmatmul.bf16.vlgmr.msrb.gmra.mxu0 %v17396_v23  ;;  %v15864_v54 = vld [vmem:[%s17262_s12 + $0x5ec] sm:$0xf0] }
  0xb2   : > { %8322 = vmatpush.bf16.msra.mxu0 %v15030_v46  ;;  %8291 = vmatmul.bf16.vlgmr.msrb.gmra.mxu1 %v17448_v29  ;;  %v14667_v46 = vld [vmem:[%s17262_s12 + $0x20e8] sm:$0xf0] }
  0xb3   : > { %8335 = vmatpush.bf16.msra.mxu1 %v15606_v49  ;;  %8304 = vmatmul.bf16.vlgmr.msrb.gmra.mxu2 %v17452_v33  ;;  %v10641_v49 = vld [vmem:[%s17262_s12 + $0x128] sm:$0xf]  ;;  %v14670_v52 = vor.u32 %v16718_v45, %v14667_v46  ;;  %v16512_v46 = vld [vmem:[%s17262_s12 + $0x1a2c] sm:$0xf0] }
  0xb4   : > { %8348 = vmatpush.bf16.msra.mxu2 %v11002_v50  ;;  %8317 = vmatmul.bf16.vlgmr.msrb.gmra.mxu3 %v17446_v28  ;;  %v15720_v50 = vld [vmem:[%s17262_s12 + $0x16c] sm:$0xf0]  ;;  %v13809_v45 = vld [vmem:[%s17262_s12 + $0x19e8] sm:$0xf] }
  0xb5   : > { %8361 = vmatpush.bf16.msra.mxu3 %v11578_v58  ;;  %v10642_v56 = vor.u32 %v15720_v50, %v10641_v49  ;;  %v14595_v58 = vld [vmem:[%s17262_s12 + $0x2058] sm:$0xf0]  ;;  %v12009_v49 = vld [vmem:[%s17262_s12 + $0xbd8] sm:$0xf] }
  0xb6   : > { %8323 = vmatpush.bf16.msra.mxu0 %v14958_v59  ;;  %v16844_v59 = vld [vmem:[%s17262_s12 + $0x2494] sm:$0xf]  ;;  %v14598_v1 = vor.u32 %v16700_v57, %v14595_v58  ;;  %v13737_v57 = vld [vmem:[%s17262_s12 + $0x1958] sm:$0xf]  ;;  %v16494_v58 = vld [vmem:[%s17262_s12 + $0x199c] sm:$0xf0] }
  0xb7   : > { %8336 = vmatpush.bf16.msra.mxu1 %v15534_v62  ;;  %v15702_v62 = vld [vmem:[%s17262_s12 + $0xdc] sm:$0xf0]  ;;  %v15174_v5 = vor.u32 %v16844_v59, %v15171_v60 }
  0xb8   : > { %8349 = vmatpush.bf16.msra.mxu2 %v10930_v63  ;;  %v11218_v63 = vor.u32 %v15864_v54, %v11217_v53  ;;  %v16206_v53 = vld [vmem:[%s17262_s12 + $0x109c] sm:$0xf0]  ;;  %v13810_v54 = vor.u32 %v16512_v46, %v13809_v45 }
  0xb9   : > { %8362 = vmatpush.bf16.msra.mxu3 %v11506_v6  ;;  %v10570_v6 = vor.u32 %v15702_v62, %v10569_v61  ;;  %v11937_v61 = vld [vmem:[%s17262_s12 + $0xb48] sm:$0xf]  ;;  %v16134_v45 = vld [vmem:[%s17262_s12 + $0xe5c] sm:$0xf0] }
  0xba   : > { %8324 = vmatpush.bf16.msra.mxu0 %v14886_v7  ;;  %v16826_v7 = vld [vmem:[%s17262_s12 + $0x2404] sm:$0xf] }
  0xbb   : > { %8337 = vmatpush.bf16.msra.mxu1 %v15462_v11  ;;  %v15684_v11 = vld [vmem:[%s17262_s12 + $0x4c] sm:$0xf0]  ;;  %v15102_v25 = vor.u32 %v16826_v7, %v15099_v8  ;;  %v11865_v8 = vld [vmem:[%s17262_s12 + $0xab8] sm:$0xf] }
  0xbc   : > { %8350 = vmatpush.bf16.msra.mxu2 %v10858_v12  ;;  %v12153_v12 = vld [vmem:[%s17262_s12 + $0xcf8] sm:$0xf] }
  0xbd   : > { %8363 = vmatpush.bf16.msra.mxu3 %v11434_v19  ;;  %v16386_v19 = vld [vmem:[%s17262_s12 + $0x163c] sm:$0xf0]  ;;  %v12154_v32 = vor.u32 %v16098_v13, %v12153_v12  ;;  %v12441_v12 = vld [vmem:[%s17262_s12 + $0xf38] sm:$0xf] }
  0xbe   : > { %8325 = vmatpush.bf16.msra.mxu0 %v14814_v20  ;;  %v11073_v20 = vld [vmem:[%s17262_s12 + $0x488] sm:$0xf]  ;;  %v13306_v36 = vor.u32 %v16386_v19, %v13305_v17  ;;  %v16170_v13 = vld [vmem:[%s17262_s12 + $0xf7c] sm:$0xf0]  ;;  %v13593_v17 = vld [vmem:[%s17262_s12 + $0x1838] sm:$0xf] }
  0xbf   : > { %8338 = vmatpush.bf16.msra.mxu1 %v15390_v26  ;;  %v10498_v26 = vor.u32 %v15684_v11, %v10497_v10  ;;  %v11074_v37 = vor.u32 %v15828_v24, %v11073_v20  ;;  %v13090_v10 = vor.u32 %v16332_v3, %v13089_v2  ;;  %v16026_v11 = vld [vmem:[%s17262_s12 + $0xafc] sm:$0xf0]  ;;  %v12442_v20 = vor.u32 %v16170_v13, %v12441_v12  ;;  %v11793_v24 = vld [vmem:[%s17262_s12 + $0xa28] sm:$0xf]  ;;  %v15609_v3 = vld [vmem:[%s17262_s12 + $0x27f8] sm:$0xf] }
  0xc0   : > { %8351 = vmatpush.bf16.msra.mxu2 %v10786_v30  ;;  %v13881_v30 = vld [vmem:[%s17262_s12 + $0x1a78] sm:$0xf]  ;;  %v11866_v19 = vor.u32 %v16026_v11, %v11865_v8  ;;  %v16818_v2 = vld [vmem:[%s17262_s12 + $0x23bc] sm:$0xf0]  ;;  %v13377_v8 = vld [vmem:[%s17262_s12 + $0x1688] sm:$0xf] }
  0xc1   : > { %8364 = vmatpush.bf16.msra.mxu3 %v11362_v38  ;;  %v16080_v38 = vld [vmem:[%s17262_s12 + $0xcac] sm:$0xf0]  ;;  %v13882_v41 = vor.u32 %v16530_v31, %v13881_v30  ;;  %v12369_v30 = vld [vmem:[%s17262_s12 + $0xea8] sm:$0xf] }
  0xc2   : > { %8326 = vmatpush.bf16.msra.mxu0 %v14742_v39  ;;  %v12657_v39 = vld [vmem:[%s17262_s12 + $0x10e8] sm:$0xf]  ;;  %v12082_v47 = vor.u32 %v16080_v38, %v12081_v35  ;;  %v16152_v31 = vld [vmem:[%s17262_s12 + $0xeec] sm:$0xf0] }
  0xc3   : > { %8339 = vmatpush.bf16.msra.mxu1 %v15318_v43  ;;  %v13233_v43 = vld [vmem:[%s17262_s12 + $0x1568] sm:$0xf]  ;;  %v12658_v48 = vor.u32 %v16224_v40, %v12657_v39  ;;  %v16296_v35 = vld [vmem:[%s17262_s12 + $0x136c] sm:$0xf0]  ;;  %v12370_v39 = vor.u32 %v16152_v31, %v12369_v30  ;;  %v11721_v40 = vld [vmem:[%s17262_s12 + $0x998] sm:$0xf] }
  0xc4   : > { %8352 = vmatpush.bf16.msra.mxu2 %v10714_v44  ;;  %v16368_v44 = vld [vmem:[%s17262_s12 + $0x15ac] sm:$0xf0] }
  0xc5   : > { %8365 = vmatpush.bf16.msra.mxu3 %v11290_v51  ;;  %v13234_v50 = vor.u32 %v16368_v44, %v13233_v43  ;;  %v16062_v51 = vld [vmem:[%s17262_s12 + $0xc1c] sm:$0xf0]  ;;  %v12297_v44 = vld [vmem:[%s17262_s12 + $0xe18] sm:$0xf]  ;;  %v16800_v31 = vld [vmem:[%s17262_s12 + $0x232c] sm:$0xf0] }
  0xc6   : > { %8327 = vmatpush.bf16.msra.mxu0 %v14670_v52  ;;  %v12585_v52 = vld [vmem:[%s17262_s12 + $0x1058] sm:$0xf]  ;;  %v12010_v59 = vor.u32 %v16062_v51, %v12009_v49  ;;  %v15990_v43 = vld [vmem:[%s17262_s12 + $0x9dc] sm:$0xf0] }
  0xc7   : > { %8340 = vmatpush.bf16.msra.mxu1 %v15246_v55  ;;  %v13161_v55 = vld [vmem:[%s17262_s12 + $0x14d8] sm:$0xf]  ;;  %v12586_v60 = vor.u32 %v16206_v53, %v12585_v52  ;;  %v16422_v51 = vld [vmem:[%s17262_s12 + $0x175c] sm:$0xf0]  ;;  %v11722_v52 = vor.u32 %v15990_v43, %v11721_v40  ;;  %v12298_v53 = vor.u32 %v16134_v45, %v12297_v44 }
  0xc8   : > { %8353 = vmatpush.bf16.msra.mxu2 %v10642_v56  ;;  %v16350_v56 = vld [vmem:[%s17262_s12 + $0x151c] sm:$0xf0]  ;;  %v14313_v43 = vld [vmem:[%s17262_s12 + $0x1dd8] sm:$0xf] }
  0xc9   : > { %8366 = vmatpush.bf16.msra.mxu3 %v11218_v63  ;;  %v13162_v62 = vor.u32 %v16350_v56, %v13161_v55  ;;  %v16044_v63 = vld [vmem:[%s17262_s12 + $0xb8c] sm:$0xf0]  ;;  %v12225_v56 = vld [vmem:[%s17262_s12 + $0xd88] sm:$0xf]  ;;  %v16638_v44 = vld [vmem:[%s17262_s12 + $0x1e1c] sm:$0xf0] }
  0xca   : > { %8328 = vmatpush.bf16.msra.mxu0 %v14598_v1  ;;  %v13738_v1 = vor.u32 %v16494_v58, %v13737_v57  ;;  %v15972_v55 = vld [vmem:[%s17262_s12 + $0x94c] sm:$0xf0]  ;;  %v14889_v45 = vld [vmem:[%s17262_s12 + $0x2258] sm:$0xf] }
  0xcb   : > { %8341 = vmatpush.bf16.msra.mxu1 %v15174_v5  ;;  %v16476_v5 = vld [vmem:[%s17262_s12 + $0x190c] sm:$0xf0] }
  0xcc   : > { %8354 = vmatpush.bf16.msra.mxu2 %v10570_v6  ;;  %v11938_v6 = vor.u32 %v16044_v63, %v11937_v61  ;;  %v16260_v61 = vld [vmem:[%s17262_s12 + $0x124c] sm:$0xf0] }
  0xcd   : > { %8367 = vmatpush.bf16.msra.mxu3 %v11146_v14  ;;  %v13666_v14 = vor.u32 %v16476_v5, %v13665_v4  ;;  %v16962_v4 = vld [vmem:[%s17262_s12 + $0x283c] sm:$0xf0] }
  0xce   : > { %8329 = vmatpush.bf16.msra.mxu0 %v14526_v18  ;;  %v16458_v18 = vld [vmem:[%s17262_s12 + $0x187c] sm:$0xf0] }
  0xcf   : > { %8342 = vmatpush.bf16.msra.mxu1 %v15102_v25  ;;  %v13018_v25 = vor.u32 %v16314_v16, %v13017_v15  ;;  %v15801_v15 = vld [vmem:[%s17262_s12 + $0x3fc] sm:$0xf]  ;;  %v11003_v16 = vld [vmem:[%s17262_s12 + $0x440] sm:$0xf0] }
  0xd0   : > { %8355 = vmatpush.bf16.msra.mxu2 %v10498_v26  ;;  %v16008_v26 = vld [vmem:[%s17262_s12 + $0xa6c] sm:$0xf0] }
  0xd1   : > { %8368 = vmatpush.bf16.msra.mxu3 %v11074_v37  ;;  %8330 = vmatmul.bf16.vlgmr.msra.gmra.mxu0 %v17462_v42  ;;  %v16440_v37 = vld [vmem:[%s17262_s12 + $0x17ec] sm:$0xf0]  ;;  %v11794_v38 = vor.u32 %v16008_v26, %v11793_v24  ;;  %v8123_v49 = vpop.f32.mrf.mxu0  ;;  %v14961_v24 = vld [vmem:[%s17262_s12 + $0x22e8] sm:$0xf] }
  0xd2   : > { %8374 = vmatpush.bf16.msrb.mxu0 %v12154_v32  ;;  %8343 = vmatmul.bf16.vlgmr.msra.gmra.mxu1 %v17523_v9  ;;  %v16188_v9 = vld [vmem:[%s17262_s12 + $0x100c] sm:$0xf0]  ;;  %v13594_v32 = vor.u32 %v16458_v18, %v13593_v17  ;;  %v15610_v18 = vor.u32 %v16962_v4, %v15609_v3  ;;  %v14962_v40 = vor.u32 %v16800_v31, %v14961_v24  ;;  %v14097_v24 = vld [vmem:[%s17262_s12 + $0x1c28] sm:$0xf] }
  0xd3   : > { %8387 = vmatpush.bf16.msrb.mxu1 %v12730_v34  ;;  %8356 = vmatmul.bf16.vlgmr.msra.gmra.mxu2 %v17394_v22  ;;  %v12514_v7 = vor.u32 %v16188_v9, %v12513_v0  ;;  %v12945_v34 = vld [vmem:[%s17262_s12 + $0x1328] sm:$0xf]  ;;  %v14457_v0 = vld [vmem:[%s17262_s12 + $0x1ef8] sm:$0xf]  ;;  %v16674_v9 = vld [vmem:[%s17262_s12 + $0x1f3c] sm:$0xf0] }
  0xd4   : > { %8400 = vmatpush.bf16.msrb.mxu2 %v13306_v36  ;;  %8369 = vmatmul.bf16.vlgmr.msra.gmra.mxu3 %v17401_v27  ;;  %v13521_v36 = vld [vmem:[%s17262_s12 + $0x17a8] sm:$0xf] }
  0xd5   : > { %8413 = vmatpush.bf16.msrb.mxu3 %v13882_v41  ;;  %v12946_v41 = vor.u32 %v16296_v35, %v12945_v34  ;;  %v13522_v46 = vor.u32 %v16440_v37, %v13521_v36  ;;  %v8136_v57 = vpop.f32.mrf.mxu1  ;;  %v16944_v34 = vld [vmem:[%s17262_s12 + $0x27ac] sm:$0xf0]  ;;  %v11006_v35 = vor.u32 %v15801_v15, %v11003_v16  ;;  %v15249_v31 = vld [vmem:[%s17262_s12 + $0x2528] sm:$0xf] }
  0xd6   : > { %8375 = vmatpush.bf16.msrb.mxu0 %v12082_v47  ;;  %v12873_v47 = vld [vmem:[%s17262_s12 + $0x1298] sm:$0xf] }
  0xd7   : > { %8388 = vmatpush.bf16.msrb.mxu1 %v12658_v48  ;;  %v16278_v48 = vld [vmem:[%s17262_s12 + $0x12dc] sm:$0xf0] }
  0xd8   : > { %8401 = vmatpush.bf16.msrb.mxu2 %v13234_v50  ;;  %v13449_v50 = vld [vmem:[%s17262_s12 + $0x1718] sm:$0xf]  ;;  %v12874_v58 = vor.u32 %v16278_v48, %v12873_v47  ;;  %v8149_v5 = vpop.f32.mrf.mxu2  ;;  %v16926_v48 = vld [vmem:[%s17262_s12 + $0x271c] sm:$0xf0] }
  0xd9   : > { %8414 = vmatpush.bf16.msrb.mxu3 %v13810_v54  ;;  %v11649_v54 = vld [vmem:[%s17262_s12 + $0x908] sm:$0xf]  ;;  %v13450_v63 = vor.u32 %v16422_v51, %v13449_v50  ;;  %v8162_v12 = vpop.f32.mrf.mxu3  ;;  %v8125_v26 = vpop.f32.mrf.mxu0  ;;  %v15465_v47 = vld [vmem:[%s17262_s12 + $0x26d8] sm:$0xf] }
  0xda   : > { %8376 = vmatpush.bf16.msrb.mxu0 %v12010_v59  ;;  %v16116_v59 = vld [vmem:[%s17262_s12 + $0xdcc] sm:$0xf0]  ;;  %v14673_v26 = vld [vmem:[%s17262_s12 + $0x20a8] sm:$0xf] }
  0xdb   : > { %8389 = vmatpush.bf16.msrb.mxu1 %v12586_v60  ;;  %v12801_v60 = vld [vmem:[%s17262_s12 + $0x1208] sm:$0xf] }
  0xdc   : > { %8402 = vmatpush.bf16.msrb.mxu2 %v13162_v62  ;;  %v8137_v62 = vadd.f32 %v8136_v57, %v8123_v49  ;;  %v12802_v13 = vor.u32 %v16260_v61, %v12801_v60  ;;  %v14241_v57 = vld [vmem:[%s17262_s12 + $0x1d48] sm:$0xf]  ;;  %v16764_v60 = vld [vmem:[%s17262_s12 + $0x220c] sm:$0xf0] }
  0xdd   : > { %8415 = vmatpush.bf16.msrb.mxu3 %v13738_v1  ;;  %v15033_v1 = vld [vmem:[%s17262_s12 + $0x2378] sm:$0xf]  ;;  %v8138_v36 = vpop.f32.mrf.mxu1  ;;  %v15393_v61 = vld [vmem:[%s17262_s12 + $0x2648] sm:$0xf] }
  0xde   : > { %8377 = vmatpush.bf16.msrb.mxu0 %v11938_v6  ;;  %v11650_v6 = vor.u32 %v15972_v55, %v11649_v54  ;;  %v8150_v11 = vadd.f32 %v8149_v5, %v8137_v62  ;;  %v15034_v17 = vor.u32 %v16818_v2, %v15033_v1  ;;  %v10859_v54 = vld [vmem:[%s17262_s12 + $0x320] sm:$0xf0]  ;;  %v16908_v62 = vld [vmem:[%s17262_s12 + $0x268c] sm:$0xf0]  ;;  %v10787_v1 = vld [vmem:[%s17262_s12 + $0x290] sm:$0xf0] }
  0xdf   : > { %8390 = vmatpush.bf16.msrb.mxu1 %v12514_v7  ;;  %v12226_v7 = vor.u32 %v16116_v59, %v12225_v56  ;;  %v15466_v56 = vor.u32 %v16926_v48, %v15465_v47  ;;  %v14817_v59 = vld [vmem:[%s17262_s12 + $0x21c8] sm:$0xf]  ;;  %v15394_v3 = vor.u32 %v16908_v62, %v15393_v61  ;;  %v14169_v5 = vld [vmem:[%s17262_s12 + $0x1cb8] sm:$0xf]  ;;  %v16710_v47 = vld [vmem:[%s17262_s12 + $0x205c] sm:$0xf0] }
  0xe0   : > { %8403 = vmatpush.bf16.msrb.mxu2 %v13090_v10  ;;  %v16404_v10 = vld [vmem:[%s17262_s12 + $0x16cc] sm:$0xf0]  ;;  %v8151_v49 = vpop.f32.mrf.mxu2  ;;  %v14818_v2 = vor.u32 %v16764_v60, %v14817_v59  ;;  %v15177_v48 = vld [vmem:[%s17262_s12 + $0x2498] sm:$0xf]  ;;  %v14529_v61 = vld [vmem:[%s17262_s12 + $0x1f88] sm:$0xf] }
  0xe1   : > { %8416 = vmatpush.bf16.msrb.mxu3 %v13666_v14  ;;  %v14458_v14 = vor.u32 %v16674_v9, %v14457_v0  ;;  %v13378_v30 = vor.u32 %v16404_v10, %v13377_v8  ;;  %v8164_v51 = vpop.f32.mrf.mxu3  ;;  %v15747_v9 = vld [vmem:[%s17262_s12 + $0x24c] sm:$0xf]  ;;  %v16746_v10 = vld [vmem:[%s17262_s12 + $0x217c] sm:$0xf0]  ;;  %v16692_v62 = vld [vmem:[%s17262_s12 + $0x1fcc] sm:$0xf0] }
  0xe2   : > { %8378 = vmatpush.bf16.msrb.mxu0 %v11866_v19  ;;  %v14385_v19 = vld [vmem:[%s17262_s12 + $0x1e68] sm:$0xf]  ;;  %v16854_v49 = vld [vmem:[%s17262_s12 + $0x24dc] sm:$0xf0] }
  0xe3   : > { %8391 = vmatpush.bf16.msrb.mxu1 %v12442_v20  ;;  %v16656_v20 = vld [vmem:[%s17262_s12 + $0x1eac] sm:$0xf0]  ;;  %v15178_v60 = vor.u32 %v16854_v49, %v15177_v48  ;;  %v12587_v48 = vld [vmem:[%s17262_s12 + $0x10a0] sm:$0xf0]  ;;  %v16341_v49 = vld [vmem:[%s17262_s12 + $0x14dc] sm:$0xf] }
  0xe4   : > { %8404 = vmatpush.bf16.msrb.mxu2 %v13018_v25  ;;  %v8163_v25 = vadd.f32 %v8162_v12, %v8150_v11  ;;  %v14386_v37 = vor.u32 %v16656_v20, %v14385_v19  ;;  %v15321_v11 = vld [vmem:[%s17262_s12 + $0x25b8] sm:$0xf]  ;;  %v16890_v12 = vld [vmem:[%s17262_s12 + $0x25fc] sm:$0xf0] }
  0xe5   : > { %8417 = vmatpush.bf16.msrb.mxu3 %v13594_v32  ;;  %v15537_v32 = vld [vmem:[%s17262_s12 + $0x2768] sm:$0xf]  ;;  %v15322_v20 = vor.u32 %v16890_v12, %v15321_v11  ;;  %v14530_v12 = vor.u32 %v16692_v62, %v14529_v61  ;;  %v12515_v61 = vld [vmem:[%s17262_s12 + $0x1010] sm:$0xf0]  ;;  %v16323_v62 = vld [vmem:[%s17262_s12 + $0x144c] sm:$0xf] }
  0xe6   : > { %8379 = vmatpush.bf16.msrb.mxu0 %v11794_v38  ;;  %v15783_v38 = vld [vmem:[%s17262_s12 + $0x36c] sm:$0xf] }
  0xe7   : > { %8392 = vmatpush.bf16.msrb.mxu1 %v12370_v39  ;;  %v10931_v39 = vld [vmem:[%s17262_s12 + $0x3b0] sm:$0xf0] }
  0xe8   : > { %8405 = vmatpush.bf16.msrb.mxu2 %v12946_v41  ;;  %v15538_v41 = vor.u32 %v16944_v34, %v15537_v32  ;;  %v10934_v50 = vor.u32 %v15783_v38, %v10931_v39  ;;  %v16872_v32 = vld [vmem:[%s17262_s12 + $0x256c] sm:$0xf0]  ;;  %v10643_v38 = vld [vmem:[%s17262_s12 + $0x170] sm:$0xf0] }
  0xe9   : > { %8418 = vmatpush.bf16.msrb.mxu3 %v13522_v46  ;;  %v16782_v46 = vld [vmem:[%s17262_s12 + $0x229c] sm:$0xf0] }
  0xea   : > { %8380 = vmatpush.bf16.msrb.mxu0 %v11722_v52  ;;  %v14314_v52 = vor.u32 %v16638_v44, %v14313_v43  ;;  %v14890_v55 = vor.u32 %v16782_v46, %v14889_v45  ;;  %v14025_v43 = vld [vmem:[%s17262_s12 + $0x1b98] sm:$0xf]  ;;  %v16566_v44 = vld [vmem:[%s17262_s12 + $0x1bdc] sm:$0xf0] }
  0xeb   : > { %8393 = vmatpush.bf16.msrb.mxu1 %v12298_v53  ;;  %v15765_v53 = vld [vmem:[%s17262_s12 + $0x2dc] sm:$0xf]  ;;  %v14601_v45 = vld [vmem:[%s17262_s12 + $0x2018] sm:$0xf] }
  0xec   : > { %8406 = vmatpush.bf16.msrb.mxu2 %v12874_v58  ;;  %v16620_v58 = vld [vmem:[%s17262_s12 + $0x1d8c] sm:$0xf0]  ;;  %v14602_v59 = vor.u32 %v16710_v47, %v14601_v45  ;;  %v17805_v45 = vld [vmem:[#allocation1] sm:$0xff]  ;;  %v16197_v47 = vld [vmem:[%s17262_s12 + $0x105c] sm:$0xf] }
  0xed   : > { %8419 = vmatpush.bf16.msrb.mxu3 %v13450_v63  ;;  %v10862_v63 = vor.u32 %v15765_v53, %v10859_v54  ;;  %v14242_v0 = vor.u32 %v16620_v58, %v14241_v57  ;;  %v13953_v57 = vld [vmem:[%s17262_s12 + $0x1b08] sm:$0xf]  ;;  %v16548_v58 = vld [vmem:[%s17262_s12 + $0x1b4c] sm:$0xf0] }
  0xee   : > { %8381 = vmatpush.bf16.msrb.mxu0 %v11650_v6  ;;  %v8175_v4 = vpop.f32.mrf.mxu0  ;;  %v16602_v6 = vld [vmem:[%s17262_s12 + $0x1cfc] sm:$0xf0] }
  0xef   : > { %8394 = vmatpush.bf16.msrb.mxu1 %v12226_v7  ;;  %v14745_v7 = vld [vmem:[%s17262_s12 + $0x2138] sm:$0xf]  ;;  %v8176_v8 = vadd.f32 %v8175_v4, %v8163_v25  ;;  %v14170_v15 = vor.u32 %v16602_v6, %v14169_v5  ;;  %v16584_v25 = vld [vmem:[%s17262_s12 + $0x1c6c] sm:$0xf0]  ;;  %v12155_v4 = vld [vmem:[%s17262_s12 + $0xd40] sm:$0xf0]  ;;  %v13954_v6 = vor.u32 %v16548_v58, %v13953_v57 }
  0xf0   : > { %8407 = vmatpush.bf16.msrb.mxu2 %v12802_v13  ;;  %v10790_v13 = vor.u32 %v15747_v9, %v10787_v1  ;;  %v14746_v19 = vor.u32 %v16746_v10, %v14745_v7  ;;  %v14098_v36 = vor.u32 %v16584_v25, %v14097_v24  ;;  %v15945_v9 = vld [vmem:[%s17262_s12 + $0x87c] sm:$0xf]  ;;  %v11579_v1 = vld [vmem:[%s17262_s12 + $0x8c0] sm:$0xf0]  ;;  %v10499_v10 = vld [vmem:[%s17262_s12 + $0x50] sm:$0xf0] }
  0xf1   : > { %8420 = vmatpush.bf16.msrb.mxu3 %v13378_v30  ;;  %8382 = vmatmul.bf16.vlgmr.msrb.gmra.mxu0 %v17392_v21  ;;  %v16728_v30 = vld [vmem:[%s17262_s12 + $0x20ec] sm:$0xf0]  ;;  %v16233_v5 = vld [vmem:[%s17262_s12 + $0x117c] sm:$0xf]  ;;  %v12731_v7 = vld [vmem:[%s17262_s12 + $0x11c0] sm:$0xf0] }
  0xf2   : > { %8426 = vmatpush.bf16.msra.mxu0 %v14458_v14  ;;  %8395 = vmatmul.bf16.vlgmr.msrb.gmra.mxu1 %v17396_v23  ;;  %v8188_v14 = vpop.f32.mrf.mxu1  ;;  %v11507_v24 = vld [vmem:[%s17262_s12 + $0x830] sm:$0xf0]  ;;  %v16071_v25 = vld [vmem:[%s17262_s12 + $0xc6c] sm:$0xf] }
  0xf3   : > { %8439 = vmatpush.bf16.msra.mxu1 %v15034_v17  ;;  %8408 = vmatmul.bf16.vlgmr.msrb.gmra.mxu2 %v17448_v29  ;;  %v8189_v16 = vadd.f32 %v8188_v14, %v8176_v8  ;;  %v15729_v17 = vld [vmem:[%s17262_s12 + $0x1bc] sm:$0xf]  ;;  %v15675_v8 = vld [vmem:[%s17262_s12 + $0xc] sm:$0xf]  ;;  %v11939_v58 = vld [vmem:[%s17262_s12 + $0xb90] sm:$0xf0] }
  0xf4   : > { %8452 = vmatpush.bf16.msra.mxu2 %v15610_v18  ;;  %8421 = vmatmul.bf16.vlgmr.msrb.gmra.mxu3 %v17452_v33  ;;  %v10715_v18 = vld [vmem:[%s17262_s12 + $0x200] sm:$0xf0]  ;;  %v16377_v14 = vld [vmem:[%s17262_s12 + $0x15fc] sm:$0xf]  ;;  %v16035_v57 = vld [vmem:[%s17262_s12 + $0xb4c] sm:$0xf] }
  0xf5   : > { %8465 = vmatpush.bf16.msra.mxu3 %v11006_v35  ;;  %v10718_v34 = vor.u32 %v15729_v17, %v10715_v18  ;;  %v15927_v18 = vld [vmem:[%s17262_s12 + $0x7ec] sm:$0xf] }
  0xf6   : > { %8427 = vmatpush.bf16.msra.mxu0 %v14386_v37  ;;  %v8201_v35 = vpop.f32.mrf.mxu2  ;;  %v15711_v37 = vld [vmem:[%s17262_s12 + $0x12c] sm:$0xf]  ;;  %v8177_v46 = vpop.f32.mrf.mxu0 }
  0xf7   : > { %8440 = vmatpush.bf16.msra.mxu1 %v14962_v40  ;;  %v8202_v39 = vadd.f32 %v8201_v35, %v8189_v16  ;;  %v14674_v40 = vor.u32 %v16728_v30, %v14673_v26  ;;  %v10646_v51 = vor.u32 %v15711_v37, %v10643_v38  ;;  %v11582_v16 = vor.u32 %v15945_v9, %v11579_v1  ;;  %v12083_v26 = vld [vmem:[%s17262_s12 + $0xcb0] sm:$0xf0]  ;;  %v16359_v35 = vld [vmem:[%s17262_s12 + $0x156c] sm:$0xf]  ;;  %v15873_v1 = vld [vmem:[%s17262_s12 + $0x63c] sm:$0xf] }
  0xf8   : > { %8453 = vmatpush.bf16.msra.mxu2 %v15538_v41  ;;  %v15250_v41 = vor.u32 %v16872_v32, %v15249_v31  ;;  %v16215_v32 = vld [vmem:[%s17262_s12 + $0x10ec] sm:$0xf]  ;;  %v11510_v37 = vor.u32 %v15927_v18, %v11507_v24  ;;  %v12086_v38 = vor.u32 %v16071_v25, %v12083_v26  ;;  %v11942_v9 = vor.u32 %v16035_v57, %v11939_v58  ;;  %v11219_v18 = vld [vmem:[%s17262_s12 + $0x5f0] sm:$0xf0] }
  0xf9   : > { %8466 = vmatpush.bf16.msra.mxu3 %v10934_v50  ;;  %v8214_v50 = vpop.f32.mrf.mxu3  ;;  %v16143_v25 = vld [vmem:[%s17262_s12 + $0xeac] sm:$0xf]  ;;  %v12371_v26 = vld [vmem:[%s17262_s12 + $0xef0] sm:$0xf0] }
  0xfa   : > { %8428 = vmatpush.bf16.msra.mxu0 %v14314_v52  ;;  %v15693_v52 = vld [vmem:[%s17262_s12 + $0x9c] sm:$0xf]  ;;  %v8190_v53 = vpop.f32.mrf.mxu1  ;;  %v17774_v54 = vadd.f32 %v8214_v50, %v8202_v39  ;;  %v13163_v50 = vld [vmem:[%s17262_s12 + $0x1520] sm:$0xf0]  ;;  %v11075_v57 = vld [vmem:[%s17262_s12 + $0x4d0] sm:$0xf0] }
  0xfb   : > { %8441 = vmatpush.bf16.msra.mxu1 %v14890_v55  ;;  %v14026_v55 = vor.u32 %v16566_v44, %v14025_v43  ;;  %v15909_v39 = vld [vmem:[%s17262_s12 + $0x75c] sm:$0xf]  ;;  %v12011_v44 = vld [vmem:[%s17262_s12 + $0xc20] sm:$0xf0]  ;;  %v15891_v53 = vld [vmem:[%s17262_s12 + $0x6cc] sm:$0xf] }
  0xfc   : > { %8454 = vmatpush.bf16.msra.mxu2 %v15466_v56  ;;  %v10571_v56 = vld [vmem:[%s17262_s12 + $0xe0] sm:$0xf0]  ;;  %v16053_v43 = vld [vmem:[%s17262_s12 + $0xbdc] sm:$0xf]  ;;  %v15963_v58 = vld [vmem:[%s17262_s12 + $0x90c] sm:$0xf] }
  0xfd   : > { %8467 = vmatpush.bf16.msra.mxu3 %v10862_v63  ;;  %v15105_v63 = vld [vmem:[%s17262_s12 + $0x2408] sm:$0xf] }
  0xfe   : > { %8429 = vmatpush.bf16.msra.mxu0 %v14242_v0  ;;  %v16836_v0 = vld [vmem:[%s17262_s12 + $0x244c] sm:$0xf0]  ;;  %v8203_v11 = vpop.f32.mrf.mxu2 }
  0xff   : > { %8442 = vmatpush.bf16.msra.mxu1 %v14818_v2  ;;  %v10574_v2 = vor.u32 %v15693_v52, %v10571_v56  ;;  %v12014_v52 = vor.u32 %v16053_v43, %v12011_v44  ;;  %v11363_v56 = vld [vmem:[%s17262_s12 + $0x710] sm:$0xf0]  ;;  %v12443_v11 = vld [vmem:[%s17262_s12 + $0xf80] sm:$0xf0] }
 0x100   : > { %8455 = vmatpush.bf16.msra.mxu2 %v15394_v3  ;;  %v16089_v3 = vld [vmem:[%s17262_s12 + $0xcfc] sm:$0xf] }
 0x101   : > { %8468 = vmatpush.bf16.msra.mxu3 %v10790_v13  ;;  %v15106_v13 = vor.u32 %v16836_v0, %v15105_v63  ;;  %v12158_v17 = vor.u32 %v16089_v3, %v12155_v4  ;;  %v8216_v30 = vpop.f32.mrf.mxu3  ;;  %v13091_v63 = vld [vmem:[%s17262_s12 + $0x1490] sm:$0xf0]  ;;  %v11366_v0 = vor.u32 %v15891_v53, %v11363_v56  ;;  %v11291_v4 = vld [vmem:[%s17262_s12 + $0x680] sm:$0xf0]  ;;  %v15819_v56 = vld [vmem:[%s17262_s12 + $0x48c] sm:$0xf] }
 0x102   : > { %8430 = vmatpush.bf16.msra.mxu0 %v14170_v15  ;;  %v13307_v15 = vld [vmem:[%s17262_s12 + $0x1640] sm:$0xf0]  ;;  %v16287_v30 = vld [vmem:[%s17262_s12 + $0x132c] sm:$0xf] }
 0x103   : > { %8443 = vmatpush.bf16.msra.mxu1 %v14746_v19  ;;  %v12734_v19 = vor.u32 %v16233_v5, %v12731_v7  ;;  %v13310_v31 = vor.u32 %v16377_v14, %v13307_v15  ;;  %v16017_v5 = vld [vmem:[%s17262_s12 + $0xabc] sm:$0xf]  ;;  %v13019_v14 = vld [vmem:[%s17262_s12 + $0x1400] sm:$0xf0]  ;;  %v11294_v15 = vor.u32 %v15873_v1, %v11291_v4 }
 0x104   : > { %8456 = vmatpush.bf16.msra.mxu2 %v15322_v20  ;;  %v10502_v20 = vor.u32 %v15675_v8, %v10499_v10  ;;  %v13094_v8 = vor.u32 %v16323_v62, %v13091_v63  ;;  %v16161_v10 = vld [vmem:[%s17262_s12 + $0xf3c] sm:$0xf]  ;;  %v12227_v62 = vld [vmem:[%s17262_s12 + $0xdd0] sm:$0xf0]  ;;  %v15035_v4 = vld [vmem:[%s17262_s12 + $0x23c0] sm:$0xf0] }
 0x105   : > { %8469 = vmatpush.bf16.msra.mxu3 %v10718_v34  ;;  %v12659_v34 = vld [vmem:[%s17262_s12 + $0x1130] sm:$0xf0]  ;;  %v16665_v1 = vld [vmem:[%s17262_s12 + $0x1efc] sm:$0xf] }
 0x106   : > { %8431 = vmatpush.bf16.msra.mxu0 %v14098_v36  ;;  %v13235_v36 = vld [vmem:[%s17262_s12 + $0x15b0] sm:$0xf0] }
 0x107   : > { %8444 = vmatpush.bf16.msra.mxu1 %v14674_v40  ;;  %v12662_v40 = vor.u32 %v16215_v32, %v12659_v34  ;;  %v13238_v46 = vor.u32 %v16359_v35, %v13235_v36  ;;  %v15837_v35 = vld [vmem:[%s17262_s12 + $0x51c] sm:$0xf] }
 0x108   : > { %8457 = vmatpush.bf16.msra.mxu2 %v15250_v41  ;;  %v11435_v41 = vld [vmem:[%s17262_s12 + $0x7a0] sm:$0xf0] }
 0x109   : > { %8470 = vmatpush.bf16.msra.mxu3 %v10646_v51  ;;  %v11438_v51 = vor.u32 %v15909_v39, %v11435_v41  ;;  %v15981_v39 = vld [vmem:[%s17262_s12 + $0x99c] sm:$0xf] }
 0x10a   : > { %8432 = vmatpush.bf16.msra.mxu0 %v14026_v55  ;;  %v12590_v55 = vor.u32 %v16197_v47, %v12587_v48  ;;  %v12299_v47 = vld [vmem:[%s17262_s12 + $0xe60] sm:$0xf0] }
 0x10b   : > { %8445 = vmatpush.bf16.msra.mxu1 %v14602_v59  ;;  %v13166_v59 = vor.u32 %v16341_v49, %v13163_v50  ;;  %v16269_v50 = vld [vmem:[%s17262_s12 + $0x129c] sm:$0xf] }
 0x10c   : > { %8458 = vmatpush.bf16.msra.mxu2 %v15178_v60  ;;  %v16179_v60 = vld [vmem:[%s17262_s12 + $0xfcc] sm:$0xf] }
 0x10d   : > { %8471 = vmatpush.bf16.msra.mxu3 %v10574_v2  ;;  %v12518_v3 = vor.u32 %v16179_v60, %v12515_v61  ;;  %v11651_v60 = vld [vmem:[%s17262_s12 + $0x950] sm:$0xf0]  ;;  %v16107_v61 = vld [vmem:[%s17262_s12 + $0xd8c] sm:$0xf] }
 0x10e   : > { %8433 = vmatpush.bf16.msra.mxu0 %v13954_v6  ;;  %v8227_v2 = vpop.f32.mrf.mxu0  ;;  %v11867_v6 = vld [vmem:[%s17262_s12 + $0xb00] sm:$0xf0] }
 0x10f   : > { %8446 = vmatpush.bf16.msra.mxu1 %v14530_v12  ;;  %v17828_v7 = vadd.f32 %v8227_v2, %v17774_v54  ;;  %v8240_v12 = vpop.f32.mrf.mxu1  ;;  %v12446_v54 = vor.u32 %v16161_v10, %v12443_v11  ;;  %v14459_v2 = vld [vmem:[%s17262_s12 + $0x1f40] sm:$0xf0]  ;;  %v12803_v10 = vld [vmem:[%s17262_s12 + $0x1250] sm:$0xf0] }
 0x110   : > { %8459 = vmatpush.bf16.msra.mxu2 %v15106_v13  ;;  %v16305_v13 = vld [vmem:[%s17262_s12 + $0x13bc] sm:$0xf] }
 0x111   : > { %8472 = vmatpush.bf16.msra.mxu3 %v10502_v20  ;;  %8434 = vmatmul.bf16.vlgmr.msra.gmra.mxu0 %v17446_v28  ;;  %v11795_v20 = vld [vmem:[%s17262_s12 + $0xa70] sm:$0xf0]  ;;  %v13022_v24 = vor.u32 %v16305_v13, %v13019_v14  ;;  %v16953_v14 = vld [vmem:[%s17262_s12 + $0x27fc] sm:$0xf] }
 0x112   : > { %8478 = vmatpush.bf16.msrb.mxu0 %v11582_v16  ;;  %8447 = vmatmul.bf16.vlgmr.msra.gmra.mxu1 %v17462_v42  ;;  %v11870_v16 = vor.u32 %v16017_v5, %v11867_v6  ;;  %v11078_v5 = vor.u32 %v15819_v56, %v11075_v57  ;;  %v11654_v6 = vor.u32 %v15963_v58, %v11651_v60  ;;  %v16611_v56 = vld [vmem:[%s17262_s12 + $0x1d4c] sm:$0xf]  ;;  %v14243_v57 = vld [vmem:[%s17262_s12 + $0x1d90] sm:$0xf0] }
 0x113   : > { %8491 = vmatpush.bf16.msrb.mxu1 %v12158_v17  ;;  %8460 = vmatmul.bf16.vlgmr.msra.gmra.mxu2 %v17805_v45  ;;  %v15855_v17 = vld [vmem:[%s17262_s12 + $0x5ac] sm:$0xf] }
 0x114   : > { %8504 = vmatpush.bf16.msrb.mxu2 %v12734_v19  ;;  %8473 = vmatmul.bf16.vlgmr.msra.gmra.mxu3 %v17394_v22  ;;  %v15999_v19 = vld [vmem:[%s17262_s12 + $0xa2c] sm:$0xf]  ;;  %v11222_v32 = vor.u32 %v15855_v17, %v11219_v18  ;;  %v13811_v18 = vld [vmem:[%s17262_s12 + $0x1a30] sm:$0xf0] }
 0x115   : > { %8517 = vmatpush.bf16.msrb.mxu3 %v13310_v31  ;;  %v12947_v31 = vld [vmem:[%s17262_s12 + $0x1370] sm:$0xf0]  ;;  %v11798_v34 = vor.u32 %v15999_v19, %v11795_v20  ;;  %v16647_v19 = vld [vmem:[%s17262_s12 + $0x1e6c] sm:$0xf] }
 0x116   : > { %8479 = vmatpush.bf16.msrb.mxu0 %v11510_v37  ;;  %v8253_v36 = vpop.f32.mrf.mxu2  ;;  %v12374_v37 = vor.u32 %v16143_v25, %v12371_v26  ;;  %v8229_v43 = vpop.f32.mrf.mxu0  ;;  %v12950_v44 = vor.u32 %v16287_v30, %v12947_v31  ;;  %v14387_v25 = vld [vmem:[%s17262_s12 + $0x1eb0] sm:$0xf0]  ;;  %v16791_v26 = vld [vmem:[%s17262_s12 + $0x22ec] sm:$0xf] }
 0x117   : > { %8492 = vmatpush.bf16.msrb.mxu1 %v12086_v38  ;;  %v11147_v38 = vld [vmem:[%s17262_s12 + $0x560] sm:$0xf0]  ;;  %v8254_v41 = vadd.f32 %v8253_v36, %v8240_v12  ;;  %v8266_v48 = vpop.f32.mrf.mxu3  ;;  %v8242_v49 = vpop.f32.mrf.mxu1  ;;  %v12230_v12 = vor.u32 %v16107_v61, %v12227_v62  ;;  %v14963_v30 = vld [vmem:[%s17262_s12 + $0x2330] sm:$0xf0]  ;;  %v14390_v36 = vor.u32 %v16647_v19, %v14387_v25  ;;  %v16773_v43 = vld [vmem:[%s17262_s12 + $0x225c] sm:$0xf] }
 0x118   : > { %8505 = vmatpush.bf16.msrb.mxu2 %v12662_v40  ;;  %v11723_v40 = vld [vmem:[%s17262_s12 + $0x9e0] sm:$0xf0]  ;;  %v11150_v53 = vor.u32 %v15837_v35, %v11147_v38  ;;  %v15539_v35 = vld [vmem:[%s17262_s12 + $0x27b0] sm:$0xf0]  ;;  %v16485_v38 = vld [vmem:[%s17262_s12 + $0x195c] sm:$0xf] }
 0x119   : > { %8518 = vmatpush.bf16.msrb.mxu3 %v13238_v46  ;;  %v16125_v46 = vld [vmem:[%s17262_s12 + $0xe1c] sm:$0xf]  ;;  %v15467_v49 = vld [vmem:[%s17262_s12 + $0x2720] sm:$0xf0]  ;;  %v16755_v58 = vld [vmem:[%s17262_s12 + $0x21cc] sm:$0xf] }
 0x11a   : > { %8480 = vmatpush.bf16.msrb.mxu0 %v11438_v51  ;;  %v12875_v51 = vld [vmem:[%s17262_s12 + $0x12e0] sm:$0xf0]  ;;  %v16899_v62 = vld [vmem:[%s17262_s12 + $0x264c] sm:$0xf]  ;;  %v14675_v25 = vld [vmem:[%s17262_s12 + $0x20f0] sm:$0xf0] }
 0x11b   : > { %8493 = vmatpush.bf16.msrb.mxu1 %v12014_v52  ;;  %v17850_v52 = vadd.f32 %v8266_v48, %v8254_v41  ;;  %v12878_v63 = vor.u32 %v16269_v50, %v12875_v51  ;;  %v14315_v41 = vld [vmem:[%s17262_s12 + $0x1e20] sm:$0xf0]  ;;  %v16917_v48 = vld [vmem:[%s17262_s12 + $0x26dc] sm:$0xf]  ;;  %v16575_v19 = vld [vmem:[%s17262_s12 + $0x1c2c] sm:$0xf] }
 0x11c   : > { %8506 = vmatpush.bf16.msrb.mxu2 %v12590_v55  ;;  %v11726_v55 = vor.u32 %v15981_v39, %v11723_v40  ;;  %v13739_v39 = vld [vmem:[%s17262_s12 + $0x19a0] sm:$0xf0]  ;;  %v16629_v40 = vld [vmem:[%s17262_s12 + $0x1ddc] sm:$0xf]  ;;  %v15470_v60 = vor.u32 %v16917_v48, %v15467_v49 }
 0x11d   : > { %8519 = vmatpush.bf16.msrb.mxu3 %v13166_v59  ;;  %v12302_v59 = vor.u32 %v16125_v46, %v12299_v47  ;;  %v13742_v47 = vor.u32 %v16485_v38, %v13739_v39  ;;  %v14318_v50 = vor.u32 %v16629_v40, %v14315_v41  ;;  %v16413_v38 = vld [vmem:[%s17262_s12 + $0x171c] sm:$0xf]  ;;  %v13451_v39 = vld [vmem:[%s17262_s12 + $0x1760] sm:$0xf0] }
 0x11e   : > { %8481 = vmatpush.bf16.msrb.mxu0 %v11366_v0  ;;  %v16521_v0 = vld [vmem:[%s17262_s12 + $0x1a7c] sm:$0xf]  ;;  %v8255_v11 = vpop.f32.mrf.mxu2 }
 0x11f   : > { %8494 = vmatpush.bf16.msrb.mxu1 %v11942_v9  ;;  %v13883_v9 = vld [vmem:[%s17262_s12 + $0x1ac0] sm:$0xf0]  ;;  %v8268_v20 = vpop.f32.mrf.mxu3  ;;  %v16557_v40 = vld [vmem:[%s17262_s12 + $0x1b9c] sm:$0xf] }
 0x120   : > { %8507 = vmatpush.bf16.msrb.mxu2 %v12518_v3  ;;  %v16809_v3 = vld [vmem:[%s17262_s12 + $0x237c] sm:$0xf]  ;;  %v13886_v13 = vor.u32 %v16521_v0, %v13883_v9  ;;  %v14246_v0 = vor.u32 %v16611_v56, %v14243_v57  ;;  %v14099_v20 = vld [vmem:[%s17262_s12 + $0x1c70] sm:$0xf0]  ;;  %v16395_v56 = vld [vmem:[%s17262_s12 + $0x168c] sm:$0xf] }
 0x121   : > { %8520 = vmatpush.bf16.msrb.mxu3 %v13094_v8  ;;  %v16251_v8 = vld [vmem:[%s17262_s12 + $0x120c] sm:$0xf]  ;;  %v15038_v17 = vor.u32 %v16809_v3, %v15035_v4  ;;  %v13595_v3 = vld [vmem:[%s17262_s12 + $0x1880] sm:$0xf0]  ;;  %v16593_v4 = vld [vmem:[%s17262_s12 + $0x1cbc] sm:$0xf] }
 0x122   : > { %8482 = vmatpush.bf16.msrb.mxu0 %v11294_v15  ;;  %v15611_v15 = vld [vmem:[%s17262_s12 + $0x2840] sm:$0xf0]  ;;  %v16845_v49 = vld [vmem:[%s17262_s12 + $0x249c] sm:$0xf]  ;;  %v13379_v57 = vld [vmem:[%s17262_s12 + $0x16d0] sm:$0xf0] }
 0x123   : > { %8495 = vmatpush.bf16.msrb.mxu1 %v11870_v16  ;;  %v14462_v16 = vor.u32 %v16665_v1, %v14459_v2  ;;  %v15614_v31 = vor.u32 %v16953_v14, %v15611_v15  ;;  %v16449_v2 = vld [vmem:[%s17262_s12 + $0x183c] sm:$0xf] }
 0x124   : > { %8508 = vmatpush.bf16.msrb.mxu2 %v12446_v54  ;;  %v16503_v54 = vld [vmem:[%s17262_s12 + $0x19ec] sm:$0xf]  ;;  %v16881_v15 = vld [vmem:[%s17262_s12 + $0x25bc] sm:$0xf] }
 0x125   : > { %8521 = vmatpush.bf16.msrb.mxu3 %v13022_v24  ;;  %v12806_v24 = vor.u32 %v16251_v8, %v12803_v10  ;;  %v16737_v8 = vld [vmem:[%s17262_s12 + $0x213c] sm:$0xf]  ;;  %v14747_v10 = vld [vmem:[%s17262_s12 + $0x2180] sm:$0xf0] }
 0x126   : > { %8483 = vmatpush.bf16.msrb.mxu0 %v11222_v32  ;;  %v13814_v32 = vor.u32 %v16503_v54, %v13811_v18  ;;  %v16431_v54 = vld [vmem:[%s17262_s12 + $0x17ac] sm:$0xf]  ;;  %v13523_v18 = vld [vmem:[%s17262_s12 + $0x17f0] sm:$0xf0] }
 0x127   : > { %8496 = vmatpush.bf16.msrb.mxu1 %v11798_v34  ;;  %v16935_v34 = vld [vmem:[%s17262_s12 + $0x276c] sm:$0xf] }
 0x128   : > { %8509 = vmatpush.bf16.msrb.mxu2 %v12374_v37  ;;  %v14966_v37 = vor.u32 %v16791_v26, %v14963_v30  ;;  %v15542_v46 = vor.u32 %v16935_v34, %v15539_v35  ;;  %v15251_v34 = vld [vmem:[%s17262_s12 + $0x2570] sm:$0xf0] }
 0x129   : > { %8522 = vmatpush.bf16.msrb.mxu3 %v12950_v44  ;;  %v14891_v44 = vld [vmem:[%s17262_s12 + $0x22a0] sm:$0xf0] }
 0x12a   : > { %8484 = vmatpush.bf16.msrb.mxu0 %v11150_v53  ;;  %v14894_v51 = vor.u32 %v16773_v43, %v14891_v44  ;;  %v16467_v53 = vld [vmem:[%s17262_s12 + $0x18cc] sm:$0xf]  ;;  %v14027_v43 = vld [vmem:[%s17262_s12 + $0x1be0] sm:$0xf0]  ;;  %v16701_v44 = vld [vmem:[%s17262_s12 + $0x201c] sm:$0xf] }
 0x12b   : > { %8497 = vmatpush.bf16.msrb.mxu1 %v11726_v55  ;;  %v13667_v55 = vld [vmem:[%s17262_s12 + $0x1910] sm:$0xf0] }
 0x12c   : > { %8510 = vmatpush.bf16.msrb.mxu2 %v12302_v59  ;;  %v14819_v59 = vld [vmem:[%s17262_s12 + $0x2210] sm:$0xf0]  ;;  %v13670_v61 = vor.u32 %v16467_v53, %v13667_v55  ;;  %v13454_v53 = vor.u32 %v16413_v38, %v13451_v39  ;;  %v15179_v55 = vld [vmem:[%s17262_s12 + $0x24e0] sm:$0xf0]  ;;  %v10865_v38 = vld [vmem:[%s17262_s12 + $0x2e0] sm:$0xf] }
 0x12d   : > { %8523 = vmatpush.bf16.msrb.mxu3 %v12878_v63  ;;  %v15395_v63 = vld [vmem:[%s17262_s12 + $0x2690] sm:$0xf0]  ;;  %v14822_v9 = vor.u32 %v16755_v58, %v14819_v59  ;;  %v14030_v58 = vor.u32 %v16557_v40, %v14027_v43  ;;  %v15775_v39 = vld [vmem:[%s17262_s12 + $0x324] sm:$0xf0]  ;;  %v11441_v40 = vld [vmem:[%s17262_s12 + $0x760] sm:$0xf] }
 0x12e   : > { %8485 = vmatpush.bf16.msrb.mxu0 %v11078_v5  ;;  %v8279_v1 = vpop.f32.mrf.mxu0  ;;  %v15398_v11 = vor.u32 %v16899_v62, %v15395_v63  ;;  %v16683_v62 = vld [vmem:[%s17262_s12 + $0x1f8c] sm:$0xf]  ;;  %v14531_v63 = vld [vmem:[%s17262_s12 + $0x1fd0] sm:$0xf0]  ;;  %v15919_v43 = vld [vmem:[%s17262_s12 + $0x7a4] sm:$0xf0] }
 0x12f   : > { %8498 = vmatpush.bf16.msrb.mxu1 %v11654_v6  ;;  %v8280_v5 = vadd.f32 %v8279_v1, %v17850_v52  ;;  %v14171_v6 = vld [vmem:[%s17262_s12 + $0x1d00] sm:$0xf0]  ;;  %v15182_v1 = vor.u32 %v16845_v49, %v15179_v55  ;;  %v10866_v49 = vor.u32 %v15775_v39, %v10865_v38  ;;  %v10793_v55 = vld [vmem:[%s17262_s12 + $0x250] sm:$0xf]  ;;  %v10577_v38 = vld [vmem:[%s17262_s12 + $0xa0] sm:$0xf] }
 0x130   : > { %8511 = vmatpush.bf16.msrb.mxu2 %v12230_v12  ;;  %v8292_v12 = vpop.f32.mrf.mxu1  ;;  %v14174_v52 = vor.u32 %v16593_v4, %v14171_v6  ;;  %v12161_v4 = vld [vmem:[%s17262_s12 + $0xd00] sm:$0xf]  ;;  %v16099_v6 = vld [vmem:[%s17262_s12 + $0xd44] sm:$0xf0] }
 0x131   : > { %8524 = vmatpush.bf16.msrb.mxu3 %v12806_v24  ;;  %8486 = vmatmul.bf16.vlgmr.msrb.gmra.mxu0 %v17401_v27  ;;  %v8293_v14 = vadd.f32 %v8292_v12, %v8280_v5  ;;  %v16719_v24 = vld [vmem:[%s17262_s12 + $0x20ac] sm:$0xf]  ;;  %v13382_v5 = vor.u32 %v16395_v56, %v13379_v57  ;;  %v15757_v56 = vld [vmem:[%s17262_s12 + $0x294] sm:$0xf0]  ;;  %v11369_v57 = vld [vmem:[%s17262_s12 + $0x6d0] sm:$0xf] }
 0x132   : > { %8530 = vmatpush.bf16.msra.mxu0 %v13886_v13  ;;  %8499 = vmatmul.bf16.vlgmr.msrb.gmra.mxu1 %v17392_v21  ;;  %v13598_v13 = vor.u32 %v16449_v2, %v13595_v3  ;;  %v11585_v2 = vld [vmem:[%s17262_s12 + $0x880] sm:$0xf]  ;;  %v15955_v3 = vld [vmem:[%s17262_s12 + $0x8c4] sm:$0xf0] }
 0x133   : > { %8543 = vmatpush.bf16.msra.mxu1 %v14462_v16  ;;  %8512 = vmatmul.bf16.vlgmr.msrb.gmra.mxu2 %v17396_v23  ;;  %v15323_v16 = vld [vmem:[%s17262_s12 + $0x2600] sm:$0xf0]  ;;  %v15703_v39 = vld [vmem:[%s17262_s12 + $0xe4] sm:$0xf0] }
 0x134   : > { %8556 = vmatpush.bf16.msra.mxu2 %v15038_v17  ;;  %8525 = vmatmul.bf16.vlgmr.msrb.gmra.mxu3 %v17448_v29  ;;  %v14750_v17 = vor.u32 %v16737_v8, %v14747_v10  ;;  %v15326_v26 = vor.u32 %v16881_v15, %v15323_v16  ;;  %v16827_v8 = vld [vmem:[%s17262_s12 + $0x240c] sm:$0xf]  ;;  %v15107_v10 = vld [vmem:[%s17262_s12 + $0x2450] sm:$0xf0]  ;;  %v16243_v15 = vld [vmem:[%s17262_s12 + $0x11c4] sm:$0xf0] }
 0x135   : > { %8569 = vmatpush.bf16.msra.mxu3 %v15614_v31  ;;  %v13526_v31 = vor.u32 %v16431_v54, %v13523_v18  ;;  %v15110_v54 = vor.u32 %v16827_v8, %v15107_v10  ;;  %v10937_v18 = vld [vmem:[%s17262_s12 + $0x370] sm:$0xf]  ;;  %v15883_v10 = vld [vmem:[%s17262_s12 + $0x684] sm:$0xf0] }
 0x136   : > { %8531 = vmatpush.bf16.msra.mxu0 %v13814_v32  ;;  %v8305_v30 = vpop.f32.mrf.mxu2  ;;  %v16863_v32 = vld [vmem:[%s17262_s12 + $0x252c] sm:$0xf]  ;;  %v8281_v41 = vpop.f32.mrf.mxu0 }
 0x137   : > { %8544 = vmatpush.bf16.msra.mxu1 %v14390_v36  ;;  %v8306_v35 = vadd.f32 %v8305_v30, %v8293_v14  ;;  %v14102_v36 = vor.u32 %v16575_v19, %v14099_v20  ;;  %v15254_v48 = vor.u32 %v16863_v32, %v15251_v34  ;;  %v12737_v14 = vld [vmem:[%s17262_s12 + $0x1180] sm:$0xf]  ;;  %v15793_v19 = vld [vmem:[%s17262_s12 + $0x3b4] sm:$0xf0]  ;;  %v11513_v20 = vld [vmem:[%s17262_s12 + $0x7f0] sm:$0xf] }
 0x138   : > { %8557 = vmatpush.bf16.msra.mxu2 %v14966_v37  ;;  %v14678_v37 = vor.u32 %v16719_v24, %v14675_v25  ;;  %v12738_v25 = vor.u32 %v16243_v15, %v12737_v14  ;;  %v12089_v30 = vld [vmem:[%s17262_s12 + $0xc70] sm:$0xf]  ;;  %v16225_v34 = vld [vmem:[%s17262_s12 + $0x1134] sm:$0xf0]  ;;  %v16171_v14 = vld [vmem:[%s17262_s12 + $0xf84] sm:$0xf0] }
 0x139   : > { %8570 = vmatpush.bf16.msra.mxu3 %v15542_v46  ;;  %v14603_v46 = vld [vmem:[%s17262_s12 + $0x2060] sm:$0xf0]  ;;  %v12665_v32 = vld [vmem:[%s17262_s12 + $0x10f0] sm:$0xf] }
 0x13a   : > { %8532 = vmatpush.bf16.msra.mxu0 %v13742_v47  ;;  %v8318_v47 = vpop.f32.mrf.mxu3  ;;  %v14606_v59 = vor.u32 %v16701_v44, %v14603_v46  ;;  %v12666_v41 = vor.u32 %v16225_v34, %v12665_v32  ;;  %v12017_v44 = vld [vmem:[%s17262_s12 + $0xbe0] sm:$0xf]  ;;  %v16063_v46 = vld [vmem:[%s17262_s12 + $0xc24] sm:$0xf0] }
 0x13b   : > { %8545 = vmatpush.bf16.msra.mxu1 %v14318_v50  ;;  %v8294_v50 = vpop.f32.mrf.mxu1 }
 0x13c   : > { %8558 = vmatpush.bf16.msra.mxu2 %v14894_v51  ;;  %v17920_v51 = vadd.f32 %v8318_v47, %v8306_v35  ;;  %v10938_v35 = vor.u32 %v15793_v19, %v10937_v18  ;;  %v12593_v47 = vld [vmem:[%s17262_s12 + $0x1060] sm:$0xf]  ;;  %v11442_v50 = vor.u32 %v15919_v43, %v11441_v40  ;;  %v11225_v18 = vld [vmem:[%s17262_s12 + $0x5b0] sm:$0xf]  ;;  %v15865_v19 = vld [vmem:[%s17262_s12 + $0x5f4] sm:$0xf0] }
 0x13d   : > { %8571 = vmatpush.bf16.msra.mxu3 %v15470_v60  ;;  %v16539_v60 = vld [vmem:[%s17262_s12 + $0x1b0c] sm:$0xf]  ;;  %v11153_v40 = vld [vmem:[%s17262_s12 + $0x520] sm:$0xf]  ;;  %v15847_v43 = vld [vmem:[%s17262_s12 + $0x564] sm:$0xf0] }
 0x13e   : > { %8533 = vmatpush.bf16.msra.mxu0 %v13670_v61  ;;  %v13955_v61 = vld [vmem:[%s17262_s12 + $0x1b50] sm:$0xf0] }
 0x13f   : > { %8546 = vmatpush.bf16.msra.mxu1 %v14246_v0  ;;  %v11009_v0 = vld [vmem:[%s17262_s12 + $0x400] sm:$0xf]  ;;  %v13958_v12 = vor.u32 %v16539_v60, %v13955_v61  ;;  %v11945_v60 = vld [vmem:[%s17262_s12 + $0xb50] sm:$0xf]  ;;  %v16045_v61 = vld [vmem:[%s17262_s12 + $0xb94] sm:$0xf0] }
 0x140   : > { %8559 = vmatpush.bf16.msra.mxu2 %v14822_v9  ;;  %v15811_v9 = vld [vmem:[%s17262_s12 + $0x444] sm:$0xf0] }
 0x141   : > { %8572 = vmatpush.bf16.msra.mxu3 %v15398_v11  ;;  %v8307_v11 = vpop.f32.mrf.mxu2  ;;  %v11010_v16 = vor.u32 %v15811_v9, %v11009_v0 }
 0x142   : > { %8534 = vmatpush.bf16.msra.mxu0 %v13598_v13  ;;  %v14534_v13 = vor.u32 %v16683_v62, %v14531_v63  ;;  %v8320_v24 = vpop.f32.mrf.mxu3  ;;  %v12521_v62 = vld [vmem:[%s17262_s12 + $0xfd0] sm:$0xf]  ;;  %v10794_v63 = vor.u32 %v15757_v56, %v10793_v55  ;;  %v11873_v11 = vld [vmem:[%s17262_s12 + $0xac0] sm:$0xf]  ;;  %v15685_v55 = vld [vmem:[%s17262_s12 + $0x54] sm:$0xf0]  ;;  %v11154_v56 = vor.u32 %v15847_v43, %v11153_v40 }
 0x143   : > { %8547 = vmatpush.bf16.msra.mxu1 %v14174_v52  ;;  %v11586_v52 = vor.u32 %v15955_v3, %v11585_v2  ;;  %v10721_v2 = vld [vmem:[%s17262_s12 + $0x1c0] sm:$0xf]  ;;  %v15739_v3 = vld [vmem:[%s17262_s12 + $0x204] sm:$0xf0] }
 0x144   : > { %8560 = vmatpush.bf16.msra.mxu2 %v14750_v17  ;;  %v12162_v17 = vor.u32 %v16099_v6, %v12161_v4  ;;  %v11297_v4 = vld [vmem:[%s17262_s12 + $0x640] sm:$0xf]  ;;  %v16639_v43 = vld [vmem:[%s17262_s12 + $0x1e24] sm:$0xf0] }
 0x145   : > { %8573 = vmatpush.bf16.msra.mxu3 %v15326_v26  ;;  %v15937_v26 = vld [vmem:[%s17262_s12 + $0x834] sm:$0xf0] }
 0x146   : > { %8535 = vmatpush.bf16.msra.mxu0 %v13526_v31  ;;  %v16081_v31 = vld [vmem:[%s17262_s12 + $0xcb4] sm:$0xf0] }
 0x147   : > { %8548 = vmatpush.bf16.msra.mxu1 %v14102_v36  ;;  %v11514_v36 = vor.u32 %v15937_v26, %v11513_v20  ;;  %v16009_v26 = vld [vmem:[%s17262_s12 + $0xa74] sm:$0xf0] }
 0x148   : > { %8561 = vmatpush.bf16.msra.mxu2 %v14678_v37  ;;  %v12090_v37 = vor.u32 %v16081_v31, %v12089_v30  ;;  %v12377_v30 = vld [vmem:[%s17262_s12 + $0xeb0] sm:$0xf]  ;;  %v16153_v31 = vld [vmem:[%s17262_s12 + $0xef4] sm:$0xf0] }
 0x149   : > { %8574 = vmatpush.bf16.msra.mxu3 %v15254_v48  ;;  %v16207_v48 = vld [vmem:[%s17262_s12 + $0x10a4] sm:$0xf0] }
 0x14a   : > { %8536 = vmatpush.bf16.msra.mxu0 %v13454_v53  ;;  %v12018_v53 = vor.u32 %v16063_v46, %v12017_v44  ;;  %v11729_v44 = vld [vmem:[%s17262_s12 + $0x9a0] sm:$0xf]  ;;  %v15991_v46 = vld [vmem:[%s17262_s12 + $0x9e4] sm:$0xf0] }
 0x14b   : > { %8549 = vmatpush.bf16.msra.mxu1 %v14030_v58  ;;  %v12594_v58 = vor.u32 %v16207_v48, %v12593_v47  ;;  %v12305_v48 = vld [vmem:[%s17262_s12 + $0xe20] sm:$0xf] }
 0x14c   : > { %8562 = vmatpush.bf16.msra.mxu2 %v14606_v59  ;;  %v15901_v59 = vld [vmem:[%s17262_s12 + $0x714] sm:$0xf0] }
 0x14d   : > { %8575 = vmatpush.bf16.msra.mxu3 %v15182_v1  ;;  %v11370_v9 = vor.u32 %v15901_v59, %v11369_v57  ;;  %v11946_v1 = vor.u32 %v16045_v61, %v11945_v60  ;;  %v11730_v57 = vor.u32 %v15991_v46, %v11729_v44  ;;  %v15829_v59 = vld [vmem:[%s17262_s12 + $0x4d4] sm:$0xf0]  ;;  %v11657_v60 = vld [vmem:[%s17262_s12 + $0x910] sm:$0xf]  ;;  %v14897_v44 = vld [vmem:[%s17262_s12 + $0x2260] sm:$0xf] }
 0x14e   : > { %8537 = vmatpush.bf16.msra.mxu0 %v13382_v5  ;;  %v8331_v0 = vpop.f32.mrf.mxu0  ;;  %v16783_v46 = vld [vmem:[%s17262_s12 + $0x22a4] sm:$0xf0] }
 0x14f   : > { %8550 = vmatpush.bf16.msra.mxu1 %v13958_v12  ;;  %v8332_v5 = vadd.f32 %v8331_v0, %v17920_v51  ;;  %v8344_v6 = vpop.f32.mrf.mxu1  ;;  %v16027_v12 = vld [vmem:[%s17262_s12 + $0xb04] sm:$0xf0]  ;;  %v11298_v51 = vor.u32 %v15883_v10, %v11297_v4  ;;  %v13889_v0 = vld [vmem:[%s17262_s12 + $0x1a80] sm:$0xf] }
 0x150   : > { %8563 = vmatpush.bf16.msra.mxu2 %v14534_v13  ;;  %v12449_v13 = vld [vmem:[%s17262_s12 + $0xf40] sm:$0xf]  ;;  %v16675_v4 = vld [vmem:[%s17262_s12 + $0x1f44] sm:$0xf0] }
 0x151   : > { %8576 = vmatpush.bf16.msra.mxu3 %v15110_v54  ;;  %8538 = vmatmul.bf16.vlgmr.msra.gmra.mxu0 %v17452_v33  ;;  %v8345_v15 = vadd.f32 %v8344_v6, %v8332_v5  ;;  %v15721_v54 = vld [vmem:[%s17262_s12 + $0x174] sm:$0xf0]  ;;  %v12450_v24 = vor.u32 %v16171_v14, %v12449_v13  ;;  %v12233_v5 = vld [vmem:[%s17262_s12 + $0xd90] sm:$0xf]  ;;  %v15041_v13 = vld [vmem:[%s17262_s12 + $0x2380] sm:$0xf] }
 0x152   : > { %8582 = vmatpush.bf16.msrb.mxu0 %v11010_v16  ;;  %8551 = vmatmul.bf16.vlgmr.msra.gmra.mxu1 %v17446_v28  ;;  %v10722_v16 = vor.u32 %v15739_v3, %v10721_v2  ;;  %v16117_v6 = vld [vmem:[%s17262_s12 + $0xdd4] sm:$0xf0]  ;;  %v16819_v14 = vld [vmem:[%s17262_s12 + $0x23c4] sm:$0xf0] }
 0x153   : > { %8595 = vmatpush.bf16.msrb.mxu1 %v11586_v52  ;;  %8564 = vmatmul.bf16.vlgmr.msra.gmra.mxu2 %v17462_v42  ;;  %v10649_v52 = vld [vmem:[%s17262_s12 + $0x130] sm:$0xf]  ;;  %v10238_v20 = vrot.slane %v8345_v15, 6 }
 0x154   : > { %8608 = vmatpush.bf16.msrb.mxu2 %v12162_v17  ;;  %8577 = vmatmul.bf16.vlgmr.msra.gmra.mxu3 %v17805_v45  ;;  %v16189_v45 = vld [vmem:[%s17262_s12 + $0x1014] sm:$0xf0]  ;;  %v11874_v17 = vor.u32 %v16027_v12, %v11873_v11  ;;  %v10650_v34 = vor.u32 %v15721_v54, %v10649_v52  ;;  %v13241_v52 = vld [vmem:[%s17262_s12 + $0x1570] sm:$0xf] }
 0x155   : > { %8621 = vmatpush.bf16.msrb.mxu3 %v12738_v25  ;;  %v12522_v8 = vor.u32 %v16189_v45, %v12521_v62  ;;  %v11801_v25 = vld [vmem:[%s17262_s12 + $0xa30] sm:$0xf]  ;;  %v17986_v32 = vsel %vm10251_vm0, %v17828_v7, %v10238_v20  ;;  %v12378_v7 = vor.u32 %v16153_v31, %v12377_v30  ;;  %v15973_v62 = vld [vmem:[%s17262_s12 + $0x954] sm:$0xf0]  ;;  %v13313_v45 = vld [vmem:[%s17262_s12 + $0x1600] sm:$0xf]  ;;  %v15042_v20 = vor.u32 %v16819_v14, %v15041_v13 }
 0x156   : > { %8583 = vmatpush.bf16.msrb.mxu0 %v10938_v35  ;;  %v8357_v35 = vpop.f32.mrf.mxu2  ;;  %v11658_v12 = vor.u32 %v15973_v62, %v11657_v60  ;;  %v16369_v54 = vld [vmem:[%s17262_s12 + $0x15b4] sm:$0xf0]  ;;  %v14825_v60 = vld [vmem:[%s17262_s12 + $0x21d0] sm:$0xf]  ;;  %v16747_v13 = vld [vmem:[%s17262_s12 + $0x2184] sm:$0xf0] }
 0x157   : > { %8596 = vmatpush.bf16.msrb.mxu1 %v11514_v36  ;;  %v11226_v36 = vor.u32 %v15865_v19, %v11225_v18  ;;  %v8346_v47 = vpop.f32.mrf.mxu1  ;;  %v8370_v2 = vpop.f32.mrf.mxu3  ;;  %v13817_v18 = vld [vmem:[%s17262_s12 + $0x19f0] sm:$0xf]  ;;  %v16513_v19 = vld [vmem:[%s17262_s12 + $0x1a34] sm:$0xf0]  ;;  %v13242_v31 = vor.u32 %v16369_v54, %v13241_v52 }
 0x158   : > { %8609 = vmatpush.bf16.msrb.mxu2 %v12090_v37  ;;  %v11802_v37 = vor.u32 %v16009_v26, %v11801_v25  ;;  %v18010_v10 = vadd.f32 %v8370_v2, %v8357_v35  ;;  %v16657_v25 = vld [vmem:[%s17262_s12 + $0x1eb4] sm:$0xf0]  ;;  %v14969_v26 = vld [vmem:[%s17262_s12 + $0x22f0] sm:$0xf]  ;;  %v13169_v35 = vld [vmem:[%s17262_s12 + $0x14e0] sm:$0xf] }
 0x159   : > { %8622 = vmatpush.bf16.msrb.mxu3 %v12666_v41  ;;  %v8333_v41 = vpop.f32.mrf.mxu0  ;;  %v16801_v30 = vld [vmem:[%s17262_s12 + $0x2334] sm:$0xf0]  ;;  %v13601_v2 = vld [vmem:[%s17262_s12 + $0x1840] sm:$0xf] }
 0x15a   : > { %8584 = vmatpush.bf16.msrb.mxu0 %v10866_v49  ;;  %v16135_v49 = vld [vmem:[%s17262_s12 + $0xe64] sm:$0xf0]  ;;  %v14970_v41 = vor.u32 %v16801_v30, %v14969_v26  ;;  %v16441_v54 = vld [vmem:[%s17262_s12 + $0x17f4] sm:$0xf0] }
 0x15b   : > { %8597 = vmatpush.bf16.msrb.mxu1 %v11442_v50  ;;  %v10578_v50 = vor.u32 %v15703_v39, %v10577_v38  ;;  %v12306_v61 = vor.u32 %v16135_v49, %v12305_v48  ;;  %v13745_v38 = vld [vmem:[%s17262_s12 + $0x1960] sm:$0xf]  ;;  %v16495_v39 = vld [vmem:[%s17262_s12 + $0x19a4] sm:$0xf0]  ;;  %v13097_v49 = vld [vmem:[%s17262_s12 + $0x1450] sm:$0xf] }
 0x15c   : > { %8610 = vmatpush.bf16.msrb.mxu2 %v12018_v53  ;;  %v10505_v53 = vld [vmem:[%s17262_s12 + $0x10] sm:$0xf]  ;;  %v13746_v48 = vor.u32 %v16495_v39, %v13745_v38  ;;  %v16279_v38 = vld [vmem:[%s17262_s12 + $0x12e4] sm:$0xf0]  ;;  %v13457_v39 = vld [vmem:[%s17262_s12 + $0x1720] sm:$0xf] }
 0x15d   : > { %8623 = vmatpush.bf16.msrb.mxu3 %v12594_v58  ;;  %v11081_v58 = vld [vmem:[%s17262_s12 + $0x490] sm:$0xf]  ;;  %v10506_v3 = vor.u32 %v15685_v55, %v10505_v53  ;;  %v16333_v53 = vld [vmem:[%s17262_s12 + $0x1494] sm:$0xf0] }
 0x15e   : > { %8585 = vmatpush.bf16.msrb.mxu0 %v10794_v63  ;;  %v16387_v63 = vld [vmem:[%s17262_s12 + $0x1644] sm:$0xf0]  ;;  %v11082_v11 = vor.u32 %v15829_v59, %v11081_v58  ;;  %v13673_v55 = vld [vmem:[%s17262_s12 + $0x18d0] sm:$0xf]  ;;  %v16621_v59 = vld [vmem:[%s17262_s12 + $0x1d94] sm:$0xf0]  ;;  %v13098_v62 = vor.u32 %v16333_v53, %v13097_v49 }
 0x15f   : > { %8598 = vmatpush.bf16.msrb.mxu1 %v11370_v9  ;;  %v16531_v9 = vld [vmem:[%s17262_s12 + $0x1ac4] sm:$0xf0]  ;;  %v13314_v15 = vor.u32 %v16387_v63, %v13313_v45  ;;  %v8372_v40 = vpop.f32.mrf.mxu3  ;;  %v14249_v58 = vld [vmem:[%s17262_s12 + $0x1d50] sm:$0xf]  ;;  %v13025_v63 = vld [vmem:[%s17262_s12 + $0x13c0] sm:$0xf] }
 0x160   : > { %8611 = vmatpush.bf16.msrb.mxu2 %v11946_v1  ;;  %v14465_v1 = vld [vmem:[%s17262_s12 + $0x1f00] sm:$0xf]  ;;  %v16423_v40 = vld [vmem:[%s17262_s12 + $0x1764] sm:$0xf0] }
 0x161   : > { %8624 = vmatpush.bf16.msrb.mxu3 %v12522_v8  ;;  %v8359_v8 = vpop.f32.mrf.mxu2  ;;  %v13458_v53 = vor.u32 %v16423_v40, %v13457_v39  ;;  %v15910_v39 = vld [vmem:[%s17262_s12 + $0x764] sm:$0xf]  ;;  %v11443_v40 = vld [vmem:[%s17262_s12 + $0x7a8] sm:$0xf0] }
 0x162   : > { %8586 = vmatpush.bf16.msrb.mxu0 %v10722_v16  ;;  %v13890_v16 = vor.u32 %v16531_v9, %v13889_v0  ;;  %v14250_v9 = vor.u32 %v16621_v59, %v14249_v58  ;;  %v16603_v8 = vld [vmem:[%s17262_s12 + $0x1d04] sm:$0xf0]  ;;  %v16405_v59 = vld [vmem:[%s17262_s12 + $0x16d4] sm:$0xf0] }
 0x163   : > { %8599 = vmatpush.bf16.msrb.mxu1 %v11298_v51  ;;  %v14466_v51 = vor.u32 %v16675_v4, %v14465_v1  ;;  %v16315_v1 = vld [vmem:[%s17262_s12 + $0x1404] sm:$0xf0] }
 0x164   : > { %8612 = vmatpush.bf16.msrb.mxu2 %v11874_v17  ;;  %v12234_v17 = vor.u32 %v16117_v6, %v12233_v5  ;;  %v14177_v6 = vld [vmem:[%s17262_s12 + $0x1cc0] sm:$0xf] }
 0x165   : > { %8625 = vmatpush.bf16.msrb.mxu3 %v12450_v24  ;;  %v14393_v24 = vld [vmem:[%s17262_s12 + $0x1e70] sm:$0xf]  ;;  %v14178_v52 = vor.u32 %v16603_v8, %v14177_v6  ;;  %v16693_v8 = vld [vmem:[%s17262_s12 + $0x1fd4] sm:$0xf0] }
 0x166   : > { %8587 = vmatpush.bf16.msrb.mxu0 %v10650_v34  ;;  %v13818_v34 = vor.u32 %v16513_v19, %v13817_v18  ;;  %v14105_v19 = vld [vmem:[%s17262_s12 + $0x1c30] sm:$0xf] }
 0x167   : > { %8600 = vmatpush.bf16.msrb.mxu1 %v11226_v36  ;;  %v14394_v36 = vor.u32 %v16657_v25, %v14393_v24  ;;  %v14681_v24 = vld [vmem:[%s17262_s12 + $0x20b0] sm:$0xf]  ;;  %v16729_v25 = vld [vmem:[%s17262_s12 + $0x20f4] sm:$0xf0] }
 0x168   : > { %8613 = vmatpush.bf16.msrb.mxu2 %v11802_v37  ;;  %v16351_v37 = vld [vmem:[%s17262_s12 + $0x1524] sm:$0xf0]  ;;  %v14537_v6 = vld [vmem:[%s17262_s12 + $0x1f90] sm:$0xf] }
 0x169   : > { %8626 = vmatpush.bf16.msrb.mxu3 %v12378_v7  ;;  %v14321_v7 = vld [vmem:[%s17262_s12 + $0x1de0] sm:$0xf]  ;;  %v13170_v47 = vor.u32 %v16351_v37, %v13169_v35 }
 0x16a   : > { %8588 = vmatpush.bf16.msrb.mxu0 %v10578_v50  ;;  %v14322_v50 = vor.u32 %v16639_v43, %v14321_v7  ;;  %v14033_v7 = vld [vmem:[%s17262_s12 + $0x1ba0] sm:$0xf]  ;;  %v16567_v43 = vld [vmem:[%s17262_s12 + $0x1be4] sm:$0xf0] }
 0x16b   : > { %8601 = vmatpush.bf16.msrb.mxu1 %v11154_v56  ;;  %v16477_v56 = vld [vmem:[%s17262_s12 + $0x1914] sm:$0xf0]  ;;  %v14034_v58 = vor.u32 %v16567_v43, %v14033_v7  ;;  %v16054_v43 = vld [vmem:[%s17262_s12 + $0xbe4] sm:$0xf] }
 0x16c   : > { %8614 = vmatpush.bf16.msrb.mxu2 %v11730_v57  ;;  %v14898_v57 = vor.u32 %v16783_v46, %v14897_v44  ;;  %v13674_v45 = vor.u32 %v16477_v56, %v13673_v55  ;;  %v12809_v55 = vld [vmem:[%s17262_s12 + $0x1210] sm:$0xf]  ;;  %v16261_v56 = vld [vmem:[%s17262_s12 + $0x1254] sm:$0xf0] }
 0x16d   : > { %8627 = vmatpush.bf16.msrb.mxu3 %v12306_v61  ;;  %v16765_v61 = vld [vmem:[%s17262_s12 + $0x2214] sm:$0xf0] }
 0x16e   : > { %8589 = vmatpush.bf16.msrb.mxu0 %v10506_v3  ;;  %v8383_v0 = vpop.f32.mrf.mxu0  ;;  %v16459_v3 = vld [vmem:[%s17262_s12 + $0x1884] sm:$0xf0]  ;;  %v14826_v5 = vor.u32 %v16765_v61, %v14825_v60  ;;  %v13961_v60 = vld [vmem:[%s17262_s12 + $0x1b10] sm:$0xf]  ;;  %v16549_v61 = vld [vmem:[%s17262_s12 + $0x1b54] sm:$0xf0] }
 0x16f   : > { %8602 = vmatpush.bf16.msrb.mxu1 %v11082_v11  ;;  %v8384_v4 = vadd.f32 %v8383_v0, %v18010_v10  ;;  %v8396_v11 = vpop.f32.mrf.mxu1  ;;  %v12953_v10 = vld [vmem:[%s17262_s12 + $0x1330] sm:$0xf]  ;;  %v15802_v0 = vld [vmem:[%s17262_s12 + $0x404] sm:$0xf] }
 0x170   : > { %8615 = vmatpush.bf16.msrb.mxu2 %v11658_v12  ;;  %v14753_v12 = vld [vmem:[%s17262_s12 + $0x2140] sm:$0xf] }
 0x171   : > { %8628 = vmatpush.bf16.msrb.mxu3 %v12234_v17  ;;  %8590 = vmatmul.bf16.vlgmr.msrb.gmra.mxu0 %v17394_v22  ;;  %v8397_v14 = vadd.f32 %v8396_v11, %v8384_v4  ;;  %v13529_v17 = vld [vmem:[%s17262_s12 + $0x17b0] sm:$0xf]  ;;  %v14754_v18 = vor.u32 %v16747_v13, %v14753_v12  ;;  %v12810_v4 = vor.u32 %v16261_v56, %v12809_v55  ;;  %v16090_v13 = vld [vmem:[%s17262_s12 + $0xd04] sm:$0xf]  ;;  %v10795_v55 = vld [vmem:[%s17262_s12 + $0x298] sm:$0xf0] }
 0x172   : > { %8634 = vmatpush.bf16.msra.mxu0 %v13314_v15  ;;  %8603 = vmatmul.bf16.vlgmr.msrb.gmra.mxu1 %v17401_v27  ;;  %v13026_v15 = vor.u32 %v16315_v1, %v13025_v63  ;;  %v16963_v63 = vld [vmem:[%s17262_s12 + $0x2844] sm:$0xf0]  ;;  %v15946_v1 = vld [vmem:[%s17262_s12 + $0x884] sm:$0xf]  ;;  %v13962_v11 = vor.u32 %v16549_v61, %v13961_v60  ;;  %v15892_v56 = vld [vmem:[%s17262_s12 + $0x6d4] sm:$0xf] }
 0x173   : > { %8647 = vmatpush.bf16.msra.mxu1 %v13890_v16  ;;  %8616 = vmatmul.bf16.vlgmr.msrb.gmra.mxu2 %v17392_v21  ;;  %v13602_v16 = vor.u32 %v16459_v3, %v13601_v2  ;;  %v11587_v2 = vld [vmem:[%s17262_s12 + $0x8c8] sm:$0xf0]  ;;  %v16036_v60 = vld [vmem:[%s17262_s12 + $0xb54] sm:$0xf]  ;;  %v11947_v61 = vld [vmem:[%s17262_s12 + $0xb98] sm:$0xf0] }
 0x174   : > { %8660 = vmatpush.bf16.msra.mxu2 %v14466_v51  ;;  %8629 = vmatmul.bf16.vlgmr.msrb.gmra.mxu3 %v17396_v23  ;;  %v16297_v51 = vld [vmem:[%s17262_s12 + $0x1374] sm:$0xf0] }
 0x175   : > { %8673 = vmatpush.bf16.msra.mxu3 %v15042_v20  ;;  %v16585_v20 = vld [vmem:[%s17262_s12 + $0x1c74] sm:$0xf0]  ;;  %v12954_v30 = vor.u32 %v16297_v51, %v12953_v10  ;;  %v15545_v10 = vld [vmem:[%s17262_s12 + $0x2770] sm:$0xf]  ;;  %v15784_v51 = vld [vmem:[%s17262_s12 + $0x374] sm:$0xf] }
 0x176   : > { %8635 = vmatpush.bf16.msra.mxu0 %v13242_v31  ;;  %v8409_v26 = vpop.f32.mrf.mxu2  ;;  %v13530_v31 = vor.u32 %v16441_v54, %v13529_v17  ;;  %v14106_v37 = vor.u32 %v16585_v20, %v14105_v19  ;;  %v14538_v54 = vor.u32 %v16693_v8, %v14537_v6  ;;  %v15928_v19 = vld [vmem:[%s17262_s12 + $0x7f4] sm:$0xf]  ;;  %v11515_v20 = vld [vmem:[%s17262_s12 + $0x838] sm:$0xf0]  ;;  %v11950_v6 = vor.u32 %v16036_v60, %v11947_v61  ;;  %v12739_v60 = vld [vmem:[%s17262_s12 + $0x11c8] sm:$0xf0] }
 0x177   : > { %8648 = vmatpush.bf16.msra.mxu1 %v13818_v34  ;;  %v12881_v34 = vld [vmem:[%s17262_s12 + $0x12a0] sm:$0xf]  ;;  %v8410_v35 = vadd.f32 %v8409_v26, %v8397_v14  ;;  %v8398_v44 = vpop.f32.mrf.mxu1  ;;  %v8422_v46 = vpop.f32.mrf.mxu3  ;;  %v12163_v14 = vld [vmem:[%s17262_s12 + $0xd48] sm:$0xf0]  ;;  %v16072_v26 = vld [vmem:[%s17262_s12 + $0xc74] sm:$0xf] }
 0x178   : > { %8661 = vmatpush.bf16.msra.mxu2 %v14394_v36  ;;  %v8385_v36 = vpop.f32.mrf.mxu0  ;;  %v12019_v44 = vld [vmem:[%s17262_s12 + $0xc28] sm:$0xf0] }
 0x179   : > { %8674 = vmatpush.bf16.msra.mxu3 %v14970_v41  ;;  %v14682_v41 = vor.u32 %v16729_v25, %v14681_v24  ;;  %v18067_v49 = vadd.f32 %v8422_v46, %v8410_v35  ;;  %v12166_v24 = vor.u32 %v16090_v13, %v12163_v14  ;;  %v15473_v35 = vld [vmem:[%s17262_s12 + $0x26e0] sm:$0xf]  ;;  %v16927_v36 = vld [vmem:[%s17262_s12 + $0x2724] sm:$0xf0]  ;;  %v11875_v13 = vld [vmem:[%s17262_s12 + $0xb08] sm:$0xf0] }
 0x17a   : > { %8636 = vmatpush.bf16.msra.mxu0 %v13170_v47  ;;  %v14609_v47 = vld [vmem:[%s17262_s12 + $0x2020] sm:$0xf]  ;;  %v15474_v7 = vor.u32 %v16927_v36, %v15473_v35  ;;  %v15694_v35 = vld [vmem:[%s17262_s12 + $0xa4] sm:$0xf]  ;;  %v10579_v36 = vld [vmem:[%s17262_s12 + $0xe8] sm:$0xf0] }
 0x17b   : > { %8649 = vmatpush.bf16.msra.mxu1 %v13746_v48  ;;  %v16711_v48 = vld [vmem:[%s17262_s12 + $0x2064] sm:$0xf0] }
 0x17c   : > { %8662 = vmatpush.bf16.msra.mxu2 %v14322_v50  ;;  %v12882_v50 = vor.u32 %v16279_v38, %v12881_v34  ;;  %v11518_v34 = vor.u32 %v15928_v19, %v11515_v20  ;;  %v10867_v38 = vld [vmem:[%s17262_s12 + $0x328] sm:$0xf0] }
 0x17d   : > { %8675 = vmatpush.bf16.msra.mxu3 %v14898_v57  ;;  %v13385_v57 = vld [vmem:[%s17262_s12 + $0x1690] sm:$0xf] }
 0x17e   : > { %8637 = vmatpush.bf16.msra.mxu0 %v13098_v62  ;;  %v14610_v62 = vor.u32 %v16711_v48, %v14609_v47  ;;  %v8411_v3 = vpop.f32.mrf.mxu2  ;;  %v11446_v47 = vor.u32 %v15910_v39, %v11443_v40  ;;  %v15401_v48 = vld [vmem:[%s17262_s12 + $0x2650] sm:$0xf] }
 0x17f   : > { %8650 = vmatpush.bf16.msra.mxu1 %v13674_v45  ;;  %v15617_v45 = vld [vmem:[%s17262_s12 + $0x2800] sm:$0xf]  ;;  %v8424_v17 = vpop.f32.mrf.mxu3  ;;  %v15874_v3 = vld [vmem:[%s17262_s12 + $0x644] sm:$0xf] }
 0x180   : > { %8663 = vmatpush.bf16.msra.mxu2 %v14250_v9  ;;  %v11011_v9 = vld [vmem:[%s17262_s12 + $0x448] sm:$0xf0]  ;;  %v15618_v12 = vor.u32 %v16963_v63, %v15617_v45  ;;  %v15329_v63 = vld [vmem:[%s17262_s12 + $0x25c0] sm:$0xf]  ;;  %v10651_v17 = vld [vmem:[%s17262_s12 + $0x178] sm:$0xf0] }
 0x181   : > { %8676 = vmatpush.bf16.msra.mxu3 %v14826_v5  ;;  %v13386_v5 = vor.u32 %v16405_v59, %v13385_v57  ;;  %v11371_v57 = vld [vmem:[%s17262_s12 + $0x718] sm:$0xf0] }
 0x182   : > { %8638 = vmatpush.bf16.msra.mxu0 %v13026_v15  ;;  %v11014_v15 = vor.u32 %v15802_v0, %v11011_v9  ;;  %v11374_v45 = vor.u32 %v15892_v56, %v11371_v57  ;;  %v16891_v0 = vld [vmem:[%s17262_s12 + $0x2604] sm:$0xf0]  ;;  %v15730_v9 = vld [vmem:[%s17262_s12 + $0x1c4] sm:$0xf]  ;;  %v10507_v56 = vld [vmem:[%s17262_s12 + $0x58] sm:$0xf0] }
 0x183   : > { %8651 = vmatpush.bf16.msra.mxu1 %v13602_v16  ;;  %v11590_v16 = vor.u32 %v15946_v1, %v11587_v2  ;;  %v10723_v2 = vld [vmem:[%s17262_s12 + $0x208] sm:$0xf0]  ;;  %v15820_v57 = vld [vmem:[%s17262_s12 + $0x494] sm:$0xf] }
 0x184   : > { %8664 = vmatpush.bf16.msra.mxu2 %v14178_v52  ;;  %v16945_v52 = vld [vmem:[%s17262_s12 + $0x27b4] sm:$0xf0]  ;;  %v10726_v14 = vor.u32 %v15730_v9, %v10723_v2  ;;  %v15964_v2 = vld [vmem:[%s17262_s12 + $0x914] sm:$0xf] }
 0x185   : > { %8677 = vmatpush.bf16.msra.mxu3 %v14754_v18  ;;  %v10939_v18 = vld [vmem:[%s17262_s12 + $0x3b8] sm:$0xf0]  ;;  %v15546_v25 = vor.u32 %v16945_v52, %v15545_v10  ;;  %v15257_v10 = vld [vmem:[%s17262_s12 + $0x2530] sm:$0xf]  ;;  %v16873_v52 = vld [vmem:[%s17262_s12 + $0x2574] sm:$0xf0] }
 0x186   : > { %8639 = vmatpush.bf16.msra.mxu0 %v12954_v30  ;;  %v12091_v30 = vld [vmem:[%s17262_s12 + $0xcb8] sm:$0xf0]  ;;  %v15258_v20 = vor.u32 %v16873_v52, %v15257_v10  ;;  %v16360_v52 = vld [vmem:[%s17262_s12 + $0x1574] sm:$0xf] }
 0x187   : > { %8652 = vmatpush.bf16.msra.mxu1 %v13530_v31  ;;  %v10942_v31 = vor.u32 %v15784_v51, %v10939_v18  ;;  %v15712_v51 = vld [vmem:[%s17262_s12 + $0x134] sm:$0xf]  ;;  %v12667_v10 = vld [vmem:[%s17262_s12 + $0x1138] sm:$0xf0] }
 0x188   : > { %8665 = vmatpush.bf16.msra.mxu2 %v14106_v37  ;;  %v15766_v37 = vld [vmem:[%s17262_s12 + $0x2e4] sm:$0xf] }
 0x189   : > { %8678 = vmatpush.bf16.msra.mxu3 %v14682_v41  ;;  %v12094_v41 = vor.u32 %v16072_v26, %v12091_v30  ;;  %v10870_v46 = vor.u32 %v15766_v37, %v10867_v38  ;;  %v10654_v26 = vor.u32 %v15712_v51, %v10651_v17  ;;  %v15838_v37 = vld [vmem:[%s17262_s12 + $0x524] sm:$0xf]  ;;  %v11155_v38 = vld [vmem:[%s17262_s12 + $0x568] sm:$0xf0]  ;;  %v13243_v51 = vld [vmem:[%s17262_s12 + $0x15b8] sm:$0xf0] }
 0x18a   : > { %8640 = vmatpush.bf16.msra.mxu0 %v12882_v50  ;;  %v16909_v50 = vld [vmem:[%s17262_s12 + $0x2694] sm:$0xf0] }
 0x18b   : > { %8653 = vmatpush.bf16.msra.mxu1 %v13458_v53  ;;  %v15748_v53 = vld [vmem:[%s17262_s12 + $0x254] sm:$0xf]  ;;  %v15402_v59 = vor.u32 %v16909_v50, %v15401_v48  ;;  %v16837_v48 = vld [vmem:[%s17262_s12 + $0x2454] sm:$0xf0]  ;;  %v10582_v50 = vor.u32 %v15694_v35, %v10579_v36  ;;  %v16342_v35 = vld [vmem:[%s17262_s12 + $0x14e4] sm:$0xf] }
 0x18c   : > { %8666 = vmatpush.bf16.msra.mxu2 %v14034_v58  ;;  %v12022_v58 = vor.u32 %v16054_v43, %v12019_v44  ;;  %v13171_v36 = vld [vmem:[%s17262_s12 + $0x1528] sm:$0xf0] }
 0x18d   : > { %8679 = vmatpush.bf16.msra.mxu3 %v14610_v62  ;;  %v10798_v62 = vor.u32 %v15748_v53, %v10795_v55  ;;  %v11158_v53 = vor.u32 %v15838_v37, %v11155_v38  ;;  %v15676_v55 = vld [vmem:[%s17262_s12 + $0x14] sm:$0xf] }
 0x18e   : > { %8641 = vmatpush.bf16.msra.mxu0 %v12810_v4  ;;  %v8435_v1 = vpop.f32.mrf.mxu0  ;;  %v11299_v4 = vld [vmem:[%s17262_s12 + $0x688] sm:$0xf0]  ;;  %v18172_v37 = vld [vmem:[#allocation1] sm:$0xff] }
 0x18f   : > { %8654 = vmatpush.bf16.msra.mxu1 %v13386_v5  ;;  %v8448_v5 = vpop.f32.mrf.mxu1  ;;  %v8436_v8 = vadd.f32 %v8435_v1, %v18067_v49  ;;  %v15856_v49 = vld [vmem:[%s17262_s12 + $0x5b4] sm:$0xf]  ;;  %v13891_v1 = vld [vmem:[%s17262_s12 + $0x1ac8] sm:$0xf0] }
 0x190   : > { %8667 = vmatpush.bf16.msra.mxu2 %v13962_v11  ;;  %v15330_v11 = vor.u32 %v16891_v0, %v15329_v63  ;;  %v16522_v63 = vld [vmem:[%s17262_s12 + $0x1a84] sm:$0xf] }
 0x191   : > { %8680 = vmatpush.bf16.msra.mxu3 %v14538_v54  ;;  %8642 = vmatmul.bf16.vlgmr.msra.gmra.mxu0 %v17448_v29  ;;  %v11227_v54 = vld [vmem:[%s17262_s12 + $0x5f8] sm:$0xf0] }
 0x192   : > { %8686 = vmatpush.bf16.msrb.mxu0 %v15618_v12  ;;  %8655 = vmatmul.bf16.vlgmr.msra.gmra.mxu1 %v17452_v33  ;;  %v16018_v12 = vld [vmem:[%s17262_s12 + $0xac4] sm:$0xf]  ;;  %v11230_v30 = vor.u32 %v15856_v49, %v11227_v54  ;;  %v16504_v54 = vld [vmem:[%s17262_s12 + $0x19f4] sm:$0xf] }
 0x193   : > { %8699 = vmatpush.bf16.msrb.mxu1 %v11014_v15  ;;  %8668 = vmatmul.bf16.vlgmr.msra.gmra.mxu2 %v17446_v28  ;;  %v11302_v15 = vor.u32 %v15874_v3, %v11299_v4  ;;  %v11878_v18 = vor.u32 %v16018_v12, %v11875_v13  ;;  %v11659_v3 = vld [vmem:[%s17262_s12 + $0x958] sm:$0xf0]  ;;  %v10510_v4 = vor.u32 %v15676_v55, %v10507_v56  ;;  %v16216_v13 = vld [vmem:[%s17262_s12 + $0x10f4] sm:$0xf] }
 0x194   : > { %8712 = vmatpush.bf16.msrb.mxu2 %v11590_v16  ;;  %8681 = vmatmul.bf16.vlgmr.msra.gmra.mxu3 %v17462_v42  ;;  %v18122_v16 = vadd.f32 %v8448_v5, %v8436_v8  ;;  %v14467_v8 = vld [vmem:[%s17262_s12 + $0x1f48] sm:$0xf0]  ;;  %v13099_v55 = vld [vmem:[%s17262_s12 + $0x1498] sm:$0xf0] }
 0x195   : > { %8725 = vmatpush.bf16.msrb.mxu3 %v12166_v24  ;;  %v16000_v24 = vld [vmem:[%s17262_s12 + $0xa34] sm:$0xf] }
 0x196   : > { %8687 = vmatpush.bf16.msrb.mxu0 %v15546_v25  ;;  %v18130_v19 = vpop.f32.mrf.mxu2  ;;  %v11803_v25 = vld [vmem:[%s17262_s12 + $0xa78] sm:$0xf0]  ;;  %v8437_v39 = vpop.f32.mrf.mxu0 }
 0x197   : > { %8700 = vmatpush.bf16.msrb.mxu1 %v10942_v31  ;;  %v15185_v31 = vld [vmem:[%s17262_s12 + $0x24a0] sm:$0xf]  ;;  %v8450_v40 = vpop.f32.mrf.mxu1  ;;  %v18141_v43 = vpop.f32.mrf.mxu3  ;;  %v16486_v39 = vld [vmem:[%s17262_s12 + $0x1964] sm:$0xf] }
 0x198   : > { %8713 = vmatpush.bf16.msrb.mxu2 %v11518_v34  ;;  %v16855_v34 = vld [vmem:[%s17262_s12 + $0x24e4] sm:$0xf0]  ;;  %v13747_v40 = vld [vmem:[%s17262_s12 + $0x19a8] sm:$0xf0] }
 0x199   : > { %8726 = vmatpush.bf16.msrb.mxu3 %v12094_v41  ;;  %v11806_v41 = vor.u32 %v16000_v24, %v11803_v25  ;;  %v15186_v44 = vor.u32 %v16855_v34, %v15185_v31  ;;  %v14395_v24 = vld [vmem:[%s17262_s12 + $0x1eb8] sm:$0xf0]  ;;  %v12670_v25 = vor.u32 %v16216_v13, %v12667_v10  ;;  %v12595_v34 = vld [vmem:[%s17262_s12 + $0x10a8] sm:$0xf0] }
 0x19a   : > { %8688 = vmatpush.bf16.msrb.mxu0 %v15474_v7  ;;  %v15982_v7 = vld [vmem:[%s17262_s12 + $0x9a4] sm:$0xf]  ;;  %v12379_v10 = vld [vmem:[%s17262_s12 + $0xef8] sm:$0xf0] }
 0x19b   : > { %8701 = vmatpush.bf16.msrb.mxu1 %v10870_v46  ;;  %v11731_v46 = vld [vmem:[%s17262_s12 + $0x9e8] sm:$0xf0] }
 0x19c   : > { %8714 = vmatpush.bf16.msrb.mxu2 %v11446_v47  ;;  %v15113_v47 = vld [vmem:[%s17262_s12 + $0x2410] sm:$0xf]  ;;  %v11734_v61 = vor.u32 %v15982_v7, %v11731_v46  ;;  %v14323_v7 = vld [vmem:[%s17262_s12 + $0x1e28] sm:$0xf0]  ;;  %v13174_v46 = vor.u32 %v16342_v35, %v13171_v36  ;;  %v16270_v36 = vld [vmem:[%s17262_s12 + $0x12a4] sm:$0xf] }
 0x19d   : > { %8727 = vmatpush.bf16.msrb.mxu3 %v12022_v58  ;;  %v11083_v58 = vld [vmem:[%s17262_s12 + $0x4d8] sm:$0xf0]  ;;  %v15114_v9 = vor.u32 %v16837_v48, %v15113_v47  ;;  %v16180_v47 = vld [vmem:[%s17262_s12 + $0xfd4] sm:$0xf]  ;;  %v13750_v48 = vor.u32 %v16486_v39, %v13747_v40  ;;  %v12307_v35 = vld [vmem:[%s17262_s12 + $0xe68] sm:$0xf0] }
 0x19e   : > { %8689 = vmatpush.bf16.msrb.mxu0 %v15402_v59  ;;  %v16234_v59 = vld [vmem:[%s17262_s12 + $0x1184] sm:$0xf]  ;;  %v8463_v0 = vpop.f32.mrf.mxu2  ;;  %v11086_v5 = vor.u32 %v15820_v57, %v11083_v58  ;;  %v16468_v57 = vld [vmem:[%s17262_s12 + $0x18d4] sm:$0xf]  ;;  %v13675_v58 = vld [vmem:[%s17262_s12 + $0x1918] sm:$0xf0] }
 0x19f   : > { %8702 = vmatpush.bf16.msrb.mxu1 %v10798_v62  ;;  %v16378_v62 = vld [vmem:[%s17262_s12 + $0x1604] sm:$0xf]  ;;  %v8476_v17 = vpop.f32.mrf.mxu3  ;;  %v13678_v0 = vor.u32 %v16468_v57, %v13675_v58  ;;  %v12811_v58 = vld [vmem:[%s17262_s12 + $0x1258] sm:$0xf0] }
 0x1a0   : > { %8715 = vmatpush.bf16.msrb.mxu2 %v11374_v45  ;;  %v13315_v45 = vld [vmem:[%s17262_s12 + $0x1648] sm:$0xf0]  ;;  %v16414_v40 = vld [vmem:[%s17262_s12 + $0x1724] sm:$0xf] }
 0x1a1   : > { %8728 = vmatpush.bf16.msrb.mxu3 %v11950_v6  ;;  %v16666_v6 = vld [vmem:[%s17262_s12 + $0x1f04] sm:$0xf]  ;;  %v13318_v12 = vor.u32 %v16378_v62, %v13315_v45 }
 0x1a2   : > { %8690 = vmatpush.bf16.msrb.mxu0 %v15330_v11  ;;  %v12742_v11 = vor.u32 %v16234_v59, %v12739_v60  ;;  %v14470_v49 = vor.u32 %v16666_v6, %v14467_v8  ;;  %v16612_v59 = vld [vmem:[%s17262_s12 + $0x1d54] sm:$0xf]  ;;  %v14251_v60 = vld [vmem:[%s17262_s12 + $0x1d98] sm:$0xf0]  ;;  %v16162_v45 = vld [vmem:[%s17262_s12 + $0xf44] sm:$0xf] }
 0x1a3   : > { %8703 = vmatpush.bf16.msrb.mxu1 %v10726_v14  ;;  %v13894_v14 = vor.u32 %v16522_v63, %v13891_v1  ;;  %v16306_v1 = vld [vmem:[%s17262_s12 + $0x13c4] sm:$0xf] }
 0x1a4   : > { %8716 = vmatpush.bf16.msrb.mxu2 %v11302_v15  ;;  %v11662_v15 = vor.u32 %v15964_v2, %v11659_v3  ;;  %v13027_v2 = vld [vmem:[%s17262_s12 + $0x1408] sm:$0xf0]  ;;  %v14254_v3 = vor.u32 %v16612_v59, %v14251_v60  ;;  %v16594_v8 = vld [vmem:[%s17262_s12 + $0x1cc4] sm:$0xf]  ;;  %v16396_v59 = vld [vmem:[%s17262_s12 + $0x1694] sm:$0xf] }
 0x1a5   : > { %8729 = vmatpush.bf16.msrb.mxu3 %v11878_v18  ;;  %v13819_v18 = vld [vmem:[%s17262_s12 + $0x1a38] sm:$0xf0]  ;;  %v13030_v13 = vor.u32 %v16306_v1, %v13027_v2  ;;  %v11017_v1 = vld [vmem:[%s17262_s12 + $0x408] sm:$0xf]  ;;  %v15812_v2 = vld [vmem:[%s17262_s12 + $0x44c] sm:$0xf0] }
 0x1a6   : > { %8691 = vmatpush.bf16.msrb.mxu0 %v15258_v20  ;;  %v16648_v20 = vld [vmem:[%s17262_s12 + $0x1e74] sm:$0xf]  ;;  %v13822_v31 = vor.u32 %v16504_v54, %v13819_v18  ;;  %v13531_v54 = vld [vmem:[%s17262_s12 + $0x17f8] sm:$0xf0] }
 0x1a7   : > { %8704 = vmatpush.bf16.msrb.mxu1 %v10654_v26  ;;  %v13246_v26 = vor.u32 %v16360_v52, %v13243_v51  ;;  %v14398_v38 = vor.u32 %v16648_v20, %v14395_v24  ;;  %v16288_v52 = vld [vmem:[%s17262_s12 + $0x1334] sm:$0xf]  ;;  %v12955_v51 = vld [vmem:[%s17262_s12 + $0x1378] sm:$0xf0] }
 0x1a8   : > { %8717 = vmatpush.bf16.msrb.mxu2 %v11230_v30  ;;  %v16198_v30 = vld [vmem:[%s17262_s12 + $0x1064] sm:$0xf]  ;;  %v16576_v18 = vld [vmem:[%s17262_s12 + $0x1c34] sm:$0xf]  ;;  %v14107_v20 = vld [vmem:[%s17262_s12 + $0x1c78] sm:$0xf0] }
 0x1a9   : > { %8730 = vmatpush.bf16.msrb.mxu3 %v11806_v41  ;;  %v16630_v41 = vld [vmem:[%s17262_s12 + $0x1de4] sm:$0xf]  ;;  %v14110_v39 = vor.u32 %v16576_v18, %v14107_v20  ;;  %v13387_v60 = vld [vmem:[%s17262_s12 + $0x16d8] sm:$0xf0]  ;;  %v10945_v20 = vld [vmem:[%s17262_s12 + $0x378] sm:$0xf] }
 0x1aa   : > { %8692 = vmatpush.bf16.msrb.mxu0 %v15186_v44  ;;  %v12598_v44 = vor.u32 %v16198_v30, %v12595_v34  ;;  %v14326_v56 = vor.u32 %v16630_v41, %v14323_v7  ;;  %v16126_v30 = vld [vmem:[%s17262_s12 + $0xe24] sm:$0xf]  ;;  %v13459_v41 = vld [vmem:[%s17262_s12 + $0x1768] sm:$0xf0]  ;;  %v15547_v18 = vld [vmem:[%s17262_s12 + $0x27b8] sm:$0xf0] }
 0x1ab   : > { %8705 = vmatpush.bf16.msrb.mxu1 %v10582_v50  ;;  %v12523_v50 = vld [vmem:[%s17262_s12 + $0x1018] sm:$0xf0]  ;;  %v13462_v57 = vor.u32 %v16414_v40, %v13459_v41  ;;  %v14899_v40 = vld [vmem:[%s17262_s12 + $0x22a8] sm:$0xf0] }
 0x1ac   : > { %8718 = vmatpush.bf16.msrb.mxu2 %v11158_v53  ;;  %v16324_v53 = vld [vmem:[%s17262_s12 + $0x1454] sm:$0xf]  ;;  %v15475_v41 = vld [vmem:[%s17262_s12 + $0x2728] sm:$0xf0] }
 0x1ad   : > { %8731 = vmatpush.bf16.msrb.mxu3 %v11734_v61  ;;  %v12526_v61 = vor.u32 %v16180_v47, %v12523_v50  ;;  %v13102_v62 = vor.u32 %v16324_v53, %v13099_v55  ;;  %v14035_v47 = vld [vmem:[%s17262_s12 + $0x1be8] sm:$0xf0]  ;;  %v16108_v53 = vld [vmem:[%s17262_s12 + $0xd94] sm:$0xf]  ;;  %v12235_v55 = vld [vmem:[%s17262_s12 + $0xdd8] sm:$0xf0] }
 0x1ae   : > { %8693 = vmatpush.bf16.msrb.mxu0 %v15114_v9  ;;  %v18191_v63 = vpop.f32.mrf.mxu0  ;;  %v12451_v9 = vld [vmem:[%s17262_s12 + $0xf88] sm:$0xf0] }
 0x1af   : > { %8706 = vmatpush.bf16.msrb.mxu1 %v10510_v4  ;;  %v16450_v4 = vld [vmem:[%s17262_s12 + $0x1844] sm:$0xf]  ;;  %v18198_v6 = vpop.f32.mrf.mxu1 }
 0x1b0   : > { %8719 = vmatpush.bf16.msrb.mxu2 %v11086_v5  ;;  %v13603_v5 = vld [vmem:[%s17262_s12 + $0x1888] sm:$0xf0] }
 0x1b1   : > { %8732 = vmatpush.bf16.msrb.mxu3 %v11662_v15  ;;  %8694 = vmatmul.bf16.vlgmr.msrb.gmra.mxu0 %v18172_v37  ;;  %v13606_v15 = vor.u32 %v16450_v4, %v13603_v5  ;;  %v8488_v4 = vadd.f32 %v18191_v63, %v18141_v43  ;;  %v12238_v5 = vor.u32 %v16108_v53, %v12235_v55  ;;  %v16936_v43 = vld [vmem:[%s17262_s12 + $0x2774] sm:$0xf]  ;;  %v11449_v53 = vld [vmem:[%s17262_s12 + $0x768] sm:$0xf]  ;;  %v15920_v55 = vld [vmem:[%s17262_s12 + $0x7ac] sm:$0xf0] }
 0x1b2   : > { %8738 = vmatpush.bf16.msra.mxu0 %v12742_v11  ;;  %8707 = vmatmul.bf16.vlgmr.msrb.gmra.mxu1 %v17394_v22  ;;  %v14179_v11 = vld [vmem:[%s17262_s12 + $0x1d08] sm:$0xf0] }
 0x1b3   : > { %8751 = vmatpush.bf16.msra.mxu1 %v13318_v12  ;;  %8720 = vmatmul.bf16.vlgmr.msrb.gmra.mxu2 %v17401_v27  ;;  %v12454_v12 = vor.u32 %v16162_v45, %v12451_v9  ;;  %v14182_v17 = vor.u32 %v16594_v8, %v14179_v11  ;;  %v15043_v45 = vld [vmem:[%s17262_s12 + $0x23c8] sm:$0xf0]  ;;  %v16540_v11 = vld [vmem:[%s17262_s12 + $0x1b14] sm:$0xf] }
 0x1b4   : > { %8764 = vmatpush.bf16.msra.mxu2 %v13894_v14  ;;  %8733 = vmatmul.bf16.vlgmr.msrb.gmra.mxu3 %v17392_v21  ;;  %v16144_v14 = vld [vmem:[%s17262_s12 + $0xeb4] sm:$0xf]  ;;  %v15619_v9 = vld [vmem:[%s17262_s12 + $0x2848] sm:$0xf0] }
 0x1b5   : > { %8777 = vmatpush.bf16.msra.mxu3 %v14470_v49  ;;  %v16432_v49 = vld [vmem:[%s17262_s12 + $0x17b4] sm:$0xf] }
 0x1b6   : > { %8739 = vmatpush.bf16.msra.mxu0 %v12670_v25  ;;  %v18210_v24 = vpop.f32.mrf.mxu2  ;;  %v12382_v25 = vor.u32 %v16144_v14, %v12379_v10  ;;  %v13534_v34 = vor.u32 %v16432_v49, %v13531_v54  ;;  %v15956_v10 = vld [vmem:[%s17262_s12 + $0x8cc] sm:$0xf0]  ;;  %v14971_v49 = vld [vmem:[%s17262_s12 + $0x2338] sm:$0xf0] }
 0x1b7   : > { %8752 = vmatpush.bf16.msra.mxu1 %v13246_v26  ;;  %v12958_v26 = vor.u32 %v16288_v52, %v12955_v51  ;;  %v18218_v7 = vpop.f32.mrf.mxu3  ;;  %v11018_v51 = vor.u32 %v15812_v2, %v11017_v1  ;;  %v11377_v1 = vld [vmem:[%s17262_s12 + $0x6d8] sm:$0xf]  ;;  %v15902_v2 = vld [vmem:[%s17262_s12 + $0x71c] sm:$0xf0] }
 0x1b8   : > { %8765 = vmatpush.bf16.msra.mxu2 %v13822_v31  ;;  %v8489_v31 = vpop.f32.mrf.mxu0 }
 0x1b9   : > { %8778 = vmatpush.bf16.msra.mxu3 %v14398_v38  ;;  %v12883_v38 = vld [vmem:[%s17262_s12 + $0x12e8] sm:$0xf0] }
 0x1ba   : > { %8740 = vmatpush.bf16.msra.mxu0 %v12598_v44  ;;  %v8502_v44 = vpop.f32.mrf.mxu1  ;;  %v12886_v50 = vor.u32 %v16270_v36, %v12883_v38  ;;  %v15550_v36 = vor.u32 %v16936_v43, %v15547_v18  ;;  %v15884_v43 = vld [vmem:[%s17262_s12 + $0x68c] sm:$0xf0] }
 0x1bb   : > { %8753 = vmatpush.bf16.msra.mxu1 %v13174_v46  ;;  %v16558_v46 = vld [vmem:[%s17262_s12 + $0x1ba4] sm:$0xf]  ;;  %v10873_v44 = vld [vmem:[%s17262_s12 + $0x2e8] sm:$0xf] }
 0x1bc   : > { %8766 = vmatpush.bf16.msra.mxu2 %v13750_v48  ;;  %v12310_v48 = vor.u32 %v16126_v30, %v12307_v35  ;;  %v15938_v35 = vld [vmem:[%s17262_s12 + $0x83c] sm:$0xf0] }
 0x1bd   : > { %8779 = vmatpush.bf16.msra.mxu3 %v14326_v56  ;;  %v16252_v56 = vld [vmem:[%s17262_s12 + $0x1214] sm:$0xf] }
 0x1be   : > { %8741 = vmatpush.bf16.msra.mxu0 %v12526_v61  ;;  %v14038_v61 = vor.u32 %v16558_v46, %v14035_v47  ;;  %v12814_v8 = vor.u32 %v16252_v56, %v12811_v58  ;;  %v15776_v46 = vld [vmem:[%s17262_s12 + $0x32c] sm:$0xf0]  ;;  %v14827_v58 = vld [vmem:[%s17262_s12 + $0x2218] sm:$0xf0] }
 0x1bf   : > { %8754 = vmatpush.bf16.msra.mxu1 %v13102_v62  ;;  %v16810_v62 = vld [vmem:[%s17262_s12 + $0x2384] sm:$0xf]  ;;  %v8528_v63 = vpop.f32.mrf.mxu3 }
 0x1c0   : > { %8767 = vmatpush.bf16.msra.mxu2 %v13678_v0  ;;  %v16954_v0 = vld [vmem:[%s17262_s12 + $0x2804] sm:$0xf]  ;;  %v15046_v14 = vor.u32 %v16810_v62, %v15043_v45  ;;  %v15758_v62 = vld [vmem:[%s17262_s12 + $0x29c] sm:$0xf0] }
 0x1c1   : > { %8780 = vmatpush.bf16.msra.mxu3 %v14254_v3  ;;  %v8515_v3 = vpop.f32.mrf.mxu2  ;;  %v15622_v52 = vor.u32 %v16954_v0, %v15619_v9  ;;  %v11450_v0 = vor.u32 %v15920_v55, %v11449_v53  ;;  %v15187_v53 = vld [vmem:[%s17262_s12 + $0x24e8] sm:$0xf0]  ;;  %v10585_v55 = vld [vmem:[%s17262_s12 + $0xa8] sm:$0xf] }
 0x1c2   : > { %8742 = vmatpush.bf16.msra.mxu0 %v12454_v12  ;;  %v13963_v12 = vld [vmem:[%s17262_s12 + $0x1b58] sm:$0xf0] }
 0x1c3   : > { %8755 = vmatpush.bf16.msra.mxu1 %v13030_v13  ;;  %v13390_v13 = vor.u32 %v16396_v59, %v13387_v60  ;;  %v13966_v54 = vor.u32 %v16540_v11, %v13963_v12  ;;  %v16900_v59 = vld [vmem:[%s17262_s12 + $0x2654] sm:$0xf]  ;;  %v15403_v60 = vld [vmem:[%s17262_s12 + $0x2698] sm:$0xf0]  ;;  %v16882_v11 = vld [vmem:[%s17262_s12 + $0x25c4] sm:$0xf] }
 0x1c4   : > { %8768 = vmatpush.bf16.msra.mxu2 %v13606_v15  ;;  %v11593_v15 = vld [vmem:[%s17262_s12 + $0x888] sm:$0xf]  ;;  %v15406_v3 = vor.u32 %v16900_v59, %v15403_v60 }
 0x1c5   : > { %8781 = vmatpush.bf16.msra.mxu3 %v14182_v17  ;;  %v16792_v17 = vld [vmem:[%s17262_s12 + $0x22f4] sm:$0xf]  ;;  %v11594_v30 = vor.u32 %v15956_v10, %v11593_v15  ;;  %v15740_v15 = vld [vmem:[%s17262_s12 + $0x20c] sm:$0xf0]  ;;  %v11161_v60 = vld [vmem:[%s17262_s12 + $0x528] sm:$0xf] }
 0x1c6   : > { %8743 = vmatpush.bf16.msra.mxu0 %v12382_v25  ;;  %v15794_v25 = vld [vmem:[%s17262_s12 + $0x3bc] sm:$0xf0]  ;;  %v14974_v31 = vor.u32 %v16792_v17, %v14971_v49  ;;  %v11305_v49 = vld [vmem:[%s17262_s12 + $0x648] sm:$0xf] }
 0x1c7   : > { %8756 = vmatpush.bf16.msra.mxu1 %v12958_v26  ;;  %v8501_v26 = vadd.f32 %v18198_v6, %v8488_v4  ;;  %v10946_v38 = vor.u32 %v15794_v25, %v10945_v20  ;;  %v16918_v6 = vld [vmem:[%s17262_s12 + $0x26e4] sm:$0xf]  ;;  %v16720_v20 = vld [vmem:[%s17262_s12 + $0x20b4] sm:$0xf]  ;;  %v14683_v25 = vld [vmem:[%s17262_s12 + $0x20f8] sm:$0xf0] }
 0x1c8   : > { %8769 = vmatpush.bf16.msra.mxu2 %v13534_v34  ;;  %v11521_v34 = vld [vmem:[%s17262_s12 + $0x7f8] sm:$0xf]  ;;  %v15478_v56 = vor.u32 %v16918_v6, %v15475_v41 }
 0x1c9   : > { %8782 = vmatpush.bf16.msra.mxu3 %v14110_v39  ;;  %v16774_v39 = vld [vmem:[%s17262_s12 + $0x2264] sm:$0xf]  ;;  %v8514_v47 = vadd.f32 %v18210_v24, %v8501_v26  ;;  %v16756_v24 = vld [vmem:[%s17262_s12 + $0x21d4] sm:$0xf] }
 0x1ca   : > { %8744 = vmatpush.bf16.msra.mxu0 %v12310_v48  ;;  %v11522_v48 = vor.u32 %v15938_v35, %v11521_v34  ;;  %v14830_v9 = vor.u32 %v16756_v24, %v14827_v58  ;;  %v16864_v26 = vld [vmem:[%s17262_s12 + $0x2534] sm:$0xf]  ;;  %v15722_v34 = vld [vmem:[%s17262_s12 + $0x17c] sm:$0xf0] }
 0x1cb   : > { %8757 = vmatpush.bf16.msra.mxu1 %v12886_v50  ;;  %v14902_v50 = vor.u32 %v16774_v39, %v14899_v40  ;;  %v8527_v45 = vadd.f32 %v18218_v7, %v8514_v47  ;;  %v11233_v39 = vld [vmem:[%s17262_s12 + $0x5b8] sm:$0xf]  ;;  %v15866_v40 = vld [vmem:[%s17262_s12 + $0x5fc] sm:$0xf0]  ;;  %v14611_v47 = vld [vmem:[%s17262_s12 + $0x2068] sm:$0xf0] }
 0x1cc   : > { %8770 = vmatpush.bf16.msra.mxu2 %v13462_v57  ;;  %v10874_v57 = vor.u32 %v15776_v46, %v10873_v44  ;;  %v16702_v46 = vld [vmem:[%s17262_s12 + $0x2024] sm:$0xf]  ;;  %v309_v58 = vld [vmem:[#allocation2] sm:$0xff]  ;;  %v11234_v59 = vor.u32 %v15866_v40, %v11233_v39  ;;  %v13249_v40 = vld [vmem:[%s17262_s12 + $0x1578] sm:$0xf] }
 0x1cd   : > { %8783 = vmatpush.bf16.msra.mxu3 %v14038_v61  ;;  %v10801_v61 = vld [vmem:[%s17262_s12 + $0x258] sm:$0xf] }
 0x1ce   : > { %8745 = vmatpush.bf16.msra.mxu0 %v12238_v5  ;;  %v10802_v4 = vor.u32 %v15758_v62, %v10801_v61  ;;  %v16738_v5 = vld [vmem:[%s17262_s12 + $0x2144] sm:$0xf]  ;;  %v8539_v12 = vpop.f32.mrf.mxu0  ;;  %v15848_v61 = vld [vmem:[%s17262_s12 + $0x56c] sm:$0xf0] }
 0x1cf   : > { %8758 = vmatpush.bf16.msra.mxu1 %v12814_v8  ;;  %v14755_v8 = vld [vmem:[%s17262_s12 + $0x2188] sm:$0xf0]  ;;  %v8552_v7 = vpop.f32.mrf.mxu1  ;;  %v8540_v10 = vadd.f32 %v8539_v12, %v8527_v45  ;;  %v14614_v45 = vor.u32 %v16702_v46, %v14611_v47  ;;  %v12169_v12 = vld [vmem:[%s17262_s12 + $0xd08] sm:$0xf] }
 0x1d0   : > { %8771 = vmatpush.bf16.msra.mxu2 %v13390_v13  ;;  %v15331_v13 = vld [vmem:[%s17262_s12 + $0x2608] sm:$0xf0]  ;;  %v14758_v17 = vor.u32 %v16738_v5, %v14755_v8  ;;  %v10513_v5 = vld [vmem:[%s17262_s12 + $0x18] sm:$0xf] }
 0x1d1   : > { %8784 = vmatpush.bf16.msra.mxu3 %v13966_v54  ;;  %8746 = vmatmul.bf16.vlgmr.msra.gmra.mxu0 %v17396_v23  ;;  %v8553_v63 = vadd.f32 %v8552_v7, %v8540_v10  ;;  %v15334_v54 = vor.u32 %v16882_v11, %v15331_v13  ;;  %v15686_v11 = vld [vmem:[%s17262_s12 + $0x5c] sm:$0xf0]  ;;  %v16100_v7 = vld [vmem:[%s17262_s12 + $0xd4c] sm:$0xf0] }
 0x1d2   : > { %8790 = vmatpush.bf16.msrb.mxu0 %v15046_v14  ;;  %8759 = vmatmul.bf16.vlgmr.msra.gmra.mxu1 %v17448_v29  ;;  %v10729_v14 = vld [vmem:[%s17262_s12 + $0x1c8] sm:$0xf]  ;;  %v16244_v10 = vld [vmem:[%s17262_s12 + $0x11cc] sm:$0xf0] }
 0x1d3   : > { %8803 = vmatpush.bf16.msrb.mxu1 %v15622_v52  ;;  %8772 = vmatmul.bf16.vlgmr.msra.gmra.mxu2 %v17452_v33  ;;  %v11378_v52 = vor.u32 %v15902_v2, %v11377_v1  ;;  %v10730_v18 = vor.u32 %v15740_v15, %v10729_v14  ;;  %v11162_v14 = vor.u32 %v15848_v61, %v11161_v60  ;;  %v12745_v15 = vld [vmem:[%s17262_s12 + $0x1188] sm:$0xf]  ;;  %v16496_v60 = vld [vmem:[%s17262_s12 + $0x19ac] sm:$0xf0] }
 0x1d4   : > { %8816 = vmatpush.bf16.msrb.mxu2 %v11018_v51  ;;  %8785 = vmatmul.bf16.vlgmr.msra.gmra.mxu3 %v17446_v28  ;;  %v8462_v51 = vadd.f32 %v18130_v19, %v18122_v16  ;;  %v11306_v19 = vor.u32 %v15884_v43, %v11305_v49  ;;  %v16388_v43 = vld [vmem:[%s17262_s12 + $0x164c] sm:$0xf0] }
 0x1d5   : > { %8829 = vmatpush.bf16.msrb.mxu3 %v11594_v30  ;;  %v15259_v30 = vld [vmem:[%s17262_s12 + $0x2578] sm:$0xf0] }
 0x1d6   : > { %8791 = vmatpush.bf16.msrb.mxu0 %v14974_v31  ;;  %v10657_v31 = vld [vmem:[%s17262_s12 + $0x138] sm:$0xf]  ;;  %v8565_v16 = vpop.f32.mrf.mxu2  ;;  %v10239_v35 = vrot.slane %v8462_v51, 4  ;;  %v15262_v41 = vor.u32 %v16864_v26, %v15259_v30  ;;  %v12170_v30 = vor.u32 %v16100_v7, %v12169_v12  ;;  %v11881_v7 = vld [vmem:[%s17262_s12 + $0xac8] sm:$0xf] }
 0x1d7   : > { %8804 = vmatpush.bf16.msrb.mxu1 %v15550_v36  ;;  %v8566_v36 = vadd.f32 %v8565_v16, %v8553_v63  ;;  %v8578_v6 = vpop.f32.mrf.mxu3  ;;  %v10658_v44 = vor.u32 %v15722_v34, %v10657_v31  ;;  %v8554_v24 = vpop.f32.mrf.mxu1  ;;  %v11089_v63 = vld [vmem:[%s17262_s12 + $0x498] sm:$0xf]  ;;  %v12746_v31 = vor.u32 %v16244_v10, %v12745_v15  ;;  %v12457_v15 = vld [vmem:[%s17262_s12 + $0xf48] sm:$0xf]  ;;  %v16172_v10 = vld [vmem:[%s17262_s12 + $0xf8c] sm:$0xf0] }
 0x1d8   : > { %8817 = vmatpush.bf16.msrb.mxu2 %v10946_v38  ;;  %v14686_v38 = vor.u32 %v16720_v20, %v14683_v25  ;;  %v13897_v20 = vld [vmem:[%s17262_s12 + $0x1a88] sm:$0xf]  ;;  %v16532_v25 = vld [vmem:[%s17262_s12 + $0x1acc] sm:$0xf0]  ;;  %v12097_v34 = vld [vmem:[%s17262_s12 + $0xc78] sm:$0xf] }
 0x1d9   : > { %8830 = vmatpush.bf16.msrb.mxu3 %v11522_v48  ;;  %v16846_v48 = vld [vmem:[%s17262_s12 + $0x24a4] sm:$0xf]  ;;  %v13898_v39 = vor.u32 %v16532_v25, %v13897_v20  ;;  %v13177_v24 = vld [vmem:[%s17262_s12 + $0x14e8] sm:$0xf]  ;;  %v12458_v20 = vor.u32 %v16172_v10, %v12457_v15  ;;  %v11809_v25 = vld [vmem:[%s17262_s12 + $0xa38] sm:$0xf] }
 0x1da   : > { %8792 = vmatpush.bf16.msrb.mxu0 %v14902_v50  ;;  %v8579_v50 = vadd.f32 %v8578_v6, %v8566_v36  ;;  %v15190_v1 = vor.u32 %v16846_v48, %v15187_v53  ;;  %v12673_v36 = vld [vmem:[%s17262_s12 + $0x10f8] sm:$0xf]  ;;  %v16370_v6 = vld [vmem:[%s17262_s12 + $0x15bc] sm:$0xf0]  ;;  %v12025_v48 = vld [vmem:[%s17262_s12 + $0xbe8] sm:$0xf] }
 0x1db   : > { %8805 = vmatpush.bf16.msrb.mxu1 %v15478_v56  ;;  %v15704_v56 = vld [vmem:[%s17262_s12 + $0xec] sm:$0xf0] }
 0x1dc   : > { %8818 = vmatpush.bf16.msrb.mxu2 %v10874_v57  ;;  %v8541_v57 = vpop.f32.mrf.mxu0  ;;  %v10240_v62 = vrot.slane %v8579_v50, 2  ;;  %v10586_v2 = vor.u32 %v15704_v56, %v10585_v55  ;;  %v13250_v50 = vor.u32 %v16370_v6, %v13249_v40  ;;  %v16064_v53 = vld [vmem:[%s17262_s12 + $0xc2c] sm:$0xf0]  ;;  %v12601_v55 = vld [vmem:[%s17262_s12 + $0x1068] sm:$0xf] }
 0x1dd   : > { %8831 = vmatpush.bf16.msrb.mxu3 %v11450_v0  ;;  %v16684_v0 = vld [vmem:[%s17262_s12 + $0x1f94] sm:$0xf]  ;;  %v16208_v56 = vld [vmem:[%s17262_s12 + $0x10ac] sm:$0xf0]  ;;  %v12026_v61 = vor.u32 %v16064_v53, %v12025_v48  ;;  %v12313_v48 = vld [vmem:[%s17262_s12 + $0xe28] sm:$0xf] }
 0x1de   : > { %8793 = vmatpush.bf16.msrb.mxu0 %v14830_v9  ;;  %v14539_v9 = vld [vmem:[%s17262_s12 + $0x1fd8] sm:$0xf0]  ;;  %v10254_v8 = vsel %vm10253_vm1, %v10239_v35, %v10240_v62  ;;  %v8567_v51 = vpop.f32.mrf.mxu2  ;;  %v16082_v35 = vld [vmem:[%s17262_s12 + $0xcbc] sm:$0xf0]  ;;  %v12602_v62 = vor.u32 %v16208_v56, %v12601_v55  ;;  %v12889_v55 = vld [vmem:[%s17262_s12 + $0x12a8] sm:$0xf] }
 0x1df   : > { %8806 = vmatpush.bf16.msrb.mxu1 %v15406_v3  ;;  %v16828_v3 = vld [vmem:[%s17262_s12 + $0x2414] sm:$0xf]  ;;  %v10256_v13 = vsel %vm10255_vm2, %v17986_v32, %v10254_v8  ;;  %v14542_v49 = vor.u32 %v16684_v0, %v14539_v9  ;;  %v8580_v26 = vpop.f32.mrf.mxu3  ;;  %v12098_v46 = vor.u32 %v16082_v35, %v12097_v34  ;;  %v16046_v9 = vld [vmem:[%s17262_s12 + $0xb9c] sm:$0xf0]  ;;  %v13033_v51 = vld [vmem:[%s17262_s12 + $0x13c8] sm:$0xf] }
 0x1e0   : > { %8819 = vmatpush.bf16.msrb.mxu2 %v10802_v4  ;;  %v15115_v4 = vld [vmem:[%s17262_s12 + $0x2458] sm:$0xf0]  ;;  %v16478_v8 = vld [vmem:[%s17262_s12 + $0x191c] sm:$0xf0]  ;;  %v16280_v56 = vld [vmem:[%s17262_s12 + $0x12ec] sm:$0xf0] }
 0x1e1   : > { %8832 = vmatpush.bf16.msrb.mxu3 %v11378_v52  ;;  %v13321_v52 = vld [vmem:[%s17262_s12 + $0x1608] sm:$0xf]  ;;  %v15118_v32 = vor.u32 %v16828_v3, %v15115_v4  ;;  %v13105_v3 = vld [vmem:[%s17262_s12 + $0x1458] sm:$0xf]  ;;  %v16334_v4 = vld [vmem:[%s17262_s12 + $0x149c] sm:$0xf0] }
 0x1e2   : > { %8794 = vmatpush.bf16.msrb.mxu0 %v14758_v17  ;;  %v10272_v17 = vadd.f32 %v10256_v13, %v309_v58  ;;  %v13322_v16 = vor.u32 %v16388_v43, %v13321_v52  ;;  %v16352_v58 = vld [vmem:[%s17262_s12 + $0x152c] sm:$0xf0]  ;;  %v13106_v13 = vor.u32 %v16334_v4, %v13105_v3  ;;  %v16154_v34 = vld [vmem:[%s17262_s12 + $0xefc] sm:$0xf0]  ;;  %v12817_v3 = vld [vmem:[%s17262_s12 + $0x1218] sm:$0xf] }
 0x1e3   : > { %8807 = vmatpush.bf16.msrb.mxu1 %v15334_v54  ;;  %v15830_v54 = vld [vmem:[%s17262_s12 + $0x4dc] sm:$0xf0]  ;;  %v13178_v0 = vor.u32 %v16352_v58, %v13177_v24  ;;  %v13465_v58 = vld [vmem:[%s17262_s12 + $0x1728] sm:$0xf] }
 0x1e4   : > { %8820 = vmatpush.bf16.msrb.mxu2 %v10730_v18  ;;  %v10514_v18 = vor.u32 %v15686_v11, %v10513_v5  ;;  %10277 = vst [vmem:[#allocation2] sm:$0xff] %v10272_v17  ;;  %v13681_v5 = vld [vmem:[%s17262_s12 + $0x18d8] sm:$0xf]  ;;  %v16316_v17 = vld [vmem:[%s17262_s12 + $0x140c] sm:$0xf0] }
 0x1e5   : > { %8833 = vmatpush.bf16.msrb.mxu3 %v11306_v19  ;;  %v11090_v19 = vor.u32 %v15830_v54, %v11089_v63  ;;  %v13682_v52 = vor.u32 %v16478_v8, %v13681_v5  ;;  %v13609_v63 = vld [vmem:[%s17262_s12 + $0x1848] sm:$0xf]  ;;  %v16460_v54 = vld [vmem:[%s17262_s12 + $0x188c] sm:$0xf0]  ;;  %v13034_v26 = vor.u32 %v16316_v17, %v13033_v51  ;;  %v16298_v35 = vld [vmem:[%s17262_s12 + $0x137c] sm:$0xf0] }
 0x1e6   : > { %8795 = vmatpush.bf16.msrb.mxu0 %v14686_v38  ;;  %v16226_v38 = vld [vmem:[%s17262_s12 + $0x113c] sm:$0xf0]  ;;  %v14473_v8 = vld [vmem:[%s17262_s12 + $0x1f08] sm:$0xf]  ;;  %v13393_v51 = vld [vmem:[%s17262_s12 + $0x1698] sm:$0xf] }
 0x1e7   : > { %8808 = vmatpush.bf16.msrb.mxu1 %v15262_v41  ;;  %v13825_v41 = vld [vmem:[%s17262_s12 + $0x19f8] sm:$0xf]  ;;  %v12674_v47 = vor.u32 %v16226_v38, %v12673_v36  ;;  %v16442_v38 = vld [vmem:[%s17262_s12 + $0x17fc] sm:$0xf0] }
 0x1e8   : > { %8821 = vmatpush.bf16.msrb.mxu2 %v10658_v44  ;;  %v16514_v44 = vld [vmem:[%s17262_s12 + $0x1a3c] sm:$0xf0]  ;;  %v13537_v36 = vld [vmem:[%s17262_s12 + $0x17b8] sm:$0xf] }
 0x1e9   : > { %8834 = vmatpush.bf16.msrb.mxu3 %v11234_v59  ;;  %v13826_v57 = vor.u32 %v16514_v44, %v13825_v41  ;;  %v13753_v59 = vld [vmem:[%s17262_s12 + $0x1968] sm:$0xf]  ;;  %v13538_v53 = vor.u32 %v16442_v38, %v13537_v36  ;;  %v16262_v4 = vld [vmem:[%s17262_s12 + $0x125c] sm:$0xf0]  ;;  %v15785_v38 = vld [vmem:[%s17262_s12 + $0x37c] sm:$0xf] }
 0x1ea   : > { %8796 = vmatpush.bf16.msrb.mxu0 %v14614_v45  ;;  %v11953_v45 = vld [vmem:[%s17262_s12 + $0xb58] sm:$0xf]  ;;  %v11737_v41 = vld [vmem:[%s17262_s12 + $0x9a8] sm:$0xf]  ;;  %v16406_v17 = vld [vmem:[%s17262_s12 + $0x16dc] sm:$0xf0] }
 0x1eb   : > { %8809 = vmatpush.bf16.msrb.mxu1 %v15190_v1  ;;  %v12529_v1 = vld [vmem:[%s17262_s12 + $0xfd8] sm:$0xf]  ;;  %v11954_v11 = vor.u32 %v16046_v9, %v11953_v45  ;;  %v15974_v9 = vld [vmem:[%s17262_s12 + $0x95c] sm:$0xf0] }
 0x1ec   : > { %8822 = vmatpush.bf16.msrb.mxu2 %v10586_v2  ;;  %v13754_v2 = vor.u32 %v16496_v60, %v13753_v59  ;;  %v16424_v59 = vld [vmem:[%s17262_s12 + $0x176c] sm:$0xf0] }
 0x1ed   : > { %8835 = vmatpush.bf16.msrb.mxu3 %v11162_v14  ;;  %v16028_v14 = vld [vmem:[%s17262_s12 + $0xb0c] sm:$0xf0]  ;;  %v13466_v5 = vor.u32 %v16424_v59, %v13465_v58  ;;  %v14257_v59 = vld [vmem:[%s17262_s12 + $0x1d58] sm:$0xf] }
 0x1ee   : > { %8797 = vmatpush.bf16.msrb.mxu0 %v14542_v49  ;;  %v8591_v49 = vpop.f32.mrf.mxu0 }
 0x1ef   : > { %8810 = vmatpush.bf16.msrb.mxu1 %v15118_v32  ;;  %v8604_v43 = vpop.f32.mrf.mxu1 }
 0x1f0   : > { %8823 = vmatpush.bf16.msrb.mxu2 %v10514_v18  ;;  %v8605_v32 = vadd.f32 %v8604_v43, %v8591_v49  ;;  %v11882_v18 = vor.u32 %v16028_v14, %v11881_v7  ;;  %v16820_v7 = vld [vmem:[%s17262_s12 + $0x23cc] sm:$0xf0]  ;;  %v12818_v49 = vor.u32 %v16262_v4, %v12817_v3  ;;  %v10803_v3 = vld [vmem:[%s17262_s12 + $0x2a0] sm:$0xf0] }
 0x1f1   : > { %8836 = vmatpush.bf16.msrb.mxu3 %v11090_v19  ;;  %8798 = vmatmul.bf16.vlgmr.msrb.gmra.mxu0 %v17462_v42  ;;  %v12961_v19 = vld [vmem:[%s17262_s12 + $0x1338] sm:$0xf]  ;;  %v16964_v14 = vld [vmem:[%s17262_s12 + $0x284c] sm:$0xf0] }
 0x1f2   : > { %8842 = vmatpush.bf16.msra.mxu0 %v12170_v30  ;;  %8811 = vmatmul.bf16.vlgmr.msrb.gmra.mxu1 %v18172_v37  ;;  %v16190_v37 = vld [vmem:[%s17262_s12 + $0x101c] sm:$0xf0] }
 0x1f3   : > { %8855 = vmatpush.bf16.msra.mxu1 %v12746_v31  ;;  %8824 = vmatmul.bf16.vlgmr.msrb.gmra.mxu2 %v17394_v22  ;;  %v12530_v12 = vor.u32 %v16190_v37, %v12529_v1  ;;  %v16010_v30 = vld [vmem:[%s17262_s12 + $0xa7c] sm:$0xf0]  ;;  %v12385_v31 = vld [vmem:[%s17262_s12 + $0xeb8] sm:$0xf]  ;;  %v12890_v37 = vor.u32 %v16280_v56, %v12889_v55  ;;  %v15767_v56 = vld [vmem:[%s17262_s12 + $0x2ec] sm:$0xf] }
 0x1f4   : > { %8868 = vmatpush.bf16.msra.mxu2 %v13322_v16  ;;  %8837 = vmatmul.bf16.vlgmr.msrb.gmra.mxu3 %v17401_v27  ;;  %v13610_v16 = vor.u32 %v16460_v54, %v13609_v63  ;;  %v11810_v40 = vor.u32 %v16010_v30, %v11809_v25  ;;  %v12386_v6 = vor.u32 %v16154_v34, %v12385_v31  ;;  %v12241_v1 = vld [vmem:[%s17262_s12 + $0xd98] sm:$0xf]  ;;  %v15803_v63 = vld [vmem:[%s17262_s12 + $0x40c] sm:$0xf]  ;;  %v11019_v54 = vld [vmem:[%s17262_s12 + $0x450] sm:$0xf0] }
 0x1f5   : > { %8881 = vmatpush.bf16.msra.mxu3 %v13898_v39  ;;  %v16658_v25 = vld [vmem:[%s17262_s12 + $0x1ebc] sm:$0xf0]  ;;  %v13394_v31 = vor.u32 %v16406_v17, %v13393_v51 }
 0x1f6   : > { %8843 = vmatpush.bf16.msra.mxu0 %v12098_v46  ;;  %v8617_v39 = vpop.f32.mrf.mxu2  ;;  %v12962_v46 = vor.u32 %v16298_v35, %v12961_v19  ;;  %v8593_v24 = vpop.f32.mrf.mxu0  ;;  %v16802_v34 = vld [vmem:[%s17262_s12 + $0x233c] sm:$0xf0]  ;;  %v11022_v35 = vor.u32 %v15803_v63, %v11019_v54  ;;  %v10731_v63 = vld [vmem:[%s17262_s12 + $0x210] sm:$0xf0] }
 0x1f7   : > { %8856 = vmatpush.bf16.msra.mxu1 %v12674_v47  ;;  %v8618_v44 = vadd.f32 %v8617_v39, %v8605_v32  ;;  %v15992_v47 = vld [vmem:[%s17262_s12 + $0x9ec] sm:$0xf0]  ;;  %v16946_v19 = vld [vmem:[%s17262_s12 + $0x27bc] sm:$0xf0]  ;;  %v10947_v39 = vld [vmem:[%s17262_s12 + $0x3c0] sm:$0xf0] }
 0x1f8   : > { %8869 = vmatpush.bf16.msra.mxu2 %v13250_v50  ;;  %v16136_v50 = vld [vmem:[%s17262_s12 + $0xe6c] sm:$0xf0] }
 0x1f9   : > { %8882 = vmatpush.bf16.msra.mxu3 %v13826_v57  ;;  %v8630_v57 = vpop.f32.mrf.mxu3  ;;  %v12314_v45 = vor.u32 %v16136_v50, %v12313_v48  ;;  %v15481_v48 = vld [vmem:[%s17262_s12 + $0x26e8] sm:$0xf]  ;;  %v16928_v50 = vld [vmem:[%s17262_s12 + $0x272c] sm:$0xf0] }
 0x1fa   : > { %8844 = vmatpush.bf16.msra.mxu0 %v12026_v61  ;;  %v18368_v60 = vadd.f32 %v8630_v57, %v8618_v44  ;;  %v8606_v61 = vpop.f32.mrf.mxu1  ;;  %v16640_v44 = vld [vmem:[%s17262_s12 + $0x1e2c] sm:$0xf0]  ;;  %v10875_v57 = vld [vmem:[%s17262_s12 + $0x330] sm:$0xf0]  ;;  %v15482_v58 = vor.u32 %v16928_v50, %v15481_v48 }
 0x1fb   : > { %8857 = vmatpush.bf16.msra.mxu1 %v12602_v62  ;;  %v11738_v62 = vor.u32 %v15992_v47, %v11737_v41  ;;  %v14329_v41 = vld [vmem:[%s17262_s12 + $0x1de8] sm:$0xf]  ;;  %v16784_v47 = vld [vmem:[%s17262_s12 + $0x22ac] sm:$0xf0]  ;;  %v16622_v61 = vld [vmem:[%s17262_s12 + $0x1d9c] sm:$0xf0] }
 0x1fc   : > { %8870 = vmatpush.bf16.msra.mxu2 %v13178_v0  ;;  %v11665_v0 = vld [vmem:[%s17262_s12 + $0x918] sm:$0xf]  ;;  %v14330_v55 = vor.u32 %v16640_v44, %v14329_v41  ;;  %v14617_v41 = vld [vmem:[%s17262_s12 + $0x2028] sm:$0xf]  ;;  %v16856_v48 = vld [vmem:[%s17262_s12 + $0x24ec] sm:$0xf0] }
 0x1fd   : > { %8883 = vmatpush.bf16.msra.mxu3 %v13754_v2  ;;  %v16118_v2 = vld [vmem:[%s17262_s12 + $0xddc] sm:$0xf0]  ;;  %v11666_v10 = vor.u32 %v15974_v9, %v11665_v0  ;;  %v15409_v0 = vld [vmem:[%s17262_s12 + $0x2658] sm:$0xf] }
 0x1fe   : > { %8845 = vmatpush.bf16.msra.mxu0 %v11954_v11  ;;  %v16676_v11 = vld [vmem:[%s17262_s12 + $0x1f4c] sm:$0xf0]  ;;  %v8619_v15 = vpop.f32.mrf.mxu2  ;;  %v16910_v9 = vld [vmem:[%s17262_s12 + $0x269c] sm:$0xf0] }
 0x1ff   : > { %8858 = vmatpush.bf16.msra.mxu1 %v12530_v12  ;;  %v15049_v12 = vld [vmem:[%s17262_s12 + $0x2388] sm:$0xf]  ;;  %v14474_v43 = vor.u32 %v16676_v11, %v14473_v8 }
 0x200   : > { %8871 = vmatpush.bf16.msra.mxu2 %v13106_v13  ;;  %v15625_v13 = vld [vmem:[%s17262_s12 + $0x2808] sm:$0xf]  ;;  %v15050_v32 = vor.u32 %v16820_v7, %v15049_v12  ;;  %v16604_v12 = vld [vmem:[%s17262_s12 + $0x1d0c] sm:$0xf0] }
 0x201   : > { %8884 = vmatpush.bf16.msra.mxu3 %v13682_v52  ;;  %v12242_v52 = vor.u32 %v16118_v2, %v12241_v1  ;;  %v8632_v30 = vpop.f32.mrf.mxu3  ;;  %v10878_v1 = vor.u32 %v15767_v56, %v10875_v57  ;;  %v15749_v2 = vld [vmem:[%s17262_s12 + $0x25c] sm:$0xf]  ;;  %v14185_v11 = vld [vmem:[%s17262_s12 + $0x1cc8] sm:$0xf] }
 0x202   : > { %8846 = vmatpush.bf16.msra.mxu0 %v11882_v18  ;;  %v15626_v18 = vor.u32 %v16964_v14, %v15625_v13  ;;  %v14761_v7 = vld [vmem:[%s17262_s12 + $0x2148] sm:$0xf]  ;;  %v16748_v14 = vld [vmem:[%s17262_s12 + $0x218c] sm:$0xf0]  ;;  %v14186_v17 = vor.u32 %v16604_v12, %v14185_v11  ;;  %v16874_v30 = vld [vmem:[%s17262_s12 + $0x257c] sm:$0xf0] }
 0x203   : > { %8859 = vmatpush.bf16.msra.mxu1 %v12458_v20  ;;  %v14401_v20 = vld [vmem:[%s17262_s12 + $0x1e78] sm:$0xf]  ;;  %v15337_v15 = vld [vmem:[%s17262_s12 + $0x25c8] sm:$0xf]  ;;  %v16235_v11 = vld [vmem:[%s17262_s12 + $0x118c] sm:$0xf] }
 0x204   : > { %8872 = vmatpush.bf16.msra.mxu2 %v13034_v26  ;;  %v14977_v26 = vld [vmem:[%s17262_s12 + $0x22f8] sm:$0xf]  ;;  %v14402_v36 = vor.u32 %v16658_v25, %v14401_v20  ;;  %v16730_v25 = vld [vmem:[%s17262_s12 + $0x20fc] sm:$0xf0] }
 0x205   : > { %8885 = vmatpush.bf16.msra.mxu3 %v13610_v16  ;;  %v15553_v16 = vld [vmem:[%s17262_s12 + $0x2778] sm:$0xf] }
 0x206   : > { %8847 = vmatpush.bf16.msra.mxu0 %v11810_v40  ;;  %v14978_v40 = vor.u32 %v16802_v34, %v14977_v26  ;;  %v14689_v20 = vld [vmem:[%s17262_s12 + $0x20b8] sm:$0xf] }
 0x207   : > { %8860 = vmatpush.bf16.msra.mxu1 %v12386_v6  ;;  %v15554_v6 = vor.u32 %v16946_v19, %v15553_v16  ;;  %v15265_v26 = vld [vmem:[%s17262_s12 + $0x2538] sm:$0xf]  ;;  %v15713_v19 = vld [vmem:[%s17262_s12 + $0x13c] sm:$0xf] }
 0x208   : > { %8873 = vmatpush.bf16.msra.mxu2 %v12962_v46  ;;  %v14905_v46 = vld [vmem:[%s17262_s12 + $0x2268] sm:$0xf] }
 0x209   : > { %8886 = vmatpush.bf16.msra.mxu3 %v13538_v53  ;;  %v10950_v53 = vor.u32 %v15785_v38, %v10947_v39  ;;  %v14906_v24 = vor.u32 %v16784_v47, %v14905_v46  ;;  %v14690_v38 = vor.u32 %v16730_v25, %v14689_v20  ;;  %v15266_v39 = vor.u32 %v16874_v30, %v15265_v26  ;;  %v16712_v46 = vld [vmem:[%s17262_s12 + $0x206c] sm:$0xf0]  ;;  %v15193_v47 = vld [vmem:[%s17262_s12 + $0x24a8] sm:$0xf]  ;;  %v12099_v20 = vld [vmem:[%s17262_s12 + $0xcc0] sm:$0xf0] }
 0x20a   : > { %8848 = vmatpush.bf16.msra.mxu0 %v11738_v62  ;;  %v14833_v62 = vld [vmem:[%s17262_s12 + $0x21d8] sm:$0xf]  ;;  %v16217_v30 = vld [vmem:[%s17262_s12 + $0x10fc] sm:$0xf] }
 0x20b   : > { %8861 = vmatpush.bf16.msra.mxu1 %v12314_v45  ;;  %v16766_v45 = vld [vmem:[%s17262_s12 + $0x221c] sm:$0xf0] }
 0x20c   : > { %8874 = vmatpush.bf16.msra.mxu2 %v12890_v37  ;;  %v14258_v37 = vor.u32 %v16622_v61, %v14257_v59  ;;  %v14834_v4 = vor.u32 %v16766_v45, %v14833_v62  ;;  %v13969_v59 = vld [vmem:[%s17262_s12 + $0x1b18] sm:$0xf]  ;;  %v16550_v61 = vld [vmem:[%s17262_s12 + $0x1b5c] sm:$0xf0]  ;;  %v14618_v62 = vor.u32 %v16712_v46, %v14617_v41  ;;  %v15194_v45 = vor.u32 %v16856_v48, %v15193_v47  ;;  %v16199_v46 = vld [vmem:[%s17262_s12 + $0x106c] sm:$0xf] }
 0x20d   : > { %8887 = vmatpush.bf16.msra.mxu3 %v13466_v5  ;;  %v15410_v5 = vor.u32 %v16910_v9, %v15409_v0  ;;  %v14545_v0 = vld [vmem:[%s17262_s12 + $0x1f98] sm:$0xf]  ;;  %v16694_v9 = vld [vmem:[%s17262_s12 + $0x1fdc] sm:$0xf0]  ;;  %v13970_v12 = vor.u32 %v16550_v61, %v13969_v59  ;;  %v12603_v47 = vld [vmem:[%s17262_s12 + $0x10b0] sm:$0xf0] }
 0x20e   : > { %8849 = vmatpush.bf16.msra.mxu0 %v11666_v10  ;;  %v8643_v8 = vpop.f32.mrf.mxu0  ;;  %v16892_v10 = vld [vmem:[%s17262_s12 + $0x260c] sm:$0xf0]  ;;  %v18469_v41 = vld [vmem:[#allocation1] sm:$0xff]  ;;  %v16343_v48 = vld [vmem:[%s17262_s12 + $0x14ec] sm:$0xf] }
 0x20f   : > { %8862 = vmatpush.bf16.msra.mxu1 %v12242_v52  ;;  %v8644_v13 = vadd.f32 %v8643_v8, %v18368_v60  ;;  %v10806_v52 = vor.u32 %v15749_v2, %v10803_v3  ;;  %v8656_v51 = vpop.f32.mrf.mxu1  ;;  %v14762_v60 = vor.u32 %v16748_v14, %v14761_v7  ;;  %v15338_v54 = vor.u32 %v16892_v10, %v15337_v15  ;;  %v15947_v2 = vld [vmem:[%s17262_s12 + $0x88c] sm:$0xf]  ;;  %v11595_v3 = vld [vmem:[%s17262_s12 + $0x8d0] sm:$0xf0]  ;;  %v10515_v14 = vld [vmem:[%s17262_s12 + $0x60] sm:$0xf0] }
 0x210   : > { %8875 = vmatpush.bf16.msra.mxu2 %v12818_v49  ;;  %v12171_v8 = vld [vmem:[%s17262_s12 + $0xd50] sm:$0xf0]  ;;  %v14546_v10 = vor.u32 %v16694_v9, %v14545_v0  ;;  %v16037_v59 = vld [vmem:[%s17262_s12 + $0xb5c] sm:$0xf]  ;;  %v11955_v61 = vld [vmem:[%s17262_s12 + $0xba0] sm:$0xf0] }
 0x211   : > { %8888 = vmatpush.bf16.msra.mxu3 %v13394_v31  ;;  %8850 = vmatmul.bf16.vlgmr.msra.gmra.mxu0 %v17392_v21  ;;  %v8657_v49 = vadd.f32 %v8656_v51, %v8644_v13  ;;  %v12747_v7 = vld [vmem:[%s17262_s12 + $0x11d0] sm:$0xf0]  ;;  %v15677_v13 = vld [vmem:[%s17262_s12 + $0x1c] sm:$0xf]  ;;  %v16379_v51 = vld [vmem:[%s17262_s12 + $0x160c] sm:$0xf] }
 0x212   : > { %8894 = vmatpush.bf16.msrb.mxu0 %v14474_v43  ;;  %8863 = vmatmul.bf16.vlgmr.msra.gmra.mxu1 %v17396_v23  ;;  %v15731_v43 = vld [vmem:[%s17262_s12 + $0x1cc] sm:$0xf]  ;;  %v12531_v0 = vld [vmem:[%s17262_s12 + $0x1020] sm:$0xf0]  ;;  %v16325_v9 = vld [vmem:[%s17262_s12 + $0x145c] sm:$0xf] }
 0x213   : > { %8907 = vmatpush.bf16.msrb.mxu1 %v15050_v32  ;;  %8876 = vmatmul.bf16.vlgmr.msra.gmra.mxu2 %v17448_v29  ;;  %v14113_v32 = vld [vmem:[%s17262_s12 + $0x1c38] sm:$0xf]  ;;  %v10734_v31 = vor.u32 %v15731_v43, %v10731_v63  ;;  %v15929_v63 = vld [vmem:[%s17262_s12 + $0x7fc] sm:$0xf] }
 0x214   : > { %8920 = vmatpush.bf16.msrb.mxu2 %v15626_v18  ;;  %8889 = vmatmul.bf16.vlgmr.msra.gmra.mxu3 %v17452_v33  ;;  %v16586_v18 = vld [vmem:[%s17262_s12 + $0x1c7c] sm:$0xf0] }
 0x215   : > { %8933 = vmatpush.bf16.msrb.mxu3 %v11022_v35  ;;  %v14114_v16 = vor.u32 %v16586_v18, %v14113_v32  ;;  %v10659_v35 = vld [vmem:[%s17262_s12 + $0x180] sm:$0xf0]  ;;  %v16073_v18 = vld [vmem:[%s17262_s12 + $0xc7c] sm:$0xf] }
 0x216   : > { %8895 = vmatpush.bf16.msrb.mxu0 %v14402_v36  ;;  %v8669_v34 = vpop.f32.mrf.mxu2  ;;  %v8645_v44 = vpop.f32.mrf.mxu0  ;;  %v11523_v32 = vld [vmem:[%s17262_s12 + $0x840] sm:$0xf0] }
 0x217   : > { %8908 = vmatpush.bf16.msrb.mxu1 %v14978_v40  ;;  %v8670_v36 = vadd.f32 %v8669_v34, %v8657_v49  ;;  %v14041_v40 = vld [vmem:[%s17262_s12 + $0x1ba8] sm:$0xf]  ;;  %v8682_v50 = vpop.f32.mrf.mxu3  ;;  %v8658_v56 = vpop.f32.mrf.mxu1  ;;  %v11598_v49 = vor.u32 %v15947_v2, %v11595_v3  ;;  %v16361_v34 = vld [vmem:[%s17262_s12 + $0x157c] sm:$0xf]  ;;  %v11958_v2 = vor.u32 %v16037_v59, %v11955_v61  ;;  %v15875_v3 = vld [vmem:[%s17262_s12 + $0x64c] sm:$0xf] }
 0x218   : > { %8921 = vmatpush.bf16.msrb.mxu2 %v15554_v6  ;;  %v16568_v6 = vld [vmem:[%s17262_s12 + $0x1bec] sm:$0xf0]  ;;  %v15893_v56 = vld [vmem:[%s17262_s12 + $0x6dc] sm:$0xf]  ;;  %v11091_v59 = vld [vmem:[%s17262_s12 + $0x4e0] sm:$0xf0] }
 0x219   : > { %8934 = vmatpush.bf16.msrb.mxu3 %v10950_v53  ;;  %v10662_v53 = vor.u32 %v15713_v19, %v10659_v35  ;;  %v18438_v57 = vadd.f32 %v8682_v50, %v8670_v36  ;;  %v11526_v19 = vor.u32 %v15929_v63, %v11523_v32  ;;  %v12102_v35 = vor.u32 %v16073_v18, %v12099_v20  ;;  %v15911_v36 = vld [vmem:[%s17262_s12 + $0x76c] sm:$0xf]  ;;  %v13179_v50 = vld [vmem:[%s17262_s12 + $0x1530] sm:$0xf0]  ;;  %v11235_v63 = vld [vmem:[%s17262_s12 + $0x600] sm:$0xf0] }
 0x21a   : > { %8896 = vmatpush.bf16.msrb.mxu0 %v14330_v55  ;;  %v15695_v55 = vld [vmem:[%s17262_s12 + $0xac] sm:$0xf]  ;;  %v16145_v18 = vld [vmem:[%s17262_s12 + $0xebc] sm:$0xf]  ;;  %v12387_v20 = vld [vmem:[%s17262_s12 + $0xf00] sm:$0xf0] }
 0x21b   : > { %8909 = vmatpush.bf16.msrb.mxu1 %v14906_v24  ;;  %v14042_v24 = vor.u32 %v16568_v6, %v14041_v40  ;;  %v16055_v40 = vld [vmem:[%s17262_s12 + $0xbec] sm:$0xf]  ;;  %v12027_v6 = vld [vmem:[%s17262_s12 + $0xc30] sm:$0xf0]  ;;  %v15965_v61 = vld [vmem:[%s17262_s12 + $0x91c] sm:$0xf] }
 0x21c   : > { %8922 = vmatpush.bf16.msrb.mxu2 %v15482_v58  ;;  %v10587_v58 = vld [vmem:[%s17262_s12 + $0xf0] sm:$0xf0] }
 0x21d   : > { %8935 = vmatpush.bf16.msrb.mxu3 %v10878_v1  ;;  %v15121_v1 = vld [vmem:[%s17262_s12 + $0x2418] sm:$0xf] }
 0x21e   : > { %8897 = vmatpush.bf16.msrb.mxu0 %v14258_v37  ;;  %v16838_v37 = vld [vmem:[%s17262_s12 + $0x245c] sm:$0xf0]  ;;  %v8671_v15 = vpop.f32.mrf.mxu2 }
 0x21f   : > { %8910 = vmatpush.bf16.msrb.mxu1 %v14834_v4  ;;  %v10590_v4 = vor.u32 %v15695_v55, %v10587_v58  ;;  %v8684_v25 = vpop.f32.mrf.mxu3  ;;  %v12030_v55 = vor.u32 %v16055_v40, %v12027_v6  ;;  %v11379_v58 = vld [vmem:[%s17262_s12 + $0x720] sm:$0xf0]  ;;  %v12459_v15 = vld [vmem:[%s17262_s12 + $0xf90] sm:$0xf0] }
 0x220   : > { %8923 = vmatpush.bf16.msrb.mxu2 %v15410_v5  ;;  %v16091_v5 = vld [vmem:[%s17262_s12 + $0xd0c] sm:$0xf]  ;;  %v16289_v25 = vld [vmem:[%s17262_s12 + $0x133c] sm:$0xf] }
 0x221   : > { %8936 = vmatpush.bf16.msrb.mxu3 %v10806_v52  ;;  %v15122_v52 = vor.u32 %v16838_v37, %v15121_v1  ;;  %v12174_v43 = vor.u32 %v16091_v5, %v12171_v8  ;;  %v13107_v1 = vld [vmem:[%s17262_s12 + $0x14a0] sm:$0xf0]  ;;  %v11382_v37 = vor.u32 %v15893_v56, %v11379_v58  ;;  %v11307_v8 = vld [vmem:[%s17262_s12 + $0x690] sm:$0xf0]  ;;  %v15821_v58 = vld [vmem:[%s17262_s12 + $0x49c] sm:$0xf] }
 0x222   : > { %8898 = vmatpush.bf16.msrb.mxu0 %v14186_v17  ;;  %v13323_v17 = vld [vmem:[%s17262_s12 + $0x1650] sm:$0xf0] }
 0x223   : > { %8911 = vmatpush.bf16.msrb.mxu1 %v14762_v60  ;;  %v12750_v60 = vor.u32 %v16235_v11, %v12747_v7  ;;  %v13326_v26 = vor.u32 %v16379_v51, %v13323_v17  ;;  %v16019_v11 = vld [vmem:[%s17262_s12 + $0xacc] sm:$0xf]  ;;  %v13035_v51 = vld [vmem:[%s17262_s12 + $0x1410] sm:$0xf0]  ;;  %v11310_v17 = vor.u32 %v15875_v3, %v11307_v8 }
 0x224   : > { %8924 = vmatpush.bf16.msrb.mxu2 %v15338_v54  ;;  %v10518_v54 = vor.u32 %v15677_v13, %v10515_v14  ;;  %v13110_v13 = vor.u32 %v16325_v9, %v13107_v1  ;;  %v16163_v14 = vld [vmem:[%s17262_s12 + $0xf4c] sm:$0xf]  ;;  %v12243_v9 = vld [vmem:[%s17262_s12 + $0xde0] sm:$0xf0]  ;;  %v15051_v8 = vld [vmem:[%s17262_s12 + $0x23d0] sm:$0xf0] }
 0x225   : > { %8937 = vmatpush.bf16.msrb.mxu3 %v10734_v31  ;;  %v12675_v31 = vld [vmem:[%s17262_s12 + $0x1140] sm:$0xf0]  ;;  %v16667_v3 = vld [vmem:[%s17262_s12 + $0x1f0c] sm:$0xf] }
 0x226   : > { %8899 = vmatpush.bf16.msrb.mxu0 %v14114_v16  ;;  %v13251_v16 = vld [vmem:[%s17262_s12 + $0x15c0] sm:$0xf0] }
 0x227   : > { %8912 = vmatpush.bf16.msrb.mxu1 %v14690_v38  ;;  %v12678_v38 = vor.u32 %v16217_v30, %v12675_v31  ;;  %v13254_v44 = vor.u32 %v16361_v34, %v13251_v16  ;;  %v15839_v34 = vld [vmem:[%s17262_s12 + $0x52c] sm:$0xf] }
 0x228   : > { %8925 = vmatpush.bf16.msrb.mxu2 %v15266_v39  ;;  %v11451_v39 = vld [vmem:[%s17262_s12 + $0x7b0] sm:$0xf0] }
 0x229   : > { %8938 = vmatpush.bf16.msrb.mxu3 %v10662_v53  ;;  %v11454_v53 = vor.u32 %v15911_v36, %v11451_v39  ;;  %v15983_v36 = vld [vmem:[%s17262_s12 + $0x9ac] sm:$0xf] }
 0x22a   : > { %8900 = vmatpush.bf16.msrb.mxu0 %v14042_v24  ;;  %v12606_v24 = vor.u32 %v16199_v46, %v12603_v47  ;;  %v12315_v46 = vld [vmem:[%s17262_s12 + $0xe70] sm:$0xf0] }
 0x22b   : > { %8913 = vmatpush.bf16.msrb.mxu1 %v14618_v62  ;;  %v13182_v62 = vor.u32 %v16343_v48, %v13179_v50  ;;  %v16271_v50 = vld [vmem:[%s17262_s12 + $0x12ac] sm:$0xf] }
 0x22c   : > { %8926 = vmatpush.bf16.msrb.mxu2 %v15194_v45  ;;  %v16181_v45 = vld [vmem:[%s17262_s12 + $0xfdc] sm:$0xf] }
 0x22d   : > { %8939 = vmatpush.bf16.msrb.mxu3 %v10590_v4  ;;  %v12534_v5 = vor.u32 %v16181_v45, %v12531_v0  ;;  %v11667_v45 = vld [vmem:[%s17262_s12 + $0x960] sm:$0xf0]  ;;  %v16109_v0 = vld [vmem:[%s17262_s12 + $0xd9c] sm:$0xf] }
 0x22e   : > { %8901 = vmatpush.bf16.msrb.mxu0 %v13970_v12  ;;  %v8695_v4 = vpop.f32.mrf.mxu0  ;;  %v11883_v12 = vld [vmem:[%s17262_s12 + $0xb10] sm:$0xf0] }
 0x22f   : > { %8914 = vmatpush.bf16.msrb.mxu1 %v14546_v10  ;;  %v18492_v7 = vadd.f32 %v8695_v4, %v18438_v57  ;;  %v8708_v10 = vpop.f32.mrf.mxu1  ;;  %v12462_v57 = vor.u32 %v16163_v14, %v12459_v15  ;;  %v14475_v4 = vld [vmem:[%s17262_s12 + $0x1f50] sm:$0xf0]  ;;  %v12819_v14 = vld [vmem:[%s17262_s12 + $0x1260] sm:$0xf0] }
 0x230   : > { %8927 = vmatpush.bf16.msrb.mxu2 %v15122_v52  ;;  %v16307_v52 = vld [vmem:[%s17262_s12 + $0x13cc] sm:$0xf] }
 0x231   : > { %8940 = vmatpush.bf16.msrb.mxu3 %v10518_v54  ;;  %8902 = vmatmul.bf16.vlgmr.msrb.gmra.mxu0 %v17446_v28  ;;  %v11811_v54 = vld [vmem:[%s17262_s12 + $0xa80] sm:$0xf0]  ;;  %v13038_v32 = vor.u32 %v16307_v52, %v13035_v51  ;;  %v16955_v51 = vld [vmem:[%s17262_s12 + $0x280c] sm:$0xf] }
 0x232   : > { %8946 = vmatpush.bf16.msra.mxu0 %v11598_v49  ;;  %8915 = vmatmul.bf16.vlgmr.msrb.gmra.mxu1 %v17462_v42  ;;  %v11886_v49 = vor.u32 %v16019_v11, %v11883_v12  ;;  %v11094_v11 = vor.u32 %v15821_v58, %v11091_v59  ;;  %v11670_v12 = vor.u32 %v15965_v61, %v11667_v45  ;;  %v16613_v58 = vld [vmem:[%s17262_s12 + $0x1d5c] sm:$0xf]  ;;  %v14259_v59 = vld [vmem:[%s17262_s12 + $0x1da0] sm:$0xf0] }
 0x233   : > { %8959 = vmatpush.bf16.msra.mxu1 %v12174_v43  ;;  %8928 = vmatmul.bf16.vlgmr.msrb.gmra.mxu2 %v18469_v41  ;;  %v15857_v43 = vld [vmem:[%s17262_s12 + $0x5bc] sm:$0xf] }
 0x234   : > { %8972 = vmatpush.bf16.msra.mxu2 %v12750_v60  ;;  %8941 = vmatmul.bf16.vlgmr.msrb.gmra.mxu3 %v17394_v22  ;;  %v16001_v60 = vld [vmem:[%s17262_s12 + $0xa3c] sm:$0xf]  ;;  %v11238_v30 = vor.u32 %v15857_v43, %v11235_v63  ;;  %v13827_v63 = vld [vmem:[%s17262_s12 + $0x1a40] sm:$0xf0] }
 0x235   : > { %8985 = vmatpush.bf16.msra.mxu3 %v13326_v26  ;;  %v12963_v26 = vld [vmem:[%s17262_s12 + $0x1380] sm:$0xf0]  ;;  %v11814_v31 = vor.u32 %v16001_v60, %v11811_v54  ;;  %v16649_v60 = vld [vmem:[%s17262_s12 + $0x1e7c] sm:$0xf] }
 0x236   : > { %8947 = vmatpush.bf16.msra.mxu0 %v11526_v19  ;;  %v8721_v16 = vpop.f32.mrf.mxu2  ;;  %v12390_v19 = vor.u32 %v16145_v18, %v12387_v20  ;;  %v8697_v40 = vpop.f32.mrf.mxu0  ;;  %v12966_v6 = vor.u32 %v16289_v25, %v12963_v26  ;;  %v14403_v18 = vld [vmem:[%s17262_s12 + $0x1ec0] sm:$0xf0]  ;;  %v16793_v20 = vld [vmem:[%s17262_s12 + $0x22fc] sm:$0xf] }
 0x237   : > { %8960 = vmatpush.bf16.msra.mxu1 %v12102_v35  ;;  %v11163_v35 = vld [vmem:[%s17262_s12 + $0x570] sm:$0xf0]  ;;  %v8722_v39 = vadd.f32 %v8721_v16, %v8708_v10  ;;  %v8734_v47 = vpop.f32.mrf.mxu3  ;;  %v8710_v48 = vpop.f32.mrf.mxu1  ;;  %v12246_v10 = vor.u32 %v16109_v0, %v12243_v9  ;;  %v14979_v25 = vld [vmem:[%s17262_s12 + $0x2340] sm:$0xf0]  ;;  %v14406_v16 = vor.u32 %v16649_v60, %v14403_v18  ;;  %v16775_v40 = vld [vmem:[%s17262_s12 + $0x226c] sm:$0xf] }
 0x238   : > { %8973 = vmatpush.bf16.msra.mxu2 %v12678_v38  ;;  %v11739_v38 = vld [vmem:[%s17262_s12 + $0x9f0] sm:$0xf0]  ;;  %v11166_v56 = vor.u32 %v15839_v34, %v11163_v35  ;;  %v15555_v34 = vld [vmem:[%s17262_s12 + $0x27c0] sm:$0xf0]  ;;  %v16487_v35 = vld [vmem:[%s17262_s12 + $0x196c] sm:$0xf] }
 0x239   : > { %8986 = vmatpush.bf16.msra.mxu3 %v13254_v44  ;;  %v16127_v44 = vld [vmem:[%s17262_s12 + $0xe2c] sm:$0xf]  ;;  %v15483_v48 = vld [vmem:[%s17262_s12 + $0x2730] sm:$0xf0]  ;;  %v16757_v61 = vld [vmem:[%s17262_s12 + $0x21dc] sm:$0xf] }
 0x23a   : > { %8948 = vmatpush.bf16.msra.mxu0 %v11454_v53  ;;  %v12891_v53 = vld [vmem:[%s17262_s12 + $0x12f0] sm:$0xf0]  ;;  %v16901_v9 = vld [vmem:[%s17262_s12 + $0x265c] sm:$0xf]  ;;  %v14691_v18 = vld [vmem:[%s17262_s12 + $0x2100] sm:$0xf0] }
 0x23b   : > { %8961 = vmatpush.bf16.msra.mxu1 %v12030_v55  ;;  %v18514_v55 = vadd.f32 %v8734_v47, %v8722_v39  ;;  %v12894_v1 = vor.u32 %v16271_v50, %v12891_v53  ;;  %v14331_v39 = vld [vmem:[%s17262_s12 + $0x1e30] sm:$0xf0]  ;;  %v16919_v47 = vld [vmem:[%s17262_s12 + $0x26ec] sm:$0xf]  ;;  %v16577_v60 = vld [vmem:[%s17262_s12 + $0x1c3c] sm:$0xf] }
 0x23c   : > { %8974 = vmatpush.bf16.msra.mxu2 %v12606_v24  ;;  %v11742_v24 = vor.u32 %v15983_v36, %v11739_v38  ;;  %v13755_v36 = vld [vmem:[%s17262_s12 + $0x19b0] sm:$0xf0]  ;;  %v16631_v38 = vld [vmem:[%s17262_s12 + $0x1dec] sm:$0xf]  ;;  %v15486_v45 = vor.u32 %v16919_v47, %v15483_v48 }
 0x23d   : > { %8987 = vmatpush.bf16.msra.mxu3 %v13182_v62  ;;  %v12318_v62 = vor.u32 %v16127_v44, %v12315_v46  ;;  %v13758_v46 = vor.u32 %v16487_v35, %v13755_v36  ;;  %v14334_v50 = vor.u32 %v16631_v38, %v14331_v39  ;;  %v16415_v35 = vld [vmem:[%s17262_s12 + $0x172c] sm:$0xf]  ;;  %v13467_v36 = vld [vmem:[%s17262_s12 + $0x1770] sm:$0xf0] }
 0x23e   : > { %8949 = vmatpush.bf16.msra.mxu0 %v11382_v37  ;;  %v16523_v37 = vld [vmem:[%s17262_s12 + $0x1a8c] sm:$0xf]  ;;  %v8723_v15 = vpop.f32.mrf.mxu2 }
 0x23f   : > { %8962 = vmatpush.bf16.msra.mxu1 %v11958_v2  ;;  %v13899_v2 = vld [vmem:[%s17262_s12 + $0x1ad0] sm:$0xf0]  ;;  %v8736_v54 = vpop.f32.mrf.mxu3  ;;  %v16559_v38 = vld [vmem:[%s17262_s12 + $0x1bac] sm:$0xf] }
 0x240   : > { %8975 = vmatpush.bf16.msra.mxu2 %v12534_v5  ;;  %v16811_v5 = vld [vmem:[%s17262_s12 + $0x238c] sm:$0xf]  ;;  %v13902_v52 = vor.u32 %v16523_v37, %v13899_v2  ;;  %v14262_v37 = vor.u32 %v16613_v58, %v14259_v59  ;;  %v14115_v54 = vld [vmem:[%s17262_s12 + $0x1c80] sm:$0xf0]  ;;  %v16397_v58 = vld [vmem:[%s17262_s12 + $0x169c] sm:$0xf] }
 0x241   : > { %8988 = vmatpush.bf16.msra.mxu3 %v13110_v13  ;;  %v16253_v13 = vld [vmem:[%s17262_s12 + $0x121c] sm:$0xf]  ;;  %v15054_v43 = vor.u32 %v16811_v5, %v15051_v8  ;;  %v13611_v5 = vld [vmem:[%s17262_s12 + $0x1890] sm:$0xf0]  ;;  %v16595_v8 = vld [vmem:[%s17262_s12 + $0x1ccc] sm:$0xf] }
 0x242   : > { %8950 = vmatpush.bf16.msra.mxu0 %v11310_v17  ;;  %v15627_v17 = vld [vmem:[%s17262_s12 + $0x2850] sm:$0xf0]  ;;  %v16847_v48 = vld [vmem:[%s17262_s12 + $0x24ac] sm:$0xf]  ;;  %v13395_v59 = vld [vmem:[%s17262_s12 + $0x16e0] sm:$0xf0] }
 0x243   : > { %8963 = vmatpush.bf16.msra.mxu1 %v11886_v49  ;;  %v14478_v49 = vor.u32 %v16667_v3, %v14475_v4  ;;  %v15630_v26 = vor.u32 %v16955_v51, %v15627_v17  ;;  %v16451_v4 = vld [vmem:[%s17262_s12 + $0x184c] sm:$0xf] }
 0x244   : > { %8976 = vmatpush.bf16.msra.mxu2 %v12462_v57  ;;  %v16505_v57 = vld [vmem:[%s17262_s12 + $0x19fc] sm:$0xf]  ;;  %v16883_v17 = vld [vmem:[%s17262_s12 + $0x25cc] sm:$0xf] }
 0x245   : > { %8989 = vmatpush.bf16.msra.mxu3 %v13038_v32  ;;  %v12822_v32 = vor.u32 %v16253_v13, %v12819_v14  ;;  %v16739_v13 = vld [vmem:[%s17262_s12 + $0x214c] sm:$0xf]  ;;  %v14763_v14 = vld [vmem:[%s17262_s12 + $0x2190] sm:$0xf0] }
 0x246   : > { %8951 = vmatpush.bf16.msra.mxu0 %v11238_v30  ;;  %v13830_v30 = vor.u32 %v16505_v57, %v13827_v63  ;;  %v16433_v57 = vld [vmem:[%s17262_s12 + $0x17bc] sm:$0xf]  ;;  %v13539_v63 = vld [vmem:[%s17262_s12 + $0x1800] sm:$0xf0] }
 0x247   : > { %8964 = vmatpush.bf16.msra.mxu1 %v11814_v31  ;;  %v16937_v31 = vld [vmem:[%s17262_s12 + $0x277c] sm:$0xf] }
 0x248   : > { %8977 = vmatpush.bf16.msra.mxu2 %v12390_v19  ;;  %v14982_v19 = vor.u32 %v16793_v20, %v14979_v25  ;;  %v15558_v44 = vor.u32 %v16937_v31, %v15555_v34  ;;  %v15267_v31 = vld [vmem:[%s17262_s12 + $0x2580] sm:$0xf0] }
 0x249   : > { %8990 = vmatpush.bf16.msra.mxu3 %v12966_v6  ;;  %v14907_v6 = vld [vmem:[%s17262_s12 + $0x22b0] sm:$0xf0] }
 0x24a   : > { %8952 = vmatpush.bf16.msra.mxu0 %v11166_v56  ;;  %v14910_v53 = vor.u32 %v16775_v40, %v14907_v6  ;;  %v16469_v56 = vld [vmem:[%s17262_s12 + $0x18dc] sm:$0xf]  ;;  %v14043_v40 = vld [vmem:[%s17262_s12 + $0x1bf0] sm:$0xf0]  ;;  %v16703_v6 = vld [vmem:[%s17262_s12 + $0x202c] sm:$0xf] }
 0x24b   : > { %8965 = vmatpush.bf16.msra.mxu1 %v11742_v24  ;;  %v13683_v24 = vld [vmem:[%s17262_s12 + $0x1920] sm:$0xf0] }
 0x24c   : > { %8978 = vmatpush.bf16.msra.mxu2 %v12318_v62  ;;  %v14835_v62 = vld [vmem:[%s17262_s12 + $0x2220] sm:$0xf0]  ;;  %v13686_v0 = vor.u32 %v16469_v56, %v13683_v24  ;;  %v13470_v56 = vor.u32 %v16415_v35, %v13467_v36  ;;  %v15195_v24 = vld [vmem:[%s17262_s12 + $0x24f0] sm:$0xf0]  ;;  %v10881_v35 = vld [vmem:[%s17262_s12 + $0x2f0] sm:$0xf] }
 0x24d   : > { %8991 = vmatpush.bf16.msra.mxu3 %v12894_v1  ;;  %v15411_v1 = vld [vmem:[%s17262_s12 + $0x26a0] sm:$0xf0]  ;;  %v14838_v2 = vor.u32 %v16757_v61, %v14835_v62  ;;  %v14046_v61 = vor.u32 %v16559_v38, %v14043_v40  ;;  %v15777_v36 = vld [vmem:[%s17262_s12 + $0x334] sm:$0xf0]  ;;  %v11457_v38 = vld [vmem:[%s17262_s12 + $0x770] sm:$0xf] }
 0x24e   : > { %8953 = vmatpush.bf16.msra.mxu0 %v11094_v11  ;;  %v8747_v3 = vpop.f32.mrf.mxu0  ;;  %v15414_v15 = vor.u32 %v16901_v9, %v15411_v1  ;;  %v16685_v9 = vld [vmem:[%s17262_s12 + $0x1f9c] sm:$0xf]  ;;  %v14547_v1 = vld [vmem:[%s17262_s12 + $0x1fe0] sm:$0xf0]  ;;  %v15921_v40 = vld [vmem:[%s17262_s12 + $0x7b4] sm:$0xf0] }
 0x24f   : > { %8966 = vmatpush.bf16.msra.mxu1 %v11670_v12  ;;  %v8748_v11 = vadd.f32 %v8747_v3, %v18514_v55  ;;  %v14187_v12 = vld [vmem:[%s17262_s12 + $0x1d10] sm:$0xf0]  ;;  %v15198_v3 = vor.u32 %v16847_v48, %v15195_v24  ;;  %v10882_v48 = vor.u32 %v15777_v36, %v10881_v35  ;;  %v10809_v24 = vld [vmem:[%s17262_s12 + $0x260] sm:$0xf]  ;;  %v10593_v35 = vld [vmem:[%s17262_s12 + $0xb0] sm:$0xf] }
 0x250   : > { %8979 = vmatpush.bf16.msra.mxu2 %v12246_v10  ;;  %v8760_v10 = vpop.f32.mrf.mxu1  ;;  %v14190_v55 = vor.u32 %v16595_v8, %v14187_v12  ;;  %v12177_v8 = vld [vmem:[%s17262_s12 + $0xd10] sm:$0xf]  ;;  %v16101_v12 = vld [vmem:[%s17262_s12 + $0xd54] sm:$0xf0] }
 0x251   : > { %8992 = vmatpush.bf16.msra.mxu3 %v12822_v32  ;;  %8954 = vmatmul.bf16.vlgmr.msra.gmra.mxu0 %v17401_v27  ;;  %v8761_v51 = vadd.f32 %v8760_v10, %v8748_v11  ;;  %v16721_v32 = vld [vmem:[%s17262_s12 + $0x20bc] sm:$0xf]  ;;  %v13398_v11 = vor.u32 %v16397_v58, %v13395_v59  ;;  %v15759_v58 = vld [vmem:[%s17262_s12 + $0x2a4] sm:$0xf0]  ;;  %v11385_v59 = vld [vmem:[%s17262_s12 + $0x6e0] sm:$0xf] }
 0x252   : > { %8998 = vmatpush.bf16.msrb.mxu0 %v13902_v52  ;;  %8967 = vmatmul.bf16.vlgmr.msra.gmra.mxu1 %v17392_v21  ;;  %v13614_v52 = vor.u32 %v16451_v4, %v13611_v5  ;;  %v11601_v4 = vld [vmem:[%s17262_s12 + $0x890] sm:$0xf]  ;;  %v15957_v5 = vld [vmem:[%s17262_s12 + $0x8d4] sm:$0xf0] }
 0x253   : > { %9011 = vmatpush.bf16.msrb.mxu1 %v14478_v49  ;;  %8980 = vmatmul.bf16.vlgmr.msra.gmra.mxu2 %v17396_v23  ;;  %v15339_v49 = vld [vmem:[%s17262_s12 + $0x2610] sm:$0xf0]  ;;  %v15705_v36 = vld [vmem:[%s17262_s12 + $0xf4] sm:$0xf0] }
 0x254   : > { %9024 = vmatpush.bf16.msrb.mxu2 %v15054_v43  ;;  %8993 = vmatmul.bf16.vlgmr.msra.gmra.mxu3 %v17448_v29  ;;  %v14766_v43 = vor.u32 %v16739_v13, %v14763_v14  ;;  %v15342_v20 = vor.u32 %v16883_v17, %v15339_v49  ;;  %v16829_v13 = vld [vmem:[%s17262_s12 + $0x241c] sm:$0xf]  ;;  %v15123_v14 = vld [vmem:[%s17262_s12 + $0x2460] sm:$0xf0]  ;;  %v16245_v17 = vld [vmem:[%s17262_s12 + $0x11d4] sm:$0xf0] }
 0x255   : > { %9037 = vmatpush.bf16.msrb.mxu3 %v15630_v26  ;;  %v13542_v26 = vor.u32 %v16433_v57, %v13539_v63  ;;  %v15126_v57 = vor.u32 %v16829_v13, %v15123_v14  ;;  %v10953_v63 = vld [vmem:[%s17262_s12 + $0x380] sm:$0xf]  ;;  %v15885_v14 = vld [vmem:[%s17262_s12 + $0x694] sm:$0xf0] }
 0x256   : > { %8999 = vmatpush.bf16.msrb.mxu0 %v13830_v30  ;;  %v8773_v25 = vpop.f32.mrf.mxu2  ;;  %v16865_v30 = vld [vmem:[%s17262_s12 + $0x253c] sm:$0xf]  ;;  %v8749_v39 = vpop.f32.mrf.mxu0 }
 0x257   : > { %9012 = vmatpush.bf16.msrb.mxu1 %v14406_v16  ;;  %v8774_v34 = vadd.f32 %v8773_v25, %v8761_v51  ;;  %v14118_v16 = vor.u32 %v16577_v60, %v14115_v54  ;;  %v15270_v47 = vor.u32 %v16865_v30, %v15267_v31  ;;  %v12753_v51 = vld [vmem:[%s17262_s12 + $0x1190] sm:$0xf]  ;;  %v15795_v60 = vld [vmem:[%s17262_s12 + $0x3c4] sm:$0xf0]  ;;  %v11529_v54 = vld [vmem:[%s17262_s12 + $0x800] sm:$0xf] }
 0x258   : > { %9025 = vmatpush.bf16.msrb.mxu2 %v14982_v19  ;;  %v14694_v19 = vor.u32 %v16721_v32, %v14691_v18  ;;  %v12754_v18 = vor.u32 %v16245_v17, %v12753_v51  ;;  %v12105_v25 = vld [vmem:[%s17262_s12 + $0xc80] sm:$0xf]  ;;  %v16227_v31 = vld [vmem:[%s17262_s12 + $0x1144] sm:$0xf0]  ;;  %v16173_v51 = vld [vmem:[%s17262_s12 + $0xf94] sm:$0xf0] }
 0x259   : > { %9038 = vmatpush.bf16.msrb.mxu3 %v15558_v44  ;;  %v14619_v44 = vld [vmem:[%s17262_s12 + $0x2070] sm:$0xf0]  ;;  %v12681_v30 = vld [vmem:[%s17262_s12 + $0x1100] sm:$0xf] }
 0x25a   : > { %9000 = vmatpush.bf16.msrb.mxu0 %v13758_v46  ;;  %v8786_v46 = vpop.f32.mrf.mxu3  ;;  %v14622_v62 = vor.u32 %v16703_v6, %v14619_v44  ;;  %v12682_v39 = vor.u32 %v16227_v31, %v12681_v30  ;;  %v12033_v6 = vld [vmem:[%s17262_s12 + $0xbf0] sm:$0xf]  ;;  %v16065_v44 = vld [vmem:[%s17262_s12 + $0xc34] sm:$0xf0] }
 0x25b   : > { %9013 = vmatpush.bf16.msrb.mxu1 %v14334_v50  ;;  %v8762_v50 = vpop.f32.mrf.mxu1 }
 0x25c   : > { %9026 = vmatpush.bf16.msrb.mxu2 %v14910_v53  ;;  %v18584_v53 = vadd.f32 %v8786_v46, %v8774_v34  ;;  %v10954_v34 = vor.u32 %v15795_v60, %v10953_v63  ;;  %v12609_v46 = vld [vmem:[%s17262_s12 + $0x1070] sm:$0xf]  ;;  %v11458_v50 = vor.u32 %v15921_v40, %v11457_v38  ;;  %v11241_v63 = vld [vmem:[%s17262_s12 + $0x5c0] sm:$0xf]  ;;  %v15867_v60 = vld [vmem:[%s17262_s12 + $0x604] sm:$0xf0] }
 0x25d   : > { %9039 = vmatpush.bf16.msrb.mxu3 %v15486_v45  ;;  %v16541_v45 = vld [vmem:[%s17262_s12 + $0x1b1c] sm:$0xf]  ;;  %v11169_v38 = vld [vmem:[%s17262_s12 + $0x530] sm:$0xf]  ;;  %v15849_v40 = vld [vmem:[%s17262_s12 + $0x574] sm:$0xf0] }
 0x25e   : > { %9001 = vmatpush.bf16.msrb.mxu0 %v13686_v0  ;;  %v13971_v0 = vld [vmem:[%s17262_s12 + $0x1b60] sm:$0xf0] }
 0x25f   : > { %9014 = vmatpush.bf16.msrb.mxu1 %v14262_v37  ;;  %v11025_v37 = vld [vmem:[%s17262_s12 + $0x410] sm:$0xf]  ;;  %v13974_v10 = vor.u32 %v16541_v45, %v13971_v0  ;;  %v11961_v45 = vld [vmem:[%s17262_s12 + $0xb60] sm:$0xf]  ;;  %v16047_v0 = vld [vmem:[%s17262_s12 + $0xba4] sm:$0xf0] }
 0x260   : > { %9027 = vmatpush.bf16.msrb.mxu2 %v14838_v2  ;;  %v15813_v2 = vld [vmem:[%s17262_s12 + $0x454] sm:$0xf0] }
 0x261   : > { %9040 = vmatpush.bf16.msrb.mxu3 %v15414_v15  ;;  %v8775_v15 = vpop.f32.mrf.mxu2  ;;  %v11026_v49 = vor.u32 %v15813_v2, %v11025_v37 }
 0x262   : > { %9002 = vmatpush.bf16.msrb.mxu0 %v13614_v52  ;;  %v14550_v52 = vor.u32 %v16685_v9, %v14547_v1  ;;  %v8788_v32 = vpop.f32.mrf.mxu3  ;;  %v12537_v9 = vld [vmem:[%s17262_s12 + $0xfe0] sm:$0xf]  ;;  %v10810_v1 = vor.u32 %v15759_v58, %v10809_v24  ;;  %v11889_v15 = vld [vmem:[%s17262_s12 + $0xad0] sm:$0xf]  ;;  %v15687_v24 = vld [vmem:[%s17262_s12 + $0x64] sm:$0xf0]  ;;  %v11170_v58 = vor.u32 %v15849_v40, %v11169_v38 }
 0x263   : > { %9015 = vmatpush.bf16.msrb.mxu1 %v14190_v55  ;;  %v11602_v55 = vor.u32 %v15957_v5, %v11601_v4  ;;  %v10737_v4 = vld [vmem:[%s17262_s12 + $0x1d0] sm:$0xf]  ;;  %v15741_v5 = vld [vmem:[%s17262_s12 + $0x214] sm:$0xf0] }
 0x264   : > { %9028 = vmatpush.bf16.msrb.mxu2 %v14766_v43  ;;  %v12178_v43 = vor.u32 %v16101_v12, %v12177_v8  ;;  %v11313_v8 = vld [vmem:[%s17262_s12 + $0x650] sm:$0xf]  ;;  %v16641_v40 = vld [vmem:[%s17262_s12 + $0x1e34] sm:$0xf0] }
 0x265   : > { %9041 = vmatpush.bf16.msrb.mxu3 %v15342_v20  ;;  %v15939_v20 = vld [vmem:[%s17262_s12 + $0x844] sm:$0xf0] }
 0x266   : > { %9003 = vmatpush.bf16.msrb.mxu0 %v13542_v26  ;;  %v16083_v26 = vld [vmem:[%s17262_s12 + $0xcc4] sm:$0xf0] }
 0x267   : > { %9016 = vmatpush.bf16.msrb.mxu1 %v14118_v16  ;;  %v11530_v16 = vor.u32 %v15939_v20, %v11529_v54  ;;  %v16011_v20 = vld [vmem:[%s17262_s12 + $0xa84] sm:$0xf0] }
 0x268   : > { %9029 = vmatpush.bf16.msrb.mxu2 %v14694_v19  ;;  %v12106_v19 = vor.u32 %v16083_v26, %v12105_v25  ;;  %v12393_v25 = vld [vmem:[%s17262_s12 + $0xec0] sm:$0xf]  ;;  %v16155_v26 = vld [vmem:[%s17262_s12 + $0xf04] sm:$0xf0] }
 0x269   : > { %9042 = vmatpush.bf16.msrb.mxu3 %v15270_v47  ;;  %v16209_v47 = vld [vmem:[%s17262_s12 + $0x10b4] sm:$0xf0] }
 0x26a   : > { %9004 = vmatpush.bf16.msrb.mxu0 %v13470_v56  ;;  %v12034_v56 = vor.u32 %v16065_v44, %v12033_v6  ;;  %v11745_v6 = vld [vmem:[%s17262_s12 + $0x9b0] sm:$0xf]  ;;  %v15993_v44 = vld [vmem:[%s17262_s12 + $0x9f4] sm:$0xf0] }
 0x26b   : > { %9017 = vmatpush.bf16.msrb.mxu1 %v14046_v61  ;;  %v12610_v61 = vor.u32 %v16209_v47, %v12609_v46  ;;  %v12321_v47 = vld [vmem:[%s17262_s12 + $0xe30] sm:$0xf] }
 0x26c   : > { %9030 = vmatpush.bf16.msrb.mxu2 %v14622_v62  ;;  %v15903_v62 = vld [vmem:[%s17262_s12 + $0x724] sm:$0xf0] }
 0x26d   : > { %9043 = vmatpush.bf16.msrb.mxu3 %v15198_v3  ;;  %v11386_v2 = vor.u32 %v15903_v62, %v11385_v59  ;;  %v11962_v3 = vor.u32 %v16047_v0, %v11961_v45  ;;  %v11746_v59 = vor.u32 %v15993_v44, %v11745_v6  ;;  %v15831_v62 = vld [vmem:[%s17262_s12 + $0x4e4] sm:$0xf0]  ;;  %v11673_v45 = vld [vmem:[%s17262_s12 + $0x920] sm:$0xf]  ;;  %v14913_v6 = vld [vmem:[%s17262_s12 + $0x2270] sm:$0xf] }
 0x26e   : > { %9005 = vmatpush.bf16.msrb.mxu0 %v13398_v11  ;;  %v8799_v37 = vpop.f32.mrf.mxu0  ;;  %v16785_v44 = vld [vmem:[%s17262_s12 + $0x22b4] sm:$0xf0] }
 0x26f   : > { %9018 = vmatpush.bf16.msrb.mxu1 %v13974_v10  ;;  %v8800_v11 = vadd.f32 %v8799_v37, %v18584_v53  ;;  %v8812_v12 = vpop.f32.mrf.mxu1  ;;  %v16029_v10 = vld [vmem:[%s17262_s12 + $0xb14] sm:$0xf0]  ;;  %v11314_v53 = vor.u32 %v15885_v14, %v11313_v8  ;;  %v13905_v37 = vld [vmem:[%s17262_s12 + $0x1a90] sm:$0xf] }
 0x270   : > { %9031 = vmatpush.bf16.msrb.mxu2 %v14550_v52  ;;  %v12465_v52 = vld [vmem:[%s17262_s12 + $0xf50] sm:$0xf]  ;;  %v16677_v8 = vld [vmem:[%s17262_s12 + $0x1f54] sm:$0xf0] }
 0x271   : > { %9044 = vmatpush.bf16.msrb.mxu3 %v15126_v57  ;;  %9006 = vmatmul.bf16.vlgmr.msrb.gmra.mxu0 %v17452_v33  ;;  %v8813_v17 = vadd.f32 %v8812_v12, %v8800_v11  ;;  %v15723_v57 = vld [vmem:[%s17262_s12 + $0x184] sm:$0xf0]  ;;  %v12466_v32 = vor.u32 %v16173_v51, %v12465_v52  ;;  %v12249_v11 = vld [vmem:[%s17262_s12 + $0xda0] sm:$0xf]  ;;  %v15057_v52 = vld [vmem:[%s17262_s12 + $0x2390] sm:$0xf] }
 0x272   : > { %9050 = vmatpush.bf16.msra.mxu0 %v11026_v49  ;;  %9019 = vmatmul.bf16.vlgmr.msrb.gmra.mxu1 %v17446_v28  ;;  %v10738_v49 = vor.u32 %v15741_v5, %v10737_v4  ;;  %v16119_v12 = vld [vmem:[%s17262_s12 + $0xde4] sm:$0xf0]  ;;  %v16821_v51 = vld [vmem:[%s17262_s12 + $0x23d4] sm:$0xf0] }
 0x273   : > { %9063 = vmatpush.bf16.msra.mxu1 %v11602_v55  ;;  %9032 = vmatmul.bf16.vlgmr.msrb.gmra.mxu2 %v17462_v42  ;;  %v10665_v55 = vld [vmem:[%s17262_s12 + $0x140] sm:$0xf]  ;;  %v10241_v54 = vrot.slane %v8813_v17, 6 }
 0x274   : > { %9076 = vmatpush.bf16.msra.mxu2 %v12178_v43  ;;  %9045 = vmatmul.bf16.vlgmr.msrb.gmra.mxu3 %v18469_v41  ;;  %v16191_v41 = vld [vmem:[%s17262_s12 + $0x1024] sm:$0xf0]  ;;  %v11890_v43 = vor.u32 %v16029_v10, %v11889_v15  ;;  %v10666_v31 = vor.u32 %v15723_v57, %v10665_v55  ;;  %v13257_v55 = vld [vmem:[%s17262_s12 + $0x1580] sm:$0xf] }
 0x275   : > { %9089 = vmatpush.bf16.msra.mxu3 %v12754_v18  ;;  %v12538_v13 = vor.u32 %v16191_v41, %v12537_v9  ;;  %v11817_v18 = vld [vmem:[%s17262_s12 + $0xa40] sm:$0xf]  ;;  %v18650_v30 = vsel %vm10251_vm0, %v18492_v7, %v10241_v54  ;;  %v12394_v7 = vor.u32 %v16155_v26, %v12393_v25  ;;  %v15975_v9 = vld [vmem:[%s17262_s12 + $0x964] sm:$0xf0]  ;;  %v13329_v41 = vld [vmem:[%s17262_s12 + $0x1610] sm:$0xf]  ;;  %v15058_v54 = vor.u32 %v16821_v51, %v15057_v52 }
 0x276   : > { %9051 = vmatpush.bf16.msra.mxu0 %v10954_v34  ;;  %v8825_v34 = vpop.f32.mrf.mxu2  ;;  %v11674_v10 = vor.u32 %v15975_v9, %v11673_v45  ;;  %v16371_v57 = vld [vmem:[%s17262_s12 + $0x15c4] sm:$0xf0]  ;;  %v14841_v45 = vld [vmem:[%s17262_s12 + $0x21e0] sm:$0xf]  ;;  %v16749_v52 = vld [vmem:[%s17262_s12 + $0x2194] sm:$0xf0] }
 0x277   : > { %9064 = vmatpush.bf16.msra.mxu1 %v11530_v16  ;;  %v11242_v16 = vor.u32 %v15867_v60, %v11241_v63  ;;  %v8814_v46 = vpop.f32.mrf.mxu1  ;;  %v8838_v4 = vpop.f32.mrf.mxu3  ;;  %v13833_v63 = vld [vmem:[%s17262_s12 + $0x1a00] sm:$0xf]  ;;  %v16515_v60 = vld [vmem:[%s17262_s12 + $0x1a44] sm:$0xf0]  ;;  %v13258_v26 = vor.u32 %v16371_v57, %v13257_v55 }
 0x278   : > { %9077 = vmatpush.bf16.msra.mxu2 %v12106_v19  ;;  %v11818_v19 = vor.u32 %v16011_v20, %v11817_v18  ;;  %v18674_v14 = vadd.f32 %v8838_v4, %v8825_v34  ;;  %v16659_v18 = vld [vmem:[%s17262_s12 + $0x1ec4] sm:$0xf0]  ;;  %v14985_v20 = vld [vmem:[%s17262_s12 + $0x2300] sm:$0xf]  ;;  %v13185_v34 = vld [vmem:[%s17262_s12 + $0x14f0] sm:$0xf] }
 0x279   : > { %9090 = vmatpush.bf16.msra.mxu3 %v12682_v39  ;;  %v8801_v39 = vpop.f32.mrf.mxu0  ;;  %v16803_v25 = vld [vmem:[%s17262_s12 + $0x2344] sm:$0xf0]  ;;  %v13617_v4 = vld [vmem:[%s17262_s12 + $0x1850] sm:$0xf] }
 0x27a   : > { %9052 = vmatpush.bf16.msra.mxu0 %v10882_v48  ;;  %v16137_v48 = vld [vmem:[%s17262_s12 + $0xe74] sm:$0xf0]  ;;  %v14986_v39 = vor.u32 %v16803_v25, %v14985_v20  ;;  %v16443_v57 = vld [vmem:[%s17262_s12 + $0x1804] sm:$0xf0] }
 0x27b   : > { %9065 = vmatpush.bf16.msra.mxu1 %v11458_v50  ;;  %v10594_v50 = vor.u32 %v15705_v36, %v10593_v35  ;;  %v12322_v0 = vor.u32 %v16137_v48, %v12321_v47  ;;  %v13761_v35 = vld [vmem:[%s17262_s12 + $0x1970] sm:$0xf]  ;;  %v16497_v36 = vld [vmem:[%s17262_s12 + $0x19b4] sm:$0xf0]  ;;  %v13113_v48 = vld [vmem:[%s17262_s12 + $0x1460] sm:$0xf] }
 0x27c   : > { %9078 = vmatpush.bf16.msra.mxu2 %v12034_v56  ;;  %v10521_v56 = vld [vmem:[%s17262_s12 + $0x20] sm:$0xf]  ;;  %v13762_v47 = vor.u32 %v16497_v36, %v13761_v35  ;;  %v16281_v35 = vld [vmem:[%s17262_s12 + $0x12f4] sm:$0xf0]  ;;  %v13473_v36 = vld [vmem:[%s17262_s12 + $0x1730] sm:$0xf] }
 0x27d   : > { %9091 = vmatpush.bf16.msra.mxu3 %v12610_v61  ;;  %v11097_v61 = vld [vmem:[%s17262_s12 + $0x4a0] sm:$0xf]  ;;  %v10522_v5 = vor.u32 %v15687_v24, %v10521_v56  ;;  %v16335_v56 = vld [vmem:[%s17262_s12 + $0x14a4] sm:$0xf0] }
 0x27e   : > { %9053 = vmatpush.bf16.msra.mxu0 %v10810_v1  ;;  %v16389_v1 = vld [vmem:[%s17262_s12 + $0x1654] sm:$0xf0]  ;;  %v11098_v15 = vor.u32 %v15831_v62, %v11097_v61  ;;  %v13689_v24 = vld [vmem:[%s17262_s12 + $0x18e0] sm:$0xf]  ;;  %v16623_v62 = vld [vmem:[%s17262_s12 + $0x1da4] sm:$0xf0]  ;;  %v13114_v9 = vor.u32 %v16335_v56, %v13113_v48 }
 0x27f   : > { %9066 = vmatpush.bf16.msra.mxu1 %v11386_v2  ;;  %v16533_v2 = vld [vmem:[%s17262_s12 + $0x1ad4] sm:$0xf0]  ;;  %v13330_v17 = vor.u32 %v16389_v1, %v13329_v41  ;;  %v8840_v38 = vpop.f32.mrf.mxu3  ;;  %v14265_v61 = vld [vmem:[%s17262_s12 + $0x1d60] sm:$0xf]  ;;  %v13041_v1 = vld [vmem:[%s17262_s12 + $0x13d0] sm:$0xf] }
 0x280   : > { %9079 = vmatpush.bf16.msra.mxu2 %v11962_v3  ;;  %v14481_v3 = vld [vmem:[%s17262_s12 + $0x1f10] sm:$0xf]  ;;  %v16425_v38 = vld [vmem:[%s17262_s12 + $0x1774] sm:$0xf0] }
 0x281   : > { %9092 = vmatpush.bf16.msra.mxu3 %v12538_v13  ;;  %v8827_v13 = vpop.f32.mrf.mxu2  ;;  %v13474_v56 = vor.u32 %v16425_v38, %v13473_v36  ;;  %v15912_v36 = vld [vmem:[%s17262_s12 + $0x774] sm:$0xf]  ;;  %v11459_v38 = vld [vmem:[%s17262_s12 + $0x7b8] sm:$0xf0] }
 0x282   : > { %9054 = vmatpush.bf16.msra.mxu0 %v10738_v49  ;;  %v13906_v49 = vor.u32 %v16533_v2, %v13905_v37  ;;  %v14266_v2 = vor.u32 %v16623_v62, %v14265_v61  ;;  %v16605_v13 = vld [vmem:[%s17262_s12 + $0x1d14] sm:$0xf0]  ;;  %v16407_v62 = vld [vmem:[%s17262_s12 + $0x16e4] sm:$0xf0] }
 0x283   : > { %9067 = vmatpush.bf16.msra.mxu1 %v11314_v53  ;;  %v14482_v53 = vor.u32 %v16677_v8, %v14481_v3  ;;  %v16317_v3 = vld [vmem:[%s17262_s12 + $0x1414] sm:$0xf0] }
 0x284   : > { %9080 = vmatpush.bf16.msra.mxu2 %v11890_v43  ;;  %v12250_v43 = vor.u32 %v16119_v12, %v12249_v11  ;;  %v14193_v12 = vld [vmem:[%s17262_s12 + $0x1cd0] sm:$0xf] }
 0x285   : > { %9093 = vmatpush.bf16.msra.mxu3 %v12466_v32  ;;  %v14409_v32 = vld [vmem:[%s17262_s12 + $0x1e80] sm:$0xf]  ;;  %v14194_v55 = vor.u32 %v16605_v13, %v14193_v12  ;;  %v16695_v13 = vld [vmem:[%s17262_s12 + $0x1fe4] sm:$0xf0] }
 0x286   : > { %9055 = vmatpush.bf16.msra.mxu0 %v10666_v31  ;;  %v13834_v31 = vor.u32 %v16515_v60, %v13833_v63  ;;  %v14121_v60 = vld [vmem:[%s17262_s12 + $0x1c40] sm:$0xf] }
 0x287   : > { %9068 = vmatpush.bf16.msra.mxu1 %v11242_v16  ;;  %v14410_v16 = vor.u32 %v16659_v18, %v14409_v32  ;;  %v14697_v32 = vld [vmem:[%s17262_s12 + $0x20c0] sm:$0xf]  ;;  %v16731_v18 = vld [vmem:[%s17262_s12 + $0x2104] sm:$0xf0] }
 0x288   : > { %9081 = vmatpush.bf16.msra.mxu2 %v11818_v19  ;;  %v16353_v19 = vld [vmem:[%s17262_s12 + $0x1534] sm:$0xf0]  ;;  %v14553_v12 = vld [vmem:[%s17262_s12 + $0x1fa0] sm:$0xf] }
 0x289   : > { %9094 = vmatpush.bf16.msra.mxu3 %v12394_v7  ;;  %v14337_v7 = vld [vmem:[%s17262_s12 + $0x1df0] sm:$0xf]  ;;  %v13186_v46 = vor.u32 %v16353_v19, %v13185_v34 }
 0x28a   : > { %9056 = vmatpush.bf16.msra.mxu0 %v10594_v50  ;;  %v14338_v50 = vor.u32 %v16641_v40, %v14337_v7  ;;  %v14049_v7 = vld [vmem:[%s17262_s12 + $0x1bb0] sm:$0xf]  ;;  %v16569_v40 = vld [vmem:[%s17262_s12 + $0x1bf4] sm:$0xf0] }
 0x28b   : > { %9069 = vmatpush.bf16.msra.mxu1 %v11170_v58  ;;  %v16479_v58 = vld [vmem:[%s17262_s12 + $0x1924] sm:$0xf0]  ;;  %v14050_v61 = vor.u32 %v16569_v40, %v14049_v7  ;;  %v16056_v40 = vld [vmem:[%s17262_s12 + $0xbf4] sm:$0xf] }
 0x28c   : > { %9082 = vmatpush.bf16.msra.mxu2 %v11746_v59  ;;  %v14914_v59 = vor.u32 %v16785_v44, %v14913_v6  ;;  %v13690_v41 = vor.u32 %v16479_v58, %v13689_v24  ;;  %v12825_v24 = vld [vmem:[%s17262_s12 + $0x1220] sm:$0xf]  ;;  %v16263_v58 = vld [vmem:[%s17262_s12 + $0x1264] sm:$0xf0] }
 0x28d   : > { %9095 = vmatpush.bf16.msra.mxu3 %v12322_v0  ;;  %v16767_v0 = vld [vmem:[%s17262_s12 + $0x2224] sm:$0xf0] }
 0x28e   : > { %9057 = vmatpush.bf16.msra.mxu0 %v10522_v5  ;;  %v8851_v37 = vpop.f32.mrf.mxu0  ;;  %v16461_v5 = vld [vmem:[%s17262_s12 + $0x1894] sm:$0xf0]  ;;  %v14842_v11 = vor.u32 %v16767_v0, %v14841_v45  ;;  %v13977_v45 = vld [vmem:[%s17262_s12 + $0x1b20] sm:$0xf]  ;;  %v16551_v0 = vld [vmem:[%s17262_s12 + $0x1b64] sm:$0xf0] }
 0x28f   : > { %9070 = vmatpush.bf16.msra.mxu1 %v11098_v15  ;;  %v8852_v8 = vadd.f32 %v8851_v37, %v18674_v14  ;;  %v8864_v15 = vpop.f32.mrf.mxu1  ;;  %v12969_v14 = vld [vmem:[%s17262_s12 + $0x1340] sm:$0xf]  ;;  %v15804_v37 = vld [vmem:[%s17262_s12 + $0x414] sm:$0xf] }
 0x290   : > { %9083 = vmatpush.bf16.msra.mxu2 %v11674_v10  ;;  %v14769_v10 = vld [vmem:[%s17262_s12 + $0x2150] sm:$0xf] }
 0x291   : > { %9096 = vmatpush.bf16.msra.mxu3 %v12250_v43  ;;  %9058 = vmatmul.bf16.vlgmr.msra.gmra.mxu0 %v17394_v22  ;;  %v8865_v51 = vadd.f32 %v8864_v15, %v8852_v8  ;;  %v13545_v43 = vld [vmem:[%s17262_s12 + $0x17c0] sm:$0xf]  ;;  %v14770_v63 = vor.u32 %v16749_v52, %v14769_v10  ;;  %v12826_v8 = vor.u32 %v16263_v58, %v12825_v24  ;;  %v16092_v52 = vld [vmem:[%s17262_s12 + $0xd14] sm:$0xf]  ;;  %v10811_v24 = vld [vmem:[%s17262_s12 + $0x2a8] sm:$0xf0] }
 0x292   : > { %9102 = vmatpush.bf16.msrb.mxu0 %v13330_v17  ;;  %9071 = vmatmul.bf16.vlgmr.msra.gmra.mxu1 %v17401_v27  ;;  %v13042_v17 = vor.u32 %v16317_v3, %v13041_v1  ;;  %v16965_v1 = vld [vmem:[%s17262_s12 + $0x2854] sm:$0xf0]  ;;  %v15948_v3 = vld [vmem:[%s17262_s12 + $0x894] sm:$0xf]  ;;  %v13978_v15 = vor.u32 %v16551_v0, %v13977_v45  ;;  %v15894_v58 = vld [vmem:[%s17262_s12 + $0x6e4] sm:$0xf] }
 0x293   : > { %9115 = vmatpush.bf16.msrb.mxu1 %v13906_v49  ;;  %9084 = vmatmul.bf16.vlgmr.msra.gmra.mxu2 %v17392_v21  ;;  %v13618_v49 = vor.u32 %v16461_v5, %v13617_v4  ;;  %v11603_v4 = vld [vmem:[%s17262_s12 + $0x8d8] sm:$0xf0]  ;;  %v16038_v45 = vld [vmem:[%s17262_s12 + $0xb64] sm:$0xf]  ;;  %v11963_v0 = vld [vmem:[%s17262_s12 + $0xba8] sm:$0xf0] }
 0x294   : > { %9128 = vmatpush.bf16.msrb.mxu2 %v14482_v53  ;;  %9097 = vmatmul.bf16.vlgmr.msra.gmra.mxu3 %v17396_v23  ;;  %v16299_v53 = vld [vmem:[%s17262_s12 + $0x1384] sm:$0xf0] }
 0x295   : > { %9141 = vmatpush.bf16.msrb.mxu3 %v15058_v54  ;;  %v16587_v54 = vld [vmem:[%s17262_s12 + $0x1c84] sm:$0xf0]  ;;  %v12970_v25 = vor.u32 %v16299_v53, %v12969_v14  ;;  %v15561_v14 = vld [vmem:[%s17262_s12 + $0x2780] sm:$0xf]  ;;  %v15786_v53 = vld [vmem:[%s17262_s12 + $0x384] sm:$0xf] }
 0x296   : > { %9103 = vmatpush.bf16.msrb.mxu0 %v13258_v26  ;;  %v8877_v20 = vpop.f32.mrf.mxu2  ;;  %v13546_v26 = vor.u32 %v16443_v57, %v13545_v43  ;;  %v14122_v19 = vor.u32 %v16587_v54, %v14121_v60  ;;  %v14554_v57 = vor.u32 %v16695_v13, %v14553_v12  ;;  %v15930_v60 = vld [vmem:[%s17262_s12 + $0x804] sm:$0xf]  ;;  %v11531_v54 = vld [vmem:[%s17262_s12 + $0x848] sm:$0xf0]  ;;  %v11966_v12 = vor.u32 %v16038_v45, %v11963_v0  ;;  %v12755_v45 = vld [vmem:[%s17262_s12 + $0x11d8] sm:$0xf0] }
 0x297   : > { %9116 = vmatpush.bf16.msrb.mxu1 %v13834_v31  ;;  %v12897_v31 = vld [vmem:[%s17262_s12 + $0x12b0] sm:$0xf]  ;;  %v8878_v34 = vadd.f32 %v8877_v20, %v8865_v51  ;;  %v8866_v6 = vpop.f32.mrf.mxu1  ;;  %v8890_v44 = vpop.f32.mrf.mxu3  ;;  %v12179_v51 = vld [vmem:[%s17262_s12 + $0xd58] sm:$0xf0]  ;;  %v16074_v20 = vld [vmem:[%s17262_s12 + $0xc84] sm:$0xf] }
 0x298   : > { %9129 = vmatpush.bf16.msrb.mxu2 %v14410_v16  ;;  %v8853_v16 = vpop.f32.mrf.mxu0  ;;  %v12035_v6 = vld [vmem:[%s17262_s12 + $0xc38] sm:$0xf0] }
 0x299   : > { %9142 = vmatpush.bf16.msrb.mxu3 %v14986_v39  ;;  %v14698_v39 = vor.u32 %v16731_v18, %v14697_v32  ;;  %v18731_v48 = vadd.f32 %v8890_v44, %v8878_v34  ;;  %v12182_v32 = vor.u32 %v16092_v52, %v12179_v51  ;;  %v15489_v34 = vld [vmem:[%s17262_s12 + $0x26f0] sm:$0xf]  ;;  %v16929_v16 = vld [vmem:[%s17262_s12 + $0x2734] sm:$0xf0]  ;;  %v11891_v52 = vld [vmem:[%s17262_s12 + $0xb18] sm:$0xf0] }
 0x29a   : > { %9104 = vmatpush.bf16.msrb.mxu0 %v13186_v46  ;;  %v14625_v46 = vld [vmem:[%s17262_s12 + $0x2030] sm:$0xf]  ;;  %v15490_v7 = vor.u32 %v16929_v16, %v15489_v34  ;;  %v15696_v34 = vld [vmem:[%s17262_s12 + $0xb4] sm:$0xf]  ;;  %v10595_v16 = vld [vmem:[%s17262_s12 + $0xf8] sm:$0xf0] }
 0x29b   : > { %9117 = vmatpush.bf16.msrb.mxu1 %v13762_v47  ;;  %v16713_v47 = vld [vmem:[%s17262_s12 + $0x2074] sm:$0xf0] }
 0x29c   : > { %9130 = vmatpush.bf16.msrb.mxu2 %v14338_v50  ;;  %v12898_v50 = vor.u32 %v16281_v35, %v12897_v31  ;;  %v11534_v31 = vor.u32 %v15930_v60, %v11531_v54  ;;  %v10883_v35 = vld [vmem:[%s17262_s12 + $0x338] sm:$0xf0] }
 0x29d   : > { %9143 = vmatpush.bf16.msrb.mxu3 %v14914_v59  ;;  %v13401_v59 = vld [vmem:[%s17262_s12 + $0x16a0] sm:$0xf] }
 0x29e   : > { %9105 = vmatpush.bf16.msrb.mxu0 %v13114_v9  ;;  %v14626_v9 = vor.u32 %v16713_v47, %v14625_v46  ;;  %v8879_v5 = vpop.f32.mrf.mxu2  ;;  %v11462_v46 = vor.u32 %v15912_v36, %v11459_v38  ;;  %v15417_v47 = vld [vmem:[%s17262_s12 + $0x2660] sm:$0xf] }
 0x29f   : > { %9118 = vmatpush.bf16.msrb.mxu1 %v13690_v41  ;;  %v15633_v41 = vld [vmem:[%s17262_s12 + $0x2810] sm:$0xf]  ;;  %v8892_v43 = vpop.f32.mrf.mxu3  ;;  %v15876_v5 = vld [vmem:[%s17262_s12 + $0x654] sm:$0xf] }
 0x2a0   : > { %9131 = vmatpush.bf16.msrb.mxu2 %v14266_v2  ;;  %v11027_v2 = vld [vmem:[%s17262_s12 + $0x458] sm:$0xf0]  ;;  %v15634_v10 = vor.u32 %v16965_v1, %v15633_v41  ;;  %v15345_v1 = vld [vmem:[%s17262_s12 + $0x25d0] sm:$0xf]  ;;  %v10667_v43 = vld [vmem:[%s17262_s12 + $0x188] sm:$0xf0] }
 0x2a1   : > { %9144 = vmatpush.bf16.msrb.mxu3 %v14842_v11  ;;  %v13402_v11 = vor.u32 %v16407_v62, %v13401_v59  ;;  %v11387_v59 = vld [vmem:[%s17262_s12 + $0x728] sm:$0xf0] }
 0x2a2   : > { %9106 = vmatpush.bf16.msrb.mxu0 %v13042_v17  ;;  %v11030_v17 = vor.u32 %v15804_v37, %v11027_v2  ;;  %v11390_v41 = vor.u32 %v15894_v58, %v11387_v59  ;;  %v16893_v37 = vld [vmem:[%s17262_s12 + $0x2614] sm:$0xf0]  ;;  %v15732_v2 = vld [vmem:[%s17262_s12 + $0x1d4] sm:$0xf]  ;;  %v10523_v58 = vld [vmem:[%s17262_s12 + $0x68] sm:$0xf0] }
 0x2a3   : > { %9119 = vmatpush.bf16.msrb.mxu1 %v13618_v49  ;;  %v11606_v49 = vor.u32 %v15948_v3, %v11603_v4  ;;  %v10739_v4 = vld [vmem:[%s17262_s12 + $0x218] sm:$0xf0]  ;;  %v15822_v59 = vld [vmem:[%s17262_s12 + $0x4a4] sm:$0xf] }
 0x2a4   : > { %9132 = vmatpush.bf16.msrb.mxu2 %v14194_v55  ;;  %v16947_v55 = vld [vmem:[%s17262_s12 + $0x27c4] sm:$0xf0]  ;;  %v10742_v51 = vor.u32 %v15732_v2, %v10739_v4  ;;  %v15966_v4 = vld [vmem:[%s17262_s12 + $0x924] sm:$0xf] }
 0x2a5   : > { %9145 = vmatpush.bf16.msrb.mxu3 %v14770_v63  ;;  %v10955_v63 = vld [vmem:[%s17262_s12 + $0x3c8] sm:$0xf0]  ;;  %v15562_v18 = vor.u32 %v16947_v55, %v15561_v14  ;;  %v15273_v14 = vld [vmem:[%s17262_s12 + $0x2540] sm:$0xf]  ;;  %v16875_v55 = vld [vmem:[%s17262_s12 + $0x2584] sm:$0xf0] }
 0x2a6   : > { %9107 = vmatpush.bf16.msrb.mxu0 %v12970_v25  ;;  %v12107_v25 = vld [vmem:[%s17262_s12 + $0xcc8] sm:$0xf0]  ;;  %v15274_v54 = vor.u32 %v16875_v55, %v15273_v14  ;;  %v16362_v55 = vld [vmem:[%s17262_s12 + $0x1584] sm:$0xf] }
 0x2a7   : > { %9120 = vmatpush.bf16.msrb.mxu1 %v13546_v26  ;;  %v10958_v26 = vor.u32 %v15786_v53, %v10955_v63  ;;  %v15714_v53 = vld [vmem:[%s17262_s12 + $0x144] sm:$0xf]  ;;  %v12683_v14 = vld [vmem:[%s17262_s12 + $0x1148] sm:$0xf0] }
 0x2a8   : > { %9133 = vmatpush.bf16.msrb.mxu2 %v14122_v19  ;;  %v15768_v19 = vld [vmem:[%s17262_s12 + $0x2f4] sm:$0xf] }
 0x2a9   : > { %9146 = vmatpush.bf16.msrb.mxu3 %v14698_v39  ;;  %v12110_v39 = vor.u32 %v16074_v20, %v12107_v25  ;;  %v10886_v44 = vor.u32 %v15768_v19, %v10883_v35  ;;  %v10670_v20 = vor.u32 %v15714_v53, %v10667_v43  ;;  %v15840_v19 = vld [vmem:[%s17262_s12 + $0x534] sm:$0xf]  ;;  %v11171_v35 = vld [vmem:[%s17262_s12 + $0x578] sm:$0xf0]  ;;  %v13259_v53 = vld [vmem:[%s17262_s12 + $0x15c8] sm:$0xf0] }
 0x2aa   : > { %9108 = vmatpush.bf16.msrb.mxu0 %v12898_v50  ;;  %v16911_v50 = vld [vmem:[%s17262_s12 + $0x26a4] sm:$0xf0] }
 0x2ab   : > { %9121 = vmatpush.bf16.msrb.mxu1 %v13474_v56  ;;  %v15750_v56 = vld [vmem:[%s17262_s12 + $0x264] sm:$0xf]  ;;  %v15418_v62 = vor.u32 %v16911_v50, %v15417_v47  ;;  %v16839_v47 = vld [vmem:[%s17262_s12 + $0x2464] sm:$0xf0]  ;;  %v10598_v50 = vor.u32 %v15696_v34, %v10595_v16  ;;  %v16344_v34 = vld [vmem:[%s17262_s12 + $0x14f4] sm:$0xf] }
 0x2ac   : > { %9134 = vmatpush.bf16.msrb.mxu2 %v14050_v61  ;;  %v12038_v61 = vor.u32 %v16056_v40, %v12035_v6  ;;  %v13187_v16 = vld [vmem:[%s17262_s12 + $0x1538] sm:$0xf0] }
 0x2ad   : > { %9147 = vmatpush.bf16.msrb.mxu3 %v14626_v9  ;;  %v10814_v9 = vor.u32 %v15750_v56, %v10811_v24  ;;  %v11174_v56 = vor.u32 %v15840_v19, %v11171_v35  ;;  %v15678_v24 = vld [vmem:[%s17262_s12 + $0x24] sm:$0xf]  ;;  %v18836_v19 = vld [vmem:[#allocation1] sm:$0xff] }
 0x2ae   : > { %9109 = vmatpush.bf16.msrb.mxu0 %v12826_v8  ;;  %v8903_v3 = vpop.f32.mrf.mxu0  ;;  %v11315_v8 = vld [vmem:[%s17262_s12 + $0x698] sm:$0xf0] }
 0x2af   : > { %9122 = vmatpush.bf16.msrb.mxu1 %v13402_v11  ;;  %v8916_v11 = vpop.f32.mrf.mxu1  ;;  %v8904_v13 = vadd.f32 %v8903_v3, %v18731_v48  ;;  %v15858_v48 = vld [vmem:[%s17262_s12 + $0x5c4] sm:$0xf]  ;;  %v13907_v3 = vld [vmem:[%s17262_s12 + $0x1ad8] sm:$0xf0] }
 0x2b0   : > { %9135 = vmatpush.bf16.msrb.mxu2 %v13978_v15  ;;  %v15346_v15 = vor.u32 %v16893_v37, %v15345_v1  ;;  %v16524_v1 = vld [vmem:[%s17262_s12 + $0x1a94] sm:$0xf] }
 0x2b1   : > { %9148 = vmatpush.bf16.msrb.mxu3 %v14554_v57  ;;  %9110 = vmatmul.bf16.vlgmr.msrb.gmra.mxu0 %v17448_v29  ;;  %v11243_v57 = vld [vmem:[%s17262_s12 + $0x608] sm:$0xf0] }
 0x2b2   : > { %9154 = vmatpush.bf16.msra.mxu0 %v15634_v10  ;;  %9123 = vmatmul.bf16.vlgmr.msrb.gmra.mxu1 %v17452_v33  ;;  %v16020_v10 = vld [vmem:[%s17262_s12 + $0xad4] sm:$0xf]  ;;  %v11246_v25 = vor.u32 %v15858_v48, %v11243_v57  ;;  %v16506_v57 = vld [vmem:[%s17262_s12 + $0x1a04] sm:$0xf] }
 0x2b3   : > { %9167 = vmatpush.bf16.msra.mxu1 %v11030_v17  ;;  %9136 = vmatmul.bf16.vlgmr.msrb.gmra.mxu2 %v17446_v28  ;;  %v11318_v17 = vor.u32 %v15876_v5, %v11315_v8  ;;  %v11894_v63 = vor.u32 %v16020_v10, %v11891_v52  ;;  %v11675_v5 = vld [vmem:[%s17262_s12 + $0x968] sm:$0xf0]  ;;  %v10526_v8 = vor.u32 %v15678_v24, %v10523_v58  ;;  %v16218_v52 = vld [vmem:[%s17262_s12 + $0x1104] sm:$0xf] }
 0x2b4   : > { %9180 = vmatpush.bf16.msra.mxu2 %v11606_v49  ;;  %9149 = vmatmul.bf16.vlgmr.msrb.gmra.mxu3 %v17462_v42  ;;  %v18786_v49 = vadd.f32 %v8916_v11, %v8904_v13  ;;  %v14483_v13 = vld [vmem:[%s17262_s12 + $0x1f58] sm:$0xf0]  ;;  %v13115_v24 = vld [vmem:[%s17262_s12 + $0x14a8] sm:$0xf0] }
 0x2b5   : > { %9193 = vmatpush.bf16.msra.mxu3 %v12182_v32  ;;  %v16002_v32 = vld [vmem:[%s17262_s12 + $0xa44] sm:$0xf] }
 0x2b6   : > { %9155 = vmatpush.bf16.msra.mxu0 %v15562_v18  ;;  %v18794_v60 = vpop.f32.mrf.mxu2  ;;  %v11819_v18 = vld [vmem:[%s17262_s12 + $0xa88] sm:$0xf0]  ;;  %v8905_v36 = vpop.f32.mrf.mxu0 }
 0x2b7   : > { %9168 = vmatpush.bf16.msra.mxu1 %v10958_v26  ;;  %v15201_v26 = vld [vmem:[%s17262_s12 + $0x24b0] sm:$0xf]  ;;  %v8918_v38 = vpop.f32.mrf.mxu1  ;;  %v18805_v40 = vpop.f32.mrf.mxu3  ;;  %v16488_v36 = vld [vmem:[%s17262_s12 + $0x1974] sm:$0xf] }
 0x2b8   : > { %9181 = vmatpush.bf16.msra.mxu2 %v11534_v31  ;;  %v16857_v31 = vld [vmem:[%s17262_s12 + $0x24f4] sm:$0xf0]  ;;  %v13763_v38 = vld [vmem:[%s17262_s12 + $0x19b8] sm:$0xf0] }
 0x2b9   : > { %9194 = vmatpush.bf16.msra.mxu3 %v12110_v39  ;;  %v11822_v39 = vor.u32 %v16002_v32, %v11819_v18  ;;  %v15202_v6 = vor.u32 %v16857_v31, %v15201_v26  ;;  %v14411_v32 = vld [vmem:[%s17262_s12 + $0x1ec8] sm:$0xf0]  ;;  %v12686_v18 = vor.u32 %v16218_v52, %v12683_v14  ;;  %v12611_v31 = vld [vmem:[%s17262_s12 + $0x10b8] sm:$0xf0] }
 0x2ba   : > { %9156 = vmatpush.bf16.msra.mxu0 %v15490_v7  ;;  %v15984_v7 = vld [vmem:[%s17262_s12 + $0x9b4] sm:$0xf]  ;;  %v12395_v14 = vld [vmem:[%s17262_s12 + $0xf08] sm:$0xf0] }
 0x2bb   : > { %9169 = vmatpush.bf16.msra.mxu1 %v10886_v44  ;;  %v11747_v44 = vld [vmem:[%s17262_s12 + $0x9f8] sm:$0xf0] }
 0x2bc   : > { %9182 = vmatpush.bf16.msra.mxu2 %v11462_v46  ;;  %v15129_v46 = vld [vmem:[%s17262_s12 + $0x2420] sm:$0xf]  ;;  %v11750_v0 = vor.u32 %v15984_v7, %v11747_v44  ;;  %v14339_v7 = vld [vmem:[%s17262_s12 + $0x1e38] sm:$0xf0]  ;;  %v13190_v44 = vor.u32 %v16344_v34, %v13187_v16  ;;  %v16272_v16 = vld [vmem:[%s17262_s12 + $0x12b4] sm:$0xf] }
 0x2bd   : > { %9195 = vmatpush.bf16.msra.mxu3 %v12038_v61  ;;  %v11099_v61 = vld [vmem:[%s17262_s12 + $0x4e8] sm:$0xf0]  ;;  %v15130_v2 = vor.u32 %v16839_v47, %v15129_v46  ;;  %v16182_v46 = vld [vmem:[%s17262_s12 + $0xfe4] sm:$0xf]  ;;  %v13766_v47 = vor.u32 %v16488_v36, %v13763_v38  ;;  %v12323_v34 = vld [vmem:[%s17262_s12 + $0xe78] sm:$0xf0] }
 0x2be   : > { %9157 = vmatpush.bf16.msra.mxu0 %v15418_v62  ;;  %v16236_v62 = vld [vmem:[%s17262_s12 + $0x1194] sm:$0xf]  ;;  %v8931_v37 = vpop.f32.mrf.mxu2  ;;  %v11102_v11 = vor.u32 %v15822_v59, %v11099_v61  ;;  %v16470_v59 = vld [vmem:[%s17262_s12 + $0x18e4] sm:$0xf]  ;;  %v13691_v61 = vld [vmem:[%s17262_s12 + $0x1928] sm:$0xf0] }
 0x2bf   : > { %9170 = vmatpush.bf16.msra.mxu1 %v10814_v9  ;;  %v16380_v9 = vld [vmem:[%s17262_s12 + $0x1614] sm:$0xf]  ;;  %v8944_v43 = vpop.f32.mrf.mxu3  ;;  %v13694_v37 = vor.u32 %v16470_v59, %v13691_v61  ;;  %v12827_v61 = vld [vmem:[%s17262_s12 + $0x1268] sm:$0xf0] }
 0x2c0   : > { %9183 = vmatpush.bf16.msra.mxu2 %v11390_v41  ;;  %v13331_v41 = vld [vmem:[%s17262_s12 + $0x1658] sm:$0xf0]  ;;  %v16416_v38 = vld [vmem:[%s17262_s12 + $0x1734] sm:$0xf] }
 0x2c1   : > { %9196 = vmatpush.bf16.msra.mxu3 %v11966_v12  ;;  %v16668_v12 = vld [vmem:[%s17262_s12 + $0x1f14] sm:$0xf]  ;;  %v13334_v10 = vor.u32 %v16380_v9, %v13331_v41 }
 0x2c2   : > { %9158 = vmatpush.bf16.msra.mxu0 %v15346_v15  ;;  %v12758_v15 = vor.u32 %v16236_v62, %v12755_v45  ;;  %v14486_v48 = vor.u32 %v16668_v12, %v14483_v13  ;;  %v16614_v62 = vld [vmem:[%s17262_s12 + $0x1d64] sm:$0xf]  ;;  %v14267_v45 = vld [vmem:[%s17262_s12 + $0x1da8] sm:$0xf0]  ;;  %v16164_v41 = vld [vmem:[%s17262_s12 + $0xf54] sm:$0xf] }
 0x2c3   : > { %9171 = vmatpush.bf16.msra.mxu1 %v10742_v51  ;;  %v13910_v51 = vor.u32 %v16524_v1, %v13907_v3  ;;  %v16308_v3 = vld [vmem:[%s17262_s12 + $0x13d4] sm:$0xf] }
 0x2c4   : > { %9184 = vmatpush.bf16.msra.mxu2 %v11318_v17  ;;  %v11678_v17 = vor.u32 %v15966_v4, %v11675_v5  ;;  %v13043_v4 = vld [vmem:[%s17262_s12 + $0x1418] sm:$0xf0]  ;;  %v14270_v5 = vor.u32 %v16614_v62, %v14267_v45  ;;  %v16596_v13 = vld [vmem:[%s17262_s12 + $0x1cd4] sm:$0xf]  ;;  %v16398_v62 = vld [vmem:[%s17262_s12 + $0x16a4] sm:$0xf] }
 0x2c5   : > { %9197 = vmatpush.bf16.msra.mxu3 %v11894_v63  ;;  %v13835_v63 = vld [vmem:[%s17262_s12 + $0x1a48] sm:$0xf0]  ;;  %v13046_v52 = vor.u32 %v16308_v3, %v13043_v4  ;;  %v11033_v3 = vld [vmem:[%s17262_s12 + $0x418] sm:$0xf]  ;;  %v15814_v4 = vld [vmem:[%s17262_s12 + $0x45c] sm:$0xf0] }
 0x2c6   : > { %9159 = vmatpush.bf16.msra.mxu0 %v15274_v54  ;;  %v16650_v54 = vld [vmem:[%s17262_s12 + $0x1e84] sm:$0xf]  ;;  %v13838_v26 = vor.u32 %v16506_v57, %v13835_v63  ;;  %v13547_v57 = vld [vmem:[%s17262_s12 + $0x1808] sm:$0xf0] }
 0x2c7   : > { %9172 = vmatpush.bf16.msra.mxu1 %v10670_v20  ;;  %v13262_v20 = vor.u32 %v16362_v55, %v13259_v53  ;;  %v14414_v35 = vor.u32 %v16650_v54, %v14411_v32  ;;  %v16290_v55 = vld [vmem:[%s17262_s12 + $0x1344] sm:$0xf]  ;;  %v12971_v53 = vld [vmem:[%s17262_s12 + $0x1388] sm:$0xf0] }
 0x2c8   : > { %9185 = vmatpush.bf16.msra.mxu2 %v11246_v25  ;;  %v16200_v25 = vld [vmem:[%s17262_s12 + $0x1074] sm:$0xf]  ;;  %v16578_v63 = vld [vmem:[%s17262_s12 + $0x1c44] sm:$0xf]  ;;  %v14123_v54 = vld [vmem:[%s17262_s12 + $0x1c88] sm:$0xf0] }
 0x2c9   : > { %9198 = vmatpush.bf16.msra.mxu3 %v11822_v39  ;;  %v16632_v39 = vld [vmem:[%s17262_s12 + $0x1df4] sm:$0xf]  ;;  %v14126_v36 = vor.u32 %v16578_v63, %v14123_v54  ;;  %v13403_v45 = vld [vmem:[%s17262_s12 + $0x16e8] sm:$0xf0]  ;;  %v10961_v54 = vld [vmem:[%s17262_s12 + $0x388] sm:$0xf] }
 0x2ca   : > { %9160 = vmatpush.bf16.msra.mxu0 %v15202_v6  ;;  %v12614_v6 = vor.u32 %v16200_v25, %v12611_v31  ;;  %v14342_v58 = vor.u32 %v16632_v39, %v14339_v7  ;;  %v16128_v25 = vld [vmem:[%s17262_s12 + $0xe34] sm:$0xf]  ;;  %v13475_v39 = vld [vmem:[%s17262_s12 + $0x1778] sm:$0xf0]  ;;  %v15563_v63 = vld [vmem:[%s17262_s12 + $0x27c8] sm:$0xf0] }
 0x2cb   : > { %9173 = vmatpush.bf16.msra.mxu1 %v10598_v50  ;;  %v12539_v50 = vld [vmem:[%s17262_s12 + $0x1028] sm:$0xf0]  ;;  %v13478_v59 = vor.u32 %v16416_v38, %v13475_v39  ;;  %v14915_v38 = vld [vmem:[%s17262_s12 + $0x22b8] sm:$0xf0] }
 0x2cc   : > { %9186 = vmatpush.bf16.msra.mxu2 %v11174_v56  ;;  %v16326_v56 = vld [vmem:[%s17262_s12 + $0x1464] sm:$0xf]  ;;  %v15491_v39 = vld [vmem:[%s17262_s12 + $0x2738] sm:$0xf0] }
 0x2cd   : > { %9199 = vmatpush.bf16.msra.mxu3 %v11750_v0  ;;  %v12542_v0 = vor.u32 %v16182_v46, %v12539_v50  ;;  %v13118_v9 = vor.u32 %v16326_v56, %v13115_v24  ;;  %v14051_v46 = vld [vmem:[%s17262_s12 + $0x1bf8] sm:$0xf0]  ;;  %v16110_v56 = vld [vmem:[%s17262_s12 + $0xda4] sm:$0xf]  ;;  %v12251_v24 = vld [vmem:[%s17262_s12 + $0xde8] sm:$0xf0] }
 0x2ce   : > { %9161 = vmatpush.bf16.msra.mxu0 %v15130_v2  ;;  %v18855_v1 = vpop.f32.mrf.mxu0  ;;  %v12467_v2 = vld [vmem:[%s17262_s12 + $0xf98] sm:$0xf0] }
 0x2cf   : > { %9174 = vmatpush.bf16.msra.mxu1 %v10526_v8  ;;  %v16452_v8 = vld [vmem:[%s17262_s12 + $0x1854] sm:$0xf]  ;;  %v18862_v12 = vpop.f32.mrf.mxu1 }
 0x2d0   : > { %9187 = vmatpush.bf16.msra.mxu2 %v11102_v11  ;;  %v13619_v11 = vld [vmem:[%s17262_s12 + $0x1898] sm:$0xf0] }
 0x2d1   : > { %9200 = vmatpush.bf16.msra.mxu3 %v11678_v17  ;;  %9162 = vmatmul.bf16.vlgmr.msra.gmra.mxu0 %v18836_v19  ;;  %v13622_v17 = vor.u32 %v16452_v8, %v13619_v11  ;;  %v8956_v8 = vadd.f32 %v18855_v1, %v18805_v40  ;;  %v12254_v11 = vor.u32 %v16110_v56, %v12251_v24  ;;  %v16938_v40 = vld [vmem:[%s17262_s12 + $0x2784] sm:$0xf]  ;;  %v11465_v56 = vld [vmem:[%s17262_s12 + $0x778] sm:$0xf]  ;;  %v15922_v24 = vld [vmem:[%s17262_s12 + $0x7bc] sm:$0xf0] }
 0x2d2   : > { %9206 = vmatpush.bf16.msrb.mxu0 %v12758_v15  ;;  %9175 = vmatmul.bf16.vlgmr.msra.gmra.mxu1 %v17394_v22  ;;  %v14195_v15 = vld [vmem:[%s17262_s12 + $0x1d18] sm:$0xf0] }
 0x2d3   : > { %9219 = vmatpush.bf16.msrb.mxu1 %v13334_v10  ;;  %9188 = vmatmul.bf16.vlgmr.msra.gmra.mxu2 %v17401_v27  ;;  %v12470_v10 = vor.u32 %v16164_v41, %v12467_v2  ;;  %v14198_v43 = vor.u32 %v16596_v13, %v14195_v15  ;;  %v15059_v41 = vld [vmem:[%s17262_s12 + $0x23d8] sm:$0xf0]  ;;  %v16542_v15 = vld [vmem:[%s17262_s12 + $0x1b24] sm:$0xf] }
 0x2d4   : > { %9232 = vmatpush.bf16.msrb.mxu2 %v13910_v51  ;;  %9201 = vmatmul.bf16.vlgmr.msra.gmra.mxu3 %v17392_v21  ;;  %v16146_v51 = vld [vmem:[%s17262_s12 + $0xec4] sm:$0xf]  ;;  %v15635_v2 = vld [vmem:[%s17262_s12 + $0x2858] sm:$0xf0] }
 0x2d5   : > { %9245 = vmatpush.bf16.msrb.mxu3 %v14486_v48  ;;  %v16434_v48 = vld [vmem:[%s17262_s12 + $0x17c4] sm:$0xf] }
 0x2d6   : > { %9207 = vmatpush.bf16.msrb.mxu0 %v12686_v18  ;;  %v18874_v32 = vpop.f32.mrf.mxu2  ;;  %v12398_v18 = vor.u32 %v16146_v51, %v12395_v14  ;;  %v13550_v31 = vor.u32 %v16434_v48, %v13547_v57  ;;  %v15958_v14 = vld [vmem:[%s17262_s12 + $0x8dc] sm:$0xf0]  ;;  %v14987_v48 = vld [vmem:[%s17262_s12 + $0x2348] sm:$0xf0] }
 0x2d7   : > { %9220 = vmatpush.bf16.msrb.mxu1 %v13262_v20  ;;  %v12974_v20 = vor.u32 %v16290_v55, %v12971_v53  ;;  %v18882_v7 = vpop.f32.mrf.mxu3  ;;  %v11034_v53 = vor.u32 %v15814_v4, %v11033_v3  ;;  %v11393_v3 = vld [vmem:[%s17262_s12 + $0x6e8] sm:$0xf]  ;;  %v15904_v4 = vld [vmem:[%s17262_s12 + $0x72c] sm:$0xf0] }
 0x2d8   : > { %9233 = vmatpush.bf16.msrb.mxu2 %v13838_v26  ;;  %v8957_v26 = vpop.f32.mrf.mxu0 }
 0x2d9   : > { %9246 = vmatpush.bf16.msrb.mxu3 %v14414_v35  ;;  %v12899_v35 = vld [vmem:[%s17262_s12 + $0x12f8] sm:$0xf0] }
 0x2da   : > { %9208 = vmatpush.bf16.msrb.mxu0 %v12614_v6  ;;  %v8970_v6 = vpop.f32.mrf.mxu1  ;;  %v12902_v50 = vor.u32 %v16272_v16, %v12899_v35  ;;  %v15566_v16 = vor.u32 %v16938_v40, %v15563_v63  ;;  %v16722_v63 = vld [vmem:[%s17262_s12 + $0x20c4] sm:$0xf] }
 0x2db   : > { %9221 = vmatpush.bf16.msrb.mxu1 %v13190_v44  ;;  %v16560_v44 = vld [vmem:[%s17262_s12 + $0x1bb4] sm:$0xf]  ;;  %v10889_v6 = vld [vmem:[%s17262_s12 + $0x2f8] sm:$0xf] }
 0x2dc   : > { %9234 = vmatpush.bf16.msrb.mxu2 %v13766_v47  ;;  %v12326_v47 = vor.u32 %v16128_v25, %v12323_v34  ;;  %v15940_v34 = vld [vmem:[%s17262_s12 + $0x84c] sm:$0xf0] }
 0x2dd   : > { %9247 = vmatpush.bf16.msrb.mxu3 %v14342_v58  ;;  %v16254_v58 = vld [vmem:[%s17262_s12 + $0x1224] sm:$0xf] }
 0x2de   : > { %9209 = vmatpush.bf16.msrb.mxu0 %v12542_v0  ;;  %v14054_v0 = vor.u32 %v16560_v44, %v14051_v46  ;;  %v12830_v13 = vor.u32 %v16254_v58, %v12827_v61  ;;  %v15778_v44 = vld [vmem:[%s17262_s12 + $0x33c] sm:$0xf0]  ;;  %v14843_v61 = vld [vmem:[%s17262_s12 + $0x2228] sm:$0xf0] }
 0x2df   : > { %9222 = vmatpush.bf16.msrb.mxu1 %v13118_v9  ;;  %v16812_v9 = vld [vmem:[%s17262_s12 + $0x2394] sm:$0xf]  ;;  %v8996_v1 = vpop.f32.mrf.mxu3 }
 0x2e0   : > { %9235 = vmatpush.bf16.msrb.mxu2 %v13694_v37  ;;  %v16956_v37 = vld [vmem:[%s17262_s12 + $0x2814] sm:$0xf]  ;;  %v15062_v51 = vor.u32 %v16812_v9, %v15059_v41  ;;  %v15760_v9 = vld [vmem:[%s17262_s12 + $0x2ac] sm:$0xf0] }
 0x2e1   : > { %9248 = vmatpush.bf16.msrb.mxu3 %v14270_v5  ;;  %v8983_v5 = vpop.f32.mrf.mxu2  ;;  %v15638_v55 = vor.u32 %v16956_v37, %v15635_v2  ;;  %v11466_v37 = vor.u32 %v15922_v24, %v11465_v56  ;;  %v10601_v56 = vld [vmem:[%s17262_s12 + $0xb8] sm:$0xf]  ;;  %v15706_v24 = vld [vmem:[%s17262_s12 + $0xfc] sm:$0xf0] }
 0x2e2   : > { %9210 = vmatpush.bf16.msrb.mxu0 %v12470_v10  ;;  %v13979_v10 = vld [vmem:[%s17262_s12 + $0x1b68] sm:$0xf0] }
 0x2e3   : > { %9223 = vmatpush.bf16.msrb.mxu1 %v13046_v52  ;;  %v13406_v52 = vor.u32 %v16398_v62, %v13403_v45  ;;  %v13982_v57 = vor.u32 %v16542_v15, %v13979_v10  ;;  %v16902_v62 = vld [vmem:[%s17262_s12 + $0x2664] sm:$0xf]  ;;  %v15419_v45 = vld [vmem:[%s17262_s12 + $0x26a8] sm:$0xf0]  ;;  %v16884_v15 = vld [vmem:[%s17262_s12 + $0x25d4] sm:$0xf] }
 0x2e4   : > { %9236 = vmatpush.bf16.msrb.mxu2 %v13622_v17  ;;  %v11609_v17 = vld [vmem:[%s17262_s12 + $0x898] sm:$0xf]  ;;  %v15422_v5 = vor.u32 %v16902_v62, %v15419_v45  ;;  %v15850_v45 = vld [vmem:[%s17262_s12 + $0x57c] sm:$0xf0] }
 0x2e5   : > { %9249 = vmatpush.bf16.msrb.mxu3 %v14198_v43  ;;  %v16794_v43 = vld [vmem:[%s17262_s12 + $0x2304] sm:$0xf]  ;;  %v11610_v25 = vor.u32 %v15958_v14, %v11609_v17  ;;  %v15742_v17 = vld [vmem:[%s17262_s12 + $0x21c] sm:$0xf0]  ;;  %v11177_v62 = vld [vmem:[%s17262_s12 + $0x538] sm:$0xf] }
 0x2e6   : > { %9211 = vmatpush.bf16.msrb.mxu0 %v12398_v18  ;;  %v15796_v18 = vld [vmem:[%s17262_s12 + $0x3cc] sm:$0xf0]  ;;  %v14990_v26 = vor.u32 %v16794_v43, %v14987_v48  ;;  %v11321_v43 = vld [vmem:[%s17262_s12 + $0x658] sm:$0xf]  ;;  %v15886_v48 = vld [vmem:[%s17262_s12 + $0x69c] sm:$0xf0] }
 0x2e7   : > { %9224 = vmatpush.bf16.msrb.mxu1 %v12974_v20  ;;  %v8969_v20 = vadd.f32 %v18862_v12, %v8956_v8  ;;  %v10962_v35 = vor.u32 %v15796_v18, %v10961_v54  ;;  %v16920_v12 = vld [vmem:[%s17262_s12 + $0x26f4] sm:$0xf]  ;;  %v14699_v54 = vld [vmem:[%s17262_s12 + $0x2108] sm:$0xf0]  ;;  %v16866_v18 = vld [vmem:[%s17262_s12 + $0x2544] sm:$0xf] }
 0x2e8   : > { %9237 = vmatpush.bf16.msrb.mxu2 %v13550_v31  ;;  %v11537_v31 = vld [vmem:[%s17262_s12 + $0x808] sm:$0xf]  ;;  %v15494_v58 = vor.u32 %v16920_v12, %v15491_v39  ;;  %v15868_v12 = vld [vmem:[%s17262_s12 + $0x60c] sm:$0xf0] }
 0x2e9   : > { %9250 = vmatpush.bf16.msrb.mxu3 %v14126_v36  ;;  %v16776_v36 = vld [vmem:[%s17262_s12 + $0x2274] sm:$0xf]  ;;  %v8982_v46 = vadd.f32 %v18874_v32, %v8969_v20  ;;  %v16758_v32 = vld [vmem:[%s17262_s12 + $0x21e4] sm:$0xf]  ;;  %v15275_v20 = vld [vmem:[%s17262_s12 + $0x2588] sm:$0xf0] }
 0x2ea   : > { %9212 = vmatpush.bf16.msrb.mxu0 %v12326_v47  ;;  %v11538_v47 = vor.u32 %v15940_v34, %v11537_v31  ;;  %v14846_v2 = vor.u32 %v16758_v32, %v14843_v61  ;;  %v8930_v31 = vadd.f32 %v18794_v60, %v18786_v49  ;;  %v16704_v49 = vld [vmem:[%s17262_s12 + $0x2034] sm:$0xf]  ;;  %v14627_v60 = vld [vmem:[%s17262_s12 + $0x2078] sm:$0xf0] }
 0x2eb   : > { %9225 = vmatpush.bf16.msrb.mxu1 %v12902_v50  ;;  %v14918_v50 = vor.u32 %v16776_v36, %v14915_v38  ;;  %v8995_v41 = vadd.f32 %v18882_v7, %v8982_v46  ;;  %v14702_v36 = vor.u32 %v16722_v63, %v14699_v54  ;;  %v11249_v38 = vld [vmem:[%s17262_s12 + $0x5c8] sm:$0xf]  ;;  %v16848_v46 = vld [vmem:[%s17262_s12 + $0x24b4] sm:$0xf]  ;;  %v13913_v54 = vld [vmem:[%s17262_s12 + $0x1a98] sm:$0xf] }
 0x2ec   : > { %9238 = vmatpush.bf16.msrb.mxu2 %v13478_v59  ;;  %v10890_v59 = vor.u32 %v15778_v44, %v10889_v6  ;;  %v15278_v6 = vor.u32 %v16866_v18, %v15275_v20  ;;  %v10242_v32 = vrot.slane %v8930_v31, 4  ;;  %v11250_v61 = vor.u32 %v15868_v12, %v11249_v38  ;;  %v16534_v18 = vld [vmem:[%s17262_s12 + $0x1adc] sm:$0xf0]  ;;  %v12113_v31 = vld [vmem:[%s17262_s12 + $0xc88] sm:$0xf] }
 0x2ed   : > { %9251 = vmatpush.bf16.msrb.mxu3 %v14054_v0  ;;  %v10817_v0 = vld [vmem:[%s17262_s12 + $0x268] sm:$0xf]  ;;  %v16228_v38 = vld [vmem:[%s17262_s12 + $0x114c] sm:$0xf0]  ;;  %v13914_v12 = vor.u32 %v16534_v18, %v13913_v54 }
 0x2ee   : > { %9213 = vmatpush.bf16.msrb.mxu0 %v12254_v11  ;;  %v10818_v8 = vor.u32 %v15760_v9, %v10817_v0  ;;  %v16740_v11 = vld [vmem:[%s17262_s12 + $0x2154] sm:$0xf]  ;;  %v9007_v10 = vpop.f32.mrf.mxu0  ;;  %v310_v0 = vld [vmem:[#allocation2 + $0x8] sm:$0xff] }
 0x2ef   : > { %9226 = vmatpush.bf16.msrb.mxu1 %v12830_v13  ;;  %v14771_v13 = vld [vmem:[%s17262_s12 + $0x2198] sm:$0xf0]  ;;  %v9020_v7 = vpop.f32.mrf.mxu1  ;;  %v9008_v14 = vadd.f32 %v9007_v10, %v8995_v41  ;;  %v14630_v41 = vor.u32 %v16704_v49, %v14627_v60  ;;  %v12185_v10 = vld [vmem:[%s17262_s12 + $0xd18] sm:$0xf]  ;;  %v16516_v49 = vld [vmem:[%s17262_s12 + $0x1a4c] sm:$0xf0] }
 0x2f0   : > { %9239 = vmatpush.bf16.msrb.mxu2 %v13406_v52  ;;  %v15347_v52 = vld [vmem:[%s17262_s12 + $0x2618] sm:$0xf0]  ;;  %v11825_v18 = vld [vmem:[%s17262_s12 + $0xa48] sm:$0xf] }
 0x2f1   : > { %9252 = vmatpush.bf16.msrb.mxu3 %v13982_v57  ;;  %9214 = vmatmul.bf16.vlgmr.msrb.gmra.mxu0 %v17396_v23  ;;  %v9021_v40 = vadd.f32 %v9020_v7, %v9008_v14  ;;  %v15350_v1 = vor.u32 %v16884_v15, %v15347_v52  ;;  %v15688_v15 = vld [vmem:[%s17262_s12 + $0x6c] sm:$0xf0]  ;;  %v16102_v7 = vld [vmem:[%s17262_s12 + $0xd5c] sm:$0xf0] }
 0x2f2   : > { %9258 = vmatpush.bf16.msra.mxu0 %v15062_v51  ;;  %9227 = vmatmul.bf16.vlgmr.msrb.gmra.mxu1 %v17448_v29  ;;  %v10745_v51 = vld [vmem:[%s17262_s12 + $0x1d8] sm:$0xf]  ;;  %v16246_v14 = vld [vmem:[%s17262_s12 + $0x11dc] sm:$0xf0] }
 0x2f3   : > { %9271 = vmatpush.bf16.msra.mxu1 %v15638_v55  ;;  %9240 = vmatmul.bf16.vlgmr.msrb.gmra.mxu2 %v17452_v33  ;;  %v11394_v55 = vor.u32 %v15904_v4, %v11393_v3  ;;  %v10746_v57 = vor.u32 %v15742_v17, %v10745_v51  ;;  %v10602_v4 = vor.u32 %v15706_v24, %v10601_v56  ;;  %v12761_v17 = vld [vmem:[%s17262_s12 + $0x1198] sm:$0xf]  ;;  %v16066_v56 = vld [vmem:[%s17262_s12 + $0xc3c] sm:$0xf0] }
 0x2f4   : > { %9284 = vmatpush.bf16.msra.mxu2 %v11034_v53  ;;  %9253 = vmatmul.bf16.vlgmr.msrb.gmra.mxu3 %v17446_v28  ;;  %v14774_v53 = vor.u32 %v16740_v11, %v14771_v13  ;;  %v10529_v11 = vld [vmem:[%s17262_s12 + $0x28] sm:$0xf]  ;;  %v11178_v51 = vor.u32 %v15850_v45, %v11177_v62  ;;  %v12617_v24 = vld [vmem:[%s17262_s12 + $0x1078] sm:$0xf]  ;;  %v16498_v45 = vld [vmem:[%s17262_s12 + $0x19bc] sm:$0xf0] }
 0x2f5   : > { %9297 = vmatpush.bf16.msra.mxu3 %v11610_v25  ;;  %v10673_v25 = vld [vmem:[%s17262_s12 + $0x148] sm:$0xf]  ;;  %v10530_v63 = vor.u32 %v15688_v15, %v10529_v11  ;;  %v13769_v62 = vld [vmem:[%s17262_s12 + $0x1978] sm:$0xf] }
 0x2f6   : > { %9259 = vmatpush.bf16.msra.mxu0 %v14990_v26  ;;  %v15724_v26 = vld [vmem:[%s17262_s12 + $0x18c] sm:$0xf0]  ;;  %v9033_v34 = vpop.f32.mrf.mxu2  ;;  %v13697_v11 = vld [vmem:[%s17262_s12 + $0x18e8] sm:$0xf] }
 0x2f7   : > { %9272 = vmatpush.bf16.msra.mxu1 %v15566_v16  ;;  %v11322_v16 = vor.u32 %v15886_v48, %v11321_v43  ;;  %v9046_v39 = vpop.f32.mrf.mxu3  ;;  %v10674_v44 = vor.u32 %v15724_v26, %v10673_v25  ;;  %v12186_v25 = vor.u32 %v16102_v7, %v12185_v10  ;;  %v12762_v26 = vor.u32 %v16246_v14, %v12761_v17  ;;  %v11897_v7 = vld [vmem:[%s17262_s12 + $0xad8] sm:$0xf]  ;;  %v16174_v14 = vld [vmem:[%s17262_s12 + $0xf9c] sm:$0xf0] }
 0x2f8   : > { %9285 = vmatpush.bf16.msra.mxu2 %v10962_v35  ;;  %v9034_v35 = vadd.f32 %v9033_v34, %v9021_v40  ;;  %v16390_v40 = vld [vmem:[%s17262_s12 + $0x165c] sm:$0xf0]  ;;  %v12473_v17 = vld [vmem:[%s17262_s12 + $0xf58] sm:$0xf] }
 0x2f9   : > { %9298 = vmatpush.bf16.msra.mxu3 %v11538_v47  ;;  %v12474_v54 = vor.u32 %v16174_v14, %v12473_v17 }
 0x2fa   : > { %9260 = vmatpush.bf16.msra.mxu0 %v14918_v50  ;;  %v9047_v47 = vadd.f32 %v9046_v39, %v9034_v35  ;;  %v15203_v50 = vld [vmem:[%s17262_s12 + $0x24f8] sm:$0xf0]  ;;  %v16084_v35 = vld [vmem:[%s17262_s12 + $0xccc] sm:$0xf0]  ;;  %v13265_v39 = vld [vmem:[%s17262_s12 + $0x1588] sm:$0xf] }
 0x2fb   : > { %9273 = vmatpush.bf16.msra.mxu1 %v15494_v58  ;;  %v9009_v58 = vpop.f32.mrf.mxu0  ;;  %v15206_v3 = vor.u32 %v16848_v46, %v15203_v50  ;;  %v12114_v60 = vor.u32 %v16084_v35, %v12113_v31  ;;  %v16156_v31 = vld [vmem:[%s17262_s12 + $0xf0c] sm:$0xf0] }
 0x2fc   : > { %9286 = vmatpush.bf16.msra.mxu2 %v10890_v59  ;;  %v9022_v59 = vpop.f32.mrf.mxu1  ;;  %v10243_v9 = vrot.slane %v9047_v47, 2  ;;  %v12041_v47 = vld [vmem:[%s17262_s12 + $0xbf8] sm:$0xf]  ;;  %v16210_v58 = vld [vmem:[%s17262_s12 + $0x10bc] sm:$0xf0] }
 0x2fd   : > { %9299 = vmatpush.bf16.msra.mxu3 %v11466_v37  ;;  %v16686_v37 = vld [vmem:[%s17262_s12 + $0x1fa4] sm:$0xf]  ;;  %v16300_v35 = vld [vmem:[%s17262_s12 + $0x138c] sm:$0xf0] }
 0x2fe   : > { %9261 = vmatpush.bf16.msra.mxu0 %v14846_v2  ;;  %v14555_v2 = vld [vmem:[%s17262_s12 + $0x1fe8] sm:$0xf0]  ;;  %v10258_v13 = vsel %vm10253_vm1, %v10242_v32, %v10243_v9  ;;  %v13193_v32 = vld [vmem:[%s17262_s12 + $0x14f8] sm:$0xf]  ;;  %v12618_v9 = vor.u32 %v16210_v58, %v12617_v24  ;;  %v16282_v58 = vld [vmem:[%s17262_s12 + $0x12fc] sm:$0xf0] }
 0x2ff   : > { %9274 = vmatpush.bf16.msra.mxu1 %v15422_v5  ;;  %v16830_v5 = vld [vmem:[%s17262_s12 + $0x2424] sm:$0xf]  ;;  %v10259_v52 = vsel %vm10255_vm2, %v18650_v30, %v10258_v13  ;;  %v14558_v48 = vor.u32 %v16686_v37, %v14555_v2  ;;  %v9048_v20 = vpop.f32.mrf.mxu3  ;;  %v16048_v2 = vld [vmem:[%s17262_s12 + $0xbac] sm:$0xf0]  ;;  %v12905_v24 = vld [vmem:[%s17262_s12 + $0x12b8] sm:$0xf] }
 0x300   : > { %9287 = vmatpush.bf16.msra.mxu2 %v10818_v8  ;;  %v15131_v8 = vld [vmem:[%s17262_s12 + $0x2468] sm:$0xf0]  ;;  %v10273_v43 = vadd.f32 %v10259_v52, %v310_v0  ;;  %v12042_v0 = vor.u32 %v16066_v56, %v12041_v47  ;;  %v16480_v13 = vld [vmem:[%s17262_s12 + $0x192c] sm:$0xf0]  ;;  %v12329_v47 = vld [vmem:[%s17262_s12 + $0xe38] sm:$0xf] }
 0x301   : > { %9300 = vmatpush.bf16.msra.mxu3 %v11394_v55  ;;  %v13337_v55 = vld [vmem:[%s17262_s12 + $0x1618] sm:$0xf]  ;;  %v15134_v30 = vor.u32 %v16830_v5, %v15131_v8  ;;  %v13121_v5 = vld [vmem:[%s17262_s12 + $0x1468] sm:$0xf]  ;;  %v16336_v8 = vld [vmem:[%s17262_s12 + $0x14ac] sm:$0xf0] }
 0x302   : > { %9262 = vmatpush.bf16.msra.mxu0 %v14774_v53  ;;  %v9035_v53 = vpop.f32.mrf.mxu2  ;;  %10278 = vst [vmem:[#allocation2 + $0x8] sm:$0xff] %v10273_v43  ;;  %v13338_v34 = vor.u32 %v16390_v40, %v13337_v55  ;;  %v13122_v52 = vor.u32 %v16336_v8, %v13121_v5  ;;  %v13698_v55 = vor.u32 %v16480_v13, %v13697_v11  ;;  %v16318_v43 = vld [vmem:[%s17262_s12 + $0x141c] sm:$0xf0]  ;;  %v12833_v5 = vld [vmem:[%s17262_s12 + $0x1228] sm:$0xf] }
 0x303   : > { %9275 = vmatpush.bf16.msra.mxu1 %v15350_v1  ;;  %v11105_v1 = vld [vmem:[%s17262_s12 + $0x4a8] sm:$0xf]  ;;  %v13049_v53 = vld [vmem:[%s17262_s12 + $0x13d8] sm:$0xf]  ;;  %v16264_v8 = vld [vmem:[%s17262_s12 + $0x126c] sm:$0xf0] }
 0x304   : > { %9288 = vmatpush.bf16.msra.mxu2 %v10746_v57  ;;  %v15832_v57 = vld [vmem:[%s17262_s12 + $0x4ec] sm:$0xf0]  ;;  %v13050_v20 = vor.u32 %v16318_v43, %v13049_v53  ;;  %v14489_v13 = vld [vmem:[%s17262_s12 + $0x1f18] sm:$0xf]  ;;  %v13409_v53 = vld [vmem:[%s17262_s12 + $0x16a8] sm:$0xf] }
 0x305   : > { %9301 = vmatpush.bf16.msra.mxu3 %v11322_v16  ;;  %v11106_v16 = vor.u32 %v15832_v57, %v11105_v1  ;;  %v13625_v1 = vld [vmem:[%s17262_s12 + $0x1858] sm:$0xf]  ;;  %v16462_v57 = vld [vmem:[%s17262_s12 + $0x189c] sm:$0xf0]  ;;  %v16408_v43 = vld [vmem:[%s17262_s12 + $0x16ec] sm:$0xf0] }
 0x306   : > { %9263 = vmatpush.bf16.msra.mxu0 %v14702_v36  ;;  %v12689_v36 = vld [vmem:[%s17262_s12 + $0x1108] sm:$0xf] }
 0x307   : > { %9276 = vmatpush.bf16.msra.mxu1 %v15278_v6  ;;  %v16372_v6 = vld [vmem:[%s17262_s12 + $0x15cc] sm:$0xf0]  ;;  %v12690_v46 = vor.u32 %v16228_v38, %v12689_v36  ;;  %v13553_v36 = vld [vmem:[%s17262_s12 + $0x17c8] sm:$0xf] }
 0x308   : > { %9289 = vmatpush.bf16.msra.mxu2 %v10674_v44  ;;  %v13841_v44 = vld [vmem:[%s17262_s12 + $0x1a08] sm:$0xf]  ;;  %v13266_v50 = vor.u32 %v16372_v6, %v13265_v39  ;;  %v16444_v38 = vld [vmem:[%s17262_s12 + $0x180c] sm:$0xf0] }
 0x309   : > { %9302 = vmatpush.bf16.msra.mxu3 %v11250_v61  ;;  %v13842_v59 = vor.u32 %v16516_v49, %v13841_v44  ;;  %v16354_v61 = vld [vmem:[%s17262_s12 + $0x153c] sm:$0xf0]  ;;  %v11753_v44 = vld [vmem:[%s17262_s12 + $0x9b8] sm:$0xf]  ;;  %v13554_v56 = vor.u32 %v16444_v38, %v13553_v36  ;;  %v15787_v38 = vld [vmem:[%s17262_s12 + $0x38c] sm:$0xf] }
 0x30a   : > { %9264 = vmatpush.bf16.msra.mxu0 %v14630_v41  ;;  %v11969_v41 = vld [vmem:[%s17262_s12 + $0xb68] sm:$0xf]  ;;  %v13194_v37 = vor.u32 %v16354_v61, %v13193_v32  ;;  %v13481_v61 = vld [vmem:[%s17262_s12 + $0x1738] sm:$0xf] }
 0x30b   : > { %9277 = vmatpush.bf16.msra.mxu1 %v15206_v3  ;;  %v12545_v3 = vld [vmem:[%s17262_s12 + $0xfe8] sm:$0xf]  ;;  %v11970_v15 = vor.u32 %v16048_v2, %v11969_v41  ;;  %v15976_v2 = vld [vmem:[%s17262_s12 + $0x96c] sm:$0xf0] }
 0x30c   : > { %9290 = vmatpush.bf16.msra.mxu2 %v10602_v4  ;;  %v13770_v4 = vor.u32 %v16498_v45, %v13769_v62  ;;  %v16426_v62 = vld [vmem:[%s17262_s12 + $0x177c] sm:$0xf0] }
 0x30d   : > { %9303 = vmatpush.bf16.msra.mxu3 %v11178_v51  ;;  %v16030_v51 = vld [vmem:[%s17262_s12 + $0xb1c] sm:$0xf0]  ;;  %v13482_v11 = vor.u32 %v16426_v62, %v13481_v61  ;;  %v14273_v62 = vld [vmem:[%s17262_s12 + $0x1d68] sm:$0xf] }
 0x30e   : > { %9265 = vmatpush.bf16.msra.mxu0 %v14558_v48  ;;  %v9059_v48 = vpop.f32.mrf.mxu0 }
 0x30f   : > { %9278 = vmatpush.bf16.msra.mxu1 %v15134_v30  ;;  %v9072_v40 = vpop.f32.mrf.mxu1 }
 0x310   : > { %9291 = vmatpush.bf16.msra.mxu2 %v10530_v63  ;;  %v9073_v30 = vadd.f32 %v9072_v40, %v9059_v48  ;;  %v11898_v63 = vor.u32 %v16030_v51, %v11897_v7  ;;  %v16822_v7 = vld [vmem:[%s17262_s12 + $0x23dc] sm:$0xf0]  ;;  %v12834_v48 = vor.u32 %v16264_v8, %v12833_v5  ;;  %v10819_v5 = vld [vmem:[%s17262_s12 + $0x2b0] sm:$0xf0] }
 0x311   : > { %9304 = vmatpush.bf16.msra.mxu3 %v11106_v16  ;;  %9266 = vmatmul.bf16.vlgmr.msra.gmra.mxu0 %v17462_v42  ;;  %v12977_v16 = vld [vmem:[%s17262_s12 + $0x1348] sm:$0xf]  ;;  %v16966_v51 = vld [vmem:[%s17262_s12 + $0x285c] sm:$0xf0] }
 0x312   : > { %9310 = vmatpush.bf16.msrb.mxu0 %v12186_v25  ;;  %9279 = vmatmul.bf16.vlgmr.msra.gmra.mxu1 %v18836_v19  ;;  %v16192_v19 = vld [vmem:[%s17262_s12 + $0x102c] sm:$0xf0] }
 0x313   : > { %9323 = vmatpush.bf16.msrb.mxu1 %v12762_v26  ;;  %9292 = vmatmul.bf16.vlgmr.msra.gmra.mxu2 %v17394_v22  ;;  %v12546_v10 = vor.u32 %v16192_v19, %v12545_v3  ;;  %v16012_v25 = vld [vmem:[%s17262_s12 + $0xa8c] sm:$0xf0]  ;;  %v12401_v26 = vld [vmem:[%s17262_s12 + $0xec8] sm:$0xf]  ;;  %v12906_v19 = vor.u32 %v16282_v58, %v12905_v24  ;;  %v15769_v58 = vld [vmem:[%s17262_s12 + $0x2fc] sm:$0xf] }
 0x314   : > { %9336 = vmatpush.bf16.msrb.mxu2 %v13338_v34  ;;  %9305 = vmatmul.bf16.vlgmr.msra.gmra.mxu3 %v17401_v27  ;;  %v13626_v34 = vor.u32 %v16462_v57, %v13625_v1  ;;  %v11826_v39 = vor.u32 %v16012_v25, %v11825_v18  ;;  %v12402_v6 = vor.u32 %v16156_v31, %v12401_v26  ;;  %v12257_v3 = vld [vmem:[%s17262_s12 + $0xda8] sm:$0xf]  ;;  %v15805_v1 = vld [vmem:[%s17262_s12 + $0x41c] sm:$0xf]  ;;  %v11035_v57 = vld [vmem:[%s17262_s12 + $0x460] sm:$0xf0] }
 0x315   : > { %9349 = vmatpush.bf16.msrb.mxu3 %v13914_v12  ;;  %v16660_v18 = vld [vmem:[%s17262_s12 + $0x1ecc] sm:$0xf0]  ;;  %v13410_v26 = vor.u32 %v16408_v43, %v13409_v53 }
 0x316   : > { %9311 = vmatpush.bf16.msrb.mxu0 %v12114_v60  ;;  %v9085_v12 = vpop.f32.mrf.mxu2  ;;  %v12978_v60 = vor.u32 %v16300_v35, %v12977_v16  ;;  %v9061_v32 = vpop.f32.mrf.mxu0  ;;  %v16804_v31 = vld [vmem:[%s17262_s12 + $0x234c] sm:$0xf0]  ;;  %v11038_v35 = vor.u32 %v15805_v1, %v11035_v57  ;;  %v10747_v1 = vld [vmem:[%s17262_s12 + $0x220] sm:$0xf0] }
 0x317   : > { %9324 = vmatpush.bf16.msrb.mxu1 %v12690_v46  ;;  %v9086_v49 = vadd.f32 %v9085_v12, %v9073_v30  ;;  %v15994_v46 = vld [vmem:[%s17262_s12 + $0x9fc] sm:$0xf0]  ;;  %v16948_v16 = vld [vmem:[%s17262_s12 + $0x27cc] sm:$0xf0]  ;;  %v10963_v12 = vld [vmem:[%s17262_s12 + $0x3d0] sm:$0xf0] }
 0x318   : > { %9337 = vmatpush.bf16.msrb.mxu2 %v13266_v50  ;;  %v16138_v50 = vld [vmem:[%s17262_s12 + $0xe7c] sm:$0xf0] }
 0x319   : > { %9350 = vmatpush.bf16.msrb.mxu3 %v13842_v59  ;;  %v9098_v59 = vpop.f32.mrf.mxu3  ;;  %v12330_v41 = vor.u32 %v16138_v50, %v12329_v47  ;;  %v15497_v47 = vld [vmem:[%s17262_s12 + $0x26f8] sm:$0xf]  ;;  %v16930_v50 = vld [vmem:[%s17262_s12 + $0x273c] sm:$0xf0] }
 0x31a   : > { %9312 = vmatpush.bf16.msrb.mxu0 %v12042_v0  ;;  %v19032_v45 = vadd.f32 %v9098_v59, %v9086_v49  ;;  %v9074_v0 = vpop.f32.mrf.mxu1  ;;  %v16642_v49 = vld [vmem:[%s17262_s12 + $0x1e3c] sm:$0xf0]  ;;  %v10891_v59 = vld [vmem:[%s17262_s12 + $0x340] sm:$0xf0]  ;;  %v15498_v61 = vor.u32 %v16930_v50, %v15497_v47 }
 0x31b   : > { %9325 = vmatpush.bf16.msrb.mxu1 %v12618_v9  ;;  %v11754_v9 = vor.u32 %v15994_v46, %v11753_v44  ;;  %v14345_v44 = vld [vmem:[%s17262_s12 + $0x1df8] sm:$0xf]  ;;  %v16786_v46 = vld [vmem:[%s17262_s12 + $0x22bc] sm:$0xf0]  ;;  %v16624_v0 = vld [vmem:[%s17262_s12 + $0x1dac] sm:$0xf0] }
 0x31c   : > { %9338 = vmatpush.bf16.msrb.mxu2 %v13194_v37  ;;  %v11681_v37 = vld [vmem:[%s17262_s12 + $0x928] sm:$0xf]  ;;  %v14346_v24 = vor.u32 %v16642_v49, %v14345_v44  ;;  %v14633_v44 = vld [vmem:[%s17262_s12 + $0x2038] sm:$0xf]  ;;  %v16858_v47 = vld [vmem:[%s17262_s12 + $0x24fc] sm:$0xf0] }
 0x31d   : > { %9351 = vmatpush.bf16.msrb.mxu3 %v13770_v4  ;;  %v16120_v4 = vld [vmem:[%s17262_s12 + $0xdec] sm:$0xf0]  ;;  %v11682_v14 = vor.u32 %v15976_v2, %v11681_v37  ;;  %v15425_v37 = vld [vmem:[%s17262_s12 + $0x2668] sm:$0xf] }
 0x31e   : > { %9313 = vmatpush.bf16.msrb.mxu0 %v11970_v15  ;;  %v16678_v15 = vld [vmem:[%s17262_s12 + $0x1f5c] sm:$0xf0]  ;;  %v9087_v17 = vpop.f32.mrf.mxu2  ;;  %v16912_v2 = vld [vmem:[%s17262_s12 + $0x26ac] sm:$0xf0] }
 0x31f   : > { %9326 = vmatpush.bf16.msrb.mxu1 %v12546_v10  ;;  %v15065_v10 = vld [vmem:[%s17262_s12 + $0x2398] sm:$0xf]  ;;  %v14490_v40 = vor.u32 %v16678_v15, %v14489_v13 }
 0x320   : > { %9339 = vmatpush.bf16.msrb.mxu2 %v13122_v52  ;;  %v15641_v52 = vld [vmem:[%s17262_s12 + $0x2818] sm:$0xf]  ;;  %v15066_v30 = vor.u32 %v16822_v7, %v15065_v10  ;;  %v16606_v10 = vld [vmem:[%s17262_s12 + $0x1d1c] sm:$0xf0] }
 0x321   : > { %9352 = vmatpush.bf16.msrb.mxu3 %v13698_v55  ;;  %v12258_v55 = vor.u32 %v16120_v4, %v12257_v3  ;;  %v9100_v25 = vpop.f32.mrf.mxu3  ;;  %v10894_v3 = vor.u32 %v15769_v58, %v10891_v59  ;;  %v15751_v4 = vld [vmem:[%s17262_s12 + $0x26c] sm:$0xf]  ;;  %v14201_v15 = vld [vmem:[%s17262_s12 + $0x1cd8] sm:$0xf] }
 0x322   : > { %9314 = vmatpush.bf16.msrb.mxu0 %v11898_v63  ;;  %v15642_v63 = vor.u32 %v16966_v51, %v15641_v52  ;;  %v14777_v7 = vld [vmem:[%s17262_s12 + $0x2158] sm:$0xf]  ;;  %v16750_v51 = vld [vmem:[%s17262_s12 + $0x219c] sm:$0xf0]  ;;  %v14202_v43 = vor.u32 %v16606_v10, %v14201_v15  ;;  %v16876_v25 = vld [vmem:[%s17262_s12 + $0x258c] sm:$0xf0] }
 0x323   : > { %9327 = vmatpush.bf16.msrb.mxu1 %v12474_v54  ;;  %v14417_v54 = vld [vmem:[%s17262_s12 + $0x1e88] sm:$0xf]  ;;  %v15353_v17 = vld [vmem:[%s17262_s12 + $0x25d8] sm:$0xf]  ;;  %v16237_v15 = vld [vmem:[%s17262_s12 + $0x119c] sm:$0xf] }
 0x324   : > { %9340 = vmatpush.bf16.msrb.mxu2 %v13050_v20  ;;  %v14993_v20 = vld [vmem:[%s17262_s12 + $0x2308] sm:$0xf]  ;;  %v14418_v36 = vor.u32 %v16660_v18, %v14417_v54  ;;  %v16732_v18 = vld [vmem:[%s17262_s12 + $0x210c] sm:$0xf0] }
 0x325   : > { %9353 = vmatpush.bf16.msrb.mxu3 %v13626_v34  ;;  %v15569_v34 = vld [vmem:[%s17262_s12 + $0x2788] sm:$0xf] }
 0x326   : > { %9315 = vmatpush.bf16.msrb.mxu0 %v11826_v39  ;;  %v14994_v39 = vor.u32 %v16804_v31, %v14993_v20  ;;  %v14705_v54 = vld [vmem:[%s17262_s12 + $0x20c8] sm:$0xf] }
 0x327   : > { %9328 = vmatpush.bf16.msrb.mxu1 %v12402_v6  ;;  %v15570_v6 = vor.u32 %v16948_v16, %v15569_v34  ;;  %v15281_v20 = vld [vmem:[%s17262_s12 + $0x2548] sm:$0xf]  ;;  %v15715_v16 = vld [vmem:[%s17262_s12 + $0x14c] sm:$0xf] }
 0x328   : > { %9341 = vmatpush.bf16.msrb.mxu2 %v12978_v60  ;;  %v14921_v60 = vld [vmem:[%s17262_s12 + $0x2278] sm:$0xf] }
 0x329   : > { %9354 = vmatpush.bf16.msrb.mxu3 %v13554_v56  ;;  %v10966_v56 = vor.u32 %v15787_v38, %v10963_v12  ;;  %v14922_v32 = vor.u32 %v16786_v46, %v14921_v60  ;;  %v14706_v38 = vor.u32 %v16732_v18, %v14705_v54  ;;  %v15282_v12 = vor.u32 %v16876_v25, %v15281_v20  ;;  %v16714_v60 = vld [vmem:[%s17262_s12 + $0x207c] sm:$0xf0]  ;;  %v15209_v46 = vld [vmem:[%s17262_s12 + $0x24b8] sm:$0xf]  ;;  %v12115_v54 = vld [vmem:[%s17262_s12 + $0xcd0] sm:$0xf0] }
 0x32a   : > { %9316 = vmatpush.bf16.msrb.mxu0 %v11754_v9  ;;  %v14849_v9 = vld [vmem:[%s17262_s12 + $0x21e8] sm:$0xf]  ;;  %v16219_v25 = vld [vmem:[%s17262_s12 + $0x110c] sm:$0xf] }
 0x32b   : > { %9329 = vmatpush.bf16.msrb.mxu1 %v12330_v41  ;;  %v16768_v41 = vld [vmem:[%s17262_s12 + $0x222c] sm:$0xf0] }
 0x32c   : > { %9342 = vmatpush.bf16.msrb.mxu2 %v12906_v19  ;;  %v14274_v19 = vor.u32 %v16624_v0, %v14273_v62  ;;  %v14850_v8 = vor.u32 %v16768_v41, %v14849_v9  ;;  %v13985_v62 = vld [vmem:[%s17262_s12 + $0x1b28] sm:$0xf]  ;;  %v16552_v0 = vld [vmem:[%s17262_s12 + $0x1b6c] sm:$0xf0]  ;;  %v14634_v9 = vor.u32 %v16714_v60, %v14633_v44  ;;  %v15210_v41 = vor.u32 %v16858_v47, %v15209_v46  ;;  %v19133_v44 = vld [vmem:[#allocation1] sm:$0xff] }
 0x32d   : > { %9355 = vmatpush.bf16.msrb.mxu3 %v13482_v11  ;;  %v15426_v11 = vor.u32 %v16912_v2, %v15425_v37  ;;  %v14561_v37 = vld [vmem:[%s17262_s12 + $0x1fa8] sm:$0xf]  ;;  %v16696_v2 = vld [vmem:[%s17262_s12 + $0x1fec] sm:$0xf0]  ;;  %v13986_v10 = vor.u32 %v16552_v0, %v13985_v62  ;;  %v16201_v60 = vld [vmem:[%s17262_s12 + $0x107c] sm:$0xf] }
 0x32e   : > { %9317 = vmatpush.bf16.msrb.mxu0 %v11682_v14  ;;  %v9111_v13 = vpop.f32.mrf.mxu0  ;;  %v16894_v14 = vld [vmem:[%s17262_s12 + $0x261c] sm:$0xf0]  ;;  %v12619_v46 = vld [vmem:[%s17262_s12 + $0x10c0] sm:$0xf0]  ;;  %v16345_v47 = vld [vmem:[%s17262_s12 + $0x14fc] sm:$0xf] }
 0x32f   : > { %9330 = vmatpush.bf16.msrb.mxu1 %v12258_v55  ;;  %v9112_v52 = vadd.f32 %v9111_v13, %v19032_v45  ;;  %v10822_v55 = vor.u32 %v15751_v4, %v10819_v5  ;;  %v9124_v53 = vpop.f32.mrf.mxu1  ;;  %v14778_v45 = vor.u32 %v16750_v51, %v14777_v7  ;;  %v15354_v57 = vor.u32 %v16894_v14, %v15353_v17  ;;  %v15949_v4 = vld [vmem:[%s17262_s12 + $0x89c] sm:$0xf]  ;;  %v11611_v5 = vld [vmem:[%s17262_s12 + $0x8e0] sm:$0xf0]  ;;  %v10531_v51 = vld [vmem:[%s17262_s12 + $0x70] sm:$0xf0] }
 0x330   : > { %9343 = vmatpush.bf16.msrb.mxu2 %v12834_v48  ;;  %v12187_v13 = vld [vmem:[%s17262_s12 + $0xd60] sm:$0xf0]  ;;  %v14562_v14 = vor.u32 %v16696_v2, %v14561_v37  ;;  %v16039_v62 = vld [vmem:[%s17262_s12 + $0xb6c] sm:$0xf]  ;;  %v11971_v0 = vld [vmem:[%s17262_s12 + $0xbb0] sm:$0xf0] }
 0x331   : > { %9356 = vmatpush.bf16.msrb.mxu3 %v13410_v26  ;;  %9318 = vmatmul.bf16.vlgmr.msrb.gmra.mxu0 %v17392_v21  ;;  %v9125_v48 = vadd.f32 %v9124_v53, %v9112_v52  ;;  %v12763_v7 = vld [vmem:[%s17262_s12 + $0x11e0] sm:$0xf0]  ;;  %v15679_v52 = vld [vmem:[%s17262_s12 + $0x2c] sm:$0xf]  ;;  %v16381_v53 = vld [vmem:[%s17262_s12 + $0x161c] sm:$0xf] }
 0x332   : > { %9362 = vmatpush.bf16.msra.mxu0 %v14490_v40  ;;  %9331 = vmatmul.bf16.vlgmr.msrb.gmra.mxu1 %v17396_v23  ;;  %v15733_v40 = vld [vmem:[%s17262_s12 + $0x1dc] sm:$0xf]  ;;  %v12547_v37 = vld [vmem:[%s17262_s12 + $0x1030] sm:$0xf0]  ;;  %v16327_v2 = vld [vmem:[%s17262_s12 + $0x146c] sm:$0xf] }
 0x333   : > { %9375 = vmatpush.bf16.msra.mxu1 %v15066_v30  ;;  %9344 = vmatmul.bf16.vlgmr.msrb.gmra.mxu2 %v17448_v29  ;;  %v14129_v30 = vld [vmem:[%s17262_s12 + $0x1c48] sm:$0xf]  ;;  %v10750_v26 = vor.u32 %v15733_v40, %v10747_v1  ;;  %v15931_v1 = vld [vmem:[%s17262_s12 + $0x80c] sm:$0xf] }
 0x334   : > { %9388 = vmatpush.bf16.msra.mxu2 %v15642_v63  ;;  %9357 = vmatmul.bf16.vlgmr.msrb.gmra.mxu3 %v17452_v33  ;;  %v16588_v63 = vld [vmem:[%s17262_s12 + $0x1c8c] sm:$0xf0] }
 0x335   : > { %9401 = vmatpush.bf16.msra.mxu3 %v11038_v35  ;;  %v14130_v34 = vor.u32 %v16588_v63, %v14129_v30  ;;  %v10675_v35 = vld [vmem:[%s17262_s12 + $0x190] sm:$0xf0]  ;;  %v16075_v63 = vld [vmem:[%s17262_s12 + $0xc8c] sm:$0xf] }
 0x336   : > { %9363 = vmatpush.bf16.msra.mxu0 %v14418_v36  ;;  %v9137_v31 = vpop.f32.mrf.mxu2  ;;  %v9113_v49 = vpop.f32.mrf.mxu0  ;;  %v11539_v30 = vld [vmem:[%s17262_s12 + $0x850] sm:$0xf0] }
 0x337   : > { %9376 = vmatpush.bf16.msra.mxu1 %v14994_v39  ;;  %v9138_v36 = vadd.f32 %v9137_v31, %v9125_v48  ;;  %v14057_v39 = vld [vmem:[%s17262_s12 + $0x1bb8] sm:$0xf]  ;;  %v9150_v50 = vpop.f32.mrf.mxu3  ;;  %v9126_v58 = vpop.f32.mrf.mxu1  ;;  %v11614_v48 = vor.u32 %v15949_v4, %v11611_v5  ;;  %v16363_v31 = vld [vmem:[%s17262_s12 + $0x158c] sm:$0xf]  ;;  %v11974_v4 = vor.u32 %v16039_v62, %v11971_v0  ;;  %v15877_v5 = vld [vmem:[%s17262_s12 + $0x65c] sm:$0xf] }
 0x338   : > { %9389 = vmatpush.bf16.msra.mxu2 %v15570_v6  ;;  %v16570_v6 = vld [vmem:[%s17262_s12 + $0x1bfc] sm:$0xf0]  ;;  %v15895_v58 = vld [vmem:[%s17262_s12 + $0x6ec] sm:$0xf]  ;;  %v11107_v62 = vld [vmem:[%s17262_s12 + $0x4f0] sm:$0xf0] }
 0x339   : > { %9402 = vmatpush.bf16.msra.mxu3 %v10966_v56  ;;  %v10678_v56 = vor.u32 %v15715_v16, %v10675_v35  ;;  %v19102_v59 = vadd.f32 %v9150_v50, %v9138_v36  ;;  %v11542_v16 = vor.u32 %v15931_v1, %v11539_v30  ;;  %v12118_v35 = vor.u32 %v16075_v63, %v12115_v54  ;;  %v15913_v36 = vld [vmem:[%s17262_s12 + $0x77c] sm:$0xf]  ;;  %v13195_v50 = vld [vmem:[%s17262_s12 + $0x1540] sm:$0xf0]  ;;  %v11251_v1 = vld [vmem:[%s17262_s12 + $0x610] sm:$0xf0] }
 0x33a   : > { %9364 = vmatpush.bf16.msra.mxu0 %v14346_v24  ;;  %v15697_v24 = vld [vmem:[%s17262_s12 + $0xbc] sm:$0xf]  ;;  %v16147_v63 = vld [vmem:[%s17262_s12 + $0xecc] sm:$0xf]  ;;  %v12403_v54 = vld [vmem:[%s17262_s12 + $0xf10] sm:$0xf0] }
 0x33b   : > { %9377 = vmatpush.bf16.msra.mxu1 %v14922_v32  ;;  %v14058_v32 = vor.u32 %v16570_v6, %v14057_v39  ;;  %v16057_v39 = vld [vmem:[%s17262_s12 + $0xbfc] sm:$0xf]  ;;  %v12043_v6 = vld [vmem:[%s17262_s12 + $0xc40] sm:$0xf0]  ;;  %v15967_v0 = vld [vmem:[%s17262_s12 + $0x92c] sm:$0xf] }
 0x33c   : > { %9390 = vmatpush.bf16.msra.mxu2 %v15498_v61  ;;  %v10603_v61 = vld [vmem:[%s17262_s12 + $0x100] sm:$0xf0] }
 0x33d   : > { %9403 = vmatpush.bf16.msra.mxu3 %v10894_v3  ;;  %v15137_v3 = vld [vmem:[%s17262_s12 + $0x2428] sm:$0xf] }
 0x33e   : > { %9365 = vmatpush.bf16.msra.mxu0 %v14274_v19  ;;  %v16840_v19 = vld [vmem:[%s17262_s12 + $0x246c] sm:$0xf0]  ;;  %v9139_v17 = vpop.f32.mrf.mxu2 }
 0x33f   : > { %9378 = vmatpush.bf16.msra.mxu1 %v14850_v8  ;;  %v10606_v8 = vor.u32 %v15697_v24, %v10603_v61  ;;  %v9152_v18 = vpop.f32.mrf.mxu3  ;;  %v12046_v24 = vor.u32 %v16057_v39, %v12043_v6  ;;  %v11395_v61 = vld [vmem:[%s17262_s12 + $0x730] sm:$0xf0]  ;;  %v12475_v17 = vld [vmem:[%s17262_s12 + $0xfa0] sm:$0xf0] }
 0x340   : > { %9391 = vmatpush.bf16.msra.mxu2 %v15426_v11  ;;  %v16093_v11 = vld [vmem:[%s17262_s12 + $0xd1c] sm:$0xf]  ;;  %v16291_v18 = vld [vmem:[%s17262_s12 + $0x134c] sm:$0xf] }
 0x341   : > { %9404 = vmatpush.bf16.msra.mxu3 %v10822_v55  ;;  %v15138_v55 = vor.u32 %v16840_v19, %v15137_v3  ;;  %v12190_v40 = vor.u32 %v16093_v11, %v12187_v13  ;;  %v13123_v3 = vld [vmem:[%s17262_s12 + $0x14b0] sm:$0xf0]  ;;  %v11398_v19 = vor.u32 %v15895_v58, %v11395_v61  ;;  %v11323_v13 = vld [vmem:[%s17262_s12 + $0x6a0] sm:$0xf0]  ;;  %v15823_v61 = vld [vmem:[%s17262_s12 + $0x4ac] sm:$0xf] }
 0x342   : > { %9366 = vmatpush.bf16.msra.mxu0 %v14202_v43  ;;  %v13339_v43 = vld [vmem:[%s17262_s12 + $0x1660] sm:$0xf0] }
 0x343   : > { %9379 = vmatpush.bf16.msra.mxu1 %v14778_v45  ;;  %v12766_v45 = vor.u32 %v16237_v15, %v12763_v7  ;;  %v13342_v20 = vor.u32 %v16381_v53, %v13339_v43  ;;  %v16021_v15 = vld [vmem:[%s17262_s12 + $0xadc] sm:$0xf]  ;;  %v13051_v53 = vld [vmem:[%s17262_s12 + $0x1420] sm:$0xf0]  ;;  %v11326_v43 = vor.u32 %v15877_v5, %v11323_v13 }
 0x344   : > { %9392 = vmatpush.bf16.msra.mxu2 %v15354_v57  ;;  %v10534_v57 = vor.u32 %v15679_v52, %v10531_v51  ;;  %v13126_v52 = vor.u32 %v16327_v2, %v13123_v3  ;;  %v16165_v51 = vld [vmem:[%s17262_s12 + $0xf5c] sm:$0xf]  ;;  %v12259_v2 = vld [vmem:[%s17262_s12 + $0xdf0] sm:$0xf0]  ;;  %v15067_v13 = vld [vmem:[%s17262_s12 + $0x23e0] sm:$0xf0] }
 0x345   : > { %9405 = vmatpush.bf16.msra.mxu3 %v10750_v26  ;;  %v12691_v26 = vld [vmem:[%s17262_s12 + $0x1150] sm:$0xf0]  ;;  %v16669_v5 = vld [vmem:[%s17262_s12 + $0x1f1c] sm:$0xf] }
 0x346   : > { %9367 = vmatpush.bf16.msra.mxu0 %v14130_v34  ;;  %v13267_v34 = vld [vmem:[%s17262_s12 + $0x15d0] sm:$0xf0] }
 0x347   : > { %9380 = vmatpush.bf16.msra.mxu1 %v14706_v38  ;;  %v12694_v38 = vor.u32 %v16219_v25, %v12691_v26  ;;  %v13270_v49 = vor.u32 %v16363_v31, %v13267_v34  ;;  %v15841_v31 = vld [vmem:[%s17262_s12 + $0x53c] sm:$0xf] }
 0x348   : > { %9393 = vmatpush.bf16.msra.mxu2 %v15282_v12  ;;  %v11467_v12 = vld [vmem:[%s17262_s12 + $0x7c0] sm:$0xf0] }
 0x349   : > { %9406 = vmatpush.bf16.msra.mxu3 %v10678_v56  ;;  %v11470_v56 = vor.u32 %v15913_v36, %v11467_v12  ;;  %v15985_v36 = vld [vmem:[%s17262_s12 + $0x9bc] sm:$0xf] }
 0x34a   : > { %9368 = vmatpush.bf16.msra.mxu0 %v14058_v32  ;;  %v12622_v32 = vor.u32 %v16201_v60, %v12619_v46  ;;  %v12331_v60 = vld [vmem:[%s17262_s12 + $0xe80] sm:$0xf0] }
 0x34b   : > { %9381 = vmatpush.bf16.msra.mxu1 %v14634_v9  ;;  %v13198_v9 = vor.u32 %v16345_v47, %v13195_v50  ;;  %v16273_v50 = vld [vmem:[%s17262_s12 + $0x12bc] sm:$0xf] }
 0x34c   : > { %9394 = vmatpush.bf16.msra.mxu2 %v15210_v41  ;;  %v16183_v41 = vld [vmem:[%s17262_s12 + $0xfec] sm:$0xf] }
 0x34d   : > { %9407 = vmatpush.bf16.msra.mxu3 %v10606_v8  ;;  %v12550_v11 = vor.u32 %v16183_v41, %v12547_v37  ;;  %v11683_v41 = vld [vmem:[%s17262_s12 + $0x970] sm:$0xf0]  ;;  %v16111_v37 = vld [vmem:[%s17262_s12 + $0xdac] sm:$0xf] }
 0x34e   : > { %9369 = vmatpush.bf16.msra.mxu0 %v13986_v10  ;;  %v9163_v8 = vpop.f32.mrf.mxu0  ;;  %v11899_v10 = vld [vmem:[%s17262_s12 + $0xb20] sm:$0xf0] }
 0x34f   : > { %9382 = vmatpush.bf16.msra.mxu1 %v14562_v14  ;;  %v19156_v7 = vadd.f32 %v9163_v8, %v19102_v59  ;;  %v9176_v14 = vpop.f32.mrf.mxu1  ;;  %v12478_v59 = vor.u32 %v16165_v51, %v12475_v17  ;;  %v14491_v8 = vld [vmem:[%s17262_s12 + $0x1f60] sm:$0xf0]  ;;  %v12835_v51 = vld [vmem:[%s17262_s12 + $0x1270] sm:$0xf0] }
 0x350   : > { %9395 = vmatpush.bf16.msra.mxu2 %v15138_v55  ;;  %v16309_v55 = vld [vmem:[%s17262_s12 + $0x13dc] sm:$0xf] }
 0x351   : > { %9408 = vmatpush.bf16.msra.mxu3 %v10534_v57  ;;  %9370 = vmatmul.bf16.vlgmr.msra.gmra.mxu0 %v17446_v28  ;;  %v11827_v57 = vld [vmem:[%s17262_s12 + $0xa90] sm:$0xf0]  ;;  %v13054_v30 = vor.u32 %v16309_v55, %v13051_v53  ;;  %v16957_v53 = vld [vmem:[%s17262_s12 + $0x281c] sm:$0xf] }
 0x352   : > { %9414 = vmatpush.bf16.msrb.mxu0 %v11614_v48  ;;  %9383 = vmatmul.bf16.vlgmr.msra.gmra.mxu1 %v17462_v42  ;;  %v11902_v48 = vor.u32 %v16021_v15, %v11899_v10  ;;  %v11110_v15 = vor.u32 %v15823_v61, %v11107_v62  ;;  %v11686_v10 = vor.u32 %v15967_v0, %v11683_v41  ;;  %v16615_v61 = vld [vmem:[%s17262_s12 + $0x1d6c] sm:$0xf]  ;;  %v14275_v62 = vld [vmem:[%s17262_s12 + $0x1db0] sm:$0xf0] }
 0x353   : > { %9427 = vmatpush.bf16.msrb.mxu1 %v12190_v40  ;;  %9396 = vmatmul.bf16.vlgmr.msra.gmra.mxu2 %v19133_v44  ;;  %v15859_v40 = vld [vmem:[%s17262_s12 + $0x5cc] sm:$0xf] }
 0x354   : > { %9440 = vmatpush.bf16.msrb.mxu2 %v12766_v45  ;;  %9409 = vmatmul.bf16.vlgmr.msra.gmra.mxu3 %v17394_v22  ;;  %v16003_v45 = vld [vmem:[%s17262_s12 + $0xa4c] sm:$0xf]  ;;  %v11254_v25 = vor.u32 %v15859_v40, %v11251_v1  ;;  %v13843_v1 = vld [vmem:[%s17262_s12 + $0x1a50] sm:$0xf0] }
 0x355   : > { %9453 = vmatpush.bf16.msrb.mxu3 %v13342_v20  ;;  %v12979_v20 = vld [vmem:[%s17262_s12 + $0x1390] sm:$0xf0]  ;;  %v11830_v26 = vor.u32 %v16003_v45, %v11827_v57  ;;  %v16651_v45 = vld [vmem:[%s17262_s12 + $0x1e8c] sm:$0xf] }
 0x356   : > { %9415 = vmatpush.bf16.msrb.mxu0 %v11542_v16  ;;  %v9189_v34 = vpop.f32.mrf.mxu2  ;;  %v12406_v16 = vor.u32 %v16147_v63, %v12403_v54  ;;  %v9165_v39 = vpop.f32.mrf.mxu0  ;;  %v12982_v6 = vor.u32 %v16291_v18, %v12979_v20  ;;  %v14419_v63 = vld [vmem:[%s17262_s12 + $0x1ed0] sm:$0xf0]  ;;  %v16795_v54 = vld [vmem:[%s17262_s12 + $0x230c] sm:$0xf] }
 0x357   : > { %9428 = vmatpush.bf16.msrb.mxu1 %v12118_v35  ;;  %v11179_v35 = vld [vmem:[%s17262_s12 + $0x580] sm:$0xf0]  ;;  %v9190_v12 = vadd.f32 %v9189_v34, %v9176_v14  ;;  %v9202_v46 = vpop.f32.mrf.mxu3  ;;  %v9178_v47 = vpop.f32.mrf.mxu1  ;;  %v12262_v14 = vor.u32 %v16111_v37, %v12259_v2  ;;  %v14995_v18 = vld [vmem:[%s17262_s12 + $0x2350] sm:$0xf0]  ;;  %v14422_v34 = vor.u32 %v16651_v45, %v14419_v63  ;;  %v16777_v39 = vld [vmem:[%s17262_s12 + $0x227c] sm:$0xf] }
 0x358   : > { %9441 = vmatpush.bf16.msrb.mxu2 %v12694_v38  ;;  %v11755_v38 = vld [vmem:[%s17262_s12 + $0xa00] sm:$0xf0]  ;;  %v11182_v58 = vor.u32 %v15841_v31, %v11179_v35  ;;  %v15571_v31 = vld [vmem:[%s17262_s12 + $0x27d0] sm:$0xf0]  ;;  %v16489_v35 = vld [vmem:[%s17262_s12 + $0x197c] sm:$0xf] }
 0x359   : > { %9454 = vmatpush.bf16.msrb.mxu3 %v13270_v49  ;;  %v16129_v49 = vld [vmem:[%s17262_s12 + $0xe3c] sm:$0xf]  ;;  %v15499_v47 = vld [vmem:[%s17262_s12 + $0x2740] sm:$0xf0]  ;;  %v16759_v0 = vld [vmem:[%s17262_s12 + $0x21ec] sm:$0xf] }
 0x35a   : > { %9416 = vmatpush.bf16.msrb.mxu0 %v11470_v56  ;;  %v12907_v56 = vld [vmem:[%s17262_s12 + $0x1300] sm:$0xf0]  ;;  %v16903_v2 = vld [vmem:[%s17262_s12 + $0x266c] sm:$0xf]  ;;  %v14707_v63 = vld [vmem:[%s17262_s12 + $0x2110] sm:$0xf0] }
 0x35b   : > { %9429 = vmatpush.bf16.msrb.mxu1 %v12046_v24  ;;  %v19178_v24 = vadd.f32 %v9202_v46, %v9190_v12  ;;  %v12910_v3 = vor.u32 %v16273_v50, %v12907_v56  ;;  %v14347_v12 = vld [vmem:[%s17262_s12 + $0x1e40] sm:$0xf0]  ;;  %v16921_v46 = vld [vmem:[%s17262_s12 + $0x26fc] sm:$0xf]  ;;  %v16579_v45 = vld [vmem:[%s17262_s12 + $0x1c4c] sm:$0xf] }
 0x35c   : > { %9442 = vmatpush.bf16.msrb.mxu2 %v12622_v32  ;;  %v11758_v32 = vor.u32 %v15985_v36, %v11755_v38  ;;  %v13771_v36 = vld [vmem:[%s17262_s12 + $0x19c0] sm:$0xf0]  ;;  %v16633_v38 = vld [vmem:[%s17262_s12 + $0x1dfc] sm:$0xf]  ;;  %v15502_v41 = vor.u32 %v16921_v46, %v15499_v47 }
 0x35d   : > { %9455 = vmatpush.bf16.msrb.mxu3 %v13198_v9  ;;  %v12334_v9 = vor.u32 %v16129_v49, %v12331_v60  ;;  %v13774_v60 = vor.u32 %v16489_v35, %v13771_v36  ;;  %v14350_v50 = vor.u32 %v16633_v38, %v14347_v12  ;;  %v16417_v35 = vld [vmem:[%s17262_s12 + $0x173c] sm:$0xf]  ;;  %v13483_v36 = vld [vmem:[%s17262_s12 + $0x1780] sm:$0xf0] }
 0x35e   : > { %9417 = vmatpush.bf16.msrb.mxu0 %v11398_v19  ;;  %v16525_v19 = vld [vmem:[%s17262_s12 + $0x1a9c] sm:$0xf]  ;;  %v9191_v17 = vpop.f32.mrf.mxu2 }
 0x35f   : > { %9430 = vmatpush.bf16.msrb.mxu1 %v11974_v4  ;;  %v13915_v4 = vld [vmem:[%s17262_s12 + $0x1ae0] sm:$0xf0]  ;;  %v9204_v57 = vpop.f32.mrf.mxu3  ;;  %v16561_v38 = vld [vmem:[%s17262_s12 + $0x1bbc] sm:$0xf] }
 0x360   : > { %9443 = vmatpush.bf16.msrb.mxu2 %v12550_v11  ;;  %v16813_v11 = vld [vmem:[%s17262_s12 + $0x239c] sm:$0xf]  ;;  %v13918_v55 = vor.u32 %v16525_v19, %v13915_v4  ;;  %v14278_v19 = vor.u32 %v16615_v61, %v14275_v62  ;;  %v14131_v57 = vld [vmem:[%s17262_s12 + $0x1c90] sm:$0xf0]  ;;  %v16399_v61 = vld [vmem:[%s17262_s12 + $0x16ac] sm:$0xf] }
 0x361   : > { %9456 = vmatpush.bf16.msrb.mxu3 %v13126_v52  ;;  %v16255_v52 = vld [vmem:[%s17262_s12 + $0x122c] sm:$0xf]  ;;  %v15070_v40 = vor.u32 %v16813_v11, %v15067_v13  ;;  %v13627_v11 = vld [vmem:[%s17262_s12 + $0x18a0] sm:$0xf0]  ;;  %v16597_v13 = vld [vmem:[%s17262_s12 + $0x1cdc] sm:$0xf] }
 0x362   : > { %9418 = vmatpush.bf16.msrb.mxu0 %v11326_v43  ;;  %v15643_v43 = vld [vmem:[%s17262_s12 + $0x2860] sm:$0xf0]  ;;  %v16849_v47 = vld [vmem:[%s17262_s12 + $0x24bc] sm:$0xf]  ;;  %v13411_v62 = vld [vmem:[%s17262_s12 + $0x16f0] sm:$0xf0] }
 0x363   : > { %9431 = vmatpush.bf16.msrb.mxu1 %v11902_v48  ;;  %v14494_v48 = vor.u32 %v16669_v5, %v14491_v8  ;;  %v15646_v20 = vor.u32 %v16957_v53, %v15643_v43  ;;  %v16453_v8 = vld [vmem:[%s17262_s12 + $0x185c] sm:$0xf] }
 0x364   : > { %9444 = vmatpush.bf16.msrb.mxu2 %v12478_v59  ;;  %v16507_v59 = vld [vmem:[%s17262_s12 + $0x1a0c] sm:$0xf]  ;;  %v16885_v43 = vld [vmem:[%s17262_s12 + $0x25dc] sm:$0xf] }
 0x365   : > { %9457 = vmatpush.bf16.msrb.mxu3 %v13054_v30  ;;  %v12838_v30 = vor.u32 %v16255_v52, %v12835_v51  ;;  %v16741_v52 = vld [vmem:[%s17262_s12 + $0x215c] sm:$0xf]  ;;  %v14779_v51 = vld [vmem:[%s17262_s12 + $0x21a0] sm:$0xf0] }
 0x366   : > { %9419 = vmatpush.bf16.msrb.mxu0 %v11254_v25  ;;  %v13846_v25 = vor.u32 %v16507_v59, %v13843_v1  ;;  %v16435_v59 = vld [vmem:[%s17262_s12 + $0x17cc] sm:$0xf]  ;;  %v13555_v1 = vld [vmem:[%s17262_s12 + $0x1810] sm:$0xf0] }
 0x367   : > { %9432 = vmatpush.bf16.msrb.mxu1 %v11830_v26  ;;  %v16939_v26 = vld [vmem:[%s17262_s12 + $0x278c] sm:$0xf] }
 0x368   : > { %9445 = vmatpush.bf16.msrb.mxu2 %v12406_v16  ;;  %v14998_v16 = vor.u32 %v16795_v54, %v14995_v18  ;;  %v15574_v49 = vor.u32 %v16939_v26, %v15571_v31  ;;  %v15283_v26 = vld [vmem:[%s17262_s12 + $0x2590] sm:$0xf0] }
 0x369   : > { %9458 = vmatpush.bf16.msrb.mxu3 %v12982_v6  ;;  %v14923_v6 = vld [vmem:[%s17262_s12 + $0x22c0] sm:$0xf0] }
 0x36a   : > { %9420 = vmatpush.bf16.msrb.mxu0 %v11182_v58  ;;  %v14926_v56 = vor.u32 %v16777_v39, %v14923_v6  ;;  %v16471_v58 = vld [vmem:[%s17262_s12 + $0x18ec] sm:$0xf]  ;;  %v14059_v39 = vld [vmem:[%s17262_s12 + $0x1c00] sm:$0xf0]  ;;  %v16705_v6 = vld [vmem:[%s17262_s12 + $0x203c] sm:$0xf] }
 0x36b   : > { %9433 = vmatpush.bf16.msrb.mxu1 %v11758_v32  ;;  %v13699_v32 = vld [vmem:[%s17262_s12 + $0x1930] sm:$0xf0] }
 0x36c   : > { %9446 = vmatpush.bf16.msrb.mxu2 %v12334_v9  ;;  %v14851_v9 = vld [vmem:[%s17262_s12 + $0x2230] sm:$0xf0]  ;;  %v13702_v37 = vor.u32 %v16471_v58, %v13699_v32  ;;  %v13486_v58 = vor.u32 %v16417_v35, %v13483_v36  ;;  %v15211_v32 = vld [vmem:[%s17262_s12 + $0x2500] sm:$0xf0]  ;;  %v10897_v35 = vld [vmem:[%s17262_s12 + $0x300] sm:$0xf] }
 0x36d   : > { %9459 = vmatpush.bf16.msrb.mxu3 %v12910_v3  ;;  %v15427_v3 = vld [vmem:[%s17262_s12 + $0x26b0] sm:$0xf0]  ;;  %v14854_v4 = vor.u32 %v16759_v0, %v14851_v9  ;;  %v14062_v0 = vor.u32 %v16561_v38, %v14059_v39  ;;  %v15779_v36 = vld [vmem:[%s17262_s12 + $0x344] sm:$0xf0]  ;;  %v11473_v38 = vld [vmem:[%s17262_s12 + $0x780] sm:$0xf] }
 0x36e   : > { %9421 = vmatpush.bf16.msrb.mxu0 %v11110_v15  ;;  %v9215_v5 = vpop.f32.mrf.mxu0  ;;  %v15430_v17 = vor.u32 %v16903_v2, %v15427_v3  ;;  %v16687_v2 = vld [vmem:[%s17262_s12 + $0x1fac] sm:$0xf]  ;;  %v14563_v3 = vld [vmem:[%s17262_s12 + $0x1ff0] sm:$0xf0]  ;;  %v15923_v39 = vld [vmem:[%s17262_s12 + $0x7c4] sm:$0xf0] }
 0x36f   : > { %9434 = vmatpush.bf16.msrb.mxu1 %v11686_v10  ;;  %v9216_v15 = vadd.f32 %v9215_v5, %v19178_v24  ;;  %v14203_v10 = vld [vmem:[%s17262_s12 + $0x1d20] sm:$0xf0]  ;;  %v15214_v5 = vor.u32 %v16849_v47, %v15211_v32  ;;  %v10898_v47 = vor.u32 %v15779_v36, %v10897_v35  ;;  %v10825_v32 = vld [vmem:[%s17262_s12 + $0x270] sm:$0xf]  ;;  %v10609_v35 = vld [vmem:[%s17262_s12 + $0xc0] sm:$0xf] }
 0x370   : > { %9447 = vmatpush.bf16.msrb.mxu2 %v12262_v14  ;;  %v9228_v14 = vpop.f32.mrf.mxu1  ;;  %v14206_v24 = vor.u32 %v16597_v13, %v14203_v10  ;;  %v12193_v13 = vld [vmem:[%s17262_s12 + $0xd20] sm:$0xf]  ;;  %v16103_v10 = vld [vmem:[%s17262_s12 + $0xd64] sm:$0xf0] }
 0x371   : > { %9460 = vmatpush.bf16.msrb.mxu3 %v12838_v30  ;;  %9422 = vmatmul.bf16.vlgmr.msrb.gmra.mxu0 %v17401_v27  ;;  %v9229_v53 = vadd.f32 %v9228_v14, %v9216_v15  ;;  %v16723_v30 = vld [vmem:[%s17262_s12 + $0x20cc] sm:$0xf]  ;;  %v13414_v15 = vor.u32 %v16399_v61, %v13411_v62  ;;  %v15761_v61 = vld [vmem:[%s17262_s12 + $0x2b4] sm:$0xf0]  ;;  %v11401_v62 = vld [vmem:[%s17262_s12 + $0x6f0] sm:$0xf] }
 0x372   : > { %9466 = vmatpush.bf16.msra.mxu0 %v13918_v55  ;;  %9435 = vmatmul.bf16.vlgmr.msrb.gmra.mxu1 %v17392_v21  ;;  %v13630_v55 = vor.u32 %v16453_v8, %v13627_v11  ;;  %v11617_v8 = vld [vmem:[%s17262_s12 + $0x8a0] sm:$0xf]  ;;  %v15959_v11 = vld [vmem:[%s17262_s12 + $0x8e4] sm:$0xf0] }
 0x373   : > { %9479 = vmatpush.bf16.msra.mxu1 %v14494_v48  ;;  %9448 = vmatmul.bf16.vlgmr.msrb.gmra.mxu2 %v17396_v23  ;;  %v15355_v48 = vld [vmem:[%s17262_s12 + $0x2620] sm:$0xf0]  ;;  %v15707_v36 = vld [vmem:[%s17262_s12 + $0x104] sm:$0xf0] }
 0x374   : > { %9492 = vmatpush.bf16.msra.mxu2 %v15070_v40  ;;  %9461 = vmatmul.bf16.vlgmr.msrb.gmra.mxu3 %v17448_v29  ;;  %v14782_v40 = vor.u32 %v16741_v52, %v14779_v51  ;;  %v15358_v54 = vor.u32 %v16885_v43, %v15355_v48  ;;  %v16831_v52 = vld [vmem:[%s17262_s12 + $0x242c] sm:$0xf]  ;;  %v15139_v51 = vld [vmem:[%s17262_s12 + $0x2470] sm:$0xf0]  ;;  %v16247_v43 = vld [vmem:[%s17262_s12 + $0x11e4] sm:$0xf0] }
 0x375   : > { %9505 = vmatpush.bf16.msra.mxu3 %v15646_v20  ;;  %v13558_v20 = vor.u32 %v16435_v59, %v13555_v1  ;;  %v15142_v59 = vor.u32 %v16831_v52, %v15139_v51  ;;  %v10969_v1 = vld [vmem:[%s17262_s12 + $0x390] sm:$0xf]  ;;  %v15887_v51 = vld [vmem:[%s17262_s12 + $0x6a4] sm:$0xf0] }
 0x376   : > { %9467 = vmatpush.bf16.msra.mxu0 %v13846_v25  ;;  %v9241_v18 = vpop.f32.mrf.mxu2  ;;  %v16867_v25 = vld [vmem:[%s17262_s12 + $0x254c] sm:$0xf]  ;;  %v9217_v12 = vpop.f32.mrf.mxu0 }
 0x377   : > { %9480 = vmatpush.bf16.msra.mxu1 %v14422_v34  ;;  %v9242_v31 = vadd.f32 %v9241_v18, %v9229_v53  ;;  %v14134_v34 = vor.u32 %v16579_v45, %v14131_v57  ;;  %v15286_v46 = vor.u32 %v16867_v25, %v15283_v26  ;;  %v12769_v53 = vld [vmem:[%s17262_s12 + $0x11a0] sm:$0xf]  ;;  %v15797_v45 = vld [vmem:[%s17262_s12 + $0x3d4] sm:$0xf0]  ;;  %v11545_v57 = vld [vmem:[%s17262_s12 + $0x810] sm:$0xf] }
 0x378   : > { %9493 = vmatpush.bf16.msra.mxu2 %v14998_v16  ;;  %v14710_v16 = vor.u32 %v16723_v30, %v14707_v63  ;;  %v12770_v63 = vor.u32 %v16247_v43, %v12769_v53  ;;  %v12121_v18 = vld [vmem:[%s17262_s12 + $0xc90] sm:$0xf]  ;;  %v16229_v26 = vld [vmem:[%s17262_s12 + $0x1154] sm:$0xf0]  ;;  %v16175_v53 = vld [vmem:[%s17262_s12 + $0xfa4] sm:$0xf0] }
 0x379   : > { %9506 = vmatpush.bf16.msra.mxu3 %v15574_v49  ;;  %v14635_v49 = vld [vmem:[%s17262_s12 + $0x2080] sm:$0xf0]  ;;  %v12697_v25 = vld [vmem:[%s17262_s12 + $0x1110] sm:$0xf] }
 0x37a   : > { %9468 = vmatpush.bf16.msra.mxu0 %v13774_v60  ;;  %v9254_v60 = vpop.f32.mrf.mxu3  ;;  %v14638_v9 = vor.u32 %v16705_v6, %v14635_v49  ;;  %v12698_v12 = vor.u32 %v16229_v26, %v12697_v25  ;;  %v12049_v6 = vld [vmem:[%s17262_s12 + $0xc00] sm:$0xf]  ;;  %v16067_v49 = vld [vmem:[%s17262_s12 + $0xc44] sm:$0xf0] }
 0x37b   : > { %9481 = vmatpush.bf16.msra.mxu1 %v14350_v50  ;;  %v9230_v50 = vpop.f32.mrf.mxu1 }
 0x37c   : > { %9494 = vmatpush.bf16.msra.mxu2 %v14926_v56  ;;  %v19248_v56 = vadd.f32 %v9254_v60, %v9242_v31  ;;  %v10970_v31 = vor.u32 %v15797_v45, %v10969_v1  ;;  %v12625_v60 = vld [vmem:[%s17262_s12 + $0x1080] sm:$0xf]  ;;  %v11474_v50 = vor.u32 %v15923_v39, %v11473_v38  ;;  %v11257_v1 = vld [vmem:[%s17262_s12 + $0x5d0] sm:$0xf]  ;;  %v15869_v45 = vld [vmem:[%s17262_s12 + $0x614] sm:$0xf0] }
 0x37d   : > { %9507 = vmatpush.bf16.msra.mxu3 %v15502_v41  ;;  %v16543_v41 = vld [vmem:[%s17262_s12 + $0x1b2c] sm:$0xf]  ;;  %v11185_v38 = vld [vmem:[%s17262_s12 + $0x540] sm:$0xf]  ;;  %v15851_v39 = vld [vmem:[%s17262_s12 + $0x584] sm:$0xf0] }
 0x37e   : > { %9469 = vmatpush.bf16.msra.mxu0 %v13702_v37  ;;  %v13987_v37 = vld [vmem:[%s17262_s12 + $0x1b70] sm:$0xf0] }
 0x37f   : > { %9482 = vmatpush.bf16.msra.mxu1 %v14278_v19  ;;  %v11041_v19 = vld [vmem:[%s17262_s12 + $0x420] sm:$0xf]  ;;  %v13990_v14 = vor.u32 %v16543_v41, %v13987_v37  ;;  %v11977_v41 = vld [vmem:[%s17262_s12 + $0xb70] sm:$0xf]  ;;  %v16049_v37 = vld [vmem:[%s17262_s12 + $0xbb4] sm:$0xf0] }
 0x380   : > { %9495 = vmatpush.bf16.msra.mxu2 %v14854_v4  ;;  %v15815_v4 = vld [vmem:[%s17262_s12 + $0x464] sm:$0xf0] }
 0x381   : > { %9508 = vmatpush.bf16.msra.mxu3 %v15430_v17  ;;  %v9243_v17 = vpop.f32.mrf.mxu2  ;;  %v11042_v48 = vor.u32 %v15815_v4, %v11041_v19 }
 0x382   : > { %9470 = vmatpush.bf16.msra.mxu0 %v13630_v55  ;;  %v14566_v55 = vor.u32 %v16687_v2, %v14563_v3  ;;  %v9256_v30 = vpop.f32.mrf.mxu3  ;;  %v12553_v2 = vld [vmem:[%s17262_s12 + $0xff0] sm:$0xf]  ;;  %v10826_v3 = vor.u32 %v15761_v61, %v10825_v32  ;;  %v11905_v17 = vld [vmem:[%s17262_s12 + $0xae0] sm:$0xf]  ;;  %v15689_v32 = vld [vmem:[%s17262_s12 + $0x74] sm:$0xf0]  ;;  %v11186_v61 = vor.u32 %v15851_v39, %v11185_v38 }
 0x383   : > { %9483 = vmatpush.bf16.msra.mxu1 %v14206_v24  ;;  %v11618_v24 = vor.u32 %v15959_v11, %v11617_v8  ;;  %v10753_v8 = vld [vmem:[%s17262_s12 + $0x1e0] sm:$0xf]  ;;  %v15743_v11 = vld [vmem:[%s17262_s12 + $0x224] sm:$0xf0] }
 0x384   : > { %9496 = vmatpush.bf16.msra.mxu2 %v14782_v40  ;;  %v12194_v40 = vor.u32 %v16103_v10, %v12193_v13  ;;  %v11329_v13 = vld [vmem:[%s17262_s12 + $0x660] sm:$0xf]  ;;  %v16643_v39 = vld [vmem:[%s17262_s12 + $0x1e44] sm:$0xf0] }
 0x385   : > { %9509 = vmatpush.bf16.msra.mxu3 %v15358_v54  ;;  %v15941_v54 = vld [vmem:[%s17262_s12 + $0x854] sm:$0xf0] }
 0x386   : > { %9471 = vmatpush.bf16.msra.mxu0 %v13558_v20  ;;  %v16085_v20 = vld [vmem:[%s17262_s12 + $0xcd4] sm:$0xf0] }
 0x387   : > { %9484 = vmatpush.bf16.msra.mxu1 %v14134_v34  ;;  %v11546_v34 = vor.u32 %v15941_v54, %v11545_v57  ;;  %v16013_v54 = vld [vmem:[%s17262_s12 + $0xa94] sm:$0xf0] }
 0x388   : > { %9497 = vmatpush.bf16.msra.mxu2 %v14710_v16  ;;  %v12122_v16 = vor.u32 %v16085_v20, %v12121_v18  ;;  %v12409_v18 = vld [vmem:[%s17262_s12 + $0xed0] sm:$0xf]  ;;  %v16157_v20 = vld [vmem:[%s17262_s12 + $0xf14] sm:$0xf0] }
 0x389   : > { %9510 = vmatpush.bf16.msra.mxu3 %v15286_v46  ;;  %v16211_v46 = vld [vmem:[%s17262_s12 + $0x10c4] sm:$0xf0] }
 0x38a   : > { %9472 = vmatpush.bf16.msra.mxu0 %v13486_v58  ;;  %v12050_v58 = vor.u32 %v16067_v49, %v12049_v6  ;;  %v11761_v6 = vld [vmem:[%s17262_s12 + $0x9c0] sm:$0xf]  ;;  %v15995_v49 = vld [vmem:[%s17262_s12 + $0xa04] sm:$0xf0] }
 0x38b   : > { %9485 = vmatpush.bf16.msra.mxu1 %v14062_v0  ;;  %v12626_v0 = vor.u32 %v16211_v46, %v12625_v60  ;;  %v12337_v46 = vld [vmem:[%s17262_s12 + $0xe40] sm:$0xf] }
 0x38c   : > { %9498 = vmatpush.bf16.msra.mxu2 %v14638_v9  ;;  %v15905_v9 = vld [vmem:[%s17262_s12 + $0x734] sm:$0xf0] }
 0x38d   : > { %9511 = vmatpush.bf16.msra.mxu3 %v15214_v5  ;;  %v11402_v4 = vor.u32 %v15905_v9, %v11401_v62  ;;  %v11978_v5 = vor.u32 %v16049_v37, %v11977_v41  ;;  %v11762_v62 = vor.u32 %v15995_v49, %v11761_v6  ;;  %v15833_v9 = vld [vmem:[%s17262_s12 + $0x4f4] sm:$0xf0]  ;;  %v11689_v41 = vld [vmem:[%s17262_s12 + $0x930] sm:$0xf]  ;;  %v14929_v6 = vld [vmem:[%s17262_s12 + $0x2280] sm:$0xf] }
 0x38e   : > { %9473 = vmatpush.bf16.msra.mxu0 %v13414_v15  ;;  %v9267_v19 = vpop.f32.mrf.mxu0  ;;  %v16787_v49 = vld [vmem:[%s17262_s12 + $0x22c4] sm:$0xf0] }
 0x38f   : > { %9486 = vmatpush.bf16.msra.mxu1 %v13990_v14  ;;  %v9268_v15 = vadd.f32 %v9267_v19, %v19248_v56  ;;  %v9280_v10 = vpop.f32.mrf.mxu1  ;;  %v16031_v14 = vld [vmem:[%s17262_s12 + $0xb24] sm:$0xf0]  ;;  %v11330_v56 = vor.u32 %v15887_v51, %v11329_v13  ;;  %v13921_v19 = vld [vmem:[%s17262_s12 + $0x1aa0] sm:$0xf] }
 0x390   : > { %9499 = vmatpush.bf16.msra.mxu2 %v14566_v55  ;;  %v12481_v55 = vld [vmem:[%s17262_s12 + $0xf60] sm:$0xf]  ;;  %v16679_v13 = vld [vmem:[%s17262_s12 + $0x1f64] sm:$0xf0] }
 0x391   : > { %9512 = vmatpush.bf16.msra.mxu3 %v15142_v59  ;;  %9474 = vmatmul.bf16.vlgmr.msra.gmra.mxu0 %v17452_v33  ;;  %v9281_v43 = vadd.f32 %v9280_v10, %v9268_v15  ;;  %v15725_v59 = vld [vmem:[%s17262_s12 + $0x194] sm:$0xf0]  ;;  %v12482_v30 = vor.u32 %v16175_v53, %v12481_v55  ;;  %v12265_v15 = vld [vmem:[%s17262_s12 + $0xdb0] sm:$0xf]  ;;  %v15073_v55 = vld [vmem:[%s17262_s12 + $0x23a0] sm:$0xf] }
 0x392   : > { %9518 = vmatpush.bf16.msrb.mxu0 %v11042_v48  ;;  %9487 = vmatmul.bf16.vlgmr.msra.gmra.mxu1 %v17446_v28  ;;  %v10754_v48 = vor.u32 %v15743_v11, %v10753_v8  ;;  %v16121_v10 = vld [vmem:[%s17262_s12 + $0xdf4] sm:$0xf0]  ;;  %v16823_v53 = vld [vmem:[%s17262_s12 + $0x23e4] sm:$0xf0] }
 0x393   : > { %9531 = vmatpush.bf16.msrb.mxu1 %v11618_v24  ;;  %9500 = vmatmul.bf16.vlgmr.msra.gmra.mxu2 %v17462_v42  ;;  %v10681_v24 = vld [vmem:[%s17262_s12 + $0x150] sm:$0xf]  ;;  %v10244_v57 = vrot.slane %v9281_v43, 6 }
 0x394   : > { %9544 = vmatpush.bf16.msrb.mxu2 %v12194_v40  ;;  %9513 = vmatmul.bf16.vlgmr.msra.gmra.mxu3 %v19133_v44  ;;  %v16193_v44 = vld [vmem:[%s17262_s12 + $0x1034] sm:$0xf0]  ;;  %v11906_v40 = vor.u32 %v16031_v14, %v11905_v17  ;;  %v10682_v26 = vor.u32 %v15725_v59, %v10681_v24  ;;  %v13273_v24 = vld [vmem:[%s17262_s12 + $0x1590] sm:$0xf] }
 0x395   : > { %9557 = vmatpush.bf16.msrb.mxu3 %v12770_v63  ;;  %v12554_v52 = vor.u32 %v16193_v44, %v12553_v2  ;;  %v11833_v63 = vld [vmem:[%s17262_s12 + $0xa50] sm:$0xf]  ;;  %v19314_v25 = vsel %vm10251_vm0, %v19156_v7, %v10244_v57  ;;  %v12410_v7 = vor.u32 %v16157_v20, %v12409_v18  ;;  %v15977_v2 = vld [vmem:[%s17262_s12 + $0x974] sm:$0xf0]  ;;  %v13345_v44 = vld [vmem:[%s17262_s12 + $0x1620] sm:$0xf]  ;;  %v15074_v57 = vor.u32 %v16823_v53, %v15073_v55 }
 0x396   : > { %9519 = vmatpush.bf16.msrb.mxu0 %v10970_v31  ;;  %v9293_v31 = vpop.f32.mrf.mxu2  ;;  %v11690_v14 = vor.u32 %v15977_v2, %v11689_v41  ;;  %v16373_v59 = vld [vmem:[%s17262_s12 + $0x15d4] sm:$0xf0]  ;;  %v14857_v41 = vld [vmem:[%s17262_s12 + $0x21f0] sm:$0xf]  ;;  %v16751_v55 = vld [vmem:[%s17262_s12 + $0x21a4] sm:$0xf0] }
 0x397   : > { %9532 = vmatpush.bf16.msrb.mxu1 %v11546_v34  ;;  %v11258_v34 = vor.u32 %v15869_v45, %v11257_v1  ;;  %v9282_v60 = vpop.f32.mrf.mxu1  ;;  %v9306_v8 = vpop.f32.mrf.mxu3  ;;  %v13849_v1 = vld [vmem:[%s17262_s12 + $0x1a10] sm:$0xf]  ;;  %v16517_v45 = vld [vmem:[%s17262_s12 + $0x1a54] sm:$0xf0]  ;;  %v13274_v20 = vor.u32 %v16373_v59, %v13273_v24 }
 0x398   : > { %9545 = vmatpush.bf16.msrb.mxu2 %v12122_v16  ;;  %v11834_v16 = vor.u32 %v16013_v54, %v11833_v63  ;;  %v19338_v51 = vadd.f32 %v9306_v8, %v9293_v31  ;;  %v16661_v63 = vld [vmem:[%s17262_s12 + $0x1ed4] sm:$0xf0]  ;;  %v15001_v54 = vld [vmem:[%s17262_s12 + $0x2310] sm:$0xf]  ;;  %v13201_v31 = vld [vmem:[%s17262_s12 + $0x1500] sm:$0xf] }
 0x399   : > { %9558 = vmatpush.bf16.msrb.mxu3 %v12698_v12  ;;  %v9269_v12 = vpop.f32.mrf.mxu0  ;;  %v16805_v18 = vld [vmem:[%s17262_s12 + $0x2354] sm:$0xf0]  ;;  %v13633_v8 = vld [vmem:[%s17262_s12 + $0x1860] sm:$0xf] }
 0x39a   : > { %9520 = vmatpush.bf16.msrb.mxu0 %v10898_v47  ;;  %v16139_v47 = vld [vmem:[%s17262_s12 + $0xe84] sm:$0xf0]  ;;  %v15002_v12 = vor.u32 %v16805_v18, %v15001_v54  ;;  %v16445_v59 = vld [vmem:[%s17262_s12 + $0x1814] sm:$0xf0] }
 0x39b   : > { %9533 = vmatpush.bf16.msrb.mxu1 %v11474_v50  ;;  %v10610_v50 = vor.u32 %v15707_v36, %v10609_v35  ;;  %v12338_v37 = vor.u32 %v16139_v47, %v12337_v46  ;;  %v13777_v35 = vld [vmem:[%s17262_s12 + $0x1980] sm:$0xf]  ;;  %v16499_v36 = vld [vmem:[%s17262_s12 + $0x19c4] sm:$0xf0]  ;;  %v13129_v47 = vld [vmem:[%s17262_s12 + $0x1470] sm:$0xf] }
 0x39c   : > { %9546 = vmatpush.bf16.msrb.mxu2 %v12050_v58  ;;  %v10537_v58 = vld [vmem:[%s17262_s12 + $0x30] sm:$0xf]  ;;  %v13778_v46 = vor.u32 %v16499_v36, %v13777_v35  ;;  %v16283_v35 = vld [vmem:[%s17262_s12 + $0x1304] sm:$0xf0]  ;;  %v13489_v36 = vld [vmem:[%s17262_s12 + $0x1740] sm:$0xf] }
 0x39d   : > { %9559 = vmatpush.bf16.msrb.mxu3 %v12626_v0  ;;  %v11113_v0 = vld [vmem:[%s17262_s12 + $0x4b0] sm:$0xf]  ;;  %v10538_v11 = vor.u32 %v15689_v32, %v10537_v58  ;;  %v16337_v58 = vld [vmem:[%s17262_s12 + $0x14b4] sm:$0xf0] }
 0x39e   : > { %9521 = vmatpush.bf16.msrb.mxu0 %v10826_v3  ;;  %v16391_v3 = vld [vmem:[%s17262_s12 + $0x1664] sm:$0xf0]  ;;  %v11114_v17 = vor.u32 %v15833_v9, %v11113_v0  ;;  %v13705_v32 = vld [vmem:[%s17262_s12 + $0x18f0] sm:$0xf]  ;;  %v16625_v9 = vld [vmem:[%s17262_s12 + $0x1db4] sm:$0xf0]  ;;  %v13130_v2 = vor.u32 %v16337_v58, %v13129_v47 }
 0x39f   : > { %9534 = vmatpush.bf16.msrb.mxu1 %v11402_v4  ;;  %v16535_v4 = vld [vmem:[%s17262_s12 + $0x1ae4] sm:$0xf0]  ;;  %v13346_v43 = vor.u32 %v16391_v3, %v13345_v44  ;;  %v9308_v38 = vpop.f32.mrf.mxu3  ;;  %v14281_v0 = vld [vmem:[%s17262_s12 + $0x1d70] sm:$0xf]  ;;  %v13057_v3 = vld [vmem:[%s17262_s12 + $0x13e0] sm:$0xf] }
 0x3a0   : > { %9547 = vmatpush.bf16.msrb.mxu2 %v11978_v5  ;;  %v14497_v5 = vld [vmem:[%s17262_s12 + $0x1f20] sm:$0xf]  ;;  %v16427_v38 = vld [vmem:[%s17262_s12 + $0x1784] sm:$0xf0] }
 0x3a1   : > { %9560 = vmatpush.bf16.msrb.mxu3 %v12554_v52  ;;  %v9295_v52 = vpop.f32.mrf.mxu2  ;;  %v13490_v58 = vor.u32 %v16427_v38, %v13489_v36  ;;  %v15914_v36 = vld [vmem:[%s17262_s12 + $0x784] sm:$0xf]  ;;  %v11475_v38 = vld [vmem:[%s17262_s12 + $0x7c8] sm:$0xf0] }
 0x3a2   : > { %9522 = vmatpush.bf16.msrb.mxu0 %v10754_v48  ;;  %v13922_v48 = vor.u32 %v16535_v4, %v13921_v19  ;;  %v14282_v4 = vor.u32 %v16625_v9, %v14281_v0  ;;  %v16607_v52 = vld [vmem:[%s17262_s12 + $0x1d24] sm:$0xf0]  ;;  %v16409_v9 = vld [vmem:[%s17262_s12 + $0x16f4] sm:$0xf0] }
 0x3a3   : > { %9535 = vmatpush.bf16.msrb.mxu1 %v11330_v56  ;;  %v14498_v56 = vor.u32 %v16679_v13, %v14497_v5  ;;  %v16319_v5 = vld [vmem:[%s17262_s12 + $0x1424] sm:$0xf0] }
 0x3a4   : > { %9548 = vmatpush.bf16.msrb.mxu2 %v11906_v40  ;;  %v12266_v40 = vor.u32 %v16121_v10, %v12265_v15  ;;  %v14209_v10 = vld [vmem:[%s17262_s12 + $0x1ce0] sm:$0xf] }
 0x3a5   : > { %9561 = vmatpush.bf16.msrb.mxu3 %v12482_v30  ;;  %v14425_v30 = vld [vmem:[%s17262_s12 + $0x1e90] sm:$0xf]  ;;  %v14210_v24 = vor.u32 %v16607_v52, %v14209_v10  ;;  %v16697_v52 = vld [vmem:[%s17262_s12 + $0x1ff4] sm:$0xf0] }
 0x3a6   : > { %9523 = vmatpush.bf16.msrb.mxu0 %v10682_v26  ;;  %v13850_v26 = vor.u32 %v16517_v45, %v13849_v1  ;;  %v14137_v45 = vld [vmem:[%s17262_s12 + $0x1c50] sm:$0xf] }
 0x3a7   : > { %9536 = vmatpush.bf16.msrb.mxu1 %v11258_v34  ;;  %v14426_v34 = vor.u32 %v16661_v63, %v14425_v30  ;;  %v14713_v30 = vld [vmem:[%s17262_s12 + $0x20d0] sm:$0xf]  ;;  %v16733_v63 = vld [vmem:[%s17262_s12 + $0x2114] sm:$0xf0] }
 0x3a8   : > { %9549 = vmatpush.bf16.msrb.mxu2 %v11834_v16  ;;  %v16355_v16 = vld [vmem:[%s17262_s12 + $0x1544] sm:$0xf0]  ;;  %v14569_v10 = vld [vmem:[%s17262_s12 + $0x1fb0] sm:$0xf] }
 0x3a9   : > { %9562 = vmatpush.bf16.msrb.mxu3 %v12410_v7  ;;  %v14353_v7 = vld [vmem:[%s17262_s12 + $0x1e00] sm:$0xf]  ;;  %v13202_v60 = vor.u32 %v16355_v16, %v13201_v31 }
 0x3aa   : > { %9524 = vmatpush.bf16.msrb.mxu0 %v10610_v50  ;;  %v14354_v50 = vor.u32 %v16643_v39, %v14353_v7  ;;  %v14065_v7 = vld [vmem:[%s17262_s12 + $0x1bc0] sm:$0xf]  ;;  %v16571_v39 = vld [vmem:[%s17262_s12 + $0x1c04] sm:$0xf0] }
 0x3ab   : > { %9537 = vmatpush.bf16.msrb.mxu1 %v11186_v61  ;;  %v16481_v61 = vld [vmem:[%s17262_s12 + $0x1934] sm:$0xf0]  ;;  %v14066_v0 = vor.u32 %v16571_v39, %v14065_v7  ;;  %v16058_v39 = vld [vmem:[%s17262_s12 + $0xc04] sm:$0xf] }
 0x3ac   : > { %9550 = vmatpush.bf16.msrb.mxu2 %v11762_v62  ;;  %v14930_v62 = vor.u32 %v16787_v49, %v14929_v6  ;;  %v13706_v44 = vor.u32 %v16481_v61, %v13705_v32  ;;  %v12841_v32 = vld [vmem:[%s17262_s12 + $0x1230] sm:$0xf]  ;;  %v16265_v61 = vld [vmem:[%s17262_s12 + $0x1274] sm:$0xf0] }
 0x3ad   : > { %9563 = vmatpush.bf16.msrb.mxu3 %v12338_v37  ;;  %v16769_v37 = vld [vmem:[%s17262_s12 + $0x2234] sm:$0xf0] }
 0x3ae   : > { %9525 = vmatpush.bf16.msrb.mxu0 %v10538_v11  ;;  %v9319_v19 = vpop.f32.mrf.mxu0  ;;  %v16463_v11 = vld [vmem:[%s17262_s12 + $0x18a4] sm:$0xf0]  ;;  %v14858_v15 = vor.u32 %v16769_v37, %v14857_v41  ;;  %v13993_v41 = vld [vmem:[%s17262_s12 + $0x1b30] sm:$0xf]  ;;  %v16553_v37 = vld [vmem:[%s17262_s12 + $0x1b74] sm:$0xf0] }
 0x3af   : > { %9538 = vmatpush.bf16.msrb.mxu1 %v11114_v17  ;;  %v9320_v13 = vadd.f32 %v9319_v19, %v19338_v51  ;;  %v9332_v17 = vpop.f32.mrf.mxu1  ;;  %v12985_v51 = vld [vmem:[%s17262_s12 + $0x1350] sm:$0xf]  ;;  %v15806_v19 = vld [vmem:[%s17262_s12 + $0x424] sm:$0xf] }
 0x3b0   : > { %9551 = vmatpush.bf16.msrb.mxu2 %v11690_v14  ;;  %v14785_v14 = vld [vmem:[%s17262_s12 + $0x2160] sm:$0xf] }
 0x3b1   : > { %9564 = vmatpush.bf16.msrb.mxu3 %v12266_v40  ;;  %9526 = vmatmul.bf16.vlgmr.msrb.gmra.mxu0 %v17394_v22  ;;  %v9333_v53 = vadd.f32 %v9332_v17, %v9320_v13  ;;  %v13561_v40 = vld [vmem:[%s17262_s12 + $0x17d0] sm:$0xf]  ;;  %v14786_v1 = vor.u32 %v16751_v55, %v14785_v14  ;;  %v12842_v13 = vor.u32 %v16265_v61, %v12841_v32  ;;  %v16094_v55 = vld [vmem:[%s17262_s12 + $0xd24] sm:$0xf]  ;;  %v10827_v32 = vld [vmem:[%s17262_s12 + $0x2b8] sm:$0xf0] }
 0x3b2   : > { %9570 = vmatpush.bf16.msra.mxu0 %v13346_v43  ;;  %9539 = vmatmul.bf16.vlgmr.msrb.gmra.mxu1 %v17401_v27  ;;  %v13058_v43 = vor.u32 %v16319_v5, %v13057_v3  ;;  %v16967_v3 = vld [vmem:[%s17262_s12 + $0x2864] sm:$0xf0]  ;;  %v15950_v5 = vld [vmem:[%s17262_s12 + $0x8a4] sm:$0xf]  ;;  %v13994_v17 = vor.u32 %v16553_v37, %v13993_v41  ;;  %v15896_v61 = vld [vmem:[%s17262_s12 + $0x6f4] sm:$0xf] }
 0x3b3   : > { %9583 = vmatpush.bf16.msra.mxu1 %v13922_v48  ;;  %9552 = vmatmul.bf16.vlgmr.msrb.gmra.mxu2 %v17392_v21  ;;  %v13634_v48 = vor.u32 %v16463_v11, %v13633_v8  ;;  %v11619_v8 = vld [vmem:[%s17262_s12 + $0x8e8] sm:$0xf0]  ;;  %v16040_v41 = vld [vmem:[%s17262_s12 + $0xb74] sm:$0xf]  ;;  %v11979_v37 = vld [vmem:[%s17262_s12 + $0xbb8] sm:$0xf0] }
 0x3b4   : > { %9596 = vmatpush.bf16.msra.mxu2 %v14498_v56  ;;  %9565 = vmatmul.bf16.vlgmr.msrb.gmra.mxu3 %v17396_v23  ;;  %v16301_v56 = vld [vmem:[%s17262_s12 + $0x1394] sm:$0xf0] }
 0x3b5   : > { %9609 = vmatpush.bf16.msra.mxu3 %v15074_v57  ;;  %v16589_v57 = vld [vmem:[%s17262_s12 + $0x1c94] sm:$0xf0]  ;;  %v12986_v18 = vor.u32 %v16301_v56, %v12985_v51  ;;  %v15577_v51 = vld [vmem:[%s17262_s12 + $0x2790] sm:$0xf]  ;;  %v15788_v56 = vld [vmem:[%s17262_s12 + $0x394] sm:$0xf] }
 0x3b6   : > { %9571 = vmatpush.bf16.msra.mxu0 %v13274_v20  ;;  %v9345_v54 = vpop.f32.mrf.mxu2  ;;  %v13562_v20 = vor.u32 %v16445_v59, %v13561_v40  ;;  %v14138_v16 = vor.u32 %v16589_v57, %v14137_v45  ;;  %v14570_v59 = vor.u32 %v16697_v52, %v14569_v10  ;;  %v15932_v45 = vld [vmem:[%s17262_s12 + $0x814] sm:$0xf]  ;;  %v11547_v57 = vld [vmem:[%s17262_s12 + $0x858] sm:$0xf0]  ;;  %v11982_v10 = vor.u32 %v16040_v41, %v11979_v37  ;;  %v12771_v41 = vld [vmem:[%s17262_s12 + $0x11e8] sm:$0xf0] }
 0x3b7   : > { %9584 = vmatpush.bf16.msra.mxu1 %v13850_v26  ;;  %v12913_v26 = vld [vmem:[%s17262_s12 + $0x12c0] sm:$0xf]  ;;  %v9346_v31 = vadd.f32 %v9345_v54, %v9333_v53  ;;  %v9334_v6 = vpop.f32.mrf.mxu1  ;;  %v9358_v49 = vpop.f32.mrf.mxu3  ;;  %v12195_v53 = vld [vmem:[%s17262_s12 + $0xd68] sm:$0xf0]  ;;  %v16076_v54 = vld [vmem:[%s17262_s12 + $0xc94] sm:$0xf] }
 0x3b8   : > { %9597 = vmatpush.bf16.msra.mxu2 %v14426_v34  ;;  %v9321_v34 = vpop.f32.mrf.mxu0  ;;  %v12051_v6 = vld [vmem:[%s17262_s12 + $0xc48] sm:$0xf0] }
 0x3b9   : > { %9610 = vmatpush.bf16.msra.mxu3 %v15002_v12  ;;  %v14714_v12 = vor.u32 %v16733_v63, %v14713_v30  ;;  %v19395_v47 = vadd.f32 %v9358_v49, %v9346_v31  ;;  %v12198_v30 = vor.u32 %v16094_v55, %v12195_v53  ;;  %v15505_v31 = vld [vmem:[%s17262_s12 + $0x2700] sm:$0xf]  ;;  %v16931_v34 = vld [vmem:[%s17262_s12 + $0x2744] sm:$0xf0]  ;;  %v11907_v55 = vld [vmem:[%s17262_s12 + $0xb28] sm:$0xf0] }
 0x3ba   : > { %9572 = vmatpush.bf16.msra.mxu0 %v13202_v60  ;;  %v14641_v60 = vld [vmem:[%s17262_s12 + $0x2040] sm:$0xf]  ;;  %v15506_v7 = vor.u32 %v16931_v34, %v15505_v31  ;;  %v15698_v31 = vld [vmem:[%s17262_s12 + $0xc4] sm:$0xf]  ;;  %v10611_v34 = vld [vmem:[%s17262_s12 + $0x108] sm:$0xf0] }
 0x3bb   : > { %9585 = vmatpush.bf16.msra.mxu1 %v13778_v46  ;;  %v16715_v46 = vld [vmem:[%s17262_s12 + $0x2084] sm:$0xf0] }
 0x3bc   : > { %9598 = vmatpush.bf16.msra.mxu2 %v14354_v50  ;;  %v12914_v50 = vor.u32 %v16283_v35, %v12913_v26  ;;  %v11550_v26 = vor.u32 %v15932_v45, %v11547_v57  ;;  %v10899_v35 = vld [vmem:[%s17262_s12 + $0x348] sm:$0xf0] }
 0x3bd   : > { %9611 = vmatpush.bf16.msra.mxu3 %v14930_v62  ;;  %v13417_v62 = vld [vmem:[%s17262_s12 + $0x16b0] sm:$0xf] }
 0x3be   : > { %9573 = vmatpush.bf16.msra.mxu0 %v13130_v2  ;;  %v14642_v2 = vor.u32 %v16715_v46, %v14641_v60  ;;  %v9347_v11 = vpop.f32.mrf.mxu2  ;;  %v11478_v60 = vor.u32 %v15914_v36, %v11475_v38  ;;  %v15433_v46 = vld [vmem:[%s17262_s12 + $0x2670] sm:$0xf] }
 0x3bf   : > { %9586 = vmatpush.bf16.msra.mxu1 %v13706_v44  ;;  %v15649_v44 = vld [vmem:[%s17262_s12 + $0x2820] sm:$0xf]  ;;  %v9360_v40 = vpop.f32.mrf.mxu3  ;;  %v15878_v11 = vld [vmem:[%s17262_s12 + $0x664] sm:$0xf] }
 0x3c0   : > { %9599 = vmatpush.bf16.msra.mxu2 %v14282_v4  ;;  %v11043_v4 = vld [vmem:[%s17262_s12 + $0x468] sm:$0xf0]  ;;  %v15650_v14 = vor.u32 %v16967_v3, %v15649_v44  ;;  %v15361_v3 = vld [vmem:[%s17262_s12 + $0x25e0] sm:$0xf]  ;;  %v10683_v40 = vld [vmem:[%s17262_s12 + $0x198] sm:$0xf0] }
 0x3c1   : > { %9612 = vmatpush.bf16.msra.mxu3 %v14858_v15  ;;  %v13418_v15 = vor.u32 %v16409_v9, %v13417_v62  ;;  %v11403_v62 = vld [vmem:[%s17262_s12 + $0x738] sm:$0xf0] }
 0x3c2   : > { %9574 = vmatpush.bf16.msra.mxu0 %v13058_v43  ;;  %v11046_v43 = vor.u32 %v15806_v19, %v11043_v4  ;;  %v11406_v44 = vor.u32 %v15896_v61, %v11403_v62  ;;  %v16895_v19 = vld [vmem:[%s17262_s12 + $0x2624] sm:$0xf0]  ;;  %v15734_v4 = vld [vmem:[%s17262_s12 + $0x1e4] sm:$0xf]  ;;  %v10539_v61 = vld [vmem:[%s17262_s12 + $0x78] sm:$0xf0] }
 0x3c3   : > { %9587 = vmatpush.bf16.msra.mxu1 %v13634_v48  ;;  %v11622_v48 = vor.u32 %v15950_v5, %v11619_v8  ;;  %v10755_v8 = vld [vmem:[%s17262_s12 + $0x228] sm:$0xf0]  ;;  %v15824_v62 = vld [vmem:[%s17262_s12 + $0x4b4] sm:$0xf] }
 0x3c4   : > { %9600 = vmatpush.bf16.msra.mxu2 %v14210_v24  ;;  %v16949_v24 = vld [vmem:[%s17262_s12 + $0x27d4] sm:$0xf0]  ;;  %v10758_v53 = vor.u32 %v15734_v4, %v10755_v8  ;;  %v15968_v8 = vld [vmem:[%s17262_s12 + $0x934] sm:$0xf] }
 0x3c5   : > { %9613 = vmatpush.bf16.msra.mxu3 %v14786_v1  ;;  %v10971_v1 = vld [vmem:[%s17262_s12 + $0x3d8] sm:$0xf0]  ;;  %v15578_v63 = vor.u32 %v16949_v24, %v15577_v51  ;;  %v15289_v51 = vld [vmem:[%s17262_s12 + $0x2550] sm:$0xf]  ;;  %v16877_v24 = vld [vmem:[%s17262_s12 + $0x2594] sm:$0xf0] }
 0x3c6   : > { %9575 = vmatpush.bf16.msra.mxu0 %v12986_v18  ;;  %v12123_v18 = vld [vmem:[%s17262_s12 + $0xcd8] sm:$0xf0]  ;;  %v15290_v57 = vor.u32 %v16877_v24, %v15289_v51  ;;  %v16364_v24 = vld [vmem:[%s17262_s12 + $0x1594] sm:$0xf] }
 0x3c7   : > { %9588 = vmatpush.bf16.msra.mxu1 %v13562_v20  ;;  %v10974_v20 = vor.u32 %v15788_v56, %v10971_v1  ;;  %v15716_v56 = vld [vmem:[%s17262_s12 + $0x154] sm:$0xf]  ;;  %v12699_v51 = vld [vmem:[%s17262_s12 + $0x1158] sm:$0xf0] }
 0x3c8   : > { %9601 = vmatpush.bf16.msra.mxu2 %v14138_v16  ;;  %v15770_v16 = vld [vmem:[%s17262_s12 + $0x304] sm:$0xf] }
 0x3c9   : > { %9614 = vmatpush.bf16.msra.mxu3 %v14714_v12  ;;  %v12126_v12 = vor.u32 %v16076_v54, %v12123_v18  ;;  %v10902_v49 = vor.u32 %v15770_v16, %v10899_v35  ;;  %v10686_v54 = vor.u32 %v15716_v56, %v10683_v40  ;;  %v15842_v16 = vld [vmem:[%s17262_s12 + $0x544] sm:$0xf]  ;;  %v11187_v35 = vld [vmem:[%s17262_s12 + $0x588] sm:$0xf0]  ;;  %v13275_v56 = vld [vmem:[%s17262_s12 + $0x15d8] sm:$0xf0] }
 0x3ca   : > { %9576 = vmatpush.bf16.msra.mxu0 %v12914_v50  ;;  %v16913_v50 = vld [vmem:[%s17262_s12 + $0x26b4] sm:$0xf0] }
 0x3cb   : > { %9589 = vmatpush.bf16.msra.mxu1 %v13490_v58  ;;  %v15752_v58 = vld [vmem:[%s17262_s12 + $0x274] sm:$0xf]  ;;  %v15434_v9 = vor.u32 %v16913_v50, %v15433_v46  ;;  %v16841_v46 = vld [vmem:[%s17262_s12 + $0x2474] sm:$0xf0]  ;;  %v10614_v50 = vor.u32 %v15698_v31, %v10611_v34  ;;  %v16346_v31 = vld [vmem:[%s17262_s12 + $0x1504] sm:$0xf] }
 0x3cc   : > { %9602 = vmatpush.bf16.msra.mxu2 %v14066_v0  ;;  %v12054_v0 = vor.u32 %v16058_v39, %v12051_v6  ;;  %v13203_v34 = vld [vmem:[%s17262_s12 + $0x1548] sm:$0xf0] }
 0x3cd   : > { %9615 = vmatpush.bf16.msra.mxu3 %v14642_v2  ;;  %v10830_v2 = vor.u32 %v15752_v58, %v10827_v32  ;;  %v11190_v58 = vor.u32 %v15842_v16, %v11187_v35  ;;  %v15680_v32 = vld [vmem:[%s17262_s12 + $0x34] sm:$0xf] }
 0x3ce   : > { %9577 = vmatpush.bf16.msra.mxu0 %v12842_v13  ;;  %v9371_v5 = vpop.f32.mrf.mxu0  ;;  %v11331_v13 = vld [vmem:[%s17262_s12 + $0x6a8] sm:$0xf0]  ;;  %v19500_v16 = vld [vmem:[#allocation1] sm:$0xff] }
 0x3cf   : > { %9590 = vmatpush.bf16.msra.mxu1 %v13418_v15  ;;  %v9384_v15 = vpop.f32.mrf.mxu1  ;;  %v9372_v52 = vadd.f32 %v9371_v5, %v19395_v47  ;;  %v15860_v47 = vld [vmem:[%s17262_s12 + $0x5d4] sm:$0xf]  ;;  %v13923_v5 = vld [vmem:[%s17262_s12 + $0x1ae8] sm:$0xf0] }
 0x3d0   : > { %9603 = vmatpush.bf16.msra.mxu2 %v13994_v17  ;;  %v15362_v17 = vor.u32 %v16895_v19, %v15361_v3  ;;  %v16526_v3 = vld [vmem:[%s17262_s12 + $0x1aa4] sm:$0xf] }
 0x3d1   : > { %9616 = vmatpush.bf16.msra.mxu3 %v14570_v59  ;;  %9578 = vmatmul.bf16.vlgmr.msra.gmra.mxu0 %v17448_v29  ;;  %v11259_v59 = vld [vmem:[%s17262_s12 + $0x618] sm:$0xf0] }
 0x3d2   : > { %9622 = vmatpush.bf16.msrb.mxu0 %v15650_v14  ;;  %9591 = vmatmul.bf16.vlgmr.msra.gmra.mxu1 %v17452_v33  ;;  %v16022_v14 = vld [vmem:[%s17262_s12 + $0xae4] sm:$0xf]  ;;  %v11262_v18 = vor.u32 %v15860_v47, %v11259_v59  ;;  %v16508_v59 = vld [vmem:[%s17262_s12 + $0x1a14] sm:$0xf] }
 0x3d3   : > { %9635 = vmatpush.bf16.msrb.mxu1 %v11046_v43  ;;  %9604 = vmatmul.bf16.vlgmr.msra.gmra.mxu2 %v17446_v28  ;;  %v11334_v43 = vor.u32 %v15878_v11, %v11331_v13  ;;  %v11910_v1 = vor.u32 %v16022_v14, %v11907_v55  ;;  %v11691_v11 = vld [vmem:[%s17262_s12 + $0x978] sm:$0xf0]  ;;  %v10542_v13 = vor.u32 %v15680_v32, %v10539_v61  ;;  %v16220_v55 = vld [vmem:[%s17262_s12 + $0x1114] sm:$0xf] }
 0x3d4   : > { %9648 = vmatpush.bf16.msrb.mxu2 %v11622_v48  ;;  %9617 = vmatmul.bf16.vlgmr.msra.gmra.mxu3 %v17462_v42  ;;  %v19450_v48 = vadd.f32 %v9384_v15, %v9372_v52  ;;  %v14499_v52 = vld [vmem:[%s17262_s12 + $0x1f68] sm:$0xf0]  ;;  %v13131_v32 = vld [vmem:[%s17262_s12 + $0x14b8] sm:$0xf0] }
 0x3d5   : > { %9661 = vmatpush.bf16.msrb.mxu3 %v12198_v30  ;;  %v16004_v30 = vld [vmem:[%s17262_s12 + $0xa54] sm:$0xf] }
 0x3d6   : > { %9623 = vmatpush.bf16.msrb.mxu0 %v15578_v63  ;;  %v19458_v45 = vpop.f32.mrf.mxu2  ;;  %v11835_v63 = vld [vmem:[%s17262_s12 + $0xa98] sm:$0xf0]  ;;  %v9373_v36 = vpop.f32.mrf.mxu0 }
 0x3d7   : > { %9636 = vmatpush.bf16.msrb.mxu1 %v10974_v20  ;;  %v15217_v20 = vld [vmem:[%s17262_s12 + $0x24c0] sm:$0xf]  ;;  %v9386_v38 = vpop.f32.mrf.mxu1  ;;  %v19469_v39 = vpop.f32.mrf.mxu3  ;;  %v16490_v36 = vld [vmem:[%s17262_s12 + $0x1984] sm:$0xf] }
 0x3d8   : > { %9649 = vmatpush.bf16.msrb.mxu2 %v11550_v26  ;;  %v16859_v26 = vld [vmem:[%s17262_s12 + $0x2504] sm:$0xf0]  ;;  %v13779_v38 = vld [vmem:[%s17262_s12 + $0x19c8] sm:$0xf0] }
 0x3d9   : > { %9662 = vmatpush.bf16.msrb.mxu3 %v12126_v12  ;;  %v11838_v12 = vor.u32 %v16004_v30, %v11835_v63  ;;  %v15218_v6 = vor.u32 %v16859_v26, %v15217_v20  ;;  %v14427_v30 = vld [vmem:[%s17262_s12 + $0x1ed8] sm:$0xf0]  ;;  %v12702_v63 = vor.u32 %v16220_v55, %v12699_v51  ;;  %v12627_v26 = vld [vmem:[%s17262_s12 + $0x10c8] sm:$0xf0] }
 0x3da   : > { %9624 = vmatpush.bf16.msrb.mxu0 %v15506_v7  ;;  %v15986_v7 = vld [vmem:[%s17262_s12 + $0x9c4] sm:$0xf]  ;;  %v12411_v51 = vld [vmem:[%s17262_s12 + $0xf18] sm:$0xf0] }
 0x3db   : > { %9637 = vmatpush.bf16.msrb.mxu1 %v10902_v49  ;;  %v11763_v49 = vld [vmem:[%s17262_s12 + $0xa08] sm:$0xf0] }
 0x3dc   : > { %9650 = vmatpush.bf16.msrb.mxu2 %v11478_v60  ;;  %v15145_v60 = vld [vmem:[%s17262_s12 + $0x2430] sm:$0xf]  ;;  %v11766_v37 = vor.u32 %v15986_v7, %v11763_v49  ;;  %v14355_v7 = vld [vmem:[%s17262_s12 + $0x1e48] sm:$0xf0]  ;;  %v13206_v49 = vor.u32 %v16346_v31, %v13203_v34  ;;  %v16274_v34 = vld [vmem:[%s17262_s12 + $0x12c4] sm:$0xf] }
 0x3dd   : > { %9663 = vmatpush.bf16.msrb.mxu3 %v12054_v0  ;;  %v11115_v0 = vld [vmem:[%s17262_s12 + $0x4f8] sm:$0xf0]  ;;  %v15146_v4 = vor.u32 %v16841_v46, %v15145_v60  ;;  %v16184_v60 = vld [vmem:[%s17262_s12 + $0xff4] sm:$0xf]  ;;  %v13782_v46 = vor.u32 %v16490_v36, %v13779_v38  ;;  %v12339_v31 = vld [vmem:[%s17262_s12 + $0xe88] sm:$0xf0] }
 0x3de   : > { %9625 = vmatpush.bf16.msrb.mxu0 %v15434_v9  ;;  %v16238_v9 = vld [vmem:[%s17262_s12 + $0x11a4] sm:$0xf]  ;;  %v9399_v19 = vpop.f32.mrf.mxu2  ;;  %v11118_v15 = vor.u32 %v15824_v62, %v11115_v0  ;;  %v16472_v62 = vld [vmem:[%s17262_s12 + $0x18f4] sm:$0xf]  ;;  %v13707_v0 = vld [vmem:[%s17262_s12 + $0x1938] sm:$0xf0] }
 0x3df   : > { %9638 = vmatpush.bf16.msrb.mxu1 %v10830_v2  ;;  %v16382_v2 = vld [vmem:[%s17262_s12 + $0x1624] sm:$0xf]  ;;  %v9412_v40 = vpop.f32.mrf.mxu3  ;;  %v13710_v19 = vor.u32 %v16472_v62, %v13707_v0  ;;  %v12843_v0 = vld [vmem:[%s17262_s12 + $0x1278] sm:$0xf0] }
 0x3e0   : > { %9651 = vmatpush.bf16.msrb.mxu2 %v11406_v44  ;;  %v13347_v44 = vld [vmem:[%s17262_s12 + $0x1668] sm:$0xf0]  ;;  %v16418_v38 = vld [vmem:[%s17262_s12 + $0x1744] sm:$0xf] }
 0x3e1   : > { %9664 = vmatpush.bf16.msrb.mxu3 %v11982_v10  ;;  %v16670_v10 = vld [vmem:[%s17262_s12 + $0x1f24] sm:$0xf]  ;;  %v13350_v14 = vor.u32 %v16382_v2, %v13347_v44 }
 0x3e2   : > { %9626 = vmatpush.bf16.msrb.mxu0 %v15362_v17  ;;  %v12774_v17 = vor.u32 %v16238_v9, %v12771_v41  ;;  %v14502_v47 = vor.u32 %v16670_v10, %v14499_v52  ;;  %v16616_v9 = vld [vmem:[%s17262_s12 + $0x1d74] sm:$0xf]  ;;  %v14283_v41 = vld [vmem:[%s17262_s12 + $0x1db8] sm:$0xf0]  ;;  %v16166_v44 = vld [vmem:[%s17262_s12 + $0xf64] sm:$0xf] }
 0x3e3   : > { %9639 = vmatpush.bf16.msrb.mxu1 %v10758_v53  ;;  %v13926_v53 = vor.u32 %v16526_v3, %v13923_v5  ;;  %v16310_v5 = vld [vmem:[%s17262_s12 + $0x13e4] sm:$0xf] }
 0x3e4   : > { %9652 = vmatpush.bf16.msrb.mxu2 %v11334_v43  ;;  %v11694_v43 = vor.u32 %v15968_v8, %v11691_v11  ;;  %v13059_v8 = vld [vmem:[%s17262_s12 + $0x1428] sm:$0xf0]  ;;  %v14286_v11 = vor.u32 %v16616_v9, %v14283_v41  ;;  %v16598_v52 = vld [vmem:[%s17262_s12 + $0x1ce4] sm:$0xf]  ;;  %v16400_v9 = vld [vmem:[%s17262_s12 + $0x16b4] sm:$0xf] }
 0x3e5   : > { %9665 = vmatpush.bf16.msrb.mxu3 %v11910_v1  ;;  %v13851_v1 = vld [vmem:[%s17262_s12 + $0x1a58] sm:$0xf0]  ;;  %v13062_v55 = vor.u32 %v16310_v5, %v13059_v8  ;;  %v11049_v5 = vld [vmem:[%s17262_s12 + $0x428] sm:$0xf]  ;;  %v15816_v8 = vld [vmem:[%s17262_s12 + $0x46c] sm:$0xf0] }
 0x3e6   : > { %9627 = vmatpush.bf16.msrb.mxu0 %v15290_v57  ;;  %v16652_v57 = vld [vmem:[%s17262_s12 + $0x1e94] sm:$0xf]  ;;  %v13854_v20 = vor.u32 %v16508_v59, %v13851_v1  ;;  %v13563_v59 = vld [vmem:[%s17262_s12 + $0x1818] sm:$0xf0] }
 0x3e7   : > { %9640 = vmatpush.bf16.msrb.mxu1 %v10686_v54  ;;  %v13278_v54 = vor.u32 %v16364_v24, %v13275_v56  ;;  %v14430_v35 = vor.u32 %v16652_v57, %v14427_v30  ;;  %v16292_v24 = vld [vmem:[%s17262_s12 + $0x1354] sm:$0xf]  ;;  %v12987_v56 = vld [vmem:[%s17262_s12 + $0x1398] sm:$0xf0] }
 0x3e8   : > { %9653 = vmatpush.bf16.msrb.mxu2 %v11262_v18  ;;  %v16202_v18 = vld [vmem:[%s17262_s12 + $0x1084] sm:$0xf]  ;;  %v16580_v1 = vld [vmem:[%s17262_s12 + $0x1c54] sm:$0xf]  ;;  %v14139_v57 = vld [vmem:[%s17262_s12 + $0x1c98] sm:$0xf0] }
 0x3e9   : > { %9666 = vmatpush.bf16.msrb.mxu3 %v11838_v12  ;;  %v16634_v12 = vld [vmem:[%s17262_s12 + $0x1e04] sm:$0xf]  ;;  %v14142_v36 = vor.u32 %v16580_v1, %v14139_v57  ;;  %v13419_v41 = vld [vmem:[%s17262_s12 + $0x16f8] sm:$0xf0]  ;;  %v10977_v57 = vld [vmem:[%s17262_s12 + $0x398] sm:$0xf] }
 0x3ea   : > { %9628 = vmatpush.bf16.msrb.mxu0 %v15218_v6  ;;  %v12630_v6 = vor.u32 %v16202_v18, %v12627_v26  ;;  %v14358_v61 = vor.u32 %v16634_v12, %v14355_v7  ;;  %v16130_v18 = vld [vmem:[%s17262_s12 + $0xe44] sm:$0xf]  ;;  %v13491_v12 = vld [vmem:[%s17262_s12 + $0x1788] sm:$0xf0]  ;;  %v15579_v1 = vld [vmem:[%s17262_s12 + $0x27d8] sm:$0xf0] }
 0x3eb   : > { %9641 = vmatpush.bf16.msrb.mxu1 %v10614_v50  ;;  %v12555_v50 = vld [vmem:[%s17262_s12 + $0x1038] sm:$0xf0]  ;;  %v13494_v62 = vor.u32 %v16418_v38, %v13491_v12  ;;  %v14931_v38 = vld [vmem:[%s17262_s12 + $0x22c8] sm:$0xf0] }
 0x3ec   : > { %9654 = vmatpush.bf16.msrb.mxu2 %v11190_v58  ;;  %v16328_v58 = vld [vmem:[%s17262_s12 + $0x1474] sm:$0xf]  ;;  %v15507_v12 = vld [vmem:[%s17262_s12 + $0x2748] sm:$0xf0] }
 0x3ed   : > { %9667 = vmatpush.bf16.msrb.mxu3 %v11766_v37  ;;  %v12558_v37 = vor.u32 %v16184_v60, %v12555_v50  ;;  %v13134_v2 = vor.u32 %v16328_v58, %v13131_v32  ;;  %v14067_v60 = vld [vmem:[%s17262_s12 + $0x1c08] sm:$0xf0]  ;;  %v16112_v58 = vld [vmem:[%s17262_s12 + $0xdb4] sm:$0xf]  ;;  %v12267_v32 = vld [vmem:[%s17262_s12 + $0xdf8] sm:$0xf0] }
 0x3ee   : > { %9629 = vmatpush.bf16.msrb.mxu0 %v15146_v4  ;;  %v19519_v3 = vpop.f32.mrf.mxu0  ;;  %v12483_v4 = vld [vmem:[%s17262_s12 + $0xfa8] sm:$0xf0] }
 0x3ef   : > { %9642 = vmatpush.bf16.msrb.mxu1 %v10542_v13  ;;  %v16454_v13 = vld [vmem:[%s17262_s12 + $0x1864] sm:$0xf]  ;;  %v19526_v10 = vpop.f32.mrf.mxu1 }
 0x3f0   : > { %9655 = vmatpush.bf16.msrb.mxu2 %v11118_v15  ;;  %v13635_v15 = vld [vmem:[%s17262_s12 + $0x18a8] sm:$0xf0] }
 0x3f1   : > { %9668 = vmatpush.bf16.msrb.mxu3 %v11694_v43  ;;  %9630 = vmatmul.bf16.vlgmr.msrb.gmra.mxu0 %v19500_v16  ;;  %v13638_v43 = vor.u32 %v16454_v13, %v13635_v15  ;;  %v9424_v13 = vadd.f32 %v19519_v3, %v19469_v39  ;;  %v12270_v15 = vor.u32 %v16112_v58, %v12267_v32  ;;  %v16940_v39 = vld [vmem:[%s17262_s12 + $0x2794] sm:$0xf]  ;;  %v11481_v58 = vld [vmem:[%s17262_s12 + $0x788] sm:$0xf]  ;;  %v15924_v32 = vld [vmem:[%s17262_s12 + $0x7cc] sm:$0xf0] }
 0x3f2   : > { %9674 = vmatpush.bf16.msra.mxu0 %v12774_v17  ;;  %9643 = vmatmul.bf16.vlgmr.msrb.gmra.mxu1 %v17394_v22  ;;  %v14211_v17 = vld [vmem:[%s17262_s12 + $0x1d28] sm:$0xf0] }
 0x3f3   : > { %9687 = vmatpush.bf16.msra.mxu1 %v13350_v14  ;;  %9656 = vmatmul.bf16.vlgmr.msrb.gmra.mxu2 %v17401_v27  ;;  %v12486_v14 = vor.u32 %v16166_v44, %v12483_v4  ;;  %v14214_v40 = vor.u32 %v16598_v52, %v14211_v17  ;;  %v15075_v44 = vld [vmem:[%s17262_s12 + $0x23e8] sm:$0xf0]  ;;  %v16544_v17 = vld [vmem:[%s17262_s12 + $0x1b34] sm:$0xf] }
 0x3f4   : > { %9700 = vmatpush.bf16.msra.mxu2 %v13926_v53  ;;  %9669 = vmatmul.bf16.vlgmr.msrb.gmra.mxu3 %v17392_v21  ;;  %v16148_v53 = vld [vmem:[%s17262_s12 + $0xed4] sm:$0xf]  ;;  %v15651_v4 = vld [vmem:[%s17262_s12 + $0x2868] sm:$0xf0] }
 0x3f5   : > { %9713 = vmatpush.bf16.msra.mxu3 %v14502_v47  ;;  %v16436_v47 = vld [vmem:[%s17262_s12 + $0x17d4] sm:$0xf] }
 0x3f6   : > { %9675 = vmatpush.bf16.msra.mxu0 %v12702_v63  ;;  %v19538_v30 = vpop.f32.mrf.mxu2  ;;  %v12414_v63 = vor.u32 %v16148_v53, %v12411_v51  ;;  %v13566_v26 = vor.u32 %v16436_v47, %v13563_v59  ;;  %v15960_v51 = vld [vmem:[%s17262_s12 + $0x8ec] sm:$0xf0]  ;;  %v15003_v47 = vld [vmem:[%s17262_s12 + $0x2358] sm:$0xf0] }
 0x3f7   : > { %9688 = vmatpush.bf16.msra.mxu1 %v13278_v54  ;;  %v12990_v54 = vor.u32 %v16292_v24, %v12987_v56  ;;  %v19546_v7 = vpop.f32.mrf.mxu3  ;;  %v11050_v56 = vor.u32 %v15816_v8, %v11049_v5  ;;  %v11409_v5 = vld [vmem:[%s17262_s12 + $0x6f8] sm:$0xf]  ;;  %v15906_v8 = vld [vmem:[%s17262_s12 + $0x73c] sm:$0xf0] }
 0x3f8   : > { %9701 = vmatpush.bf16.msra.mxu2 %v13854_v20  ;;  %v9425_v20 = vpop.f32.mrf.mxu0 }
 0x3f9   : > { %9714 = vmatpush.bf16.msra.mxu3 %v14430_v35  ;;  %v12915_v35 = vld [vmem:[%s17262_s12 + $0x1308] sm:$0xf0] }
 0x3fa   : > { %9676 = vmatpush.bf16.msra.mxu0 %v12630_v6  ;;  %v9438_v6 = vpop.f32.mrf.mxu1  ;;  %v12918_v50 = vor.u32 %v16274_v34, %v12915_v35  ;;  %v15582_v34 = vor.u32 %v16940_v39, %v15579_v1  ;;  %v16724_v1 = vld [vmem:[%s17262_s12 + $0x20d4] sm:$0xf] }
 0x3fb   : > { %9689 = vmatpush.bf16.msra.mxu1 %v13206_v49  ;;  %v16562_v49 = vld [vmem:[%s17262_s12 + $0x1bc4] sm:$0xf]  ;;  %v10905_v6 = vld [vmem:[%s17262_s12 + $0x308] sm:$0xf] }
 0x3fc   : > { %9702 = vmatpush.bf16.msra.mxu2 %v13782_v46  ;;  %v12342_v46 = vor.u32 %v16130_v18, %v12339_v31  ;;  %v15942_v31 = vld [vmem:[%s17262_s12 + $0x85c] sm:$0xf0] }
 0x3fd   : > { %9715 = vmatpush.bf16.msra.mxu3 %v14358_v61  ;;  %v16256_v61 = vld [vmem:[%s17262_s12 + $0x1234] sm:$0xf] }
 0x3fe   : > { %9677 = vmatpush.bf16.msra.mxu0 %v12558_v37  ;;  %v14070_v37 = vor.u32 %v16562_v49, %v14067_v60  ;;  %v12846_v52 = vor.u32 %v16256_v61, %v12843_v0  ;;  %v15780_v49 = vld [vmem:[%s17262_s12 + $0x34c] sm:$0xf0]  ;;  %v14859_v0 = vld [vmem:[%s17262_s12 + $0x2238] sm:$0xf0] }
 0x3ff   : > { %9690 = vmatpush.bf16.msra.mxu1 %v13134_v2  ;;  %v16814_v2 = vld [vmem:[%s17262_s12 + $0x23a4] sm:$0xf]  ;;  %v9464_v3 = vpop.f32.mrf.mxu3 }
 0x400   : > { %9703 = vmatpush.bf16.msra.mxu2 %v13710_v19  ;;  %v16958_v19 = vld [vmem:[%s17262_s12 + $0x2824] sm:$0xf]  ;;  %v15078_v53 = vor.u32 %v16814_v2, %v15075_v44  ;;  %v15762_v2 = vld [vmem:[%s17262_s12 + $0x2bc] sm:$0xf0] }
 0x401   : > { %9716 = vmatpush.bf16.msra.mxu3 %v14286_v11  ;;  %v9451_v11 = vpop.f32.mrf.mxu2  ;;  %v15654_v24 = vor.u32 %v16958_v19, %v15651_v4  ;;  %v11482_v19 = vor.u32 %v15924_v32, %v11481_v58  ;;  %v10617_v58 = vld [vmem:[%s17262_s12 + $0xc8] sm:$0xf]  ;;  %v15708_v32 = vld [vmem:[%s17262_s12 + $0x10c] sm:$0xf0] }
 0x402   : > { %9678 = vmatpush.bf16.msra.mxu0 %v12486_v14  ;;  %v13995_v14 = vld [vmem:[%s17262_s12 + $0x1b78] sm:$0xf0] }
 0x403   : > { %9691 = vmatpush.bf16.msra.mxu1 %v13062_v55  ;;  %v13422_v55 = vor.u32 %v16400_v9, %v13419_v41  ;;  %v13998_v59 = vor.u32 %v16544_v17, %v13995_v14  ;;  %v16904_v9 = vld [vmem:[%s17262_s12 + $0x2674] sm:$0xf]  ;;  %v15435_v41 = vld [vmem:[%s17262_s12 + $0x26b8] sm:$0xf0]  ;;  %v16886_v17 = vld [vmem:[%s17262_s12 + $0x25e4] sm:$0xf] }
 0x404   : > { %9704 = vmatpush.bf16.msra.mxu2 %v13638_v43  ;;  %v11625_v43 = vld [vmem:[%s17262_s12 + $0x8a8] sm:$0xf]  ;;  %v15438_v11 = vor.u32 %v16904_v9, %v15435_v41  ;;  %v15852_v41 = vld [vmem:[%s17262_s12 + $0x58c] sm:$0xf0] }
 0x405   : > { %9717 = vmatpush.bf16.msra.mxu3 %v14214_v40  ;;  %v16796_v40 = vld [vmem:[%s17262_s12 + $0x2314] sm:$0xf]  ;;  %v11626_v18 = vor.u32 %v15960_v51, %v11625_v43  ;;  %v15744_v43 = vld [vmem:[%s17262_s12 + $0x22c] sm:$0xf0]  ;;  %v11193_v9 = vld [vmem:[%s17262_s12 + $0x548] sm:$0xf] }
 0x406   : > { %9679 = vmatpush.bf16.msra.mxu0 %v12414_v63  ;;  %v15798_v63 = vld [vmem:[%s17262_s12 + $0x3dc] sm:$0xf0]  ;;  %v15006_v20 = vor.u32 %v16796_v40, %v15003_v47  ;;  %v11337_v40 = vld [vmem:[%s17262_s12 + $0x668] sm:$0xf]  ;;  %v15888_v47 = vld [vmem:[%s17262_s12 + $0x6ac] sm:$0xf0] }
 0x407   : > { %9692 = vmatpush.bf16.msra.mxu1 %v12990_v54  ;;  %v9437_v54 = vadd.f32 %v19526_v10, %v9424_v13  ;;  %v10978_v35 = vor.u32 %v15798_v63, %v10977_v57  ;;  %v16922_v10 = vld [vmem:[%s17262_s12 + $0x2704] sm:$0xf]  ;;  %v14715_v57 = vld [vmem:[%s17262_s12 + $0x2118] sm:$0xf0]  ;;  %v16868_v63 = vld [vmem:[%s17262_s12 + $0x2554] sm:$0xf] }
 0x408   : > { %9705 = vmatpush.bf16.msra.mxu2 %v13566_v26  ;;  %v11553_v26 = vld [vmem:[%s17262_s12 + $0x818] sm:$0xf]  ;;  %v15510_v61 = vor.u32 %v16922_v10, %v15507_v12  ;;  %v15870_v10 = vld [vmem:[%s17262_s12 + $0x61c] sm:$0xf0] }
 0x409   : > { %9718 = vmatpush.bf16.msra.mxu3 %v14142_v36  ;;  %v16778_v36 = vld [vmem:[%s17262_s12 + $0x2284] sm:$0xf]  ;;  %v9450_v60 = vadd.f32 %v19538_v30, %v9437_v54  ;;  %v16760_v30 = vld [vmem:[%s17262_s12 + $0x21f4] sm:$0xf]  ;;  %v15291_v54 = vld [vmem:[%s17262_s12 + $0x2598] sm:$0xf0] }
 0x40a   : > { %9680 = vmatpush.bf16.msra.mxu0 %v12342_v46  ;;  %v11554_v46 = vor.u32 %v15942_v31, %v11553_v26  ;;  %v14862_v4 = vor.u32 %v16760_v30, %v14859_v0  ;;  %v9398_v26 = vadd.f32 %v19458_v45, %v19450_v48  ;;  %v16706_v48 = vld [vmem:[%s17262_s12 + $0x2044] sm:$0xf]  ;;  %v14643_v45 = vld [vmem:[%s17262_s12 + $0x2088] sm:$0xf0] }
 0x40b   : > { %9693 = vmatpush.bf16.msra.mxu1 %v12918_v50  ;;  %v14934_v50 = vor.u32 %v16778_v36, %v14931_v38  ;;  %v9463_v44 = vadd.f32 %v19546_v7, %v9450_v60  ;;  %v14718_v36 = vor.u32 %v16724_v1, %v14715_v57  ;;  %v11265_v38 = vld [vmem:[%s17262_s12 + $0x5d8] sm:$0xf]  ;;  %v16850_v60 = vld [vmem:[%s17262_s12 + $0x24c4] sm:$0xf]  ;;  %v13929_v57 = vld [vmem:[%s17262_s12 + $0x1aa8] sm:$0xf] }
 0x40c   : > { %9706 = vmatpush.bf16.msra.mxu2 %v13494_v62  ;;  %v10906_v62 = vor.u32 %v15780_v49, %v10905_v6  ;;  %v15294_v6 = vor.u32 %v16868_v63, %v15291_v54  ;;  %v10245_v30 = vrot.slane %v9398_v26, 4  ;;  %v11266_v0 = vor.u32 %v15870_v10, %v11265_v38  ;;  %v16536_v63 = vld [vmem:[%s17262_s12 + $0x1aec] sm:$0xf0]  ;;  %v12129_v26 = vld [vmem:[%s17262_s12 + $0xc98] sm:$0xf] }
 0x40d   : > { %9719 = vmatpush.bf16.msra.mxu3 %v14070_v37  ;;  %v10833_v37 = vld [vmem:[%s17262_s12 + $0x278] sm:$0xf]  ;;  %v16230_v38 = vld [vmem:[%s17262_s12 + $0x115c] sm:$0xf0]  ;;  %v13930_v10 = vor.u32 %v16536_v63, %v13929_v57 }
 0x40e   : > { %9681 = vmatpush.bf16.msra.mxu0 %v12270_v15  ;;  %v10834_v13 = vor.u32 %v15762_v2, %v10833_v37  ;;  %v16742_v15 = vld [vmem:[%s17262_s12 + $0x2164] sm:$0xf]  ;;  %v9475_v14 = vpop.f32.mrf.mxu0  ;;  %v311_v37 = vld [vmem:[#allocation2 + $0x10] sm:$0xff]  ;;  %v11841_v63 = vld [vmem:[%s17262_s12 + $0xa58] sm:$0xf] }
 0x40f   : > { %9694 = vmatpush.bf16.msra.mxu1 %v12846_v52  ;;  %v14787_v52 = vld [vmem:[%s17262_s12 + $0x21a8] sm:$0xf0]  ;;  %v9488_v7 = vpop.f32.mrf.mxu1  ;;  %v9476_v51 = vadd.f32 %v9475_v14, %v9463_v44  ;;  %v14646_v44 = vor.u32 %v16706_v48, %v14643_v45  ;;  %v12201_v14 = vld [vmem:[%s17262_s12 + $0xd28] sm:$0xf]  ;;  %v16518_v48 = vld [vmem:[%s17262_s12 + $0x1a5c] sm:$0xf0] }
 0x410   : > { %9707 = vmatpush.bf16.msra.mxu2 %v13422_v55  ;;  %v15363_v55 = vld [vmem:[%s17262_s12 + $0x2628] sm:$0xf0] }
 0x411   : > { %9720 = vmatpush.bf16.msra.mxu3 %v13998_v59  ;;  %9682 = vmatmul.bf16.vlgmr.msra.gmra.mxu0 %v17396_v23  ;;  %v9489_v39 = vadd.f32 %v9488_v7, %v9476_v51  ;;  %v15366_v3 = vor.u32 %v16886_v17, %v15363_v55  ;;  %v15690_v17 = vld [vmem:[%s17262_s12 + $0x7c] sm:$0xf0]  ;;  %v16104_v7 = vld [vmem:[%s17262_s12 + $0xd6c] sm:$0xf0] }
 0x412   : > { %9726 = vmatpush.bf16.msrb.mxu0 %v15078_v53  ;;  %9695 = vmatmul.bf16.vlgmr.msra.gmra.mxu1 %v17448_v29  ;;  %v10761_v53 = vld [vmem:[%s17262_s12 + $0x1e8] sm:$0xf]  ;;  %v16248_v51 = vld [vmem:[%s17262_s12 + $0x11ec] sm:$0xf0] }
 0x413   : > { %9739 = vmatpush.bf16.msrb.mxu1 %v15654_v24  ;;  %9708 = vmatmul.bf16.vlgmr.msra.gmra.mxu2 %v17452_v33  ;;  %v11410_v24 = vor.u32 %v15906_v8, %v11409_v5  ;;  %v10762_v59 = vor.u32 %v15744_v43, %v10761_v53  ;;  %v10618_v8 = vor.u32 %v15708_v32, %v10617_v58  ;;  %v12777_v43 = vld [vmem:[%s17262_s12 + $0x11a8] sm:$0xf]  ;;  %v16068_v58 = vld [vmem:[%s17262_s12 + $0xc4c] sm:$0xf0] }
 0x414   : > { %9752 = vmatpush.bf16.msrb.mxu2 %v11050_v56  ;;  %9721 = vmatmul.bf16.vlgmr.msra.gmra.mxu3 %v17446_v28  ;;  %v14790_v56 = vor.u32 %v16742_v15, %v14787_v52  ;;  %v10545_v15 = vld [vmem:[%s17262_s12 + $0x38] sm:$0xf]  ;;  %v11194_v53 = vor.u32 %v15852_v41, %v11193_v9  ;;  %v12633_v32 = vld [vmem:[%s17262_s12 + $0x1088] sm:$0xf]  ;;  %v16500_v41 = vld [vmem:[%s17262_s12 + $0x19cc] sm:$0xf0] }
 0x415   : > { %9765 = vmatpush.bf16.msrb.mxu3 %v11626_v18  ;;  %v10689_v18 = vld [vmem:[%s17262_s12 + $0x158] sm:$0xf]  ;;  %v10546_v1 = vor.u32 %v15690_v17, %v10545_v15  ;;  %v13785_v9 = vld [vmem:[%s17262_s12 + $0x1988] sm:$0xf] }
 0x416   : > { %9727 = vmatpush.bf16.msrb.mxu0 %v15006_v20  ;;  %v15726_v20 = vld [vmem:[%s17262_s12 + $0x19c] sm:$0xf0]  ;;  %v9501_v31 = vpop.f32.mrf.mxu2  ;;  %v13713_v15 = vld [vmem:[%s17262_s12 + $0x18f8] sm:$0xf] }
 0x417   : > { %9740 = vmatpush.bf16.msrb.mxu1 %v15582_v34  ;;  %v11338_v34 = vor.u32 %v15888_v47, %v11337_v40  ;;  %v9514_v12 = vpop.f32.mrf.mxu3  ;;  %v10690_v49 = vor.u32 %v15726_v20, %v10689_v18  ;;  %v12202_v18 = vor.u32 %v16104_v7, %v12201_v14  ;;  %v12778_v20 = vor.u32 %v16248_v51, %v12777_v43  ;;  %v11913_v7 = vld [vmem:[%s17262_s12 + $0xae8] sm:$0xf]  ;;  %v16176_v51 = vld [vmem:[%s17262_s12 + $0xfac] sm:$0xf0] }
 0x418   : > { %9753 = vmatpush.bf16.msrb.mxu2 %v10978_v35  ;;  %v9502_v35 = vadd.f32 %v9501_v31, %v9489_v39  ;;  %v16392_v39 = vld [vmem:[%s17262_s12 + $0x166c] sm:$0xf0]  ;;  %v12489_v43 = vld [vmem:[%s17262_s12 + $0xf68] sm:$0xf] }
 0x419   : > { %9766 = vmatpush.bf16.msrb.mxu3 %v11554_v46  ;;  %v12490_v57 = vor.u32 %v16176_v51, %v12489_v43 }
 0x41a   : > { %9728 = vmatpush.bf16.msrb.mxu0 %v14934_v50  ;;  %v9515_v46 = vadd.f32 %v9514_v12, %v9502_v35  ;;  %v15219_v50 = vld [vmem:[%s17262_s12 + $0x2508] sm:$0xf0]  ;;  %v16086_v35 = vld [vmem:[%s17262_s12 + $0xcdc] sm:$0xf0]  ;;  %v13281_v12 = vld [vmem:[%s17262_s12 + $0x1598] sm:$0xf] }
 0x41b   : > { %9741 = vmatpush.bf16.msrb.mxu1 %v15510_v61  ;;  %v9477_v61 = vpop.f32.mrf.mxu0  ;;  %v15222_v5 = vor.u32 %v16850_v60, %v15219_v50  ;;  %v12130_v45 = vor.u32 %v16086_v35, %v12129_v26  ;;  %v16158_v26 = vld [vmem:[%s17262_s12 + $0xf1c] sm:$0xf0] }
 0x41c   : > { %9754 = vmatpush.bf16.msrb.mxu2 %v10906_v62  ;;  %v9490_v62 = vpop.f32.mrf.mxu1  ;;  %v10246_v2 = vrot.slane %v9515_v46, 2  ;;  %v12057_v46 = vld [vmem:[%s17262_s12 + $0xc08] sm:$0xf]  ;;  %v16212_v61 = vld [vmem:[%s17262_s12 + $0x10cc] sm:$0xf0] }
 0x41d   : > { %9767 = vmatpush.bf16.msrb.mxu3 %v11482_v19  ;;  %v16688_v19 = vld [vmem:[%s17262_s12 + $0x1fb4] sm:$0xf]  ;;  %v16302_v35 = vld [vmem:[%s17262_s12 + $0x139c] sm:$0xf0] }
 0x41e   : > { %9729 = vmatpush.bf16.msrb.mxu0 %v14862_v4  ;;  %v14571_v4 = vld [vmem:[%s17262_s12 + $0x1ff8] sm:$0xf0]  ;;  %v10261_v52 = vsel %vm10253_vm1, %v10245_v30, %v10246_v2  ;;  %v13209_v30 = vld [vmem:[%s17262_s12 + $0x1508] sm:$0xf]  ;;  %v12634_v2 = vor.u32 %v16212_v61, %v12633_v32  ;;  %v16284_v61 = vld [vmem:[%s17262_s12 + $0x130c] sm:$0xf0] }
 0x41f   : > { %9742 = vmatpush.bf16.msrb.mxu1 %v15438_v11  ;;  %v16832_v11 = vld [vmem:[%s17262_s12 + $0x2434] sm:$0xf]  ;;  %v10262_v55 = vsel %vm10255_vm2, %v19314_v25, %v10261_v52  ;;  %v14574_v47 = vor.u32 %v16688_v19, %v14571_v4  ;;  %v9516_v54 = vpop.f32.mrf.mxu3  ;;  %v16050_v4 = vld [vmem:[%s17262_s12 + $0xbbc] sm:$0xf0]  ;;  %v12921_v32 = vld [vmem:[%s17262_s12 + $0x12c8] sm:$0xf] }
 0x420   : > { %9755 = vmatpush.bf16.msrb.mxu2 %v10834_v13  ;;  %v15147_v13 = vld [vmem:[%s17262_s12 + $0x2478] sm:$0xf0]  ;;  %v10274_v40 = vadd.f32 %v10262_v55, %v311_v37  ;;  %v12058_v37 = vor.u32 %v16068_v58, %v12057_v46  ;;  %v16482_v52 = vld [vmem:[%s17262_s12 + $0x193c] sm:$0xf0]  ;;  %v12345_v46 = vld [vmem:[%s17262_s12 + $0xe48] sm:$0xf] }
 0x421   : > { %9768 = vmatpush.bf16.msrb.mxu3 %v11410_v24  ;;  %v13353_v24 = vld [vmem:[%s17262_s12 + $0x1628] sm:$0xf]  ;;  %v15150_v25 = vor.u32 %v16832_v11, %v15147_v13  ;;  %v13137_v11 = vld [vmem:[%s17262_s12 + $0x1478] sm:$0xf]  ;;  %v16338_v13 = vld [vmem:[%s17262_s12 + $0x14bc] sm:$0xf0] }
 0x422   : > { %9730 = vmatpush.bf16.msrb.mxu0 %v14790_v56  ;;  %v9503_v56 = vpop.f32.mrf.mxu2  ;;  %10279 = vst [vmem:[#allocation2 + $0x10] sm:$0xff] %v10274_v40  ;;  %v13354_v31 = vor.u32 %v16392_v39, %v13353_v24  ;;  %v13138_v55 = vor.u32 %v16338_v13, %v13137_v11  ;;  %v13714_v24 = vor.u32 %v16482_v52, %v13713_v15  ;;  %v16320_v40 = vld [vmem:[%s17262_s12 + $0x142c] sm:$0xf0]  ;;  %v12849_v11 = vld [vmem:[%s17262_s12 + $0x1238] sm:$0xf] }
 0x423   : > { %9743 = vmatpush.bf16.msrb.mxu1 %v15366_v3  ;;  %v11121_v3 = vld [vmem:[%s17262_s12 + $0x4b8] sm:$0xf]  ;;  %v13065_v56 = vld [vmem:[%s17262_s12 + $0x13e8] sm:$0xf]  ;;  %v16266_v13 = vld [vmem:[%s17262_s12 + $0x127c] sm:$0xf0] }
 0x424   : > { %9756 = vmatpush.bf16.msrb.mxu2 %v10762_v59  ;;  %v15834_v59 = vld [vmem:[%s17262_s12 + $0x4fc] sm:$0xf0]  ;;  %v13066_v54 = vor.u32 %v16320_v40, %v13065_v56  ;;  %v14505_v52 = vld [vmem:[%s17262_s12 + $0x1f28] sm:$0xf]  ;;  %v13425_v56 = vld [vmem:[%s17262_s12 + $0x16b8] sm:$0xf] }
 0x425   : > { %9769 = vmatpush.bf16.msrb.mxu3 %v11338_v34  ;;  %v11122_v34 = vor.u32 %v15834_v59, %v11121_v3  ;;  %v13641_v3 = vld [vmem:[%s17262_s12 + $0x1868] sm:$0xf]  ;;  %v16464_v59 = vld [vmem:[%s17262_s12 + $0x18ac] sm:$0xf0]  ;;  %v16410_v40 = vld [vmem:[%s17262_s12 + $0x16fc] sm:$0xf0] }
 0x426   : > { %9731 = vmatpush.bf16.msrb.mxu0 %v14718_v36  ;;  %v12705_v36 = vld [vmem:[%s17262_s12 + $0x1118] sm:$0xf] }
 0x427   : > { %9744 = vmatpush.bf16.msrb.mxu1 %v15294_v6  ;;  %v16374_v6 = vld [vmem:[%s17262_s12 + $0x15dc] sm:$0xf0]  ;;  %v12706_v60 = vor.u32 %v16230_v38, %v12705_v36  ;;  %v13569_v36 = vld [vmem:[%s17262_s12 + $0x17d8] sm:$0xf] }
 0x428   : > { %9757 = vmatpush.bf16.msrb.mxu2 %v10690_v49  ;;  %v13857_v49 = vld [vmem:[%s17262_s12 + $0x1a18] sm:$0xf]  ;;  %v13282_v50 = vor.u32 %v16374_v6, %v13281_v12  ;;  %v16446_v38 = vld [vmem:[%s17262_s12 + $0x181c] sm:$0xf0] }
 0x429   : > { %9770 = vmatpush.bf16.msrb.mxu3 %v11266_v0  ;;  %v13858_v62 = vor.u32 %v16518_v48, %v13857_v49  ;;  %v16356_v0 = vld [vmem:[%s17262_s12 + $0x154c] sm:$0xf0]  ;;  %v11769_v49 = vld [vmem:[%s17262_s12 + $0x9c8] sm:$0xf]  ;;  %v13570_v58 = vor.u32 %v16446_v38, %v13569_v36  ;;  %v15789_v38 = vld [vmem:[%s17262_s12 + $0x39c] sm:$0xf] }
 0x42a   : > { %9732 = vmatpush.bf16.msrb.mxu0 %v14646_v44  ;;  %v11985_v44 = vld [vmem:[%s17262_s12 + $0xb78] sm:$0xf]  ;;  %v13210_v19 = vor.u32 %v16356_v0, %v13209_v30  ;;  %v13497_v0 = vld [vmem:[%s17262_s12 + $0x1748] sm:$0xf] }
 0x42b   : > { %9745 = vmatpush.bf16.msrb.mxu1 %v15222_v5  ;;  %v12561_v5 = vld [vmem:[%s17262_s12 + $0xff8] sm:$0xf]  ;;  %v11986_v17 = vor.u32 %v16050_v4, %v11985_v44  ;;  %v15978_v4 = vld [vmem:[%s17262_s12 + $0x97c] sm:$0xf0] }
 0x42c   : > { %9758 = vmatpush.bf16.msrb.mxu2 %v10618_v8  ;;  %v13786_v8 = vor.u32 %v16500_v41, %v13785_v9  ;;  %v16428_v9 = vld [vmem:[%s17262_s12 + $0x178c] sm:$0xf0] }
 0x42d   : > { %9771 = vmatpush.bf16.msrb.mxu3 %v11194_v53  ;;  %v16032_v53 = vld [vmem:[%s17262_s12 + $0xb2c] sm:$0xf0]  ;;  %v13498_v15 = vor.u32 %v16428_v9, %v13497_v0  ;;  %v14289_v9 = vld [vmem:[%s17262_s12 + $0x1d78] sm:$0xf] }
 0x42e   : > { %9733 = vmatpush.bf16.msrb.mxu0 %v14574_v47  ;;  %v9527_v47 = vpop.f32.mrf.mxu0 }
 0x42f   : > { %9746 = vmatpush.bf16.msrb.mxu1 %v15150_v25  ;;  %v9540_v39 = vpop.f32.mrf.mxu1 }
 0x430   : > { %9759 = vmatpush.bf16.msrb.mxu2 %v10546_v1  ;;  %v9541_v25 = vadd.f32 %v9540_v39, %v9527_v47  ;;  %v11914_v1 = vor.u32 %v16032_v53, %v11913_v7  ;;  %v16824_v7 = vld [vmem:[%s17262_s12 + $0x23ec] sm:$0xf0]  ;;  %v12850_v47 = vor.u32 %v16266_v13, %v12849_v11  ;;  %v10835_v11 = vld [vmem:[%s17262_s12 + $0x2c0] sm:$0xf0] }
 0x431   : > { %9772 = vmatpush.bf16.msrb.mxu3 %v11122_v34  ;;  %9734 = vmatmul.bf16.vlgmr.msrb.gmra.mxu0 %v17462_v42  ;;  %v12993_v34 = vld [vmem:[%s17262_s12 + $0x1358] sm:$0xf]  ;;  %v16968_v53 = vld [vmem:[%s17262_s12 + $0x286c] sm:$0xf0] }
 0x432   : > { %9778 = vmatpush.bf16.msra.mxu0 %v12202_v18  ;;  %9747 = vmatmul.bf16.vlgmr.msrb.gmra.mxu1 %v19500_v16  ;;  %v16194_v16 = vld [vmem:[%s17262_s12 + $0x103c] sm:$0xf0] }
 0x433   : > { %9791 = vmatpush.bf16.msra.mxu1 %v12778_v20  ;;  %9760 = vmatmul.bf16.vlgmr.msrb.gmra.mxu2 %v17394_v22  ;;  %v12562_v14 = vor.u32 %v16194_v16, %v12561_v5  ;;  %v16014_v18 = vld [vmem:[%s17262_s12 + $0xa9c] sm:$0xf0]  ;;  %v12417_v20 = vld [vmem:[%s17262_s12 + $0xed8] sm:$0xf]  ;;  %v12922_v16 = vor.u32 %v16284_v61, %v12921_v32  ;;  %v15771_v61 = vld [vmem:[%s17262_s12 + $0x30c] sm:$0xf] }
 0x434   : > { %9804 = vmatpush.bf16.msra.mxu2 %v13354_v31  ;;  %9773 = vmatmul.bf16.vlgmr.msrb.gmra.mxu3 %v17401_v27  ;;  %v13642_v31 = vor.u32 %v16464_v59, %v13641_v3  ;;  %v11842_v12 = vor.u32 %v16014_v18, %v11841_v63  ;;  %v12418_v6 = vor.u32 %v16158_v26, %v12417_v20  ;;  %v12273_v5 = vld [vmem:[%s17262_s12 + $0xdb8] sm:$0xf]  ;;  %v15807_v3 = vld [vmem:[%s17262_s12 + $0x42c] sm:$0xf]  ;;  %v11051_v59 = vld [vmem:[%s17262_s12 + $0x470] sm:$0xf0] }
 0x435   : > { %9817 = vmatpush.bf16.msra.mxu3 %v13930_v10  ;;  %v16662_v63 = vld [vmem:[%s17262_s12 + $0x1edc] sm:$0xf0]  ;;  %v13426_v20 = vor.u32 %v16410_v40, %v13425_v56 }
 0x436   : > { %9779 = vmatpush.bf16.msra.mxu0 %v12130_v45  ;;  %v9553_v10 = vpop.f32.mrf.mxu2  ;;  %v12994_v45 = vor.u32 %v16302_v35, %v12993_v34  ;;  %v9529_v30 = vpop.f32.mrf.mxu0  ;;  %v16806_v26 = vld [vmem:[%s17262_s12 + $0x235c] sm:$0xf0]  ;;  %v11054_v35 = vor.u32 %v15807_v3, %v11051_v59  ;;  %v10763_v3 = vld [vmem:[%s17262_s12 + $0x230] sm:$0xf0] }
 0x437   : > { %9792 = vmatpush.bf16.msra.mxu1 %v12706_v60  ;;  %v9554_v48 = vadd.f32 %v9553_v10, %v9541_v25  ;;  %v15996_v60 = vld [vmem:[%s17262_s12 + $0xa0c] sm:$0xf0]  ;;  %v16950_v34 = vld [vmem:[%s17262_s12 + $0x27dc] sm:$0xf0]  ;;  %v10979_v10 = vld [vmem:[%s17262_s12 + $0x3e0] sm:$0xf0] }
 0x438   : > { %9805 = vmatpush.bf16.msra.mxu2 %v13282_v50  ;;  %v16140_v50 = vld [vmem:[%s17262_s12 + $0xe8c] sm:$0xf0] }
 0x439   : > { %9818 = vmatpush.bf16.msra.mxu3 %v13858_v62  ;;  %v9566_v62 = vpop.f32.mrf.mxu3  ;;  %v12346_v44 = vor.u32 %v16140_v50, %v12345_v46  ;;  %v15513_v46 = vld [vmem:[%s17262_s12 + $0x2708] sm:$0xf]  ;;  %v16932_v50 = vld [vmem:[%s17262_s12 + $0x274c] sm:$0xf0] }
 0x43a   : > { %9780 = vmatpush.bf16.msra.mxu0 %v12058_v37  ;;  %v19696_v41 = vadd.f32 %v9566_v62, %v9554_v48  ;;  %v9542_v37 = vpop.f32.mrf.mxu1  ;;  %v16644_v48 = vld [vmem:[%s17262_s12 + $0x1e4c] sm:$0xf0]  ;;  %v10907_v62 = vld [vmem:[%s17262_s12 + $0x350] sm:$0xf0]  ;;  %v15514_v0 = vor.u32 %v16932_v50, %v15513_v46 }
 0x43b   : > { %9793 = vmatpush.bf16.msra.mxu1 %v12634_v2  ;;  %v11770_v2 = vor.u32 %v15996_v60, %v11769_v49  ;;  %v14361_v49 = vld [vmem:[%s17262_s12 + $0x1e08] sm:$0xf]  ;;  %v16788_v60 = vld [vmem:[%s17262_s12 + $0x22cc] sm:$0xf0]  ;;  %v16626_v37 = vld [vmem:[%s17262_s12 + $0x1dbc] sm:$0xf0] }
 0x43c   : > { %9806 = vmatpush.bf16.msra.mxu2 %v13210_v19  ;;  %v11697_v19 = vld [vmem:[%s17262_s12 + $0x938] sm:$0xf]  ;;  %v14362_v32 = vor.u32 %v16644_v48, %v14361_v49  ;;  %v14649_v49 = vld [vmem:[%s17262_s12 + $0x2048] sm:$0xf]  ;;  %v16860_v46 = vld [vmem:[%s17262_s12 + $0x250c] sm:$0xf0] }
 0x43d   : > { %9819 = vmatpush.bf16.msra.mxu3 %v13786_v8  ;;  %v16122_v8 = vld [vmem:[%s17262_s12 + $0xdfc] sm:$0xf0]  ;;  %v11698_v51 = vor.u32 %v15978_v4, %v11697_v19  ;;  %v15441_v19 = vld [vmem:[%s17262_s12 + $0x2678] sm:$0xf] }
 0x43e   : > { %9781 = vmatpush.bf16.msra.mxu0 %v11986_v17  ;;  %v16680_v17 = vld [vmem:[%s17262_s12 + $0x1f6c] sm:$0xf0]  ;;  %v9555_v43 = vpop.f32.mrf.mxu2  ;;  %v16914_v4 = vld [vmem:[%s17262_s12 + $0x26bc] sm:$0xf0] }
 0x43f   : > { %9794 = vmatpush.bf16.msra.mxu1 %v12562_v14  ;;  %v15081_v14 = vld [vmem:[%s17262_s12 + $0x23a8] sm:$0xf]  ;;  %v14506_v39 = vor.u32 %v16680_v17, %v14505_v52 }
 0x440   : > { %9807 = vmatpush.bf16.msra.mxu2 %v13138_v55  ;;  %v15657_v55 = vld [vmem:[%s17262_s12 + $0x2828] sm:$0xf]  ;;  %v15082_v25 = vor.u32 %v16824_v7, %v15081_v14  ;;  %v16608_v14 = vld [vmem:[%s17262_s12 + $0x1d2c] sm:$0xf0] }
 0x441   : > { %9820 = vmatpush.bf16.msra.mxu3 %v13714_v24  ;;  %v12274_v24 = vor.u32 %v16122_v8, %v12273_v5  ;;  %v9568_v18 = vpop.f32.mrf.mxu3  ;;  %v10910_v5 = vor.u32 %v15771_v61, %v10907_v62  ;;  %v15753_v8 = vld [vmem:[%s17262_s12 + $0x27c] sm:$0xf]  ;;  %v14217_v17 = vld [vmem:[%s17262_s12 + $0x1ce8] sm:$0xf] }
 0x442   : > { %9782 = vmatpush.bf16.msra.mxu0 %v11914_v1  ;;  %v15658_v1 = vor.u32 %v16968_v53, %v15657_v55  ;;  %v14793_v7 = vld [vmem:[%s17262_s12 + $0x2168] sm:$0xf]  ;;  %v16752_v53 = vld [vmem:[%s17262_s12 + $0x21ac] sm:$0xf0]  ;;  %v14218_v40 = vor.u32 %v16608_v14, %v14217_v17  ;;  %v16878_v18 = vld [vmem:[%s17262_s12 + $0x259c] sm:$0xf0] }
 0x443   : > { %9795 = vmatpush.bf16.msra.mxu1 %v12490_v57  ;;  %v14433_v57 = vld [vmem:[%s17262_s12 + $0x1e98] sm:$0xf]  ;;  %v15369_v43 = vld [vmem:[%s17262_s12 + $0x25e8] sm:$0xf]  ;;  %v16239_v17 = vld [vmem:[%s17262_s12 + $0x11ac] sm:$0xf] }
 0x444   : > { %9808 = vmatpush.bf16.msra.mxu2 %v13066_v54  ;;  %v15009_v54 = vld [vmem:[%s17262_s12 + $0x2318] sm:$0xf]  ;;  %v14434_v36 = vor.u32 %v16662_v63, %v14433_v57  ;;  %v16734_v63 = vld [vmem:[%s17262_s12 + $0x211c] sm:$0xf0] }
 0x445   : > { %9821 = vmatpush.bf16.msra.mxu3 %v13642_v31  ;;  %v15585_v31 = vld [vmem:[%s17262_s12 + $0x2798] sm:$0xf] }
 0x446   : > { %9783 = vmatpush.bf16.msra.mxu0 %v11842_v12  ;;  %v15010_v12 = vor.u32 %v16806_v26, %v15009_v54  ;;  %v14721_v57 = vld [vmem:[%s17262_s12 + $0x20d8] sm:$0xf] }
 0x447   : > { %9796 = vmatpush.bf16.msra.mxu1 %v12418_v6  ;;  %v15586_v6 = vor.u32 %v16950_v34, %v15585_v31  ;;  %v15297_v54 = vld [vmem:[%s17262_s12 + $0x2558] sm:$0xf]  ;;  %v15717_v34 = vld [vmem:[%s17262_s12 + $0x15c] sm:$0xf] }
 0x448   : > { %9809 = vmatpush.bf16.msra.mxu2 %v12994_v45  ;;  %v14937_v45 = vld [vmem:[%s17262_s12 + $0x2288] sm:$0xf] }
 0x449   : > { %9822 = vmatpush.bf16.msra.mxu3 %v13570_v58  ;;  %v10982_v58 = vor.u32 %v15789_v38, %v10979_v10  ;;  %v14938_v30 = vor.u32 %v16788_v60, %v14937_v45  ;;  %v14722_v38 = vor.u32 %v16734_v63, %v14721_v57  ;;  %v15298_v10 = vor.u32 %v16878_v18, %v15297_v54  ;;  %v16716_v45 = vld [vmem:[%s17262_s12 + $0x208c] sm:$0xf0]  ;;  %v15225_v60 = vld [vmem:[%s17262_s12 + $0x24c8] sm:$0xf]  ;;  %v12131_v57 = vld [vmem:[%s17262_s12 + $0xce0] sm:$0xf0] }
 0x44a   : > { %9784 = vmatpush.bf16.msra.mxu0 %v11770_v2  ;;  %v14865_v2 = vld [vmem:[%s17262_s12 + $0x21f8] sm:$0xf]  ;;  %v16221_v18 = vld [vmem:[%s17262_s12 + $0x111c] sm:$0xf] }
 0x44b   : > { %9797 = vmatpush.bf16.msra.mxu1 %v12346_v44  ;;  %v16770_v44 = vld [vmem:[%s17262_s12 + $0x223c] sm:$0xf0] }
 0x44c   : > { %9810 = vmatpush.bf16.msra.mxu2 %v12922_v16  ;;  %v14290_v16 = vor.u32 %v16626_v37, %v14289_v9  ;;  %v14866_v13 = vor.u32 %v16770_v44, %v14865_v2  ;;  %v14001_v9 = vld [vmem:[%s17262_s12 + $0x1b38] sm:$0xf]  ;;  %v16554_v37 = vld [vmem:[%s17262_s12 + $0x1b7c] sm:$0xf0]  ;;  %v14650_v2 = vor.u32 %v16716_v45, %v14649_v49  ;;  %v15226_v44 = vor.u32 %v16860_v46, %v15225_v60  ;;  %v16203_v45 = vld [vmem:[%s17262_s12 + $0x108c] sm:$0xf] }
 0x44d   : > { %9823 = vmatpush.bf16.msra.mxu3 %v13498_v15  ;;  %v15442_v15 = vor.u32 %v16914_v4, %v15441_v19  ;;  %v14577_v19 = vld [vmem:[%s17262_s12 + $0x1fb8] sm:$0xf]  ;;  %v16698_v4 = vld [vmem:[%s17262_s12 + $0x1ffc] sm:$0xf0]  ;;  %v14002_v14 = vor.u32 %v16554_v37, %v14001_v9  ;;  %v12635_v60 = vld [vmem:[%s17262_s12 + $0x10d0] sm:$0xf0] }
 0x44e   : > { %9785 = vmatpush.bf16.msra.mxu0 %v11698_v51  ;;  %v9579_v52 = vpop.f32.mrf.mxu0  ;;  %v16896_v51 = vld [vmem:[%s17262_s12 + $0x262c] sm:$0xf0]  ;;  %v19797_v49 = vld [vmem:[#allocation1] sm:$0xff]  ;;  %v16347_v46 = vld [vmem:[%s17262_s12 + $0x150c] sm:$0xf] }
 0x44f   : > { %9798 = vmatpush.bf16.msra.mxu1 %v12274_v24  ;;  %v9580_v55 = vadd.f32 %v9579_v52, %v19696_v41  ;;  %v10838_v24 = vor.u32 %v15753_v8, %v10835_v11  ;;  %v9592_v56 = vpop.f32.mrf.mxu1  ;;  %v14794_v41 = vor.u32 %v16752_v53, %v14793_v7  ;;  %v15370_v59 = vor.u32 %v16896_v51, %v15369_v43  ;;  %v15951_v8 = vld [vmem:[%s17262_s12 + $0x8ac] sm:$0xf]  ;;  %v11627_v11 = vld [vmem:[%s17262_s12 + $0x8f0] sm:$0xf0]  ;;  %v10547_v53 = vld [vmem:[%s17262_s12 + $0x80] sm:$0xf0] }
 0x450   : > { %9811 = vmatpush.bf16.msra.mxu2 %v12850_v47  ;;  %v12203_v52 = vld [vmem:[%s17262_s12 + $0xd70] sm:$0xf0]  ;;  %v14578_v51 = vor.u32 %v16698_v4, %v14577_v19  ;;  %v16041_v9 = vld [vmem:[%s17262_s12 + $0xb7c] sm:$0xf]  ;;  %v11987_v37 = vld [vmem:[%s17262_s12 + $0xbc0] sm:$0xf0] }
 0x451   : > { %9824 = vmatpush.bf16.msra.mxu3 %v13426_v20  ;;  %9786 = vmatmul.bf16.vlgmr.msra.gmra.mxu0 %v17392_v21  ;;  %v9593_v47 = vadd.f32 %v9592_v56, %v9580_v55  ;;  %v12779_v7 = vld [vmem:[%s17262_s12 + $0x11f0] sm:$0xf0]  ;;  %v15681_v55 = vld [vmem:[%s17262_s12 + $0x3c] sm:$0xf]  ;;  %v16383_v56 = vld [vmem:[%s17262_s12 + $0x162c] sm:$0xf] }
 0x452   : > { %9830 = vmatpush.bf16.msrb.mxu0 %v14506_v39  ;;  %9799 = vmatmul.bf16.vlgmr.msra.gmra.mxu1 %v17396_v23  ;;  %v15735_v39 = vld [vmem:[%s17262_s12 + $0x1ec] sm:$0xf]  ;;  %v12563_v19 = vld [vmem:[%s17262_s12 + $0x1040] sm:$0xf0]  ;;  %v16329_v4 = vld [vmem:[%s17262_s12 + $0x147c] sm:$0xf] }
 0x453   : > { %9843 = vmatpush.bf16.msrb.mxu1 %v15082_v25  ;;  %9812 = vmatmul.bf16.vlgmr.msra.gmra.mxu2 %v17448_v29  ;;  %v14145_v25 = vld [vmem:[%s17262_s12 + $0x1c58] sm:$0xf]  ;;  %v10766_v20 = vor.u32 %v15735_v39, %v10763_v3  ;;  %v15933_v3 = vld [vmem:[%s17262_s12 + $0x81c] sm:$0xf] }
 0x454   : > { %9856 = vmatpush.bf16.msrb.mxu2 %v15658_v1  ;;  %9825 = vmatmul.bf16.vlgmr.msra.gmra.mxu3 %v17452_v33  ;;  %v16590_v1 = vld [vmem:[%s17262_s12 + $0x1c9c] sm:$0xf0] }
 0x455   : > { %9869 = vmatpush.bf16.msrb.mxu3 %v11054_v35  ;;  %v14146_v31 = vor.u32 %v16590_v1, %v14145_v25  ;;  %v10691_v35 = vld [vmem:[%s17262_s12 + $0x1a0] sm:$0xf0]  ;;  %v16077_v1 = vld [vmem:[%s17262_s12 + $0xc9c] sm:$0xf] }
 0x456   : > { %9831 = vmatpush.bf16.msrb.mxu0 %v14434_v36  ;;  %v9605_v26 = vpop.f32.mrf.mxu2  ;;  %v9581_v48 = vpop.f32.mrf.mxu0  ;;  %v11555_v25 = vld [vmem:[%s17262_s12 + $0x860] sm:$0xf0] }
 0x457   : > { %9844 = vmatpush.bf16.msrb.mxu1 %v15010_v12  ;;  %v9606_v36 = vadd.f32 %v9605_v26, %v9593_v47  ;;  %v14073_v12 = vld [vmem:[%s17262_s12 + $0x1bc8] sm:$0xf]  ;;  %v9618_v50 = vpop.f32.mrf.mxu3  ;;  %v9594_v61 = vpop.f32.mrf.mxu1  ;;  %v11630_v47 = vor.u32 %v15951_v8, %v11627_v11  ;;  %v16365_v26 = vld [vmem:[%s17262_s12 + $0x159c] sm:$0xf]  ;;  %v11990_v8 = vor.u32 %v16041_v9, %v11987_v37  ;;  %v15879_v11 = vld [vmem:[%s17262_s12 + $0x66c] sm:$0xf] }
 0x458   : > { %9857 = vmatpush.bf16.msrb.mxu2 %v15586_v6  ;;  %v16572_v6 = vld [vmem:[%s17262_s12 + $0x1c0c] sm:$0xf0]  ;;  %v15897_v61 = vld [vmem:[%s17262_s12 + $0x6fc] sm:$0xf]  ;;  %v11123_v9 = vld [vmem:[%s17262_s12 + $0x500] sm:$0xf0] }
 0x459   : > { %9870 = vmatpush.bf16.msrb.mxu3 %v10982_v58  ;;  %v10694_v58 = vor.u32 %v15717_v34, %v10691_v35  ;;  %v19766_v62 = vadd.f32 %v9618_v50, %v9606_v36  ;;  %v11558_v34 = vor.u32 %v15933_v3, %v11555_v25  ;;  %v12134_v35 = vor.u32 %v16077_v1, %v12131_v57  ;;  %v15915_v36 = vld [vmem:[%s17262_s12 + $0x78c] sm:$0xf]  ;;  %v13211_v50 = vld [vmem:[%s17262_s12 + $0x1550] sm:$0xf0]  ;;  %v11267_v3 = vld [vmem:[%s17262_s12 + $0x620] sm:$0xf0] }
 0x45a   : > { %9832 = vmatpush.bf16.msrb.mxu0 %v14362_v32  ;;  %v15699_v32 = vld [vmem:[%s17262_s12 + $0xcc] sm:$0xf]  ;;  %v16149_v1 = vld [vmem:[%s17262_s12 + $0xedc] sm:$0xf]  ;;  %v12419_v57 = vld [vmem:[%s17262_s12 + $0xf20] sm:$0xf0] }
 0x45b   : > { %9845 = vmatpush.bf16.msrb.mxu1 %v14938_v30  ;;  %v14074_v30 = vor.u32 %v16572_v6, %v14073_v12  ;;  %v16059_v12 = vld [vmem:[%s17262_s12 + $0xc0c] sm:$0xf]  ;;  %v12059_v6 = vld [vmem:[%s17262_s12 + $0xc50] sm:$0xf0]  ;;  %v15969_v37 = vld [vmem:[%s17262_s12 + $0x93c] sm:$0xf] }
 0x45c   : > { %9858 = vmatpush.bf16.msrb.mxu2 %v15514_v0  ;;  %v10619_v0 = vld [vmem:[%s17262_s12 + $0x110] sm:$0xf0] }
 0x45d   : > { %9871 = vmatpush.bf16.msrb.mxu3 %v10910_v5  ;;  %v15153_v5 = vld [vmem:[%s17262_s12 + $0x2438] sm:$0xf] }
 0x45e   : > { %9833 = vmatpush.bf16.msrb.mxu0 %v14290_v16  ;;  %v16842_v16 = vld [vmem:[%s17262_s12 + $0x247c] sm:$0xf0]  ;;  %v9607_v43 = vpop.f32.mrf.mxu2 }
 0x45f   : > { %9846 = vmatpush.bf16.msrb.mxu1 %v14866_v13  ;;  %v10622_v13 = vor.u32 %v15699_v32, %v10619_v0  ;;  %v9620_v63 = vpop.f32.mrf.mxu3  ;;  %v12062_v32 = vor.u32 %v16059_v12, %v12059_v6  ;;  %v11411_v0 = vld [vmem:[%s17262_s12 + $0x740] sm:$0xf0]  ;;  %v12491_v43 = vld [vmem:[%s17262_s12 + $0xfb0] sm:$0xf0] }
 0x460   : > { %9859 = vmatpush.bf16.msrb.mxu2 %v15442_v15  ;;  %v16095_v15 = vld [vmem:[%s17262_s12 + $0xd2c] sm:$0xf]  ;;  %v16293_v63 = vld [vmem:[%s17262_s12 + $0x135c] sm:$0xf] }
 0x461   : > { %9872 = vmatpush.bf16.msrb.mxu3 %v10838_v24  ;;  %v15154_v24 = vor.u32 %v16842_v16, %v15153_v5  ;;  %v12206_v39 = vor.u32 %v16095_v15, %v12203_v52  ;;  %v13139_v5 = vld [vmem:[%s17262_s12 + $0x14c0] sm:$0xf0]  ;;  %v11414_v16 = vor.u32 %v15897_v61, %v11411_v0  ;;  %v11339_v52 = vld [vmem:[%s17262_s12 + $0x6b0] sm:$0xf0]  ;;  %v15825_v0 = vld [vmem:[%s17262_s12 + $0x4bc] sm:$0xf] }
 0x462   : > { %9834 = vmatpush.bf16.msrb.mxu0 %v14218_v40  ;;  %v13355_v40 = vld [vmem:[%s17262_s12 + $0x1670] sm:$0xf0] }
 0x463   : > { %9847 = vmatpush.bf16.msrb.mxu1 %v14794_v41  ;;  %v12782_v41 = vor.u32 %v16239_v17, %v12779_v7  ;;  %v13358_v54 = vor.u32 %v16383_v56, %v13355_v40  ;;  %v16023_v17 = vld [vmem:[%s17262_s12 + $0xaec] sm:$0xf]  ;;  %v13067_v56 = vld [vmem:[%s17262_s12 + $0x1430] sm:$0xf0]  ;;  %v11342_v40 = vor.u32 %v15879_v11, %v11339_v52 }
 0x464   : > { %9860 = vmatpush.bf16.msrb.mxu2 %v15370_v59  ;;  %v10550_v59 = vor.u32 %v15681_v55, %v10547_v53  ;;  %v13142_v55 = vor.u32 %v16329_v4, %v13139_v5  ;;  %v16167_v53 = vld [vmem:[%s17262_s12 + $0xf6c] sm:$0xf]  ;;  %v12275_v4 = vld [vmem:[%s17262_s12 + $0xe00] sm:$0xf0]  ;;  %v15083_v52 = vld [vmem:[%s17262_s12 + $0x23f0] sm:$0xf0] }
 0x465   : > { %9873 = vmatpush.bf16.msrb.mxu3 %v10766_v20  ;;  %v12707_v20 = vld [vmem:[%s17262_s12 + $0x1160] sm:$0xf0]  ;;  %v16671_v11 = vld [vmem:[%s17262_s12 + $0x1f2c] sm:$0xf] }
 0x466   : > { %9835 = vmatpush.bf16.msrb.mxu0 %v14146_v31  ;;  %v13283_v31 = vld [vmem:[%s17262_s12 + $0x15e0] sm:$0xf0] }
 0x467   : > { %9848 = vmatpush.bf16.msrb.mxu1 %v14722_v38  ;;  %v12710_v38 = vor.u32 %v16221_v18, %v12707_v20  ;;  %v13286_v48 = vor.u32 %v16365_v26, %v13283_v31  ;;  %v15843_v26 = vld [vmem:[%s17262_s12 + $0x54c] sm:$0xf] }
 0x468   : > { %9861 = vmatpush.bf16.msrb.mxu2 %v15298_v10  ;;  %v11483_v10 = vld [vmem:[%s17262_s12 + $0x7d0] sm:$0xf0] }
 0x469   : > { %9874 = vmatpush.bf16.msrb.mxu3 %v10694_v58  ;;  %v11486_v58 = vor.u32 %v15915_v36, %v11483_v10  ;;  %v15987_v36 = vld [vmem:[%s17262_s12 + $0x9cc] sm:$0xf] }
 0x46a   : > { %9836 = vmatpush.bf16.msrb.mxu0 %v14074_v30  ;;  %v12638_v30 = vor.u32 %v16203_v45, %v12635_v60  ;;  %v12347_v45 = vld [vmem:[%s17262_s12 + $0xe90] sm:$0xf0] }
 0x46b   : > { %9849 = vmatpush.bf16.msrb.mxu1 %v14650_v2  ;;  %v13214_v2 = vor.u32 %v16347_v46, %v13211_v50  ;;  %v16275_v50 = vld [vmem:[%s17262_s12 + $0x12cc] sm:$0xf] }
 0x46c   : > { %9862 = vmatpush.bf16.msrb.mxu2 %v15226_v44  ;;  %v16185_v44 = vld [vmem:[%s17262_s12 + $0xffc] sm:$0xf] }
 0x46d   : > { %9875 = vmatpush.bf16.msrb.mxu3 %v10622_v13  ;;  %v12566_v15 = vor.u32 %v16185_v44, %v12563_v19  ;;  %v11699_v44 = vld [vmem:[%s17262_s12 + $0x980] sm:$0xf0]  ;;  %v16113_v19 = vld [vmem:[%s17262_s12 + $0xdbc] sm:$0xf] }
 0x46e   : > { %9837 = vmatpush.bf16.msrb.mxu0 %v14002_v14  ;;  %v9631_v13 = vpop.f32.mrf.mxu0  ;;  %v11915_v14 = vld [vmem:[%s17262_s12 + $0xb30] sm:$0xf0] }
 0x46f   : > { %9850 = vmatpush.bf16.msrb.mxu1 %v14578_v51  ;;  %v19820_v7 = vadd.f32 %v9631_v13, %v19766_v62  ;;  %v9644_v51 = vpop.f32.mrf.mxu1  ;;  %v12494_v62 = vor.u32 %v16167_v53, %v12491_v43  ;;  %v14507_v13 = vld [vmem:[%s17262_s12 + $0x1f70] sm:$0xf0]  ;;  %v12851_v53 = vld [vmem:[%s17262_s12 + $0x1280] sm:$0xf0] }
 0x470   : > { %9863 = vmatpush.bf16.msrb.mxu2 %v15154_v24  ;;  %v16311_v24 = vld [vmem:[%s17262_s12 + $0x13ec] sm:$0xf] }
 0x471   : > { %9876 = vmatpush.bf16.msrb.mxu3 %v10550_v59  ;;  %9838 = vmatmul.bf16.vlgmr.msrb.gmra.mxu0 %v17446_v28  ;;  %v11843_v59 = vld [vmem:[%s17262_s12 + $0xaa0] sm:$0xf0]  ;;  %v13070_v25 = vor.u32 %v16311_v24, %v13067_v56  ;;  %v16959_v56 = vld [vmem:[%s17262_s12 + $0x282c] sm:$0xf] }
 0x472   : > { %9882 = vmatpush.bf16.msra.mxu0 %v11630_v47  ;;  %9851 = vmatmul.bf16.vlgmr.msrb.gmra.mxu1 %v17462_v42  ;;  %v11918_v47 = vor.u32 %v16023_v17, %v11915_v14  ;;  %v11126_v17 = vor.u32 %v15825_v0, %v11123_v9  ;;  %v11702_v14 = vor.u32 %v15969_v37, %v11699_v44  ;;  %v16617_v0 = vld [vmem:[%s17262_s12 + $0x1d7c] sm:$0xf]  ;;  %v14291_v9 = vld [vmem:[%s17262_s12 + $0x1dc0] sm:$0xf0] }
 0x473   : > { %9895 = vmatpush.bf16.msra.mxu1 %v12206_v39  ;;  %9864 = vmatmul.bf16.vlgmr.msrb.gmra.mxu2 %v19797_v49  ;;  %v15861_v39 = vld [vmem:[%s17262_s12 + $0x5dc] sm:$0xf] }
 0x474   : > { %9908 = vmatpush.bf16.msra.mxu2 %v12782_v41  ;;  %9877 = vmatmul.bf16.vlgmr.msrb.gmra.mxu3 %v17394_v22  ;;  %v16005_v41 = vld [vmem:[%s17262_s12 + $0xa5c] sm:$0xf]  ;;  %v11270_v18 = vor.u32 %v15861_v39, %v11267_v3  ;;  %v13859_v3 = vld [vmem:[%s17262_s12 + $0x1a60] sm:$0xf0] }
 0x475   : > { %9921 = vmatpush.bf16.msra.mxu3 %v13358_v54  ;;  %v12995_v54 = vld [vmem:[%s17262_s12 + $0x13a0] sm:$0xf0]  ;;  %v11846_v20 = vor.u32 %v16005_v41, %v11843_v59  ;;  %v16653_v41 = vld [vmem:[%s17262_s12 + $0x1e9c] sm:$0xf] }
 0x476   : > { %9883 = vmatpush.bf16.msra.mxu0 %v11558_v34  ;;  %v9657_v31 = vpop.f32.mrf.mxu2  ;;  %v12422_v34 = vor.u32 %v16149_v1, %v12419_v57  ;;  %v9633_v12 = vpop.f32.mrf.mxu0  ;;  %v12998_v6 = vor.u32 %v16293_v63, %v12995_v54  ;;  %v14435_v1 = vld [vmem:[%s17262_s12 + $0x1ee0] sm:$0xf0]  ;;  %v16797_v57 = vld [vmem:[%s17262_s12 + $0x231c] sm:$0xf] }
 0x477   : > { %9896 = vmatpush.bf16.msra.mxu1 %v12134_v35  ;;  %v11195_v35 = vld [vmem:[%s17262_s12 + $0x590] sm:$0xf0]  ;;  %v9658_v10 = vadd.f32 %v9657_v31, %v9644_v51  ;;  %v9670_v60 = vpop.f32.mrf.mxu3  ;;  %v9646_v46 = vpop.f32.mrf.mxu1  ;;  %v12278_v51 = vor.u32 %v16113_v19, %v12275_v4  ;;  %v15011_v63 = vld [vmem:[%s17262_s12 + $0x2360] sm:$0xf0]  ;;  %v14438_v31 = vor.u32 %v16653_v41, %v14435_v1  ;;  %v16779_v12 = vld [vmem:[%s17262_s12 + $0x228c] sm:$0xf] }
 0x478   : > { %9909 = vmatpush.bf16.msra.mxu2 %v12710_v38  ;;  %v11771_v38 = vld [vmem:[%s17262_s12 + $0xa10] sm:$0xf0]  ;;  %v11198_v61 = vor.u32 %v15843_v26, %v11195_v35  ;;  %v15587_v26 = vld [vmem:[%s17262_s12 + $0x27e0] sm:$0xf0]  ;;  %v16491_v35 = vld [vmem:[%s17262_s12 + $0x198c] sm:$0xf] }
 0x479   : > { %9922 = vmatpush.bf16.msra.mxu3 %v13286_v48  ;;  %v16131_v48 = vld [vmem:[%s17262_s12 + $0xe4c] sm:$0xf]  ;;  %v15515_v46 = vld [vmem:[%s17262_s12 + $0x2750] sm:$0xf0]  ;;  %v16761_v37 = vld [vmem:[%s17262_s12 + $0x21fc] sm:$0xf] }
 0x47a   : > { %9884 = vmatpush.bf16.msra.mxu0 %v11486_v58  ;;  %v12923_v58 = vld [vmem:[%s17262_s12 + $0x1310] sm:$0xf0]  ;;  %v16905_v4 = vld [vmem:[%s17262_s12 + $0x267c] sm:$0xf]  ;;  %v14723_v1 = vld [vmem:[%s17262_s12 + $0x2120] sm:$0xf0] }
 0x47b   : > { %9897 = vmatpush.bf16.msra.mxu1 %v12062_v32  ;;  %v19842_v32 = vadd.f32 %v9670_v60, %v9658_v10  ;;  %v12926_v5 = vor.u32 %v16275_v50, %v12923_v58  ;;  %v14363_v10 = vld [vmem:[%s17262_s12 + $0x1e50] sm:$0xf0]  ;;  %v16923_v60 = vld [vmem:[%s17262_s12 + $0x270c] sm:$0xf]  ;;  %v16581_v41 = vld [vmem:[%s17262_s12 + $0x1c5c] sm:$0xf] }
 0x47c   : > { %9910 = vmatpush.bf16.msra.mxu2 %v12638_v30  ;;  %v11774_v30 = vor.u32 %v15987_v36, %v11771_v38  ;;  %v13787_v36 = vld [vmem:[%s17262_s12 + $0x19d0] sm:$0xf0]  ;;  %v16635_v38 = vld [vmem:[%s17262_s12 + $0x1e0c] sm:$0xf]  ;;  %v15518_v44 = vor.u32 %v16923_v60, %v15515_v46 }
 0x47d   : > { %9923 = vmatpush.bf16.msra.mxu3 %v13214_v2  ;;  %v12350_v2 = vor.u32 %v16131_v48, %v12347_v45  ;;  %v13790_v45 = vor.u32 %v16491_v35, %v13787_v36  ;;  %v14366_v50 = vor.u32 %v16635_v38, %v14363_v10  ;;  %v16419_v35 = vld [vmem:[%s17262_s12 + $0x174c] sm:$0xf]  ;;  %v13499_v36 = vld [vmem:[%s17262_s12 + $0x1790] sm:$0xf0] }
 0x47e   : > { %9885 = vmatpush.bf16.msra.mxu0 %v11414_v16  ;;  %v16527_v16 = vld [vmem:[%s17262_s12 + $0x1aac] sm:$0xf]  ;;  %v9659_v43 = vpop.f32.mrf.mxu2 }
 0x47f   : > { %9898 = vmatpush.bf16.msra.mxu1 %v11990_v8  ;;  %v13931_v8 = vld [vmem:[%s17262_s12 + $0x1af0] sm:$0xf0]  ;;  %v9672_v59 = vpop.f32.mrf.mxu3  ;;  %v16563_v38 = vld [vmem:[%s17262_s12 + $0x1bcc] sm:$0xf] }
 0x480   : > { %9911 = vmatpush.bf16.msra.mxu2 %v12566_v15  ;;  %v16815_v15 = vld [vmem:[%s17262_s12 + $0x23ac] sm:$0xf]  ;;  %v13934_v24 = vor.u32 %v16527_v16, %v13931_v8  ;;  %v14294_v16 = vor.u32 %v16617_v0, %v14291_v9  ;;  %v14147_v59 = vld [vmem:[%s17262_s12 + $0x1ca0] sm:$0xf0]  ;;  %v16401_v0 = vld [vmem:[%s17262_s12 + $0x16bc] sm:$0xf] }
 0x481   : > { %9924 = vmatpush.bf16.msra.mxu3 %v13142_v55  ;;  %v16257_v55 = vld [vmem:[%s17262_s12 + $0x123c] sm:$0xf]  ;;  %v15086_v39 = vor.u32 %v16815_v15, %v15083_v52  ;;  %v13643_v15 = vld [vmem:[%s17262_s12 + $0x18b0] sm:$0xf0]  ;;  %v16599_v52 = vld [vmem:[%s17262_s12 + $0x1cec] sm:$0xf] }
 0x482   : > { %9886 = vmatpush.bf16.msra.mxu0 %v11342_v40  ;;  %v15659_v40 = vld [vmem:[%s17262_s12 + $0x2870] sm:$0xf0]  ;;  %v16851_v46 = vld [vmem:[%s17262_s12 + $0x24cc] sm:$0xf]  ;;  %v13427_v9 = vld [vmem:[%s17262_s12 + $0x1700] sm:$0xf0] }
 0x483   : > { %9899 = vmatpush.bf16.msra.mxu1 %v11918_v47  ;;  %v14510_v47 = vor.u32 %v16671_v11, %v14507_v13  ;;  %v15662_v54 = vor.u32 %v16959_v56, %v15659_v40  ;;  %v16455_v13 = vld [vmem:[%s17262_s12 + $0x186c] sm:$0xf] }
 0x484   : > { %9912 = vmatpush.bf16.msra.mxu2 %v12494_v62  ;;  %v16509_v62 = vld [vmem:[%s17262_s12 + $0x1a1c] sm:$0xf]  ;;  %v16887_v40 = vld [vmem:[%s17262_s12 + $0x25ec] sm:$0xf] }
 0x485   : > { %9925 = vmatpush.bf16.msra.mxu3 %v13070_v25  ;;  %v12854_v25 = vor.u32 %v16257_v55, %v12851_v53  ;;  %v16743_v55 = vld [vmem:[%s17262_s12 + $0x216c] sm:$0xf]  ;;  %v14795_v53 = vld [vmem:[%s17262_s12 + $0x21b0] sm:$0xf0] }
 0x486   : > { %9887 = vmatpush.bf16.msra.mxu0 %v11270_v18  ;;  %v13862_v18 = vor.u32 %v16509_v62, %v13859_v3  ;;  %v16437_v62 = vld [vmem:[%s17262_s12 + $0x17dc] sm:$0xf]  ;;  %v13571_v3 = vld [vmem:[%s17262_s12 + $0x1820] sm:$0xf0] }
 0x487   : > { %9900 = vmatpush.bf16.msra.mxu1 %v11846_v20  ;;  %v16941_v20 = vld [vmem:[%s17262_s12 + $0x279c] sm:$0xf] }
 0x488   : > { %9913 = vmatpush.bf16.msra.mxu2 %v12422_v34  ;;  %v15014_v34 = vor.u32 %v16797_v57, %v15011_v63  ;;  %v15590_v48 = vor.u32 %v16941_v20, %v15587_v26  ;;  %v15299_v20 = vld [vmem:[%s17262_s12 + $0x25a0] sm:$0xf0] }
 0x489   : > { %9926 = vmatpush.bf16.msra.mxu3 %v12998_v6  ;;  %v14939_v6 = vld [vmem:[%s17262_s12 + $0x22d0] sm:$0xf0] }
 0x48a   : > { %9888 = vmatpush.bf16.msra.mxu0 %v11198_v61  ;;  %v14942_v58 = vor.u32 %v16779_v12, %v14939_v6  ;;  %v16473_v61 = vld [vmem:[%s17262_s12 + $0x18fc] sm:$0xf]  ;;  %v14075_v12 = vld [vmem:[%s17262_s12 + $0x1c10] sm:$0xf0]  ;;  %v16707_v6 = vld [vmem:[%s17262_s12 + $0x204c] sm:$0xf] }
 0x48b   : > { %9901 = vmatpush.bf16.msra.mxu1 %v11774_v30  ;;  %v13715_v30 = vld [vmem:[%s17262_s12 + $0x1940] sm:$0xf0] }
 0x48c   : > { %9914 = vmatpush.bf16.msra.mxu2 %v12350_v2  ;;  %v14867_v2 = vld [vmem:[%s17262_s12 + $0x2240] sm:$0xf0]  ;;  %v13718_v19 = vor.u32 %v16473_v61, %v13715_v30  ;;  %v13502_v61 = vor.u32 %v16419_v35, %v13499_v36  ;;  %v15227_v30 = vld [vmem:[%s17262_s12 + $0x2510] sm:$0xf0]  ;;  %v10913_v35 = vld [vmem:[%s17262_s12 + $0x310] sm:$0xf] }
 0x48d   : > { %9927 = vmatpush.bf16.msra.mxu3 %v12926_v5  ;;  %v15443_v5 = vld [vmem:[%s17262_s12 + $0x26c0] sm:$0xf0]  ;;  %v14870_v8 = vor.u32 %v16761_v37, %v14867_v2  ;;  %v14078_v37 = vor.u32 %v16563_v38, %v14075_v12  ;;  %v15781_v36 = vld [vmem:[%s17262_s12 + $0x354] sm:$0xf0]  ;;  %v11489_v38 = vld [vmem:[%s17262_s12 + $0x790] sm:$0xf] }
 0x48e   : > { %9889 = vmatpush.bf16.msra.mxu0 %v11126_v17  ;;  %v9683_v11 = vpop.f32.mrf.mxu0  ;;  %v15446_v43 = vor.u32 %v16905_v4, %v15443_v5  ;;  %v16689_v4 = vld [vmem:[%s17262_s12 + $0x1fbc] sm:$0xf]  ;;  %v14579_v5 = vld [vmem:[%s17262_s12 + $0x2000] sm:$0xf0]  ;;  %v15925_v12 = vld [vmem:[%s17262_s12 + $0x7d4] sm:$0xf0] }
 0x48f   : > { %9902 = vmatpush.bf16.msra.mxu1 %v11702_v14  ;;  %v9684_v17 = vadd.f32 %v9683_v11, %v19842_v32  ;;  %v14219_v14 = vld [vmem:[%s17262_s12 + $0x1d30] sm:$0xf0]  ;;  %v15230_v11 = vor.u32 %v16851_v46, %v15227_v30  ;;  %v10914_v46 = vor.u32 %v15781_v36, %v10913_v35  ;;  %v10841_v30 = vld [vmem:[%s17262_s12 + $0x280] sm:$0xf]  ;;  %v10625_v35 = vld [vmem:[%s17262_s12 + $0xd0] sm:$0xf] }
 0x490   : > { %9915 = vmatpush.bf16.msra.mxu2 %v12278_v51  ;;  %v9696_v51 = vpop.f32.mrf.mxu1  ;;  %v14222_v32 = vor.u32 %v16599_v52, %v14219_v14  ;;  %v16833_v52 = vld [vmem:[%s17262_s12 + $0x243c] sm:$0xf]  ;;  %v15155_v14 = vld [vmem:[%s17262_s12 + $0x2480] sm:$0xf0]  ;;  %v15709_v36 = vld [vmem:[%s17262_s12 + $0x114] sm:$0xf0] }
 0x491   : > { %9928 = vmatpush.bf16.msra.mxu3 %v12854_v25  ;;  %9890 = vmatmul.bf16.vlgmr.msra.gmra.mxu0 %v17401_v27  ;;  %v9697_v56 = vadd.f32 %v9696_v51, %v9684_v17  ;;  %v16725_v25 = vld [vmem:[%s17262_s12 + $0x20dc] sm:$0xf]  ;;  %v13430_v17 = vor.u32 %v16401_v0, %v13427_v9  ;;  %v15763_v0 = vld [vmem:[%s17262_s12 + $0x2c4] sm:$0xf0]  ;;  %v11417_v9 = vld [vmem:[%s17262_s12 + $0x700] sm:$0xf] }
 0x492   : > { %9934 = vmatpush.bf16.msrb.mxu0 %v13934_v24  ;;  %9903 = vmatmul.bf16.vlgmr.msra.gmra.mxu1 %v17392_v21  ;;  %v13646_v24 = vor.u32 %v16455_v13, %v13643_v15  ;;  %v11633_v13 = vld [vmem:[%s17262_s12 + $0x8b0] sm:$0xf]  ;;  %v15961_v15 = vld [vmem:[%s17262_s12 + $0x8f4] sm:$0xf0] }
 0x493   : > { %9947 = vmatpush.bf16.msrb.mxu1 %v14510_v47  ;;  %9916 = vmatmul.bf16.vlgmr.msra.gmra.mxu2 %v17396_v23  ;;  %v15371_v47 = vld [vmem:[%s17262_s12 + $0x2630] sm:$0xf0] }
 0x494   : > { %9960 = vmatpush.bf16.msrb.mxu2 %v15086_v39  ;;  %9929 = vmatmul.bf16.vlgmr.msra.gmra.mxu3 %v17448_v29  ;;  %v14798_v39 = vor.u32 %v16743_v55, %v14795_v53  ;;  %v15374_v57 = vor.u32 %v16887_v40, %v15371_v47  ;;  %v12209_v55 = vld [vmem:[%s17262_s12 + $0xd30] sm:$0xf]  ;;  %v16105_v53 = vld [vmem:[%s17262_s12 + $0xd74] sm:$0xf0] }
 0x495   : > { %9973 = vmatpush.bf16.msrb.mxu3 %v15662_v54  ;;  %v13574_v54 = vor.u32 %v16437_v62, %v13571_v3  ;;  %v16249_v40 = vld [vmem:[%s17262_s12 + $0x11f4] sm:$0xf0]  ;;  %v12210_v62 = vor.u32 %v16105_v53, %v12209_v55  ;;  %v10985_v3 = vld [vmem:[%s17262_s12 + $0x3a0] sm:$0xf] }
 0x496   : > { %9935 = vmatpush.bf16.msrb.mxu0 %v13862_v18  ;;  %v9709_v63 = vpop.f32.mrf.mxu2  ;;  %v16869_v18 = vld [vmem:[%s17262_s12 + $0x255c] sm:$0xf]  ;;  %v9685_v10 = vpop.f32.mrf.mxu0  ;;  %v15889_v53 = vld [vmem:[%s17262_s12 + $0x6b4] sm:$0xf0] }
 0x497   : > { %9948 = vmatpush.bf16.msrb.mxu1 %v14438_v31  ;;  %v9710_v26 = vadd.f32 %v9709_v63, %v9697_v56  ;;  %v14150_v31 = vor.u32 %v16581_v41, %v14147_v59  ;;  %v15302_v60 = vor.u32 %v16869_v18, %v15299_v20  ;;  %v12785_v56 = vld [vmem:[%s17262_s12 + $0x11b0] sm:$0xf]  ;;  %v15799_v41 = vld [vmem:[%s17262_s12 + $0x3e4] sm:$0xf0]  ;;  %v11561_v59 = vld [vmem:[%s17262_s12 + $0x820] sm:$0xf] }
 0x498   : > { %9961 = vmatpush.bf16.msrb.mxu2 %v15014_v34  ;;  %v14726_v34 = vor.u32 %v16725_v25, %v14723_v1  ;;  %v12786_v1 = vor.u32 %v16249_v40, %v12785_v56  ;;  %v12137_v63 = vld [vmem:[%s17262_s12 + $0xca0] sm:$0xf]  ;;  %v16231_v20 = vld [vmem:[%s17262_s12 + $0x1164] sm:$0xf0]  ;;  %v16177_v56 = vld [vmem:[%s17262_s12 + $0xfb4] sm:$0xf0] }
 0x499   : > { %9974 = vmatpush.bf16.msrb.mxu3 %v15590_v48  ;;  %v14651_v48 = vld [vmem:[%s17262_s12 + $0x2090] sm:$0xf0]  ;;  %v12713_v18 = vld [vmem:[%s17262_s12 + $0x1120] sm:$0xf] }
 0x49a   : > { %9936 = vmatpush.bf16.msrb.mxu0 %v13790_v45  ;;  %v9722_v45 = vpop.f32.mrf.mxu3  ;;  %v14654_v2 = vor.u32 %v16707_v6, %v14651_v48  ;;  %v12714_v10 = vor.u32 %v16231_v20, %v12713_v18  ;;  %v12065_v6 = vld [vmem:[%s17262_s12 + $0xc10] sm:$0xf]  ;;  %v16069_v48 = vld [vmem:[%s17262_s12 + $0xc54] sm:$0xf0] }
 0x49b   : > { %9949 = vmatpush.bf16.msrb.mxu1 %v14366_v50  ;;  %v9698_v50 = vpop.f32.mrf.mxu1 }
 0x49c   : > { %9962 = vmatpush.bf16.msrb.mxu2 %v14942_v58  ;;  %v19912_v58 = vadd.f32 %v9722_v45, %v9710_v26  ;;  %v10986_v26 = vor.u32 %v15799_v41, %v10985_v3  ;;  %v12641_v45 = vld [vmem:[%s17262_s12 + $0x1090] sm:$0xf]  ;;  %v11490_v50 = vor.u32 %v15925_v12, %v11489_v38  ;;  %v11273_v3 = vld [vmem:[%s17262_s12 + $0x5e0] sm:$0xf]  ;;  %v15871_v41 = vld [vmem:[%s17262_s12 + $0x624] sm:$0xf0] }
 0x49d   : > { %9975 = vmatpush.bf16.msrb.mxu3 %v15518_v44  ;;  %v16545_v44 = vld [vmem:[%s17262_s12 + $0x1b3c] sm:$0xf]  ;;  %v11201_v38 = vld [vmem:[%s17262_s12 + $0x550] sm:$0xf]  ;;  %v15853_v12 = vld [vmem:[%s17262_s12 + $0x594] sm:$0xf0] }
 0x49e   : > { %9937 = vmatpush.bf16.msrb.mxu0 %v13718_v19  ;;  %v14003_v19 = vld [vmem:[%s17262_s12 + $0x1b80] sm:$0xf0] }
 0x49f   : > { %9950 = vmatpush.bf16.msrb.mxu1 %v14294_v16  ;;  %v11057_v16 = vld [vmem:[%s17262_s12 + $0x430] sm:$0xf]  ;;  %v14006_v51 = vor.u32 %v16545_v44, %v14003_v19  ;;  %v11993_v44 = vld [vmem:[%s17262_s12 + $0xb80] sm:$0xf]  ;;  %v16051_v19 = vld [vmem:[%s17262_s12 + $0xbc4] sm:$0xf0] }
 0x4a0   : > { %9963 = vmatpush.bf16.msrb.mxu2 %v14870_v8  ;;  %v15817_v8 = vld [vmem:[%s17262_s12 + $0x474] sm:$0xf0] }
 0x4a1   : > { %9976 = vmatpush.bf16.msrb.mxu3 %v15446_v43  ;;  %v9711_v43 = vpop.f32.mrf.mxu2  ;;  %v11058_v47 = vor.u32 %v15817_v8, %v11057_v16 }
 0x4a2   : > { %9938 = vmatpush.bf16.msrb.mxu0 %v13646_v24  ;;  %v14582_v24 = vor.u32 %v16689_v4, %v14579_v5  ;;  %v9724_v25 = vpop.f32.mrf.mxu3  ;;  %v12569_v4 = vld [vmem:[%s17262_s12 + $0x1000] sm:$0xf]  ;;  %v10842_v5 = vor.u32 %v15763_v0, %v10841_v30  ;;  %v11921_v43 = vld [vmem:[%s17262_s12 + $0xaf0] sm:$0xf]  ;;  %v15691_v30 = vld [vmem:[%s17262_s12 + $0x84] sm:$0xf0]  ;;  %v11202_v0 = vor.u32 %v15853_v12, %v11201_v38 }
 0x4a3   : > { %9951 = vmatpush.bf16.msrb.mxu1 %v14222_v32  ;;  %v11634_v32 = vor.u32 %v15961_v15, %v11633_v13  ;;  %v10769_v13 = vld [vmem:[%s17262_s12 + $0x1f0] sm:$0xf]  ;;  %v15745_v15 = vld [vmem:[%s17262_s12 + $0x234] sm:$0xf0] }
 0x4a4   : > { %9964 = vmatpush.bf16.msrb.mxu2 %v14798_v39  ;;  %v15158_v39 = vor.u32 %v16833_v52, %v15155_v14  ;;  %v11345_v52 = vld [vmem:[%s17262_s12 + $0x670] sm:$0xf]  ;;  %v16645_v12 = vld [vmem:[%s17262_s12 + $0x1e54] sm:$0xf0] }
 0x4a5   : > { %9977 = vmatpush.bf16.msrb.mxu3 %v15374_v57  ;;  %v15943_v57 = vld [vmem:[%s17262_s12 + $0x864] sm:$0xf0] }
 0x4a6   : > { %9939 = vmatpush.bf16.msrb.mxu0 %v13574_v54  ;;  %v16087_v54 = vld [vmem:[%s17262_s12 + $0xce4] sm:$0xf0] }
 0x4a7   : > { %9952 = vmatpush.bf16.msrb.mxu1 %v14150_v31  ;;  %v11562_v31 = vor.u32 %v15943_v57, %v11561_v59  ;;  %v16015_v57 = vld [vmem:[%s17262_s12 + $0xaa4] sm:$0xf0] }
 0x4a8   : > { %9965 = vmatpush.bf16.msrb.mxu2 %v14726_v34  ;;  %v12138_v34 = vor.u32 %v16087_v54, %v12137_v63  ;;  %v12425_v63 = vld [vmem:[%s17262_s12 + $0xee0] sm:$0xf]  ;;  %v16159_v54 = vld [vmem:[%s17262_s12 + $0xf24] sm:$0xf0] }
 0x4a9   : > { %9978 = vmatpush.bf16.msrb.mxu3 %v15302_v60  ;;  %v16213_v60 = vld [vmem:[%s17262_s12 + $0x10d4] sm:$0xf0] }
 0x4aa   : > { %9940 = vmatpush.bf16.msrb.mxu0 %v13502_v61  ;;  %v12066_v61 = vor.u32 %v16069_v48, %v12065_v6  ;;  %v11777_v6 = vld [vmem:[%s17262_s12 + $0x9d0] sm:$0xf]  ;;  %v15997_v48 = vld [vmem:[%s17262_s12 + $0xa14] sm:$0xf0] }
 0x4ab   : > { %9953 = vmatpush.bf16.msrb.mxu1 %v14078_v37  ;;  %v12642_v37 = vor.u32 %v16213_v60, %v12641_v45  ;;  %v12353_v60 = vld [vmem:[%s17262_s12 + $0xe50] sm:$0xf] }
 0x4ac   : > { %9966 = vmatpush.bf16.msrb.mxu2 %v14654_v2  ;;  %v15907_v2 = vld [vmem:[%s17262_s12 + $0x744] sm:$0xf0] }
 0x4ad   : > { %9979 = vmatpush.bf16.msrb.mxu3 %v15230_v11  ;;  %v11418_v8 = vor.u32 %v15907_v2, %v11417_v9  ;;  %v11994_v11 = vor.u32 %v16051_v19, %v11993_v44  ;;  %v11778_v9 = vor.u32 %v15997_v48, %v11777_v6  ;;  %v15835_v2 = vld [vmem:[%s17262_s12 + $0x504] sm:$0xf0]  ;;  %v11705_v44 = vld [vmem:[%s17262_s12 + $0x940] sm:$0xf]  ;;  %v14945_v6 = vld [vmem:[%s17262_s12 + $0x2290] sm:$0xf] }
 0x4ae   : > { %9941 = vmatpush.bf16.msrb.mxu0 %v13430_v17  ;;  %v9735_v16 = vpop.f32.mrf.mxu0  ;;  %v16789_v48 = vld [vmem:[%s17262_s12 + $0x22d4] sm:$0xf0] }
 0x4af   : > { %9954 = vmatpush.bf16.msrb.mxu1 %v14006_v51  ;;  %v9736_v17 = vadd.f32 %v9735_v16, %v19912_v58  ;;  %v9748_v14 = vpop.f32.mrf.mxu1  ;;  %v16033_v51 = vld [vmem:[%s17262_s12 + $0xb34] sm:$0xf0]  ;;  %v11346_v58 = vor.u32 %v15889_v53, %v11345_v52  ;;  %v13937_v16 = vld [vmem:[%s17262_s12 + $0x1ab0] sm:$0xf] }
 0x4b0   : > { %9967 = vmatpush.bf16.msrb.mxu2 %v14582_v24  ;;  %v12497_v24 = vld [vmem:[%s17262_s12 + $0xf70] sm:$0xf]  ;;  %v16681_v52 = vld [vmem:[%s17262_s12 + $0x1f74] sm:$0xf0] }
 0x4b1   : > { %9980 = vmatpush.bf16.msrb.mxu3 %v15158_v39  ;;  %9942 = vmatmul.bf16.vlgmr.msrb.gmra.mxu0 %v17452_v33  ;;  %v9749_v40 = vadd.f32 %v9748_v14, %v9736_v17  ;;  %v11922_v39 = vor.u32 %v16033_v51, %v11921_v43  ;;  %v12498_v25 = vor.u32 %v16177_v56, %v12497_v24  ;;  %v12281_v17 = vld [vmem:[%s17262_s12 + $0xdc0] sm:$0xf]  ;;  %v16123_v14 = vld [vmem:[%s17262_s12 + $0xe04] sm:$0xf0]  ;;  %v15089_v24 = vld [vmem:[%s17262_s12 + $0x23b0] sm:$0xf] }
 0x4b2   : > { %9986 = vmatpush.bf16.msra.mxu0 %v11058_v47  ;;  %9955 = vmatmul.bf16.vlgmr.msrb.gmra.mxu1 %v17446_v28  ;;  %v10770_v47 = vor.u32 %v15745_v15, %v10769_v13  ;;  %v16825_v56 = vld [vmem:[%s17262_s12 + $0x23f4] sm:$0xf0] }
 0x4b3   : > { %9999 = vmatpush.bf16.msra.mxu1 %v11634_v32  ;;  %9968 = vmatmul.bf16.vlgmr.msrb.gmra.mxu2 %v17462_v42  ;;  %v10697_v32 = vld [vmem:[%s17262_s12 + $0x160] sm:$0xf]  ;;  %v10247_v59 = vrot.slane %v9749_v40, 6 }
 0x4b4   : > { %10012 = vmatpush.bf16.msra.mxu2 %v12210_v62  ;;  %9981 = vmatmul.bf16.vlgmr.msrb.gmra.mxu3 %v19797_v49  ;;  %v16195_v49 = vld [vmem:[%s17262_s12 + $0x1044] sm:$0xf0] }
 0x4b5   : > { %10025 = vmatpush.bf16.msra.mxu3 %v12786_v1  ;;  %v12570_v55 = vor.u32 %v16195_v49, %v12569_v4  ;;  %v15727_v62 = vld [vmem:[%s17262_s12 + $0x1a4] sm:$0xf0]  ;;  %v11849_v1 = vld [vmem:[%s17262_s12 + $0xa60] sm:$0xf]  ;;  %v19978_v18 = vsel %vm10251_vm0, %v19820_v7, %v10247_v59  ;;  %v12426_v7 = vor.u32 %v16159_v54, %v12425_v63  ;;  %v13361_v49 = vld [vmem:[%s17262_s12 + $0x1630] sm:$0xf]  ;;  %v15090_v59 = vor.u32 %v16825_v56, %v15089_v24 }
 0x4b6   : > { %9987 = vmatpush.bf16.msra.mxu0 %v10986_v26  ;;  %v10698_v20 = vor.u32 %v15727_v62, %v10697_v32  ;;  %v9761_v26 = vpop.f32.mrf.mxu2  ;;  %v15979_v4 = vld [vmem:[%s17262_s12 + $0x984] sm:$0xf0]  ;;  %v13289_v32 = vld [vmem:[%s17262_s12 + $0x15a0] sm:$0xf]  ;;  %v16753_v24 = vld [vmem:[%s17262_s12 + $0x21b4] sm:$0xf0] }
 0x4b7   : > { %10000 = vmatpush.bf16.msra.mxu1 %v11562_v31  ;;  %v11274_v31 = vor.u32 %v15871_v41, %v11273_v3  ;;  %v9750_v45 = vpop.f32.mrf.mxu1  ;;  %v9774_v13 = vpop.f32.mrf.mxu3  ;;  %v11706_v51 = vor.u32 %v15979_v4, %v11705_v44  ;;  %v16375_v62 = vld [vmem:[%s17262_s12 + $0x15e4] sm:$0xf0]  ;;  %v13865_v3 = vld [vmem:[%s17262_s12 + $0x1a20] sm:$0xf] }
 0x4b8   : > { %10013 = vmatpush.bf16.msra.mxu2 %v12138_v34  ;;  %v11850_v34 = vor.u32 %v16015_v57, %v11849_v1  ;;  %v20002_v53 = vadd.f32 %v9774_v13, %v9761_v26  ;;  %v16519_v41 = vld [vmem:[%s17262_s12 + $0x1a64] sm:$0xf0]  ;;  %v15017_v57 = vld [vmem:[%s17262_s12 + $0x2320] sm:$0xf]  ;;  %v13290_v54 = vor.u32 %v16375_v62, %v13289_v32  ;;  %v13217_v26 = vld [vmem:[%s17262_s12 + $0x1510] sm:$0xf] }
 0x4b9   : > { %10026 = vmatpush.bf16.msra.mxu3 %v12714_v10  ;;  %v9737_v10 = vpop.f32.mrf.mxu0  ;;  %v16663_v1 = vld [vmem:[%s17262_s12 + $0x1ee4] sm:$0xf0]  ;;  %v14873_v44 = vld [vmem:[%s17262_s12 + $0x2200] sm:$0xf]  ;;  %v13649_v13 = vld [vmem:[%s17262_s12 + $0x1870] sm:$0xf] }
 0x4ba   : > { %9988 = vmatpush.bf16.msra.mxu0 %v10914_v46  ;;  %v16141_v46 = vld [vmem:[%s17262_s12 + $0xe94] sm:$0xf0]  ;;  %v16807_v63 = vld [vmem:[%s17262_s12 + $0x2364] sm:$0xf0] }
 0x4bb   : > { %10001 = vmatpush.bf16.msra.mxu1 %v11490_v50  ;;  %v10626_v50 = vor.u32 %v15709_v36, %v10625_v35  ;;  %v12354_v19 = vor.u32 %v16141_v46, %v12353_v60  ;;  %v13793_v35 = vld [vmem:[%s17262_s12 + $0x1990] sm:$0xf]  ;;  %v16501_v36 = vld [vmem:[%s17262_s12 + $0x19d4] sm:$0xf0]  ;;  %v15018_v10 = vor.u32 %v16807_v63, %v15017_v57  ;;  %v13145_v46 = vld [vmem:[%s17262_s12 + $0x1480] sm:$0xf] }
 0x4bc   : > { %10014 = vmatpush.bf16.msra.mxu2 %v12066_v61  ;;  %v10553_v61 = vld [vmem:[%s17262_s12 + $0x40] sm:$0xf]  ;;  %v13794_v60 = vor.u32 %v16501_v36, %v13793_v35  ;;  %v16447_v62 = vld [vmem:[%s17262_s12 + $0x1824] sm:$0xf0]  ;;  %v16285_v35 = vld [vmem:[%s17262_s12 + $0x1314] sm:$0xf0] }
 0x4bd   : > { %10027 = vmatpush.bf16.msra.mxu3 %v12642_v37  ;;  %v11129_v37 = vld [vmem:[%s17262_s12 + $0x4c0] sm:$0xf]  ;;  %v10554_v15 = vor.u32 %v15691_v30, %v10553_v61  ;;  %v16339_v61 = vld [vmem:[%s17262_s12 + $0x14c4] sm:$0xf0]  ;;  %v13505_v36 = vld [vmem:[%s17262_s12 + $0x1750] sm:$0xf] }
 0x4be   : > { %9989 = vmatpush.bf16.msra.mxu0 %v10842_v5  ;;  %v16393_v5 = vld [vmem:[%s17262_s12 + $0x1674] sm:$0xf0]  ;;  %v11130_v43 = vor.u32 %v15835_v2, %v11129_v37  ;;  %v13721_v30 = vld [vmem:[%s17262_s12 + $0x1900] sm:$0xf]  ;;  %v16627_v2 = vld [vmem:[%s17262_s12 + $0x1dc4] sm:$0xf0]  ;;  %v13146_v4 = vor.u32 %v16339_v61, %v13145_v46 }
 0x4bf   : > { %10002 = vmatpush.bf16.msra.mxu1 %v11418_v8  ;;  %v16537_v8 = vld [vmem:[%s17262_s12 + $0x1af4] sm:$0xf0]  ;;  %v13362_v40 = vor.u32 %v16393_v5, %v13361_v49  ;;  %v9776_v38 = vpop.f32.mrf.mxu3  ;;  %v14297_v37 = vld [vmem:[%s17262_s12 + $0x1d80] sm:$0xf]  ;;  %v13073_v5 = vld [vmem:[%s17262_s12 + $0x13f0] sm:$0xf] }
 0x4c0   : > { %10015 = vmatpush.bf16.msra.mxu2 %v11994_v11  ;;  %v14513_v11 = vld [vmem:[%s17262_s12 + $0x1f30] sm:$0xf]  ;;  %v16429_v38 = vld [vmem:[%s17262_s12 + $0x1794] sm:$0xf0] }
 0x4c1   : > { %10028 = vmatpush.bf16.msra.mxu3 %v12570_v55  ;;  %v9763_v55 = vpop.f32.mrf.mxu2  ;;  %v13506_v61 = vor.u32 %v16429_v38, %v13505_v36  ;;  %v15916_v36 = vld [vmem:[%s17262_s12 + $0x794] sm:$0xf]  ;;  %v11491_v38 = vld [vmem:[%s17262_s12 + $0x7d8] sm:$0xf0] }
 0x4c2   : > { %9990 = vmatpush.bf16.msra.mxu0 %v10770_v47  ;;  %v13938_v47 = vor.u32 %v16537_v8, %v13937_v16  ;;  %v14298_v8 = vor.u32 %v16627_v2, %v14297_v37  ;;  %v16609_v55 = vld [vmem:[%s17262_s12 + $0x1d34] sm:$0xf0]  ;;  %v16411_v2 = vld [vmem:[%s17262_s12 + $0x1704] sm:$0xf0] }
 0x4c3   : > { %10003 = vmatpush.bf16.msra.mxu1 %v11346_v58  ;;  %v14514_v58 = vor.u32 %v16681_v52, %v14513_v11  ;;  %v16321_v11 = vld [vmem:[%s17262_s12 + $0x1434] sm:$0xf0] }
 0x4c4   : > { %10016 = vmatpush.bf16.msra.mxu2 %v11922_v39  ;;  %v12282_v39 = vor.u32 %v16123_v14, %v12281_v17  ;;  %v14225_v14 = vld [vmem:[%s17262_s12 + $0x1cf0] sm:$0xf] }
 0x4c5   : > { %10029 = vmatpush.bf16.msra.mxu3 %v12498_v25  ;;  %v14441_v25 = vld [vmem:[%s17262_s12 + $0x1ea0] sm:$0xf]  ;;  %v14226_v32 = vor.u32 %v16609_v55, %v14225_v14  ;;  %v16699_v55 = vld [vmem:[%s17262_s12 + $0x2004] sm:$0xf0] }
 0x4c6   : > { %9991 = vmatpush.bf16.msra.mxu0 %v10698_v20  ;;  %v13866_v20 = vor.u32 %v16519_v41, %v13865_v3  ;;  %v14153_v41 = vld [vmem:[%s17262_s12 + $0x1c60] sm:$0xf] }
 0x4c7   : > { %10004 = vmatpush.bf16.msra.mxu1 %v11274_v31  ;;  %v14442_v31 = vor.u32 %v16663_v1, %v14441_v25  ;;  %v14729_v25 = vld [vmem:[%s17262_s12 + $0x20e0] sm:$0xf]  ;;  %v16735_v1 = vld [vmem:[%s17262_s12 + $0x2124] sm:$0xf0] }
 0x4c8   : > { %10017 = vmatpush.bf16.msra.mxu2 %v11850_v34  ;;  %v16357_v34 = vld [vmem:[%s17262_s12 + $0x1554] sm:$0xf0]  ;;  %v14585_v14 = vld [vmem:[%s17262_s12 + $0x1fc0] sm:$0xf] }
 0x4c9   : > { %10030 = vmatpush.bf16.msra.mxu3 %v12426_v7  ;;  %v14369_v7 = vld [vmem:[%s17262_s12 + $0x1e10] sm:$0xf]  ;;  %v13218_v45 = vor.u32 %v16357_v34, %v13217_v26 }
 0x4ca   : > { %9992 = vmatpush.bf16.msra.mxu0 %v10626_v50  ;;  %v14370_v50 = vor.u32 %v16645_v12, %v14369_v7  ;;  %v14081_v7 = vld [vmem:[%s17262_s12 + $0x1bd0] sm:$0xf]  ;;  %v16573_v12 = vld [vmem:[%s17262_s12 + $0x1c14] sm:$0xf0] }
 0x4cb   : > { %10005 = vmatpush.bf16.msra.mxu1 %v11202_v0  ;;  %v16483_v0 = vld [vmem:[%s17262_s12 + $0x1944] sm:$0xf0]  ;;  %v14082_v37 = vor.u32 %v16573_v12, %v14081_v7  ;;  %v16060_v12 = vld [vmem:[%s17262_s12 + $0xc14] sm:$0xf] }
 0x4cc   : > { %10018 = vmatpush.bf16.msra.mxu2 %v11778_v9  ;;  %v14946_v9 = vor.u32 %v16789_v48, %v14945_v6  ;;  %v13722_v49 = vor.u32 %v16483_v0, %v13721_v30  ;;  %v12857_v30 = vld [vmem:[%s17262_s12 + $0x1240] sm:$0xf]  ;;  %v16267_v0 = vld [vmem:[%s17262_s12 + $0x1284] sm:$0xf0] }
 0x4cd   : > { %10031 = vmatpush.bf16.msra.mxu3 %v12354_v19  ;;  %v16771_v19 = vld [vmem:[%s17262_s12 + $0x2244] sm:$0xf0] }
 0x4ce   : > { %9993 = vmatpush.bf16.msra.mxu0 %v10554_v15  ;;  %v9787_v16 = vpop.f32.mrf.mxu0  ;;  %v16465_v15 = vld [vmem:[%s17262_s12 + $0x18b4] sm:$0xf0]  ;;  %v14874_v17 = vor.u32 %v16771_v19, %v14873_v44  ;;  %v14009_v44 = vld [vmem:[%s17262_s12 + $0x1b40] sm:$0xf]  ;;  %v16555_v19 = vld [vmem:[%s17262_s12 + $0x1b84] sm:$0xf0] }
 0x4cf   : > { %10006 = vmatpush.bf16.msra.mxu1 %v11130_v43  ;;  %v9788_v52 = vadd.f32 %v9787_v16, %v20002_v53  ;;  %v9800_v43 = vpop.f32.mrf.mxu1  ;;  %v13001_v53 = vld [vmem:[%s17262_s12 + $0x1360] sm:$0xf]  ;;  %v15808_v16 = vld [vmem:[%s17262_s12 + $0x434] sm:$0xf] }
 0x4d0   : > { %10019 = vmatpush.bf16.msra.mxu2 %v11706_v51  ;;  %v14801_v51 = vld [vmem:[%s17262_s12 + $0x2170] sm:$0xf] }
 0x4d1   : > { %10032 = vmatpush.bf16.msra.mxu3 %v12282_v39  ;;  %9994 = vmatmul.bf16.vlgmr.msra.gmra.mxu0 %v17394_v22  ;;  %v9801_v56 = vadd.f32 %v9800_v43, %v9788_v52  ;;  %v13577_v39 = vld [vmem:[%s17262_s12 + $0x17e0] sm:$0xf]  ;;  %v14802_v3 = vor.u32 %v16753_v24, %v14801_v51  ;;  %v12858_v52 = vor.u32 %v16267_v0, %v12857_v30  ;;  %v16096_v24 = vld [vmem:[%s17262_s12 + $0xd34] sm:$0xf]  ;;  %v10843_v30 = vld [vmem:[%s17262_s12 + $0x2c8] sm:$0xf0] }
 0x4d2   : > { %10038 = vmatpush.bf16.msrb.mxu0 %v13362_v40  ;;  %10007 = vmatmul.bf16.vlgmr.msra.gmra.mxu1 %v17401_v27  ;;  %v13074_v40 = vor.u32 %v16321_v11, %v13073_v5  ;;  %v16969_v5 = vld [vmem:[%s17262_s12 + $0x2874] sm:$0xf0]  ;;  %v15952_v11 = vld [vmem:[%s17262_s12 + $0x8b4] sm:$0xf]  ;;  %v14010_v43 = vor.u32 %v16555_v19, %v14009_v44  ;;  %v15898_v0 = vld [vmem:[%s17262_s12 + $0x704] sm:$0xf] }
 0x4d3   : > { %10051 = vmatpush.bf16.msrb.mxu1 %v13938_v47  ;;  %10020 = vmatmul.bf16.vlgmr.msra.gmra.mxu2 %v17392_v21  ;;  %v13650_v47 = vor.u32 %v16465_v15, %v13649_v13  ;;  %v11635_v13 = vld [vmem:[%s17262_s12 + $0x8f8] sm:$0xf0]  ;;  %v16042_v44 = vld [vmem:[%s17262_s12 + $0xb84] sm:$0xf]  ;;  %v11995_v19 = vld [vmem:[%s17262_s12 + $0xbc8] sm:$0xf0] }
 0x4d4   : > { %10064 = vmatpush.bf16.msrb.mxu2 %v14514_v58  ;;  %10033 = vmatmul.bf16.vlgmr.msra.gmra.mxu3 %v17396_v23  ;;  %v16303_v58 = vld [vmem:[%s17262_s12 + $0x13a4] sm:$0xf0] }
 0x4d5   : > { %10077 = vmatpush.bf16.msrb.mxu3 %v15090_v59  ;;  %v16591_v59 = vld [vmem:[%s17262_s12 + $0x1ca4] sm:$0xf0]  ;;  %v13002_v63 = vor.u32 %v16303_v58, %v13001_v53  ;;  %v15593_v53 = vld [vmem:[%s17262_s12 + $0x27a0] sm:$0xf]  ;;  %v15790_v58 = vld [vmem:[%s17262_s12 + $0x3a4] sm:$0xf] }
 0x4d6   : > { %10039 = vmatpush.bf16.msrb.mxu0 %v13290_v54  ;;  %v9813_v57 = vpop.f32.mrf.mxu2  ;;  %v13578_v54 = vor.u32 %v16447_v62, %v13577_v39  ;;  %v14154_v34 = vor.u32 %v16591_v59, %v14153_v41  ;;  %v14586_v62 = vor.u32 %v16699_v55, %v14585_v14  ;;  %v15934_v41 = vld [vmem:[%s17262_s12 + $0x824] sm:$0xf]  ;;  %v11563_v59 = vld [vmem:[%s17262_s12 + $0x868] sm:$0xf0]  ;;  %v11998_v55 = vor.u32 %v16042_v44, %v11995_v19  ;;  %v12787_v19 = vld [vmem:[%s17262_s12 + $0x11f8] sm:$0xf0] }
 0x4d7   : > { %10052 = vmatpush.bf16.msrb.mxu1 %v13866_v20  ;;  %v12929_v20 = vld [vmem:[%s17262_s12 + $0x12d0] sm:$0xf]  ;;  %v9814_v26 = vadd.f32 %v9813_v57, %v9801_v56  ;;  %v9802_v6 = vpop.f32.mrf.mxu1  ;;  %v9826_v48 = vpop.f32.mrf.mxu3  ;;  %v12211_v56 = vld [vmem:[%s17262_s12 + $0xd78] sm:$0xf0]  ;;  %v16078_v57 = vld [vmem:[%s17262_s12 + $0xca4] sm:$0xf] }
 0x4d8   : > { %10065 = vmatpush.bf16.msrb.mxu2 %v14442_v31  ;;  %v9789_v31 = vpop.f32.mrf.mxu0  ;;  %v12067_v6 = vld [vmem:[%s17262_s12 + $0xc58] sm:$0xf0] }
 0x4d9   : > { %10078 = vmatpush.bf16.msrb.mxu3 %v15018_v10  ;;  %v14730_v10 = vor.u32 %v16735_v1, %v14729_v25  ;;  %v20059_v46 = vadd.f32 %v9826_v48, %v9814_v26  ;;  %v12214_v25 = vor.u32 %v16096_v24, %v12211_v56  ;;  %v15521_v26 = vld [vmem:[%s17262_s12 + $0x2710] sm:$0xf]  ;;  %v16933_v31 = vld [vmem:[%s17262_s12 + $0x2754] sm:$0xf0]  ;;  %v11923_v24 = vld [vmem:[%s17262_s12 + $0xb38] sm:$0xf0] }
 0x4da   : > { %10040 = vmatpush.bf16.msrb.mxu0 %v13218_v45  ;;  %v14657_v45 = vld [vmem:[%s17262_s12 + $0x2050] sm:$0xf]  ;;  %v15522_v7 = vor.u32 %v16933_v31, %v15521_v26  ;;  %v15700_v26 = vld [vmem:[%s17262_s12 + $0xd4] sm:$0xf]  ;;  %v10627_v31 = vld [vmem:[%s17262_s12 + $0x118] sm:$0xf0] }
 0x4db   : > { %10053 = vmatpush.bf16.msrb.mxu1 %v13794_v60  ;;  %v16717_v60 = vld [vmem:[%s17262_s12 + $0x2094] sm:$0xf0] }
 0x4dc   : > { %10066 = vmatpush.bf16.msrb.mxu2 %v14370_v50  ;;  %v12930_v50 = vor.u32 %v16285_v35, %v12929_v20  ;;  %v11566_v20 = vor.u32 %v15934_v41, %v11563_v59  ;;  %v10915_v35 = vld [vmem:[%s17262_s12 + $0x358] sm:$0xf0] }
 0x4dd   : > { %10079 = vmatpush.bf16.msrb.mxu3 %v14946_v9  ;;  %v13433_v9 = vld [vmem:[%s17262_s12 + $0x16c0] sm:$0xf] }
 0x4de   : > { %10041 = vmatpush.bf16.msrb.mxu0 %v13146_v4  ;;  %v14658_v4 = vor.u32 %v16717_v60, %v14657_v45  ;;  %v9815_v15 = vpop.f32.mrf.mxu2  ;;  %v11494_v45 = vor.u32 %v15916_v36, %v11491_v38  ;;  %v15449_v60 = vld [vmem:[%s17262_s12 + $0x2680] sm:$0xf] }
 0x4df   : > { %10054 = vmatpush.bf16.msrb.mxu1 %v13722_v49  ;;  %v15665_v49 = vld [vmem:[%s17262_s12 + $0x2830] sm:$0xf]  ;;  %v9828_v39 = vpop.f32.mrf.mxu3 }
 0x4e0   : > { %10067 = vmatpush.bf16.msrb.mxu2 %v14298_v8  ;;  %v11059_v8 = vld [vmem:[%s17262_s12 + $0x478] sm:$0xf0]  ;;  %v15666_v51 = vor.u32 %v16969_v5, %v15665_v49  ;;  %v15377_v5 = vld [vmem:[%s17262_s12 + $0x25f0] sm:$0xf]  ;;  %v15862_v39 = vld [vmem:[%s17262_s12 + $0x5e4] sm:$0xf] }
 0x4e1   : > { %10080 = vmatpush.bf16.msrb.mxu3 %v14874_v17  ;;  %v13434_v17 = vor.u32 %v16411_v2, %v13433_v9  ;;  %v11419_v9 = vld [vmem:[%s17262_s12 + $0x748] sm:$0xf0] }
 0x4e2   : > { %10042 = vmatpush.bf16.msrb.mxu0 %v13074_v40  ;;  %v11062_v40 = vor.u32 %v15808_v16, %v11059_v8  ;;  %v11422_v49 = vor.u32 %v15898_v0, %v11419_v9  ;;  %v16897_v16 = vld [vmem:[%s17262_s12 + $0x2634] sm:$0xf0]  ;;  %v15736_v8 = vld [vmem:[%s17262_s12 + $0x1f4] sm:$0xf]  ;;  %v10555_v0 = vld [vmem:[%s17262_s12 + $0x88] sm:$0xf0] }
 0x4e3   : > { %10055 = vmatpush.bf16.msrb.mxu1 %v13650_v47  ;;  %v11638_v47 = vor.u32 %v15952_v11, %v11635_v13  ;;  %v10771_v13 = vld [vmem:[%s17262_s12 + $0x238] sm:$0xf0]  ;;  %v15826_v9 = vld [vmem:[%s17262_s12 + $0x4c4] sm:$0xf] }
 0x4e4   : > { %10068 = vmatpush.bf16.msrb.mxu2 %v14226_v32  ;;  %v16951_v32 = vld [vmem:[%s17262_s12 + $0x27e4] sm:$0xf0]  ;;  %v10774_v56 = vor.u32 %v15736_v8, %v10771_v13  ;;  %v16528_v8 = vld [vmem:[%s17262_s12 + $0x1ab4] sm:$0xf] }
 0x4e5   : > { %10081 = vmatpush.bf16.msrb.mxu3 %v14802_v3  ;;  %v10987_v3 = vld [vmem:[%s17262_s12 + $0x3e8] sm:$0xf0]  ;;  %v15594_v1 = vor.u32 %v16951_v32, %v15593_v53  ;;  %v15305_v53 = vld [vmem:[%s17262_s12 + $0x2560] sm:$0xf]  ;;  %v16879_v32 = vld [vmem:[%s17262_s12 + $0x25a4] sm:$0xf0] }
 0x4e6   : > { %10043 = vmatpush.bf16.msrb.mxu0 %v13002_v63  ;;  %v12139_v63 = vld [vmem:[%s17262_s12 + $0xce8] sm:$0xf0]  ;;  %v15306_v59 = vor.u32 %v16879_v32, %v15305_v53  ;;  %v16366_v53 = vld [vmem:[%s17262_s12 + $0x15a4] sm:$0xf] }
 0x4e7   : > { %10056 = vmatpush.bf16.msrb.mxu1 %v13578_v54  ;;  %v10990_v54 = vor.u32 %v15790_v58, %v10987_v3  ;;  %v15718_v58 = vld [vmem:[%s17262_s12 + $0x164] sm:$0xf]  ;;  %v13291_v32 = vld [vmem:[%s17262_s12 + $0x15e8] sm:$0xf0] }
 0x4e8   : > { %10069 = vmatpush.bf16.msrb.mxu2 %v14154_v34  ;;  %v15772_v34 = vld [vmem:[%s17262_s12 + $0x314] sm:$0xf] }
 0x4e9   : > { %10082 = vmatpush.bf16.msrb.mxu3 %v14730_v10  ;;  %v12142_v10 = vor.u32 %v16078_v57, %v12139_v63  ;;  %v10918_v48 = vor.u32 %v15772_v34, %v10915_v35  ;;  %v15844_v34 = vld [vmem:[%s17262_s12 + $0x554] sm:$0xf]  ;;  %v11203_v35 = vld [vmem:[%s17262_s12 + $0x598] sm:$0xf0] }
 0x4ea   : > { %10044 = vmatpush.bf16.msrb.mxu0 %v12930_v50  ;;  %v16915_v50 = vld [vmem:[%s17262_s12 + $0x26c4] sm:$0xf0] }
 0x4eb   : > { %10057 = vmatpush.bf16.msrb.mxu1 %v13506_v61  ;;  %v15754_v61 = vld [vmem:[%s17262_s12 + $0x284] sm:$0xf]  ;;  %v15450_v2 = vor.u32 %v16915_v50, %v15449_v60  ;;  %v10630_v60 = vor.u32 %v15700_v26, %v10627_v31  ;;  %v11206_v50 = vor.u32 %v15844_v34, %v11203_v35  ;;  %v12643_v26 = vld [vmem:[%s17262_s12 + $0x10d8] sm:$0xf0]  ;;  %v16348_v31 = vld [vmem:[%s17262_s12 + $0x1514] sm:$0xf] }
 0x4ec   : > { %10070 = vmatpush.bf16.msrb.mxu2 %v14082_v37  ;;  %v12070_v37 = vor.u32 %v16060_v12, %v12067_v6  ;;  %v15988_v6 = vld [vmem:[%s17262_s12 + $0x9d4] sm:$0xf]  ;;  %v13219_v34 = vld [vmem:[%s17262_s12 + $0x1558] sm:$0xf0] }
 0x4ed   : > { %10083 = vmatpush.bf16.msrb.mxu3 %v14658_v4  ;;  %v10846_v4 = vor.u32 %v15754_v61, %v10843_v30  ;;  %v16843_v61 = vld [vmem:[%s17262_s12 + $0x2484] sm:$0xf0]  ;;  %v15682_v30 = vld [vmem:[%s17262_s12 + $0x44] sm:$0xf]  ;;  %v16492_v35 = vld [vmem:[%s17262_s12 + $0x1994] sm:$0xf] }
 0x4ee   : > { %10045 = vmatpush.bf16.msrb.mxu0 %v12858_v52  ;;  %v9839_v11 = vpop.f32.mrf.mxu0  ;;  %v15880_v52 = vld [vmem:[%s17262_s12 + $0x674] sm:$0xf]  ;;  %v10558_v13 = vor.u32 %v15682_v30, %v10555_v0  ;;  %v13723_v30 = vld [vmem:[%s17262_s12 + $0x1948] sm:$0xf0] }
 0x4ef   : > { %10058 = vmatpush.bf16.msrb.mxu1 %v13434_v17  ;;  %v9852_v15 = vpop.f32.mrf.mxu1  ;;  %v11347_v17 = vld [vmem:[%s17262_s12 + $0x6b8] sm:$0xf0]  ;;  %v9840_v14 = vadd.f32 %v9839_v11, %v20059_v46  ;;  %v10699_v46 = vld [vmem:[%s17262_s12 + $0x1a8] sm:$0xf0] }
 0x4f0   : > { %10071 = vmatpush.bf16.msrb.mxu2 %v14010_v43  ;;  %v15378_v43 = vor.u32 %v16897_v16, %v15377_v5  ;;  %v10702_v57 = vor.u32 %v15718_v58, %v10699_v46  ;;  %v13939_v11 = vld [vmem:[%s17262_s12 + $0x1af8] sm:$0xf0] }
 0x4f1   : > { %10084 = vmatpush.bf16.msrb.mxu3 %v14586_v62  ;;  %10046 = vmatmul.bf16.vlgmr.msrb.gmra.mxu0 %v17448_v29  ;;  %v11275_v62 = vld [vmem:[%s17262_s12 + $0x628] sm:$0xf0] }
 0x4f2   : > { %10090 = vmatpush.bf16.msra.mxu0 %v15666_v51  ;;  %10059 = vmatmul.bf16.vlgmr.msrb.gmra.mxu1 %v17452_v33  ;;  %v16024_v51 = vld [vmem:[%s17262_s12 + $0xaf4] sm:$0xf]  ;;  %v11278_v63 = vor.u32 %v15862_v39, %v11275_v62  ;;  %v16510_v39 = vld [vmem:[%s17262_s12 + $0x1a24] sm:$0xf]  ;;  %v13867_v62 = vld [vmem:[%s17262_s12 + $0x1a68] sm:$0xf0] }
 0x4f3   : > { %10103 = vmatpush.bf16.msra.mxu1 %v11062_v40  ;;  %10072 = vmatmul.bf16.vlgmr.msrb.gmra.mxu2 %v17446_v28  ;;  %v20114_v40 = vadd.f32 %v9852_v15, %v9840_v14  ;;  %v11926_v41 = vor.u32 %v16024_v51, %v11923_v24  ;;  %v14515_v51 = vld [vmem:[%s17262_s12 + $0x1f78] sm:$0xf0]  ;;  %v16222_v24 = vld [vmem:[%s17262_s12 + $0x1124] sm:$0xf] }
 0x4f4   : > { %10116 = vmatpush.bf16.msra.mxu2 %v11638_v47  ;;  %10085 = vmatmul.bf16.vlgmr.msrb.gmra.mxu3 %v17462_v42  ;;  %v11350_v47 = vor.u32 %v15880_v52, %v11347_v17  ;;  %v15970_v52 = vld [vmem:[%s17262_s12 + $0x944] sm:$0xf]  ;;  %v11707_v17 = vld [vmem:[%s17262_s12 + $0x988] sm:$0xf0] }
 0x4f5   : > { %10129 = vmatpush.bf16.msra.mxu3 %v12214_v25  ;;  %v16006_v25 = vld [vmem:[%s17262_s12 + $0xa64] sm:$0xf]  ;;  %v11710_v46 = vor.u32 %v15970_v52, %v11707_v17 }
 0x4f6   : > { %10091 = vmatpush.bf16.msra.mxu0 %v15594_v1  ;;  %v20122_v3 = vpop.f32.mrf.mxu2  ;;  %v11851_v1 = vld [vmem:[%s17262_s12 + $0xaa8] sm:$0xf0]  ;;  %v9841_v36 = vpop.f32.mrf.mxu0 }
 0x4f7   : > { %10104 = vmatpush.bf16.msra.mxu1 %v10990_v54  ;;  %v15233_v54 = vld [vmem:[%s17262_s12 + $0x24d0] sm:$0xf]  ;;  %v9854_v38 = vpop.f32.mrf.mxu1  ;;  %v13795_v36 = vld [vmem:[%s17262_s12 + $0x19d8] sm:$0xf0] }
 0x4f8   : > { %10117 = vmatpush.bf16.msra.mxu2 %v11566_v20  ;;  %v16861_v20 = vld [vmem:[%s17262_s12 + $0x2514] sm:$0xf0] }
 0x4f9   : > { %10130 = vmatpush.bf16.msra.mxu3 %v12142_v10  ;;  %v11854_v10 = vor.u32 %v16006_v25, %v11851_v1  ;;  %v15234_v12 = vor.u32 %v16861_v20, %v15233_v54  ;;  %v13294_v25 = vor.u32 %v16366_v53, %v13291_v32  ;;  %v16654_v1 = vld [vmem:[%s17262_s12 + $0x1ea4] sm:$0xf]  ;;  %v20161_v54 = vld [vmem:[#allocation1] sm:$0xff]  ;;  %v13870_v20 = vor.u32 %v16510_v39, %v13867_v62  ;;  %v13579_v32 = vld [vmem:[%s17262_s12 + $0x1828] sm:$0xf0] }
 0x4fa   : > { %10092 = vmatpush.bf16.msra.mxu0 %v15522_v7  ;;  %v20132_v7 = vpop.f32.mrf.mxu3  ;;  %v16438_v53 = vld [vmem:[%s17262_s12 + $0x17e4] sm:$0xf] }
 0x4fb   : > { %10105 = vmatpush.bf16.msra.mxu1 %v10918_v48  ;;  %v11779_v48 = vld [vmem:[%s17262_s12 + $0xa18] sm:$0xf0] }
 0x4fc   : > { %10118 = vmatpush.bf16.msra.mxu2 %v11494_v45  ;;  %v15161_v45 = vld [vmem:[%s17262_s12 + $0x2440] sm:$0xf]  ;;  %v11782_v44 = vor.u32 %v15988_v6, %v11779_v48  ;;  %v16636_v6 = vld [vmem:[%s17262_s12 + $0x1e14] sm:$0xf]  ;;  %v14371_v48 = vld [vmem:[%s17262_s12 + $0x1e58] sm:$0xf0] }
 0x4fd   : > { %10131 = vmatpush.bf16.msra.mxu3 %v12070_v37  ;;  %v11131_v37 = vld [vmem:[%s17262_s12 + $0x508] sm:$0xf0]  ;;  %v15162_v16 = vor.u32 %v16843_v61, %v15161_v45  ;;  %v16186_v45 = vld [vmem:[%s17262_s12 + $0x1004] sm:$0xf]  ;;  %v14374_v0 = vor.u32 %v16636_v6, %v14371_v48  ;;  %v14083_v48 = vld [vmem:[%s17262_s12 + $0x1c18] sm:$0xf0] }
 0x4fe   : > { %10093 = vmatpush.bf16.msra.mxu0 %v15450_v2  ;;  %v16240_v2 = vld [vmem:[%s17262_s12 + $0x11b4] sm:$0xf]  ;;  %v9867_v5 = vpop.f32.mrf.mxu2  ;;  %v11134_v15 = vor.u32 %v15826_v9, %v11131_v37  ;;  %v13147_v61 = vld [vmem:[%s17262_s12 + $0x14c8] sm:$0xf0] }
 0x4ff   : > { %10106 = vmatpush.bf16.msra.mxu1 %v10846_v4  ;;  %v16384_v4 = vld [vmem:[%s17262_s12 + $0x1634] sm:$0xf]  ;;  %v12790_v14 = vor.u32 %v16240_v2, %v12787_v19  ;;  %v16618_v2 = vld [vmem:[%s17262_s12 + $0x1d84] sm:$0xf] }
 0x500   : > { %10119 = vmatpush.bf16.msra.mxu2 %v11422_v49  ;;  %v13363_v49 = vld [vmem:[%s17262_s12 + $0x1678] sm:$0xf0]  ;;  %v16168_v19 = vld [vmem:[%s17262_s12 + $0xf74] sm:$0xf] }
 0x501   : > { %10132 = vmatpush.bf16.msra.mxu3 %v11998_v55  ;;  %v13366_v55 = vor.u32 %v16384_v4, %v13363_v49  ;;  %v12499_v49 = vld [vmem:[%s17262_s12 + $0xfb8] sm:$0xf0]  ;;  %v16312_v5 = vld [vmem:[%s17262_s12 + $0x13f4] sm:$0xf] }
 0x502   : > { %10094 = vmatpush.bf16.msra.mxu0 %v15378_v43  ;;  %v16672_v43 = vld [vmem:[%s17262_s12 + $0x1f34] sm:$0xf]  ;;  %v9880_v58 = vpop.f32.mrf.mxu3  ;;  %v12502_v52 = vor.u32 %v16168_v19, %v12499_v49 }
 0x503   : > { %10107 = vmatpush.bf16.msra.mxu1 %v10774_v56  ;;  %v13942_v56 = vor.u32 %v16528_v8, %v13939_v11  ;;  %v16456_v8 = vld [vmem:[%s17262_s12 + $0x1874] sm:$0xf]  ;;  %v13651_v11 = vld [vmem:[%s17262_s12 + $0x18b8] sm:$0xf0] }
 0x504   : > { %10120 = vmatpush.bf16.msra.mxu2 %v11350_v47  ;;  %v12715_v47 = vld [vmem:[%s17262_s12 + $0x1168] sm:$0xf0] }
 0x505   : > { %10133 = vmatpush.bf16.msra.mxu3 %v11926_v41  ;;  %v14518_v41 = vor.u32 %v16672_v43, %v14515_v51  ;;  %v16150_v43 = vld [vmem:[%s17262_s12 + $0xee4] sm:$0xf]  ;;  %v13654_v51 = vor.u32 %v16456_v8, %v13651_v11  ;;  %v14011_v8 = vld [vmem:[%s17262_s12 + $0x1b88] sm:$0xf0] }
 0x506   : > { %10095 = vmatpush.bf16.msra.mxu0 %v15306_v59  ;;  %v12718_v59 = vor.u32 %v16222_v24, %v12715_v47  ;;  %v12427_v24 = vld [vmem:[%s17262_s12 + $0xf28] sm:$0xf0] }
 0x507   : > { %10108 = vmatpush.bf16.msra.mxu1 %v10702_v57  ;;  %v14443_v57 = vld [vmem:[%s17262_s12 + $0x1ee8] sm:$0xf0]  ;;  %v12430_v39 = vor.u32 %v16150_v43, %v12427_v24 }
 0x508   : > { %10121 = vmatpush.bf16.msra.mxu2 %v11278_v63  ;;  %v16204_v63 = vld [vmem:[%s17262_s12 + $0x1094] sm:$0xf]  ;;  %v14446_v38 = vor.u32 %v16654_v1, %v14443_v57  ;;  %v13003_v47 = vld [vmem:[%s17262_s12 + $0x13a8] sm:$0xf0]  ;;  %v13582_v57 = vor.u32 %v16438_v53, %v13579_v32  ;;  %v14947_v53 = vld [vmem:[%s17262_s12 + $0x22d8] sm:$0xf0] }
 0x509   : > { %10134 = vmatpush.bf16.msra.mxu3 %v11854_v10  ;;  %v12646_v10 = vor.u32 %v16204_v63, %v12643_v26  ;;  %v12355_v63 = vld [vmem:[%s17262_s12 + $0xe98] sm:$0xf0]  ;;  %v15595_v24 = vld [vmem:[%s17262_s12 + $0x27e8] sm:$0xf0]  ;;  %v16924_v32 = vld [vmem:[%s17262_s12 + $0x2714] sm:$0xf] }
 0x50a   : > { %10096 = vmatpush.bf16.msra.mxu0 %v15234_v12  ;;  %v13222_v12 = vor.u32 %v16348_v31, %v13219_v34  ;;  %v12931_v26 = vld [vmem:[%s17262_s12 + $0x1318] sm:$0xf0]  ;;  %v16420_v31 = vld [vmem:[%s17262_s12 + $0x1754] sm:$0xf] }
 0x50b   : > { %10109 = vmatpush.bf16.msra.mxu1 %v10630_v60  ;;  %v13798_v60 = vor.u32 %v16492_v35, %v13795_v36  ;;  %v13507_v34 = vld [vmem:[%s17262_s12 + $0x1798] sm:$0xf0] }
 0x50c   : > { %10122 = vmatpush.bf16.msra.mxu2 %v11206_v50  ;;  %v12571_v50 = vld [vmem:[%s17262_s12 + $0x1048] sm:$0xf0] }
 0x50d   : > { %10135 = vmatpush.bf16.msra.mxu3 %v11782_v44  ;;  %v12574_v9 = vor.u32 %v16186_v45, %v12571_v50  ;;  %v14299_v44 = vld [vmem:[%s17262_s12 + $0x1dc8] sm:$0xf0]  ;;  %v16114_v45 = vld [vmem:[%s17262_s12 + $0xdc4] sm:$0xf]  ;;  %v13510_v50 = vor.u32 %v16420_v31, %v13507_v34 }
 0x50e   : > { %10097 = vmatpush.bf16.msra.mxu0 %v15162_v16  ;;  %v20183_v4 = vpop.f32.mrf.mxu0  ;;  %v13075_v16 = vld [vmem:[%s17262_s12 + $0x1438] sm:$0xf0] }
 0x50f   : > { %10110 = vmatpush.bf16.msra.mxu1 %v10558_v13  ;;  %v20190_v13 = vpop.f32.mrf.mxu1  ;;  %v13078_v17 = vor.u32 %v16312_v5, %v13075_v16  ;;  %v16546_v16 = vld [vmem:[%s17262_s12 + $0x1b44] sm:$0xf] }
 0x510   : > { %10123 = vmatpush.bf16.msra.mxu2 %v11134_v15  ;;  %v14302_v15 = vor.u32 %v16618_v2, %v14299_v44  ;;  %v16960_v2 = vld [vmem:[%s17262_s12 + $0x2834] sm:$0xf]  ;;  %v15667_v44 = vld [vmem:[%s17262_s12 + $0x2878] sm:$0xf0]  ;;  %v14014_v43 = vor.u32 %v16546_v16, %v14011_v8  ;;  %v14587_v16 = vld [vmem:[%s17262_s12 + $0x2008] sm:$0xf0] }
 0x511   : > { %10098 = vmatmul.bf16.vlgmr.msra.gmra.mxu0 %v20161_v54  ;;  %10136 = vmatpush.bf16.msra.mxu3 %v11710_v46 }
 0x512   : > { %10142 = vmatpush.bf16.msrb.mxu0 %v12790_v14  ;;  %10111 = vmatmul.bf16.vlgmr.msra.gmra.mxu1 %v17394_v22  ;;  %v16474_v22 = vld [vmem:[%s17262_s12 + $0x1904] sm:$0xf]  ;;  %v16600_v14 = vld [vmem:[%s17262_s12 + $0x1cf4] sm:$0xf] }
 0x513   : > { %10155 = vmatpush.bf16.msrb.mxu1 %v13366_v55  ;;  %10124 = vmatmul.bf16.vlgmr.msra.gmra.mxu2 %v17401_v27  ;;  %v16330_v27 = vld [vmem:[%s17262_s12 + $0x1484] sm:$0xf]  ;;  %v14227_v55 = vld [vmem:[%s17262_s12 + $0x1d38] sm:$0xf0] }
 0x514   : > { %10168 = vmatpush.bf16.msrb.mxu2 %v13942_v56  ;;  %10137 = vmatmul.bf16.vlgmr.msra.gmra.mxu3 %v17392_v21  ;;  %v13150_v37 = vor.u32 %v16330_v27, %v13147_v61  ;;  %v13726_v21 = vor.u32 %v16474_v22, %v13723_v30  ;;  %v16294_v56 = vld [vmem:[%s17262_s12 + $0x1364] sm:$0xf]  ;;  %v14230_v58 = vor.u32 %v16600_v14, %v14227_v55  ;;  %v12859_v61 = vld [vmem:[%s17262_s12 + $0x1288] sm:$0xf0] }
 0x515   : > { %10181 = vmatpush.bf16.msrb.mxu3 %v14518_v41  ;;  %v13006_v62 = vor.u32 %v16294_v56, %v13003_v47  ;;  %v16582_v41 = vld [vmem:[%s17262_s12 + $0x1c64] sm:$0xf]  ;;  %v13435_v30 = vld [vmem:[%s17262_s12 + $0x1708] sm:$0xf0]  ;;  %v16780_v47 = vld [vmem:[%s17262_s12 + $0x2294] sm:$0xf] }
 0x516   : > { %10143 = vmatpush.bf16.msrb.mxu0 %v12718_v59  ;;  %v20200_v46 = vpop.f32.mrf.mxu2  ;;  %v14155_v59 = vld [vmem:[%s17262_s12 + $0x1ca8] sm:$0xf0]  ;;  %v9893_v1 = vpop.f32.mrf.mxu0  ;;  %v16258_v27 = vld [vmem:[%s17262_s12 + $0x1244] sm:$0xf] }
 0x517   : > { %10156 = vmatpush.bf16.msrb.mxu1 %v13294_v25  ;;  %v16132_v25 = vld [vmem:[%s17262_s12 + $0xe54] sm:$0xf]  ;;  %v20210_v35 = vpop.f32.mrf.mxu3  ;;  %v9906_v36 = vpop.f32.mrf.mxu1  ;;  %v16402_v22 = vld [vmem:[%s17262_s12 + $0x16c4] sm:$0xf]  ;;  %v12862_v5 = vor.u32 %v16258_v27, %v12859_v61  ;;  %v15019_v14 = vld [vmem:[%s17262_s12 + $0x2368] sm:$0xf0] }
 0x518   : > { %10169 = vmatpush.bf16.msrb.mxu2 %v13870_v20  ;;  %v16276_v20 = vld [vmem:[%s17262_s12 + $0x12d4] sm:$0xf]  ;;  %v13438_v11 = vor.u32 %v16402_v22, %v13435_v30  ;;  %v14659_v30 = vld [vmem:[%s17262_s12 + $0x2098] sm:$0xf0] }
 0x519   : > { %10182 = vmatpush.bf16.msrb.mxu3 %v14446_v38  ;;  %v14158_v38 = vor.u32 %v16582_v41, %v14155_v59  ;;  %v12934_v6 = vor.u32 %v16276_v20, %v12931_v26  ;;  %v16762_v41 = vld [vmem:[%s17262_s12 + $0x2204] sm:$0xf]  ;;  %v16744_v1 = vld [vmem:[%s17262_s12 + $0x2174] sm:$0xf]  ;;  %v15379_v26 = vld [vmem:[%s17262_s12 + $0x2638] sm:$0xf0] }
 0x51a   : > { %10144 = vmatpush.bf16.msrb.mxu0 %v12646_v10  ;;  %v16564_v10 = vld [vmem:[%s17262_s12 + $0x1bd4] sm:$0xf]  ;;  %v16906_v59 = vld [vmem:[%s17262_s12 + $0x2684] sm:$0xf] }
 0x51b   : > { %10157 = vmatpush.bf16.msrb.mxu1 %v13222_v12  ;;  %v12358_v12 = vor.u32 %v16132_v25, %v12355_v63  ;;  %v15451_v25 = vld [vmem:[%s17262_s12 + $0x26c8] sm:$0xf0]  ;;  %v16888_v20 = vld [vmem:[%s17262_s12 + $0x25f4] sm:$0xf] }
 0x51c   : > { %10170 = vmatpush.bf16.msrb.mxu2 %v13798_v60  ;;  %v12283_v60 = vld [vmem:[%s17262_s12 + $0xe08] sm:$0xf0]  ;;  %v15382_v36 = vor.u32 %v16888_v20, %v15379_v26  ;;  %v16708_v22 = vld [vmem:[%s17262_s12 + $0x2054] sm:$0xf] }
 0x51d   : > { %10183 = vmatpush.bf16.msrb.mxu3 %v14374_v0  ;;  %v16816_v0 = vld [vmem:[%s17262_s12 + $0x23b4] sm:$0xf]  ;;  %v12286_v49 = vor.u32 %v16114_v45, %v12283_v60  ;;  %v9866_v45 = vadd.f32 %v20122_v3, %v20114_v40  ;;  %v14662_v40 = vor.u32 %v16708_v22, %v14659_v30 }
 0x51e   : > { %10145 = vmatpush.bf16.msrb.mxu0 %v12574_v9  ;;  %v15091_v9 = vld [vmem:[%s17262_s12 + $0x23f8] sm:$0xf0]  ;;  %v9919_v19 = vpop.f32.mrf.mxu2  ;;  %v312_v3 = vld [vmem:[#allocation2 + $0x18] sm:$0xff] }
 0x51f   : > { %10158 = vmatpush.bf16.msrb.mxu1 %v13150_v37  ;;  %v14086_v37 = vor.u32 %v16564_v10, %v14083_v48  ;;  %v9932_v55 = vpop.f32.mrf.mxu3  ;;  %v14731_v10 = vld [vmem:[%s17262_s12 + $0x2128] sm:$0xf0]  ;;  %v10248_v19 = vrot.slane %v9866_v45, 4 }
 0x520   : > { %10171 = vmatpush.bf16.msrb.mxu2 %v13726_v21  ;;  %v9892_v21 = vadd.f32 %v20183_v4, %v20132_v7 }
 0x521   : > { %10184 = vmatpush.bf16.msrb.mxu3 %v14302_v15  ;;  %v15094_v15 = vor.u32 %v16816_v0, %v15091_v9  ;;  %v16852_v9 = vld [vmem:[%s17262_s12 + $0x24d4] sm:$0xf] }
 0x522   : > { %10146 = vmatpush.bf16.msrb.mxu0 %v12502_v52  ;;  %v15670_v52 = vor.u32 %v16960_v2, %v15667_v44  ;;  %v9905_v7 = vadd.f32 %v20190_v13, %v9892_v21 }
 0x523   : > { %10159 = vmatpush.bf16.msrb.mxu1 %v13078_v17  ;;  %v16798_v17 = vld [vmem:[%s17262_s12 + $0x2324] sm:$0xf] }
 0x524   : > { %10172 = vmatpush.bf16.msrb.mxu2 %v13654_v51  ;;  %v16942_v51 = vld [vmem:[%s17262_s12 + $0x27a4] sm:$0xf]  ;;  %v15022_v4 = vor.u32 %v16798_v17, %v15019_v14  ;;  %v9918_v13 = vadd.f32 %v20200_v46, %v9905_v7 }
 0x525   : > { %10185 = vmatpush.bf16.msrb.mxu3 %v14230_v58  ;;  %v15598_v56 = vor.u32 %v16942_v51, %v15595_v24  ;;  %v15523_v58 = vld [vmem:[%s17262_s12 + $0x2758] sm:$0xf0] }
 0x526   : > { %10147 = vmatpush.bf16.msrb.mxu0 %v12430_v39  ;;  %v14950_v39 = vor.u32 %v16780_v47, %v14947_v53  ;;  %v9931_v46 = vadd.f32 %v20210_v35, %v9918_v13 }
 0x527   : > { %10160 = vmatpush.bf16.msrb.mxu1 %v13006_v62  ;;  %v15526_v62 = vor.u32 %v16924_v32, %v15523_v58 }
 0x528   : > { %10173 = vmatpush.bf16.msrb.mxu2 %v13582_v57  ;;  %v14803_v57 = vld [vmem:[%s17262_s12 + $0x21b8] sm:$0xf0] }
 0x529   : > { %10186 = vmatpush.bf16.msrb.mxu3 %v14158_v38  ;;  %v14806_v34 = vor.u32 %v16744_v1, %v14803_v57  ;;  %v16726_v38 = vld [vmem:[%s17262_s12 + $0x20e4] sm:$0xf] }
 0x52a   : > { %10148 = vmatpush.bf16.msrb.mxu0 %v12358_v12  ;;  %v16870_v12 = vld [vmem:[%s17262_s12 + $0x2564] sm:$0xf] }
 0x52b   : > { %10161 = vmatpush.bf16.msrb.mxu1 %v12934_v6  ;;  %v15307_v6 = vld [vmem:[%s17262_s12 + $0x25a8] sm:$0xf0] }
 0x52c   : > { %10174 = vmatpush.bf16.msrb.mxu2 %v13510_v50  ;;  %v14734_v50 = vor.u32 %v16726_v38, %v14731_v10  ;;  %v15310_v61 = vor.u32 %v16870_v12, %v15307_v6 }
 0x52d   : > { %10187 = vmatpush.bf16.msrb.mxu3 %v14086_v37  ;;  %v15235_v37 = vld [vmem:[%s17262_s12 + $0x2518] sm:$0xf0] }
 0x52e   : > { %10149 = vmatpush.bf16.msrb.mxu0 %v12286_v49  ;;  %v9943_v63 = vpop.f32.mrf.mxu0  ;;  %v15238_v49 = vor.u32 %v16852_v9, %v15235_v37 }
 0x52f   : > { %10162 = vmatpush.bf16.msrb.mxu1 %v12862_v5  ;;  %v9944_v31 = vadd.f32 %v9943_v63, %v9931_v46  ;;  %v16690_v5 = vld [vmem:[%s17262_s12 + $0x1fc4] sm:$0xf] }
 0x530   : > { %10175 = vmatpush.bf16.msrb.mxu2 %v13438_v11  ;;  %v16834_v11 = vld [vmem:[%s17262_s12 + $0x2444] sm:$0xf]  ;;  %v14590_v55 = vor.u32 %v16690_v5, %v14587_v16 }
 0x531   : > { %10188 = vmatpush.bf16.msrb.mxu3 %v14014_v43  ;;  %10150 = vmatmul.bf16.vlgmr.msrb.gmra.mxu0 %v17396_v23  ;;  %v14875_v23 = vld [vmem:[%s17262_s12 + $0x2248] sm:$0xf0] }
 0x532   : > { %10194 = vmatpush.bf16.msra.mxu0 %v15094_v15  ;;  %10163 = vmatmul.bf16.vlgmr.msrb.gmra.mxu1 %v17448_v29  ;;  %v15454_v29 = vor.u32 %v16906_v59, %v15451_v25  ;;  %v15163_v15 = vld [vmem:[%s17262_s12 + $0x2488] sm:$0xf0] }
 0x533   : > { %10207 = vmatpush.bf16.msra.mxu1 %v15670_v52  ;;  %10176 = vmatmul.bf16.vlgmr.msrb.gmra.mxu2 %v17452_v33  ;;  %v14878_v33 = vor.u32 %v16762_v41, %v14875_v23  ;;  %v15166_v43 = vor.u32 %v16834_v11, %v15163_v15 }
 0x534   : > { %10189 = vmatmul.bf16.vlgmr.msrb.gmra.mxu3 %v17446_v28  ;;  %v9956_v28 = vpop.f32.mrf.mxu1 }
 0x535   : > { %v9957_v35 = vadd.f32 %v9956_v28, %v9944_v31 }
 0x536   : > { %10195 = vmatpush.bf16.msra.mxu0 %v15022_v4  ;;  %v9969_v48 = vpop.f32.mrf.mxu2  ;;  %v9945_v2 = vpop.f32.mrf.mxu0 }
 0x537   : > { %10208 = vmatpush.bf16.msra.mxu1 %v15598_v56  ;;  %v9970_v60 = vadd.f32 %v9969_v48, %v9957_v35  ;;  %v9982_v27 = vpop.f32.mrf.mxu3 }
 0x539   : > { %v9983_v0 = vadd.f32 %v9982_v27, %v9970_v60 }
 0x53a   : > { %10196 = vmatpush.bf16.msra.mxu0 %v14950_v39 }
 0x53b   : > { %10209 = vmatpush.bf16.msra.mxu1 %v15526_v62  ;;  %v10249_v21 = vrot.slane %v9983_v0, 2 }
 0x53c   : > { %v9958_v44 = vpop.f32.mrf.mxu1 }
 0x53d   : > { %v10264_v8 = vsel %vm10253_vm1, %v10248_v19, %v10249_v21 }
 0x53e   : > { %10197 = vmatpush.bf16.msra.mxu0 %v14878_v33  ;;  %v10265_v52 = vsel %vm10255_vm2, %v19978_v18, %v10264_v8  ;;  %v9971_v17 = vpop.f32.mrf.mxu2 }
 0x53f   : > { %10210 = vmatpush.bf16.msra.mxu1 %v15454_v29  ;;  %v10275_v14 = vadd.f32 %v10265_v52, %v312_v3  ;;  %v9984_v51 = vpop.f32.mrf.mxu3 }
 0x541   : > { %10280 = vst [vmem:[#allocation2 + $0x18] sm:$0xff] %v10275_v14 }
 0x542   : > { %10198 = vmatpush.bf16.msra.mxu0 %v14806_v34 }
 0x543   : > { %10211 = vmatpush.bf16.msra.mxu1 %v15382_v36 }
 0x546   : > { %10199 = vmatpush.bf16.msra.mxu0 %v14734_v50 }
 0x547   : > { %10212 = vmatpush.bf16.msra.mxu1 %v15310_v61 }
 0x54a   : > { %10200 = vmatpush.bf16.msra.mxu0 %v14662_v40  ;;  %v313_v40 = vld [vmem:[#allocation2 + $0x20] sm:$0xf] }
 0x54b   : > { %10213 = vmatpush.bf16.msra.mxu1 %v15238_v49 }
 0x54e   : > { %10201 = vmatpush.bf16.msra.mxu0 %v14590_v55  ;;  %v9995_v24 = vpop.f32.mrf.mxu0 }
 0x54f   : > { %10214 = vmatpush.bf16.msra.mxu1 %v15166_v43  ;;  %v10008_v7 = vpop.f32.mrf.mxu1 }
 0x550   : > { %v10009_v4 = vadd.f32 %v10008_v7, %v9995_v24 }
 0x551   : > { %10202 = vmatmul.bf16.vlgmr.msra.gmra.mxu0 %v17462_v42 }
 0x552   : > { %10215 = vmatmul.bf16.vlgmr.msra.gmra.mxu1 %v20161_v54 }
 0x556   : > { %v10021_v56 = vpop.f32.mrf.mxu2  ;;  %v9997_v53 = vpop.f32.mrf.mxu0 }
 0x557   : > { %v10022_v47 = vadd.f32 %v10021_v56, %v10009_v4  ;;  %v10034_v18 = vpop.f32.mrf.mxu3  ;;  %v10010_v58 = vpop.f32.mrf.mxu1 }
 0x559   : > { %v10035_v32 = vadd.f32 %v10034_v18, %v10022_v47 }
 0x55e   : > { %v10023_v13 = vpop.f32.mrf.mxu2 }
 0x55f   : > { %v10036_v39 = vpop.f32.mrf.mxu3 }
 0x56e   : > { %v10047_v62 = vpop.f32.mrf.mxu0 }
 0x56f   : > { %v10048_v41 = vadd.f32 %v10047_v62, %v10035_v32  ;;  %v10060_v23 = vpop.f32.mrf.mxu1 }
 0x571   : > { %v10061_v59 = vadd.f32 %v10060_v23, %v10048_v41 }
 0x576   : > { %v10073_v25 = vpop.f32.mrf.mxu2  ;;  %v10049_v42 = vpop.f32.mrf.mxu0 }
 0x577   : > { %v10074_v46 = vadd.f32 %v10073_v25, %v10061_v59  ;;  %v10086_v33 = vpop.f32.mrf.mxu3  ;;  %v10062_v54 = vpop.f32.mrf.mxu1 }
 0x579   : > { %v10087_v29 = vadd.f32 %v10086_v33, %v10074_v46 }
 0x57e   : > { %v10075_v1 = vpop.f32.mrf.mxu2 }
 0x57f   : > { %v10088_v57 = vpop.f32.mrf.mxu3 }
 0x58e   : > { %v10099_v63 = vpop.f32.mrf.mxu0 }
 0x58f   : > { %v10112_v28 = vpop.f32.mrf.mxu1  ;;  %v10100_v21 = vadd.f32 %v10099_v63, %v10087_v29 }
 0x596   : > { %v10125_v20 = vpop.f32.mrf.mxu2  ;;  %v10101_v26 = vpop.f32.mrf.mxu0 }
 0x597   : > { %v10138_v31 = vpop.f32.mrf.mxu3  ;;  %v10114_v34 = vpop.f32.mrf.mxu1  ;;  %v10126_v6 = vadd.f32 %v10125_v20, %v10112_v28 }
 0x599   : > { %v10139_v50 = vadd.f32 %v10138_v31, %v10126_v6 }
 0x59e   : > { %v10127_v35 = vpop.f32.mrf.mxu2 }
 0x59f   : > { %v10140_v36 = vpop.f32.mrf.mxu3 }
 0x5ae   : > { %v10151_v38 = vpop.f32.mrf.mxu0 }
 0x5af   : > { %v10164_v10 = vpop.f32.mrf.mxu1  ;;  %v10152_v61 = vadd.f32 %v10151_v38, %v10139_v50 }
 0x5b1   : > { %v10165_v30 = vadd.f32 %v10164_v10, %v10152_v61 }
 0x5b6   : > { %v10177_v12 = vpop.f32.mrf.mxu2  ;;  %v10153_v48 = vpop.f32.mrf.mxu0 }
 0x5b7   : > { %v10190_v45 = vpop.f32.mrf.mxu3  ;;  %v10166_v60 = vpop.f32.mrf.mxu1  ;;  %v10178_v0 = vadd.f32 %v10177_v12, %v10165_v30 }
 0x5b9   : > { %v10191_v9 = vadd.f32 %v10190_v45, %v10178_v0 }
 0x5be   : > { %v10179_v27 = vpop.f32.mrf.mxu2 }
 0x5bf   : > { %v10192_v22 = vpop.f32.mrf.mxu3 }
 0x5ce   : > { %v10203_v37 = vpop.f32.mrf.mxu0 }
 0x5cf   : > { %v10204_v2 = vadd.f32 %v10203_v37, %v10191_v9  ;;  %v10216_v44 = vpop.f32.mrf.mxu1 }
 0x5d1   : > { %v10217_v19 = vadd.f32 %v10216_v44, %v10204_v2 }
 0x5d3   : > { %v10250_v3 = vrot.slane %v10217_v19, 6 }
 0x5d4   : > { %10285 = sbr.rel (%p15671_p3) target bundleno = 1518 (0x5ee), region = 48 }
 0x5d5   : > { %v10266_v49 = vsel %vm10251_vm0, %v10100_v21, %v10250_v3 }
 0x5d6   : > { %v10276_v5 = vadd.f32 %v10266_v49, %v313_v40  ;;  %v10205_v16 = vpop.f32.mrf.mxu0 }
 0x5d7   : > { %v10218_v8 = vpop.f32.mrf.mxu1 }
 0x5d8   : > { %10281 = vst [vmem:[#allocation2 + $0x20] sm:$0xf] %v10276_v5 }
 0x5d9   : > { %v10291_v11 = vld [vmem:[%s17278_s15] sm:$0xff]  ;;  %v10292_v7 = vld [vmem:[%s17278_s15 + $0x8] sm:$0xff]  ;;  %v10286_v53 = vld [vmem:[#allocation2] sm:$0xff] }
 0x5da   : > { %v10297_v15 = vperm.slane %v10291_v11, 0  ;;  %v10298_v52 = vperm.slane %v10291_v11, 1  ;;  %v10299_v17 = vperm.slane %v10291_v11, 2  ;;  %v10300_v14 = vperm.slane %v10291_v11, 3  ;;  %v10287_v23 = vld [vmem:[#allocation2 + $0x8] sm:$0xff]  ;;  %v10351_v42 = vld [vmem:[%s17283_s29] sm:$0xff] }
 0x5db   : > { %v10301_v55 = vperm.slane %v10291_v11, 4  ;;  %v10302_v43 = vperm.slane %v10291_v11, 5  ;;  %v10303_v51 = vperm.slane %v10291_v11, 6  ;;  %v10304_v24 = vperm.slane %v10291_v11, 7  ;;  %v10352_v63 = vld [vmem:[%s17283_s29 + $0x8] sm:$0xff]  ;;  %v10288_v31 = vld [vmem:[#allocation2 + $0x10] sm:$0xff] }
 0x5dc   : > { %v10315_v4 = vrot.slane %v10298_v52, 6  ;;  %v10316_v56 = vrot.slane %v10299_v17, 4  ;;  %v10317_v47 = vrot.slane %v10300_v14, 2  ;;  %v10305_v18 = vperm.slane %v10292_v7, 0  ;;  %v10293_v38 = vld [vmem:[%s17278_s15 + $0x10] sm:$0x3] }
 0x5dd   : > { %v10318_v32 = vrot.slane %v10302_v43, 6  ;;  %v10319_v58 = vrot.slane %v10303_v51, 4  ;;  %v10320_v13 = vrot.slane %v10304_v24, 2  ;;  %v10306_v39 = vperm.slane %v10292_v7, 1  ;;  %v10353_v50 = vld [vmem:[%s17283_s29 + $0x10] sm:$0xff]  ;;  %v10289_v37 = vld [vmem:[#allocation2 + $0x18] sm:$0xff] }
 0x5de   : > { %v10328_v62 = vsel %vm10251_vm0, %v10297_v15, %v10315_v4  ;;  %v10329_v41 = vsel %vm10253_vm1, %v10316_v56, %v10317_v47  ;;  %v10307_v59 = vperm.slane %v10292_v7, 2  ;;  %v10308_v25 = vperm.slane %v10292_v7, 3  ;;  %v10354_v49 = vld [vmem:[%s17283_s29 + $0x18] sm:$0xff]  ;;  %v10355_v8 = vld [vmem:[%s17283_s29 + $0x20] sm:$0xf] }
 0x5df   : > { %v10330_v46 = vsel %vm10255_vm2, %v10328_v62, %v10329_v41  ;;  %v10331_v33 = vsel %vm10251_vm0, %v10301_v55, %v10318_v32  ;;  %v10332_v54 = vsel %vm10253_vm1, %v10319_v58, %v10320_v13  ;;  %v10321_v29 = vrot.slane %v10306_v39, 6  ;;  %v10290_v21 = vld [vmem:[#allocation2 + $0x20] sm:$0xf] }
 0x5e0   : > { %v10346_v1 = vadd.f32 %v10330_v46, %v10286_v53  ;;  %v10333_v57 = vsel %vm10255_vm2, %v10331_v33, %v10332_v54  ;;  %v10322_v28 = vrot.slane %v10307_v59, 4  ;;  %v10323_v20 = vrot.slane %v10308_v25, 2 }
 0x5e1   : > { %v10347_v26 = vadd.f32 %v10333_v57, %v10287_v23  ;;  %v10334_v34 = vsel %vm10251_vm0, %v10305_v18, %v10321_v29  ;;  %v10309_v35 = vperm.slane %v10292_v7, 4  ;;  %v10310_v36 = vperm.slane %v10292_v7, 5 }
 0x5e2   : > { %v10356_v10 = vmul.f32 %v10351_v42, %v10346_v1  ;;  %v10335_v12 = vsel %vm10253_vm1, %v10322_v28, %v10323_v20  ;;  %v10311_v6 = vperm.slane %v10292_v7, 6  ;;  %v10312_v48 = vperm.slane %v10292_v7, 7 }
 0x5e3   : > { %v10357_v45 = vmul.f32 %v10352_v63, %v10347_v26  ;;  %v10336_v60 = vsel %vm10255_vm2, %v10334_v34, %v10335_v12  ;;  %v10324_v27 = vrot.slane %v10310_v36, 6  ;;  %v10313_v61 = vperm.slane %v10293_v38, 0 }
 0x5e4   : > { %10361 = vst [vmem:[%s17288_s26] sm:$0xff] %v10356_v10  ;;  %v10348_v22 = vadd.f32 %v10336_v60, %v10288_v31  ;;  %v10325_v30 = vrot.slane %v10311_v6, 4  ;;  %v10326_v0 = vrot.slane %v10312_v48, 2  ;;  %v10314_v9 = vperm.slane %v10293_v38, 1 }
 0x5e5   : > { %10362 = vst [vmem:[%s17288_s26 + $0x8] sm:$0xff] %v10357_v45  ;;  %v10337_v2 = vsel %vm10251_vm0, %v10309_v35, %v10324_v27 }
 0x5e6   : > { %v10358_v44 = vmul.f32 %v10353_v50, %v10348_v22  ;;  %v10338_v19 = vsel %vm10253_vm1, %v10325_v30, %v10326_v0  ;;  %v10327_v40 = vrot.slane %v10314_v9, 6 }
 0x5e7   : > { %v10339_v3 = vsel %vm10255_vm2, %v10337_v2, %v10338_v19 }
 0x5e8   : > { %10363 = vst [vmem:[%s17288_s26 + $0x10] sm:$0xff] %v10358_v44  ;;  %v10349_v5 = vadd.f32 %v10339_v3, %v10289_v37  ;;  %v10340_v16 = vsel %vm10251_vm0, %v10313_v61, %v10327_v40 }
 0x5e9   : > { %v10350_v11 = vadd.f32 %v10340_v16, %v10290_v21 }
 0x5ea   : > { %v10359_v15 = vmul.f32 %v10354_v49, %v10349_v5 }
 0x5eb   : > { %v10360_v52 = vmul.f32 %v10355_v8, %v10350_v11 }
 0x5ec   : > { %10364 = vst [vmem:[%s17288_s26 + $0x18] sm:$0xff] %v10359_v15 }
 0x5ed   : > { %10365 = vst [vmem:[%s17288_s26 + $0x20] sm:$0xf] %v10360_v52 }
 0x5ee PF: > { %s17_s22 = sadd.s32 1, %s17153_s22   ;;  %s20333_s6 = sld [smem:[#allocation6_spill]] }
 0x5ef   : > { %p14_p4 = scmp.ge.s32.totalorder %s17_s22, 18   ;;  %s20334_s9 = sld [smem:[#allocation7_spill]] }
 0x5f0   : > { %s20335_s15 = smov %s17129_s16  ;;  %s20336_s16 = smov %s17133_s17 }
 0x5f1   : > { %s20337_s17 = smov %s17250_s8  ;;  %s20338_s18 = smov %s17145_s20 }
 0x5f2   : > { %s20339_s19 = smov %s17149_s21  ;;  %16 = sbr.rel (!%p14_p4) target bundleno = 5 (0x5), region = 93 }
 0x5f4   : > { %s20340_s20 = smov %s20333_s6 }
 0x5f5   : > { %s20341_s21 = smov %s20334_s9 }
 0x5f7   :  { %10388 = vsyncpa [#allocation4], 1 }
 0x5f8   :  { %10390 = vsyncpa [#allocation4 + $0x1], 1 }

</bundles_post_ra>
